<compile_context>
chip_gen: v6e
topology: v6e:2x2x1
jax: 0.10.0
libtpu: 0.0.40
codegen_flags: <defaults>
</compile_context>

<pallas_src>
import functools

import jax
import jax.numpy as jnp
from jax import lax
from jax.experimental import pallas as pl
from jax.experimental.pallas import tpu as pltpu

BN_EPS = 1e-5
VMEM_LIMIT_BYTES = 32 * 1024 * 1024   # explicit scoped-VMEM request; fits v5e/v6e/v7x
MAX_ROW_TILE = 32                     # output rows produced per grid step


def _round_up(x, m):
    return (x + m - 1) // m * m


def _row_tile(h, max_rows=MAX_ROW_TILE):
    t = min(h, max_rows)
    while h % t:
        t -= 1
    return t


# ----------------------------- Pallas kernels ------------------------------

def _conv_kernel(x_ref, w_ref, s_ref, b_ref, o_ref, *, kh, kw, th, w_out, relu):
    """Conv (kh x kw, stride 1) + folded-BN affine + optional ReLU.

    x_ref: (1, H+2p, Cin_p, W+2p)  bf16  whole padded sample (resident across row tiles)
    w_ref: (kh, kw, Cout, Cin_p)   bf16
    s_ref, b_ref: (Cout, 1)        f32   folded BN scale / shift
    o_ref: (1, th, Cout, w_out)           one tile of output rows
    """
    cout = o_ref.shape[2]
    r0 = pl.program_id(1) * th

    def row_body(h, carry):
        acc = jnp.zeros((cout, w_out), jnp.float32)
        for dy in range(kh):
            # One padded input row: (Cin_p, W+2p); channels in sublanes, W in lanes.
            row = x_ref[0, r0 + h + dy]
            for dx in range(kw):
                # (Cout, Cin_p) @ (Cin_p, W) -> lane-dense (Cout, W) on the MXU.
                acc += jnp.dot(w_ref[dy, dx], row[:, dx:dx + w_out],
                               preferred_element_type=jnp.float32)
        y = acc * s_ref[...] + b_ref[...]          # f32 affine (folded BN + bias)
        if relu:
            y = jnp.maximum(y, 0.0)
        o_ref[0, h] = y.astype(o_ref.dtype)
        return carry

    lax.fori_loop(0, th, row_body, 0)


def conv2d_pallas(x, w, scale, shift, *, relu, out_dtype):
    """x: (N, H, Cin_p, W); w: (KH, KW, Cout, Cin_p) -> (N, H, Cout, W)."""
    N, H, cin_p, W = x.shape
    KH, KW, Cout, _ = w.shape
    ph, pw = (KH - 1) // 2, (KW - 1) // 2
    xp = jnp.pad(x, ((0, 0), (ph, ph), (0, 0), (pw, pw)))
    Hp, Wp = H + 2 * ph, W + 2 * pw
    th = _row_tile(H)
    kern = functools.partial(_conv_kernel, kh=KH, kw=KW, th=th, w_out=W, relu=relu)
    return pl.pallas_call(
        kern,
        out_shape=jax.ShapeDtypeStruct((N, H, Cout, W), out_dtype),
        grid=(N, H // th),
        in_specs=[
            # Whole padded sample stays resident across the row-tile axis (1 DMA / sample).
            pl.BlockSpec((1, Hp, cin_p, Wp), lambda n, r: (n, 0, 0, 0)),
            pl.BlockSpec((KH, KW, Cout, cin_p), lambda n, r: (0, 0, 0, 0)),
            pl.BlockSpec((Cout, 1), lambda n, r: (0, 0)),
            pl.BlockSpec((Cout, 1), lambda n, r: (0, 0)),
        ],
        out_specs=pl.BlockSpec((1, th, Cout, W), lambda n, r: (n, r, 0, 0)),
        compiler_params=pltpu.CompilerParams(
            dimension_semantics=("parallel", "parallel"),
            vmem_limit_bytes=VMEM_LIMIT_BYTES),
    )(xp, w, scale.reshape(Cout, 1), shift.reshape(Cout, 1))


def _l2norm_kernel(x_ref, o_ref, n_ref):
    # x_ref: (1, R, Q) f32 -- per-sample L2 normalization of the whole tensor.
    # TODO(synk): no epsilon, exactly like the torch reference (x / sqrt(sum(x^2)));
    # an all-zero sample yields inf/NaN in both implementations.
    x = x_ref[0]
    ss = jnp.sum(x * x)
    inv = lax.rsqrt(ss)                    # EUP rsqrt + multiply instead of divide
    o_ref[0] = x * inv
    n_ref[0] = (ss * inv) * jnp.ones((1, 1), jnp.float32)   # == sqrt(ss)


def l2_normalize(x):
    """x: (N, R, Q) f32 -> (x / ||x||_2 per sample, norms (N, 1, 1))."""
    N, R, Q = x.shape
    return pl.pallas_call(
        _l2norm_kernel,
        out_shape=(jax.ShapeDtypeStruct((N, R, Q), jnp.float32),
                   jax.ShapeDtypeStruct((N, 1, 1), jnp.float32)),
        grid=(N,),
        in_specs=[pl.BlockSpec((1, R, Q), lambda n: (n, 0, 0))],
        out_specs=(pl.BlockSpec((1, R, Q), lambda n: (n, 0, 0)),
                   pl.BlockSpec((1, 1, 1), lambda n: (n, 0, 0))),
        compiler_params=pltpu.CompilerParams(
            dimension_semantics=("parallel",),
            vmem_limit_bytes=VMEM_LIMIT_BYTES),
    )(x)


# ------------------------------ JAX glue ops --------------------------------
# Layout between layers is channels-first "NHCW": (N, H, C, W), bf16.

def maxpool2(x):
    N, H, C, W = x.shape
    return x.reshape(N, H // 2, 2, C, W // 2, 2).max(axis=(2, 5))


def upsample2_bilinear(x):
    """nn.Upsample(scale_factor=2, mode='bilinear', align_corners=True) on (N,H,C,W)."""
    # TODO(synk): could be fused into the following conv kernel's input indexing;
    # kept as XLA glue but de-gathered (rows gathered once, then columns).
    N, H, C, W = x.shape
    Ho, Wo = 2 * H, 2 * W
    dt = x.dtype
    ys = jnp.arange(Ho, dtype=jnp.float32) * ((H - 1) / (Ho - 1))
    xs = jnp.arange(Wo, dtype=jnp.float32) * ((W - 1) / (Wo - 1))
    y0 = jnp.floor(ys).astype(jnp.int32)
    x0 = jnp.floor(xs).astype(jnp.int32)
    y1 = jnp.minimum(y0 + 1, H - 1)
    x1 = jnp.minimum(x0 + 1, W - 1)
    wy = (ys - y0.astype(jnp.float32)).astype(dt).reshape(1, Ho, 1, 1)
    wx = (xs - x0.astype(jnp.float32)).astype(dt).reshape(1, 1, 1, Wo)
    rows = x[:, y0] * (1 - wy) + x[:, y1] * wy                      # (N, Ho, C, W)
    out = rows[:, :, :, x0] * (1 - wx) + rows[:, :, :, x1] * wx      # (N, Ho, C, Wo)
    return out


# --------------------------- module building blocks --------------------------

def double_conv(x, p, out_dtype=jnp.bfloat16):
    x = conv2d_pallas(x, p[0]["w"], p[0]["scale"], p[0]["shift"],
                      relu=True, out_dtype=jnp.bfloat16)
    x = conv2d_pallas(x, p[1]["w"], p[1]["scale"], p[1]["shift"],
                      relu=True, out_dtype=out_dtype)
    return x


def down_block(x, p, out_dtype=jnp.bfloat16):
    return double_conv(maxpool2(x), p, out_dtype=out_dtype)


def up_block(x, p):
    return double_conv(upsample2_bilinear(x), p)


def outconv(x, p):
    return conv2d_pallas(x, p["w"], p["scale"], p["shift"],
                         relu=False, out_dtype=jnp.float32)


# ------------------------------ parameter init -------------------------------

def _init_conv(key, cin, cout, cin_pad=None):
    cin_p = cin if cin_pad is None else cin_pad
    kw_, kb, kg, kbe = jax.random.split(key, 4)
    w = 0.1 * jax.random.normal(kw_, (3, 3, cout, cin), jnp.float32)
    if cin_p != cin:
        w = jnp.pad(w, ((0, 0), (0, 0), (0, 0), (0, cin_p - cin)))
    b = 0.05 * jax.random.normal(kb, (cout,), jnp.float32)
    gamma = 1.0 + 0.05 * jax.random.normal(kg, (cout,), jnp.float32)
    beta = 0.05 * jax.random.normal(kbe, (cout,), jnp.float32)
    # eval-mode BatchNorm (running_mean=0, running_var=1) folded with conv bias.
    # TODO(synk): when porting a trained checkpoint, fold the real running stats
    # and permute torch (cout, cin, kh, kw) weights into (kh, kw, cout, cin).
    scale = gamma / jnp.sqrt(1.0 + BN_EPS)
    shift = beta + b * scale
    return {"w": w.astype(jnp.bfloat16), "scale": scale, "shift": shift}


def _init_double_conv(key, cin, cout, cin_pad=None):
    k1, k2 = jax.random.split(key)
    return (_init_conv(k1, cin, cout, cin_pad=cin_pad), _init_conv(k2, cout, cout))


def init_params(key, n_channels):
    cin0 = _round_up(n_channels, 8)     # first-layer channels padded for sublane alignment
    ks = jax.random.split(key, 12)
    params = {
        "inc": _init_double_conv(ks[0], n_channels, 24, cin_pad=cin0),
        "down1": _init_double_conv(ks[1], 24, 24),
        "down2": _init_double_conv(ks[2], 24, 48),
        "down3": _init_double_conv(ks[3], 48, 16),
        "down4_mu": _init_double_conv(ks[4], 16, 16),
        "down4_std": _init_double_conv(ks[5], 16, 16),
        "up1": _init_double_conv(ks[6], 16, 48),
        "up2": _init_double_conv(ks[7], 48, 48),
        "up3": _init_double_conv(ks[8], 48, 24),
        "up4": _init_double_conv(ks[9], 24, 24),
    }
    w_out = 0.1 * jax.random.normal(ks[10], (1, 1, n_channels, 24), jnp.float32)
    b_out = 0.05 * jax.random.normal(ks[11], (n_channels,), jnp.float32)
    params["outc"] = {"w": w_out.astype(jnp.bfloat16),
                      "scale": jnp.ones((n_channels,), jnp.float32),
                      "shift": b_out}
    return params


# -------------------------------- forward ------------------------------------

def forward(params, x_nchw, noise_key):
    """Mirrors MNIST224VAEGenerator.forward. Returns (x_enc, x, z_mu, z_std), NCHW."""
    x = x_nchw.astype(jnp.float32)
    N, C, H, W = x.shape

    # per-sample L2 normalization of the input (Pallas), keep the norm
    xn_flat, x_norm = l2_normalize(x.reshape(N, C * H, W))
    x_norm = x_norm.reshape(N, 1, 1, 1)

    # internal layout: (N, H, C, W), channels padded to a multiple of 8, bf16
    cin_p = _round_up(C, 8)
    xh = jnp.transpose(xn_flat.reshape(N, C, H, W), (0, 2, 1, 3))
    if cin_p != C:
        xh = jnp.pad(xh, ((0, 0), (0, 0), (0, cin_p - C), (0, 0)))
    xh = xh.astype(jnp.bfloat16)

    # ---- encode ----
    h = double_conv(xh, params["inc"])
    h = down_block(h, params["down1"])
    h = down_block(h, params["down2"])
    h = down_block(h, params["down3"])
    hp = maxpool2(h)
    z_mu = double_conv(hp, params["down4_mu"], out_dtype=jnp.float32)
    z_logstd2 = double_conv(hp, params["down4_std"], out_dtype=jnp.float32)
    z_std = jnp.exp(z_logstd2 / 2.0)

    # TODO(synk): torch .normal_() RNG stream cannot be matched bit-exactly; JAX PRNG is used.
    eps = jax.random.normal(noise_key, z_mu.shape, jnp.float32)
    z = eps * z_std + z_mu

    Ne, He, Ce, We = z.shape
    z_n, _ = l2_normalize(z.reshape(Ne, He * Ce, We))
    x_enc = z_n.reshape(Ne, He, Ce, We)                       # (N, h, 16, w), f32

    # ---- decode ----
    y = up_block(x_enc.astype(jnp.bfloat16), params["up1"])
    y = up_block(y, params["up2"])
    y = up_block(y, params["up3"])
    y = up_block(y, params["up4"])
    y = outconv(y, params["outc"])                            # (N, H, C, W), f32

    yn_flat, _ = l2_normalize(y.reshape(N, H * C, W))
    # TODO(synk): the final normalize + x_norm rescale could be fused into the
    # 1x1 outconv kernel (two-pass) to save one full HBM round trip.
    y = yn_flat.reshape(N, H, C, W) * x_norm

    to_nchw = lambda a: jnp.transpose(a, (0, 2, 1, 3))        # (N,H,C,W) -> (N,C,H,W)
    return (to_nchw(x_enc).astype(jnp.float32), to_nchw(y),
            to_nchw(z_mu), to_nchw(z_std))


# ---------------------------------- main --------------------------------------

if __name__ == "__main__":
    key = jax.random.PRNGKey(0)
    pkey, xkey, nkey = jax.random.split(key, 3)

    n_channels = 1
    # Small shapes consistent with the (fully convolutional) module: 32 -> enc 2x2.
    x = jax.random.uniform(xkey, (2, n_channels, 32, 32), jnp.float32) + 0.1

    params = init_params(pkey, n_channels)

    fwd = jax.jit(forward)
    x_enc, x_rec, z_mu, z_std = fwd(params, x, nkey)
    jax.block_until_ready((x_enc, x_rec, z_mu, z_std))

    assert x_rec.shape == x.shape
    assert x_enc.shape == (2, 16, 2, 2)
    assert z_mu.shape == (2, 16, 2, 2) and z_std.shape == (2, 16, 2, 2)
    assert bool(jnp.all(jnp.isfinite(x_rec)))
    print("KERNEL_OK")
</pallas_src>

<mosaic_0001>
module attributes {stable_mosaic.version = 11 : i64} {
  func.func @_l2norm_kernel(%arg0: i32, %arg1: memref<1x32x32xf32, #tpu.memory_space<vmem>>, %arg2: memref<1x32x32xf32, #tpu.memory_space<vmem>>, %arg3: memref<1x1x1xf32, #tpu.memory_space<vmem>>) attributes {dimension_semantics = [#tpu.dimension_semantics<parallel>], iteration_bounds = array<i64: 2>, scalar_prefetch = 0 : i64, scratch_operands = 0 : i64, tpu.core_type = #tpu.core_type<tc>, window_params = [{transform_indices = @transform_0, window_bounds = array<i64: 1, 32, 32>}, {transform_indices = @transform_1, window_bounds = array<i64: 1, 32, 32>}, {transform_indices = @transform_2, window_bounds = array<i64: 1, 1, 1>}]} {
    %c0 = arith.constant 0 : index
    %c0_0 = arith.constant 0 : index
    %c0_1 = arith.constant 0 : index
    %0 = vector.load %arg1[%c0, %c0_0, %c0_1] : memref<1x32x32xf32, #tpu.memory_space<vmem>>, vector<1x32x32xf32>
    %1 = vector.shape_cast %0 : vector<1x32x32xf32> to vector<32x32xf32>
    %2 = arith.mulf %1, %1 : vector<32x32xf32>
    %3 = vector.shape_cast %2 : vector<32x32xf32> to vector<1x32x32xf32>
    %cst = arith.constant dense<0.000000e+00> : vector<1xf32>
    %4 = vector.multi_reduction <add>, %3, %cst [1, 2] : vector<1x32x32xf32> to vector<1xf32>
    %5 = vector.shape_cast %4 : vector<1xf32> to vector<1x1x1xf32>
    %6 = vector.extract %5[0, 0, 0] : f32 from vector<1x1x1xf32>
    %7 = math.rsqrt %6 : f32
    %8 = vector.broadcast %7 : f32 to vector<32x32xf32>
    %9 = arith.mulf %1, %8 : vector<32x32xf32>
    %c0_2 = arith.constant 0 : index
    %c0_3 = arith.constant 0 : index
    %c0_4 = arith.constant 0 : index
    %10 = vector.load %arg2[%c0_2, %c0_3, %c0_4] : memref<1x32x32xf32, #tpu.memory_space<vmem>>, vector<1x32x32xf32>
    %11 = vector.shape_cast %10 : vector<1x32x32xf32> to vector<32x32xf32>
    %12 = vector.shape_cast %9 : vector<32x32xf32> to vector<1x32x32xf32>
    tpu.vector_store %arg2[%c0_2, %c0_3, %c0_4], %12 {strides = array<i32>} : memref<1x32x32xf32, #tpu.memory_space<vmem>>, vector<1x32x32xf32>,
    %13 = arith.mulf %6, %7 : f32
    %cst_5 = arith.constant 1.000000e+00 : f32
    %14 = vector.broadcast %cst_5 : f32 to vector<1x1xf32>
    %15 = vector.broadcast %13 : f32 to vector<1x1xf32>
    %16 = arith.mulf %15, %14 : vector<1x1xf32>
    %c0_6 = arith.constant 0 : index
    %c0_7 = arith.constant 0 : index
    %c0_8 = arith.constant 0 : index
    %17 = vector.load %arg3[%c0_6, %c0_7, %c0_8] : memref<1x1x1xf32, #tpu.memory_space<vmem>>, vector<1x1x1xf32>
    %18 = vector.shape_cast %17 : vector<1x1x1xf32> to vector<1x1xf32>
    %19 = vector.shape_cast %16 : vector<1x1xf32> to vector<1x1x1xf32>
    tpu.vector_store %arg3[%c0_6, %c0_7, %c0_8], %19 {strides = array<i32>} : memref<1x1x1xf32, #tpu.memory_space<vmem>>, vector<1x1x1xf32>,
    return
  }
  func.func @transform_0(%arg0: i32) -> (i32, i32, i32) {
    %c0_i32 = arith.constant 0 : i32
    %c0_i32_0 = arith.constant 0 : i32
    %c0_i32_1 = arith.constant 0 : i32
    return %arg0, %c0_i32, %c0_i32_0 : i32, i32, i32
  }
  func.func @transform_1(%arg0: i32) -> (i32, i32, i32) {
    %c0_i32 = arith.constant 0 : i32
    %c0_i32_0 = arith.constant 0 : i32
    %c0_i32_1 = arith.constant 0 : i32
    return %arg0, %c0_i32, %c0_i32_0 : i32, i32, i32
  }
  func.func @transform_2(%arg0: i32) -> (i32, i32, i32) {
    %c0_i32 = arith.constant 0 : i32
    %c0_i32_0 = arith.constant 0 : i32
    %c0_i32_1 = arith.constant 0 : i32
    return %arg0, %c0_i32, %c0_i32_0 : i32, i32, i32
  }
}

module attributes {stable_mosaic.version = 11 : i64} {
  func.func @_conv_kernel(%arg0: i32, %arg1: i32, %arg2: memref<1x34x8x34xbf16, #tpu.memory_space<vmem>>, %arg3: memref<3x3x24x8xbf16, #tpu.memory_space<vmem>>, %arg4: memref<24x1xf32, #tpu.memory_space<vmem>>, %arg5: memref<24x1xf32, #tpu.memory_space<vmem>>, %arg6: memref<1x32x24x32xbf16, #tpu.memory_space<vmem>>) attributes {dimension_semantics = [#tpu.dimension_semantics<parallel>, #tpu.dimension_semantics<parallel>], iteration_bounds = array<i64: 2, 1>, scalar_prefetch = 0 : i64, scratch_operands = 0 : i64, tpu.core_type = #tpu.core_type<tc>, window_params = [{transform_indices = @transform_0, window_bounds = array<i64: 1, 34, 8, 34>}, {pipeline_mode = #tpu.pipeline_mode<synchronous>, transform_indices = @transform_1, window_bounds = array<i64: 3, 3, 24, 8>}, {pipeline_mode = #tpu.pipeline_mode<synchronous>, transform_indices = @transform_2, window_bounds = array<i64: 24, 1>}, {pipeline_mode = #tpu.pipeline_mode<synchronous>, transform_indices = @transform_3, window_bounds = array<i64: 24, 1>}, {transform_indices = @transform_4, window_bounds = array<i64: 1, 32, 24, 32>}]} {
    %c32_i32 = arith.constant 32 : i32
    %0 = arith.muli %arg1, %c32_i32 : i32
    %c0_i32 = arith.constant 0 : i32
    %c32_i32_0 = arith.constant 32 : i32
    %1 = arith.addi %c0_i32, %c32_i32_0 : i32
    %c1_i32 = arith.constant 1 : i32
    scf.for %arg7 = %c0_i32 to %1 step %c1_i32  : i32 {
      %cst = arith.constant 0.000000e+00 : f32
      %2 = vector.broadcast %cst : f32 to vector<24x32xf32>
      %3 = arith.addi %0, %arg7 : i32
      %c0_i32_2 = arith.constant 0 : i32
      %4 = arith.addi %3, %c0_i32_2 : i32
      %c0 = arith.constant 0 : index
      %5 = arith.index_cast %4 : i32 to index
      %c0_3 = arith.constant 0 : index
      %c0_4 = arith.constant 0 : index
      %6 = vector.load %arg2[%c0, %5, %c0_3, %c0_4] : memref<1x34x8x34xbf16, #tpu.memory_space<vmem>>, vector<1x1x8x34xbf16>
      %7 = vector.shape_cast %6 : vector<1x1x8x34xbf16> to vector<8x34xbf16>
      %c0_5 = arith.constant 0 : index
      %c0_6 = arith.constant 0 : index
      %c0_7 = arith.constant 0 : index
      %c0_8 = arith.constant 0 : index
      %8 = vector.load %arg3[%c0_5, %c0_6, %c0_7, %c0_8] : memref<3x3x24x8xbf16, #tpu.memory_space<vmem>>, vector<1x1x24x8xbf16>
      %9 = vector.shape_cast %8 : vector<1x1x24x8xbf16> to vector<24x8xbf16>
      %10 = vector.extract_strided_slice %7 {offsets = [0, 0], sizes = [8, 32], strides = [1, 1]} : vector<8x34xbf16> to vector<8x32xbf16>
      %cst_9 = arith.constant dense<0.000000e+00> : vector<24x32xf32>
      %11 = tpu.matmul %9, %10, %cst_9 {dimension_numbers = #tpu.dot_dimension_numbers<[1], [0], [0], [1], [0, 0, 1, 1], [], []>} : vector<24x8xbf16>, vector<8x32xbf16>, vector<24x32xf32> -> vector<24x32xf32>
      %12 = arith.addf %2, %11 : vector<24x32xf32>
      %c0_10 = arith.constant 0 : index
      %c1 = arith.constant 1 : index
      %c0_11 = arith.constant 0 : index
      %c0_12 = arith.constant 0 : index
      %13 = vector.load %arg3[%c0_10, %c1, %c0_11, %c0_12] : memref<3x3x24x8xbf16, #tpu.memory_space<vmem>>, vector<1x1x24x8xbf16>
      %14 = vector.shape_cast %13 : vector<1x1x24x8xbf16> to vector<24x8xbf16>
      %15 = vector.extract_strided_slice %7 {offsets = [0, 1], sizes = [8, 32], strides = [1, 1]} : vector<8x34xbf16> to vector<8x32xbf16>
      %cst_13 = arith.constant dense<0.000000e+00> : vector<24x32xf32>
      %16 = tpu.matmul %14, %15, %cst_13 {dimension_numbers = #tpu.dot_dimension_numbers<[1], [0], [0], [1], [0, 0, 1, 1], [], []>} : vector<24x8xbf16>, vector<8x32xbf16>, vector<24x32xf32> -> vector<24x32xf32>
      %17 = arith.addf %12, %16 : vector<24x32xf32>
      %c0_14 = arith.constant 0 : index
      %c2 = arith.constant 2 : index
      %c0_15 = arith.constant 0 : index
      %c0_16 = arith.constant 0 : index
      %18 = vector.load %arg3[%c0_14, %c2, %c0_15, %c0_16] : memref<3x3x24x8xbf16, #tpu.memory_space<vmem>>, vector<1x1x24x8xbf16>
      %19 = vector.shape_cast %18 : vector<1x1x24x8xbf16> to vector<24x8xbf16>
      %20 = vector.extract_strided_slice %7 {offsets = [0, 2], sizes = [8, 32], strides = [1, 1]} : vector<8x34xbf16> to vector<8x32xbf16>
      %cst_17 = arith.constant dense<0.000000e+00> : vector<24x32xf32>
      %21 = tpu.matmul %19, %20, %cst_17 {dimension_numbers = #tpu.dot_dimension_numbers<[1], [0], [0], [1], [0, 0, 1, 1], [], []>} : vector<24x8xbf16>, vector<8x32xbf16>, vector<24x32xf32> -> vector<24x32xf32>
      %22 = arith.addf %17, %21 : vector<24x32xf32>
      %23 = arith.addi %0, %arg7 : i32
      %c1_i32_18 = arith.constant 1 : i32
      %24 = arith.addi %23, %c1_i32_18 : i32
      %c0_19 = arith.constant 0 : index
      %25 = arith.index_cast %24 : i32 to index
      %c0_20 = arith.constant 0 : index
      %c0_21 = arith.constant 0 : index
      %26 = vector.load %arg2[%c0_19, %25, %c0_20, %c0_21] : memref<1x34x8x34xbf16, #tpu.memory_space<vmem>>, vector<1x1x8x34xbf16>
      %27 = vector.shape_cast %26 : vector<1x1x8x34xbf16> to vector<8x34xbf16>
      %c1_22 = arith.constant 1 : index
      %c0_23 = arith.constant 0 : index
      %c0_24 = arith.constant 0 : index
      %c0_25 = arith.constant 0 : index
      %28 = vector.load %arg3[%c1_22, %c0_23, %c0_24, %c0_25] : memref<3x3x24x8xbf16, #tpu.memory_space<vmem>>, vector<1x1x24x8xbf16>
      %29 = vector.shape_cast %28 : vector<1x1x24x8xbf16> to vector<24x8xbf16>
      %30 = vector.extract_strided_slice %27 {offsets = [0, 0], sizes = [8, 32], strides = [1, 1]} : vector<8x34xbf16> to vector<8x32xbf16>
      %cst_26 = arith.constant dense<0.000000e+00> : vector<24x32xf32>
      %31 = tpu.matmul %29, %30, %cst_26 {dimension_numbers = #tpu.dot_dimension_numbers<[1], [0], [0], [1], [0, 0, 1, 1], [], []>} : vector<24x8xbf16>, vector<8x32xbf16>, vector<24x32xf32> -> vector<24x32xf32>
      %32 = arith.addf %22, %31 : vector<24x32xf32>
      %c1_27 = arith.constant 1 : index
      %c1_28 = arith.constant 1 : index
      %c0_29 = arith.constant 0 : index
      %c0_30 = arith.constant 0 : index
      %33 = vector.load %arg3[%c1_27, %c1_28, %c0_29, %c0_30] : memref<3x3x24x8xbf16, #tpu.memory_space<vmem>>, vector<1x1x24x8xbf16>
      %34 = vector.shape_cast %33 : vector<1x1x24x8xbf16> to vector<24x8xbf16>
      %35 = vector.extract_strided_slice %27 {offsets = [0, 1], sizes = [8, 32], strides = [1, 1]} : vector<8x34xbf16> to vector<8x32xbf16>
      %cst_31 = arith.constant dense<0.000000e+00> : vector<24x32xf32>
      %36 = tpu.matmul %34, %35, %cst_31 {dimension_numbers = #tpu.dot_dimension_numbers<[1], [0], [0], [1], [0, 0, 1, 1], [], []>} : vector<24x8xbf16>, vector<8x32xbf16>, vector<24x32xf32> -> vector<24x32xf32>
      %37 = arith.addf %32, %36 : vector<24x32xf32>
      %c1_32 = arith.constant 1 : index
      %c2_33 = arith.constant 2 : index
      %c0_34 = arith.constant 0 : index
      %c0_35 = arith.constant 0 : index
      %38 = vector.load %arg3[%c1_32, %c2_33, %c0_34, %c0_35] : memref<3x3x24x8xbf16, #tpu.memory_space<vmem>>, vector<1x1x24x8xbf16>
      %39 = vector.shape_cast %38 : vector<1x1x24x8xbf16> to vector<24x8xbf16>
      %40 = vector.extract_strided_slice %27 {offsets = [0, 2], sizes = [8, 32], strides = [1, 1]} : vector<8x34xbf16> to vector<8x32xbf16>
      %cst_36 = arith.constant dense<0.000000e+00> : vector<24x32xf32>
      %41 = tpu.matmul %39, %40, %cst_36 {dimension_numbers = #tpu.dot_dimension_numbers<[1], [0], [0], [1], [0, 0, 1, 1], [], []>} : vector<24x8xbf16>, vector<8x32xbf16>, vector<24x32xf32> -> vector<24x32xf32>
      %42 = arith.addf %37, %41 : vector<24x32xf32>
      %43 = arith.addi %0, %arg7 : i32
      %c2_i32 = arith.constant 2 : i32
      %44 = arith.addi %43, %c2_i32 : i32
      %c0_37 = arith.constant 0 : index
      %45 = arith.index_cast %44 : i32 to index
      %c0_38 = arith.constant 0 : index
      %c0_39 = arith.constant 0 : index
      %46 = vector.load %arg2[%c0_37, %45, %c0_38, %c0_39] : memref<1x34x8x34xbf16, #tpu.memory_space<vmem>>, vector<1x1x8x34xbf16>
      %47 = vector.shape_cast %46 : vector<1x1x8x34xbf16> to vector<8x34xbf16>
      %c2_40 = arith.constant 2 : index
      %c0_41 = arith.constant 0 : index
      %c0_42 = arith.constant 0 : index
      %c0_43 = arith.constant 0 : index
      %48 = vector.load %arg3[%c2_40, %c0_41, %c0_42, %c0_43] : memref<3x3x24x8xbf16, #tpu.memory_space<vmem>>, vector<1x1x24x8xbf16>
      %49 = vector.shape_cast %48 : vector<1x1x24x8xbf16> to vector<24x8xbf16>
      %50 = vector.extract_strided_slice %47 {offsets = [0, 0], sizes = [8, 32], strides = [1, 1]} : vector<8x34xbf16> to vector<8x32xbf16>
      %cst_44 = arith.constant dense<0.000000e+00> : vector<24x32xf32>
      %51 = tpu.matmul %49, %50, %cst_44 {dimension_numbers = #tpu.dot_dimension_numbers<[1], [0], [0], [1], [0, 0, 1, 1], [], []>} : vector<24x8xbf16>, vector<8x32xbf16>, vector<24x32xf32> -> vector<24x32xf32>
      %52 = arith.addf %42, %51 : vector<24x32xf32>
      %c2_45 = arith.constant 2 : index
      %c1_46 = arith.constant 1 : index
      %c0_47 = arith.constant 0 : index
      %c0_48 = arith.constant 0 : index
      %53 = vector.load %arg3[%c2_45, %c1_46, %c0_47, %c0_48] : memref<3x3x24x8xbf16, #tpu.memory_space<vmem>>, vector<1x1x24x8xbf16>
      %54 = vector.shape_cast %53 : vector<1x1x24x8xbf16> to vector<24x8xbf16>
      %55 = vector.extract_strided_slice %47 {offsets = [0, 1], sizes = [8, 32], strides = [1, 1]} : vector<8x34xbf16> to vector<8x32xbf16>
      %cst_49 = arith.constant dense<0.000000e+00> : vector<24x32xf32>
      %56 = tpu.matmul %54, %55, %cst_49 {dimension_numbers = #tpu.dot_dimension_numbers<[1], [0], [0], [1], [0, 0, 1, 1], [], []>} : vector<24x8xbf16>, vector<8x32xbf16>, vector<24x32xf32> -> vector<24x32xf32>
      %57 = arith.addf %52, %56 : vector<24x32xf32>
      %c2_50 = arith.constant 2 : index
      %c2_51 = arith.constant 2 : index
      %c0_52 = arith.constant 0 : index
      %c0_53 = arith.constant 0 : index
      %58 = vector.load %arg3[%c2_50, %c2_51, %c0_52, %c0_53] : memref<3x3x24x8xbf16, #tpu.memory_space<vmem>>, vector<1x1x24x8xbf16>
      %59 = vector.shape_cast %58 : vector<1x1x24x8xbf16> to vector<24x8xbf16>
      %60 = vector.extract_strided_slice %47 {offsets = [0, 2], sizes = [8, 32], strides = [1, 1]} : vector<8x34xbf16> to vector<8x32xbf16>
      %cst_54 = arith.constant dense<0.000000e+00> : vector<24x32xf32>
      %61 = tpu.matmul %59, %60, %cst_54 {dimension_numbers = #tpu.dot_dimension_numbers<[1], [0], [0], [1], [0, 0, 1, 1], [], []>} : vector<24x8xbf16>, vector<8x32xbf16>, vector<24x32xf32> -> vector<24x32xf32>
      %62 = arith.addf %57, %61 : vector<24x32xf32>
      %c0_55 = arith.constant 0 : index
      %c0_56 = arith.constant 0 : index
      %63 = vector.load %arg4[%c0_55, %c0_56] : memref<24x1xf32, #tpu.memory_space<vmem>>, vector<24x1xf32>
      %64 = vector.broadcast %63 : vector<24x1xf32> to vector<24x32xf32>
      %65 = arith.mulf %62, %64 : vector<24x32xf32>
      %c0_57 = arith.constant 0 : index
      %c0_58 = arith.constant 0 : index
      %66 = vector.load %arg5[%c0_57, %c0_58] : memref<24x1xf32, #tpu.memory_space<vmem>>, vector<24x1xf32>
      %67 = vector.broadcast %66 : vector<24x1xf32> to vector<24x32xf32>
      %68 = arith.addf %65, %67 : vector<24x32xf32>
      %cst_59 = arith.constant 0.000000e+00 : f32
      %69 = vector.broadcast %cst_59 : f32 to vector<24x32xf32>
      %70 = arith.maximumf %68, %69 : vector<24x32xf32>
      %71 = arith.truncf %70 : vector<24x32xf32> to vector<24x32xbf16>
      %c0_60 = arith.constant 0 : index
      %72 = arith.index_cast %arg7 : i32 to index
      %c0_61 = arith.constant 0 : index
      %c0_62 = arith.constant 0 : index
      %73 = vector.load %arg6[%c0_60, %72, %c0_61, %c0_62] : memref<1x32x24x32xbf16, #tpu.memory_space<vmem>>, vector<1x1x24x32xbf16>
      %74 = vector.shape_cast %73 : vector<1x1x24x32xbf16> to vector<24x32xbf16>
      %75 = vector.shape_cast %71 : vector<24x32xbf16> to vector<1x1x24x32xbf16>
      tpu.vector_store %arg6[%c0_60, %72, %c0_61, %c0_62], %75 {strides = array<i32>} : memref<1x32x24x32xbf16, #tpu.memory_space<vmem>>, vector<1x1x24x32xbf16>,
    }
    %c32_i32_1 = arith.constant 32 : i32
    return
  }
  func.func @transform_0(%arg0: i32, %arg1: i32) -> (i32, i32, i32, i32) {
    %c0_i32 = arith.constant 0 : i32
    %c0_i32_0 = arith.constant 0 : i32
    %c0_i32_1 = arith.constant 0 : i32
    %c0_i32_2 = arith.constant 0 : i32
    return %arg0, %c0_i32, %c0_i32_0, %c0_i32_1 : i32, i32, i32, i32
  }
  func.func @transform_1(%arg0: i32, %arg1: i32) -> (i32, i32, i32, i32) {
    %c0_i32 = arith.constant 0 : i32
    %c0_i32_0 = arith.constant 0 : i32
    %c0_i32_1 = arith.constant 0 : i32
    %c0_i32_2 = arith.constant 0 : i32
    %c0_i32_3 = arith.constant 0 : i32
    return %c0_i32, %c0_i32_0, %c0_i32_1, %c0_i32_2 : i32, i32, i32, i32
  }
  func.func @transform_2(%arg0: i32, %arg1: i32) -> (i32, i32) {
    %c0_i32 = arith.constant 0 : i32
    %c0_i32_0 = arith.constant 0 : i32
    %c0_i32_1 = arith.constant 0 : i32
    return %c0_i32, %c0_i32_0 : i32, i32
  }
  func.func @transform_3(%arg0: i32, %arg1: i32) -> (i32, i32) {
    %c0_i32 = arith.constant 0 : i32
    %c0_i32_0 = arith.constant 0 : i32
    %c0_i32_1 = arith.constant 0 : i32
    return %c0_i32, %c0_i32_0 : i32, i32
  }
  func.func @transform_4(%arg0: i32, %arg1: i32) -> (i32, i32, i32, i32) {
    %c0_i32 = arith.constant 0 : i32
    %c0_i32_0 = arith.constant 0 : i32
    %c0_i32_1 = arith.constant 0 : i32
    return %arg0, %arg1, %c0_i32, %c0_i32_0 : i32, i32, i32, i32
  }
}

module attributes {stable_mosaic.version = 11 : i64} {
  func.func @_conv_kernel(%arg0: i32, %arg1: i32, %arg2: memref<1x34x24x34xbf16, #tpu.memory_space<vmem>>, %arg3: memref<3x3x24x24xbf16, #tpu.memory_space<vmem>>, %arg4: memref<24x1xf32, #tpu.memory_space<vmem>>, %arg5: memref<24x1xf32, #tpu.memory_space<vmem>>, %arg6: memref<1x32x24x32xbf16, #tpu.memory_space<vmem>>) attributes {dimension_semantics = [#tpu.dimension_semantics<parallel>, #tpu.dimension_semantics<parallel>], iteration_bounds = array<i64: 2, 1>, scalar_prefetch = 0 : i64, scratch_operands = 0 : i64, tpu.core_type = #tpu.core_type<tc>, window_params = [{transform_indices = @transform_0, window_bounds = array<i64: 1, 34, 24, 34>}, {pipeline_mode = #tpu.pipeline_mode<synchronous>, transform_indices = @transform_1, window_bounds = array<i64: 3, 3, 24, 24>}, {pipeline_mode = #tpu.pipeline_mode<synchronous>, transform_indices = @transform_2, window_bounds = array<i64: 24, 1>}, {pipeline_mode = #tpu.pipeline_mode<synchronous>, transform_indices = @transform_3, window_bounds = array<i64: 24, 1>}, {transform_indices = @transform_4, window_bounds = array<i64: 1, 32, 24, 32>}]} {
    %c32_i32 = arith.constant 32 : i32
    %0 = arith.muli %arg1, %c32_i32 : i32
    %c0_i32 = arith.constant 0 : i32
    %c32_i32_0 = arith.constant 32 : i32
    %1 = arith.addi %c0_i32, %c32_i32_0 : i32
    %c1_i32 = arith.constant 1 : i32
    scf.for %arg7 = %c0_i32 to %1 step %c1_i32  : i32 {
      %cst = arith.constant 0.000000e+00 : f32
      %2 = vector.broadcast %cst : f32 to vector<24x32xf32>
      %3 = arith.addi %0, %arg7 : i32
      %c0_i32_2 = arith.constant 0 : i32
      %4 = arith.addi %3, %c0_i32_2 : i32
      %c0 = arith.constant 0 : index
      %5 = arith.index_cast %4 : i32 to index
      %c0_3 = arith.constant 0 : index
      %c0_4 = arith.constant 0 : index
      %6 = vector.load %arg2[%c0, %5, %c0_3, %c0_4] : memref<1x34x24x34xbf16, #tpu.memory_space<vmem>>, vector<1x1x24x34xbf16>
      %7 = vector.shape_cast %6 : vector<1x1x24x34xbf16> to vector<24x34xbf16>
      %c0_5 = arith.constant 0 : index
      %c0_6 = arith.constant 0 : index
      %c0_7 = arith.constant 0 : index
      %c0_8 = arith.constant 0 : index
      %8 = vector.load %arg3[%c0_5, %c0_6, %c0_7, %c0_8] : memref<3x3x24x24xbf16, #tpu.memory_space<vmem>>, vector<1x1x24x24xbf16>
      %9 = vector.shape_cast %8 : vector<1x1x24x24xbf16> to vector<24x24xbf16>
      %10 = vector.extract_strided_slice %7 {offsets = [0, 0], sizes = [24, 32], strides = [1, 1]} : vector<24x34xbf16> to vector<24x32xbf16>
      %cst_9 = arith.constant dense<0.000000e+00> : vector<24x32xf32>
      %11 = tpu.matmul %9, %10, %cst_9 {dimension_numbers = #tpu.dot_dimension_numbers<[1], [0], [0], [1], [0, 0, 1, 1], [], []>} : vector<24x24xbf16>, vector<24x32xbf16>, vector<24x32xf32> -> vector<24x32xf32>
      %12 = arith.addf %2, %11 : vector<24x32xf32>
      %c0_10 = arith.constant 0 : index
      %c1 = arith.constant 1 : index
      %c0_11 = arith.constant 0 : index
      %c0_12 = arith.constant 0 : index
      %13 = vector.load %arg3[%c0_10, %c1, %c0_11, %c0_12] : memref<3x3x24x24xbf16, #tpu.memory_space<vmem>>, vector<1x1x24x24xbf16>
      %14 = vector.shape_cast %13 : vector<1x1x24x24xbf16> to vector<24x24xbf16>
      %15 = vector.extract_strided_slice %7 {offsets = [0, 1], sizes = [24, 32], strides = [1, 1]} : vector<24x34xbf16> to vector<24x32xbf16>
      %cst_13 = arith.constant dense<0.000000e+00> : vector<24x32xf32>
      %16 = tpu.matmul %14, %15, %cst_13 {dimension_numbers = #tpu.dot_dimension_numbers<[1], [0], [0], [1], [0, 0, 1, 1], [], []>} : vector<24x24xbf16>, vector<24x32xbf16>, vector<24x32xf32> -> vector<24x32xf32>
      %17 = arith.addf %12, %16 : vector<24x32xf32>
      %c0_14 = arith.constant 0 : index
      %c2 = arith.constant 2 : index
      %c0_15 = arith.constant 0 : index
      %c0_16 = arith.constant 0 : index
      %18 = vector.load %arg3[%c0_14, %c2, %c0_15, %c0_16] : memref<3x3x24x24xbf16, #tpu.memory_space<vmem>>, vector<1x1x24x24xbf16>
      %19 = vector.shape_cast %18 : vector<1x1x24x24xbf16> to vector<24x24xbf16>
      %20 = vector.extract_strided_slice %7 {offsets = [0, 2], sizes = [24, 32], strides = [1, 1]} : vector<24x34xbf16> to vector<24x32xbf16>
      %cst_17 = arith.constant dense<0.000000e+00> : vector<24x32xf32>
      %21 = tpu.matmul %19, %20, %cst_17 {dimension_numbers = #tpu.dot_dimension_numbers<[1], [0], [0], [1], [0, 0, 1, 1], [], []>} : vector<24x24xbf16>, vector<24x32xbf16>, vector<24x32xf32> -> vector<24x32xf32>
      %22 = arith.addf %17, %21 : vector<24x32xf32>
      %23 = arith.addi %0, %arg7 : i32
      %c1_i32_18 = arith.constant 1 : i32
      %24 = arith.addi %23, %c1_i32_18 : i32
      %c0_19 = arith.constant 0 : index
      %25 = arith.index_cast %24 : i32 to index
      %c0_20 = arith.constant 0 : index
      %c0_21 = arith.constant 0 : index
      %26 = vector.load %arg2[%c0_19, %25, %c0_20, %c0_21] : memref<1x34x24x34xbf16, #tpu.memory_space<vmem>>, vector<1x1x24x34xbf16>
      %27 = vector.shape_cast %26 : vector<1x1x24x34xbf16> to vector<24x34xbf16>
      %c1_22 = arith.constant 1 : index
      %c0_23 = arith.constant 0 : index
      %c0_24 = arith.constant 0 : index
      %c0_25 = arith.constant 0 : index
      %28 = vector.load %arg3[%c1_22, %c0_23, %c0_24, %c0_25] : memref<3x3x24x24xbf16, #tpu.memory_space<vmem>>, vector<1x1x24x24xbf16>
      %29 = vector.shape_cast %28 : vector<1x1x24x24xbf16> to vector<24x24xbf16>
      %30 = vector.extract_strided_slice %27 {offsets = [0, 0], sizes = [24, 32], strides = [1, 1]} : vector<24x34xbf16> to vector<24x32xbf16>
      %cst_26 = arith.constant dense<0.000000e+00> : vector<24x32xf32>
      %31 = tpu.matmul %29, %30, %cst_26 {dimension_numbers = #tpu.dot_dimension_numbers<[1], [0], [0], [1], [0, 0, 1, 1], [], []>} : vector<24x24xbf16>, vector<24x32xbf16>, vector<24x32xf32> -> vector<24x32xf32>
      %32 = arith.addf %22, %31 : vector<24x32xf32>
      %c1_27 = arith.constant 1 : index
      %c1_28 = arith.constant 1 : index
      %c0_29 = arith.constant 0 : index
      %c0_30 = arith.constant 0 : index
      %33 = vector.load %arg3[%c1_27, %c1_28, %c0_29, %c0_30] : memref<3x3x24x24xbf16, #tpu.memory_space<vmem>>, vector<1x1x24x24xbf16>
      %34 = vector.shape_cast %33 : vector<1x1x24x24xbf16> to vector<24x24xbf16>
      %35 = vector.extract_strided_slice %27 {offsets = [0, 1], sizes = [24, 32], strides = [1, 1]} : vector<24x34xbf16> to vector<24x32xbf16>
      %cst_31 = arith.constant dense<0.000000e+00> : vector<24x32xf32>
      %36 = tpu.matmul %34, %35, %cst_31 {dimension_numbers = #tpu.dot_dimension_numbers<[1], [0], [0], [1], [0, 0, 1, 1], [], []>} : vector<24x24xbf16>, vector<24x32xbf16>, vector<24x32xf32> -> vector<24x32xf32>
      %37 = arith.addf %32, %36 : vector<24x32xf32>
      %c1_32 = arith.constant 1 : index
      %c2_33 = arith.constant 2 : index
      %c0_34 = arith.constant 0 : index
      %c0_35 = arith.constant 0 : index
      %38 = vector.load %arg3[%c1_32, %c2_33, %c0_34, %c0_35] : memref<3x3x24x24xbf16, #tpu.memory_space<vmem>>, vector<1x1x24x24xbf16>
      %39 = vector.shape_cast %38 : vector<1x1x24x24xbf16> to vector<24x24xbf16>
      %40 = vector.extract_strided_slice %27 {offsets = [0, 2], sizes = [24, 32], strides = [1, 1]} : vector<24x34xbf16> to vector<24x32xbf16>
      %cst_36 = arith.constant dense<0.000000e+00> : vector<24x32xf32>
      %41 = tpu.matmul %39, %40, %cst_36 {dimension_numbers = #tpu.dot_dimension_numbers<[1], [0], [0], [1], [0, 0, 1, 1], [], []>} : vector<24x24xbf16>, vector<24x32xbf16>, vector<24x32xf32> -> vector<24x32xf32>
      %42 = arith.addf %37, %41 : vector<24x32xf32>
      %43 = arith.addi %0, %arg7 : i32
      %c2_i32 = arith.constant 2 : i32
      %44 = arith.addi %43, %c2_i32 : i32
      %c0_37 = arith.constant 0 : index
      %45 = arith.index_cast %44 : i32 to index
      %c0_38 = arith.constant 0 : index
      %c0_39 = arith.constant 0 : index
      %46 = vector.load %arg2[%c0_37, %45, %c0_38, %c0_39] : memref<1x34x24x34xbf16, #tpu.memory_space<vmem>>, vector<1x1x24x34xbf16>
      %47 = vector.shape_cast %46 : vector<1x1x24x34xbf16> to vector<24x34xbf16>
      %c2_40 = arith.constant 2 : index
      %c0_41 = arith.constant 0 : index
      %c0_42 = arith.constant 0 : index
      %c0_43 = arith.constant 0 : index
      %48 = vector.load %arg3[%c2_40, %c0_41, %c0_42, %c0_43] : memref<3x3x24x24xbf16, #tpu.memory_space<vmem>>, vector<1x1x24x24xbf16>
      %49 = vector.shape_cast %48 : vector<1x1x24x24xbf16> to vector<24x24xbf16>
      %50 = vector.extract_strided_slice %47 {offsets = [0, 0], sizes = [24, 32], strides = [1, 1]} : vector<24x34xbf16> to vector<24x32xbf16>
      %cst_44 = arith.constant dense<0.000000e+00> : vector<24x32xf32>
      %51 = tpu.matmul %49, %50, %cst_44 {dimension_numbers = #tpu.dot_dimension_numbers<[1], [0], [0], [1], [0, 0, 1, 1], [], []>} : vector<24x24xbf16>, vector<24x32xbf16>, vector<24x32xf32> -> vector<24x32xf32>
      %52 = arith.addf %42, %51 : vector<24x32xf32>
      %c2_45 = arith.constant 2 : index
      %c1_46 = arith.constant 1 : index
      %c0_47 = arith.constant 0 : index
      %c0_48 = arith.constant 0 : index
      %53 = vector.load %arg3[%c2_45, %c1_46, %c0_47, %c0_48] : memref<3x3x24x24xbf16, #tpu.memory_space<vmem>>, vector<1x1x24x24xbf16>
      %54 = vector.shape_cast %53 : vector<1x1x24x24xbf16> to vector<24x24xbf16>
      %55 = vector.extract_strided_slice %47 {offsets = [0, 1], sizes = [24, 32], strides = [1, 1]} : vector<24x34xbf16> to vector<24x32xbf16>
      %cst_49 = arith.constant dense<0.000000e+00> : vector<24x32xf32>
      %56 = tpu.matmul %54, %55, %cst_49 {dimension_numbers = #tpu.dot_dimension_numbers<[1], [0], [0], [1], [0, 0, 1, 1], [], []>} : vector<24x24xbf16>, vector<24x32xbf16>, vector<24x32xf32> -> vector<24x32xf32>
      %57 = arith.addf %52, %56 : vector<24x32xf32>
      %c2_50 = arith.constant 2 : index
      %c2_51 = arith.constant 2 : index
      %c0_52 = arith.constant 0 : index
      %c0_53 = arith.constant 0 : index
      %58 = vector.load %arg3[%c2_50, %c2_51, %c0_52, %c0_53] : memref<3x3x24x24xbf16, #tpu.memory_space<vmem>>, vector<1x1x24x24xbf16>
      %59 = vector.shape_cast %58 : vector<1x1x24x24xbf16> to vector<24x24xbf16>
      %60 = vector.extract_strided_slice %47 {offsets = [0, 2], sizes = [24, 32], strides = [1, 1]} : vector<24x34xbf16> to vector<24x32xbf16>
      %cst_54 = arith.constant dense<0.000000e+00> : vector<24x32xf32>
      %61 = tpu.matmul %59, %60, %cst_54 {dimension_numbers = #tpu.dot_dimension_numbers<[1], [0], [0], [1], [0, 0, 1, 1], [], []>} : vector<24x24xbf16>, vector<24x32xbf16>, vector<24x32xf32> -> vector<24x32xf32>
      %62 = arith.addf %57, %61 : vector<24x32xf32>
      %c0_55 = arith.constant 0 : index
      %c0_56 = arith.constant 0 : index
      %63 = vector.load %arg4[%c0_55, %c0_56] : memref<24x1xf32, #tpu.memory_space<vmem>>, vector<24x1xf32>
      %64 = vector.broadcast %63 : vector<24x1xf32> to vector<24x32xf32>
      %65 = arith.mulf %62, %64 : vector<24x32xf32>
      %c0_57 = arith.constant 0 : index
      %c0_58 = arith.constant 0 : index
      %66 = vector.load %arg5[%c0_57, %c0_58] : memref<24x1xf32, #tpu.memory_space<vmem>>, vector<24x1xf32>
      %67 = vector.broadcast %66 : vector<24x1xf32> to vector<24x32xf32>
      %68 = arith.addf %65, %67 : vector<24x32xf32>
      %cst_59 = arith.constant 0.000000e+00 : f32
      %69 = vector.broadcast %cst_59 : f32 to vector<24x32xf32>
      %70 = arith.maximumf %68, %69 : vector<24x32xf32>
      %71 = arith.truncf %70 : vector<24x32xf32> to vector<24x32xbf16>
      %c0_60 = arith.constant 0 : index
      %72 = arith.index_cast %arg7 : i32 to index
      %c0_61 = arith.constant 0 : index
      %c0_62 = arith.constant 0 : index
      %73 = vector.load %arg6[%c0_60, %72, %c0_61, %c0_62] : memref<1x32x24x32xbf16, #tpu.memory_space<vmem>>, vector<1x1x24x32xbf16>
      %74 = vector.shape_cast %73 : vector<1x1x24x32xbf16> to vector<24x32xbf16>
      %75 = vector.shape_cast %71 : vector<24x32xbf16> to vector<1x1x24x32xbf16>
      tpu.vector_store %arg6[%c0_60, %72, %c0_61, %c0_62], %75 {strides = array<i32>} : memref<1x32x24x32xbf16, #tpu.memory_space<vmem>>, vector<1x1x24x32xbf16>,
    }
    %c32_i32_1 = arith.constant 32 : i32
    return
  }
  func.func @transform_0(%arg0: i32, %arg1: i32) -> (i32, i32, i32, i32) {
    %c0_i32 = arith.constant 0 : i32
    %c0_i32_0 = arith.constant 0 : i32
    %c0_i32_1 = arith.constant 0 : i32
    %c0_i32_2 = arith.constant 0 : i32
    return %arg0, %c0_i32, %c0_i32_0, %c0_i32_1 : i32, i32, i32, i32
  }
  func.func @transform_1(%arg0: i32, %arg1: i32) -> (i32, i32, i32, i32) {
    %c0_i32 = arith.constant 0 : i32
    %c0_i32_0 = arith.constant 0 : i32
    %c0_i32_1 = arith.constant 0 : i32
    %c0_i32_2 = arith.constant 0 : i32
    %c0_i32_3 = arith.constant 0 : i32
    return %c0_i32, %c0_i32_0, %c0_i32_1, %c0_i32_2 : i32, i32, i32, i32
  }
  func.func @transform_2(%arg0: i32, %arg1: i32) -> (i32, i32) {
    %c0_i32 = arith.constant 0 : i32
    %c0_i32_0 = arith.constant 0 : i32
    %c0_i32_1 = arith.constant 0 : i32
    return %c0_i32, %c0_i32_0 : i32, i32
  }
  func.func @transform_3(%arg0: i32, %arg1: i32) -> (i32, i32) {
    %c0_i32 = arith.constant 0 : i32
    %c0_i32_0 = arith.constant 0 : i32
    %c0_i32_1 = arith.constant 0 : i32
    return %c0_i32, %c0_i32_0 : i32, i32
  }
  func.func @transform_4(%arg0: i32, %arg1: i32) -> (i32, i32, i32, i32) {
    %c0_i32 = arith.constant 0 : i32
    %c0_i32_0 = arith.constant 0 : i32
    %c0_i32_1 = arith.constant 0 : i32
    return %arg0, %arg1, %c0_i32, %c0_i32_0 : i32, i32, i32, i32
  }
}

module attributes {stable_mosaic.version = 11 : i64} {
  func.func @_conv_kernel(%arg0: i32, %arg1: i32, %arg2: memref<1x18x24x18xbf16, #tpu.memory_space<vmem>>, %arg3: memref<3x3x24x24xbf16, #tpu.memory_space<vmem>>, %arg4: memref<24x1xf32, #tpu.memory_space<vmem>>, %arg5: memref<24x1xf32, #tpu.memory_space<vmem>>, %arg6: memref<1x16x24x16xbf16, #tpu.memory_space<vmem>>) attributes {dimension_semantics = [#tpu.dimension_semantics<parallel>, #tpu.dimension_semantics<parallel>], iteration_bounds = array<i64: 2, 1>, scalar_prefetch = 0 : i64, scratch_operands = 0 : i64, tpu.core_type = #tpu.core_type<tc>, window_params = [{transform_indices = @transform_0, window_bounds = array<i64: 1, 18, 24, 18>}, {pipeline_mode = #tpu.pipeline_mode<synchronous>, transform_indices = @transform_1, window_bounds = array<i64: 3, 3, 24, 24>}, {pipeline_mode = #tpu.pipeline_mode<synchronous>, transform_indices = @transform_2, window_bounds = array<i64: 24, 1>}, {pipeline_mode = #tpu.pipeline_mode<synchronous>, transform_indices = @transform_3, window_bounds = array<i64: 24, 1>}, {transform_indices = @transform_4, window_bounds = array<i64: 1, 16, 24, 16>}]} {
    %c16_i32 = arith.constant 16 : i32
    %0 = arith.muli %arg1, %c16_i32 : i32
    %c0_i32 = arith.constant 0 : i32
    %c16_i32_0 = arith.constant 16 : i32
    %1 = arith.addi %c0_i32, %c16_i32_0 : i32
    %c1_i32 = arith.constant 1 : i32
    scf.for %arg7 = %c0_i32 to %1 step %c1_i32  : i32 {
      %cst = arith.constant 0.000000e+00 : f32
      %2 = vector.broadcast %cst : f32 to vector<24x16xf32>
      %3 = arith.addi %0, %arg7 : i32
      %c0_i32_2 = arith.constant 0 : i32
      %4 = arith.addi %3, %c0_i32_2 : i32
      %c0 = arith.constant 0 : index
      %5 = arith.index_cast %4 : i32 to index
      %c0_3 = arith.constant 0 : index
      %c0_4 = arith.constant 0 : index
      %6 = vector.load %arg2[%c0, %5, %c0_3, %c0_4] : memref<1x18x24x18xbf16, #tpu.memory_space<vmem>>, vector<1x1x24x18xbf16>
      %7 = vector.shape_cast %6 : vector<1x1x24x18xbf16> to vector<24x18xbf16>
      %c0_5 = arith.constant 0 : index
      %c0_6 = arith.constant 0 : index
      %c0_7 = arith.constant 0 : index
      %c0_8 = arith.constant 0 : index
      %8 = vector.load %arg3[%c0_5, %c0_6, %c0_7, %c0_8] : memref<3x3x24x24xbf16, #tpu.memory_space<vmem>>, vector<1x1x24x24xbf16>
      %9 = vector.shape_cast %8 : vector<1x1x24x24xbf16> to vector<24x24xbf16>
      %10 = vector.extract_strided_slice %7 {offsets = [0, 0], sizes = [24, 16], strides = [1, 1]} : vector<24x18xbf16> to vector<24x16xbf16>
      %cst_9 = arith.constant dense<0.000000e+00> : vector<24x16xf32>
      %11 = tpu.matmul %9, %10, %cst_9 {dimension_numbers = #tpu.dot_dimension_numbers<[1], [0], [0], [1], [0, 0, 1, 1], [], []>} : vector<24x24xbf16>, vector<24x16xbf16>, vector<24x16xf32> -> vector<24x16xf32>
      %12 = arith.addf %2, %11 : vector<24x16xf32>
      %c0_10 = arith.constant 0 : index
      %c1 = arith.constant 1 : index
      %c0_11 = arith.constant 0 : index
      %c0_12 = arith.constant 0 : index
      %13 = vector.load %arg3[%c0_10, %c1, %c0_11, %c0_12] : memref<3x3x24x24xbf16, #tpu.memory_space<vmem>>, vector<1x1x24x24xbf16>
      %14 = vector.shape_cast %13 : vector<1x1x24x24xbf16> to vector<24x24xbf16>
      %15 = vector.extract_strided_slice %7 {offsets = [0, 1], sizes = [24, 16], strides = [1, 1]} : vector<24x18xbf16> to vector<24x16xbf16>
      %cst_13 = arith.constant dense<0.000000e+00> : vector<24x16xf32>
      %16 = tpu.matmul %14, %15, %cst_13 {dimension_numbers = #tpu.dot_dimension_numbers<[1], [0], [0], [1], [0, 0, 1, 1], [], []>} : vector<24x24xbf16>, vector<24x16xbf16>, vector<24x16xf32> -> vector<24x16xf32>
      %17 = arith.addf %12, %16 : vector<24x16xf32>
      %c0_14 = arith.constant 0 : index
      %c2 = arith.constant 2 : index
      %c0_15 = arith.constant 0 : index
      %c0_16 = arith.constant 0 : index
      %18 = vector.load %arg3[%c0_14, %c2, %c0_15, %c0_16] : memref<3x3x24x24xbf16, #tpu.memory_space<vmem>>, vector<1x1x24x24xbf16>
      %19 = vector.shape_cast %18 : vector<1x1x24x24xbf16> to vector<24x24xbf16>
      %20 = vector.extract_strided_slice %7 {offsets = [0, 2], sizes = [24, 16], strides = [1, 1]} : vector<24x18xbf16> to vector<24x16xbf16>
      %cst_17 = arith.constant dense<0.000000e+00> : vector<24x16xf32>
      %21 = tpu.matmul %19, %20, %cst_17 {dimension_numbers = #tpu.dot_dimension_numbers<[1], [0], [0], [1], [0, 0, 1, 1], [], []>} : vector<24x24xbf16>, vector<24x16xbf16>, vector<24x16xf32> -> vector<24x16xf32>
      %22 = arith.addf %17, %21 : vector<24x16xf32>
      %23 = arith.addi %0, %arg7 : i32
      %c1_i32_18 = arith.constant 1 : i32
      %24 = arith.addi %23, %c1_i32_18 : i32
      %c0_19 = arith.constant 0 : index
      %25 = arith.index_cast %24 : i32 to index
      %c0_20 = arith.constant 0 : index
      %c0_21 = arith.constant 0 : index
      %26 = vector.load %arg2[%c0_19, %25, %c0_20, %c0_21] : memref<1x18x24x18xbf16, #tpu.memory_space<vmem>>, vector<1x1x24x18xbf16>
      %27 = vector.shape_cast %26 : vector<1x1x24x18xbf16> to vector<24x18xbf16>
      %c1_22 = arith.constant 1 : index
      %c0_23 = arith.constant 0 : index
      %c0_24 = arith.constant 0 : index
      %c0_25 = arith.constant 0 : index
      %28 = vector.load %arg3[%c1_22, %c0_23, %c0_24, %c0_25] : memref<3x3x24x24xbf16, #tpu.memory_space<vmem>>, vector<1x1x24x24xbf16>
      %29 = vector.shape_cast %28 : vector<1x1x24x24xbf16> to vector<24x24xbf16>
      %30 = vector.extract_strided_slice %27 {offsets = [0, 0], sizes = [24, 16], strides = [1, 1]} : vector<24x18xbf16> to vector<24x16xbf16>
      %cst_26 = arith.constant dense<0.000000e+00> : vector<24x16xf32>
      %31 = tpu.matmul %29, %30, %cst_26 {dimension_numbers = #tpu.dot_dimension_numbers<[1], [0], [0], [1], [0, 0, 1, 1], [], []>} : vector<24x24xbf16>, vector<24x16xbf16>, vector<24x16xf32> -> vector<24x16xf32>
      %32 = arith.addf %22, %31 : vector<24x16xf32>
      %c1_27 = arith.constant 1 : index
      %c1_28 = arith.constant 1 : index
      %c0_29 = arith.constant 0 : index
      %c0_30 = arith.constant 0 : index
      %33 = vector.load %arg3[%c1_27, %c1_28, %c0_29, %c0_30] : memref<3x3x24x24xbf16, #tpu.memory_space<vmem>>, vector<1x1x24x24xbf16>
      %34 = vector.shape_cast %33 : vector<1x1x24x24xbf16> to vector<24x24xbf16>
      %35 = vector.extract_strided_slice %27 {offsets = [0, 1], sizes = [24, 16], strides = [1, 1]} : vector<24x18xbf16> to vector<24x16xbf16>
      %cst_31 = arith.constant dense<0.000000e+00> : vector<24x16xf32>
      %36 = tpu.matmul %34, %35, %cst_31 {dimension_numbers = #tpu.dot_dimension_numbers<[1], [0], [0], [1], [0, 0, 1, 1], [], []>} : vector<24x24xbf16>, vector<24x16xbf16>, vector<24x16xf32> -> vector<24x16xf32>
      %37 = arith.addf %32, %36 : vector<24x16xf32>
      %c1_32 = arith.constant 1 : index
      %c2_33 = arith.constant 2 : index
      %c0_34 = arith.constant 0 : index
      %c0_35 = arith.constant 0 : index
      %38 = vector.load %arg3[%c1_32, %c2_33, %c0_34, %c0_35] : memref<3x3x24x24xbf16, #tpu.memory_space<vmem>>, vector<1x1x24x24xbf16>
      %39 = vector.shape_cast %38 : vector<1x1x24x24xbf16> to vector<24x24xbf16>
      %40 = vector.extract_strided_slice %27 {offsets = [0, 2], sizes = [24, 16], strides = [1, 1]} : vector<24x18xbf16> to vector<24x16xbf16>
      %cst_36 = arith.constant dense<0.000000e+00> : vector<24x16xf32>
      %41 = tpu.matmul %39, %40, %cst_36 {dimension_numbers = #tpu.dot_dimension_numbers<[1], [0], [0], [1], [0, 0, 1, 1], [], []>} : vector<24x24xbf16>, vector<24x16xbf16>, vector<24x16xf32> -> vector<24x16xf32>
      %42 = arith.addf %37, %41 : vector<24x16xf32>
      %43 = arith.addi %0, %arg7 : i32
      %c2_i32 = arith.constant 2 : i32
      %44 = arith.addi %43, %c2_i32 : i32
      %c0_37 = arith.constant 0 : index
      %45 = arith.index_cast %44 : i32 to index
      %c0_38 = arith.constant 0 : index
      %c0_39 = arith.constant 0 : index
      %46 = vector.load %arg2[%c0_37, %45, %c0_38, %c0_39] : memref<1x18x24x18xbf16, #tpu.memory_space<vmem>>, vector<1x1x24x18xbf16>
      %47 = vector.shape_cast %46 : vector<1x1x24x18xbf16> to vector<24x18xbf16>
      %c2_40 = arith.constant 2 : index
      %c0_41 = arith.constant 0 : index
      %c0_42 = arith.constant 0 : index
      %c0_43 = arith.constant 0 : index
      %48 = vector.load %arg3[%c2_40, %c0_41, %c0_42, %c0_43] : memref<3x3x24x24xbf16, #tpu.memory_space<vmem>>, vector<1x1x24x24xbf16>
      %49 = vector.shape_cast %48 : vector<1x1x24x24xbf16> to vector<24x24xbf16>
      %50 = vector.extract_strided_slice %47 {offsets = [0, 0], sizes = [24, 16], strides = [1, 1]} : vector<24x18xbf16> to vector<24x16xbf16>
      %cst_44 = arith.constant dense<0.000000e+00> : vector<24x16xf32>
      %51 = tpu.matmul %49, %50, %cst_44 {dimension_numbers = #tpu.dot_dimension_numbers<[1], [0], [0], [1], [0, 0, 1, 1], [], []>} : vector<24x24xbf16>, vector<24x16xbf16>, vector<24x16xf32> -> vector<24x16xf32>
      %52 = arith.addf %42, %51 : vector<24x16xf32>
      %c2_45 = arith.constant 2 : index
      %c1_46 = arith.constant 1 : index
      %c0_47 = arith.constant 0 : index
      %c0_48 = arith.constant 0 : index
      %53 = vector.load %arg3[%c2_45, %c1_46, %c0_47, %c0_48] : memref<3x3x24x24xbf16, #tpu.memory_space<vmem>>, vector<1x1x24x24xbf16>
      %54 = vector.shape_cast %53 : vector<1x1x24x24xbf16> to vector<24x24xbf16>
      %55 = vector.extract_strided_slice %47 {offsets = [0, 1], sizes = [24, 16], strides = [1, 1]} : vector<24x18xbf16> to vector<24x16xbf16>
      %cst_49 = arith.constant dense<0.000000e+00> : vector<24x16xf32>
      %56 = tpu.matmul %54, %55, %cst_49 {dimension_numbers = #tpu.dot_dimension_numbers<[1], [0], [0], [1], [0, 0, 1, 1], [], []>} : vector<24x24xbf16>, vector<24x16xbf16>, vector<24x16xf32> -> vector<24x16xf32>
      %57 = arith.addf %52, %56 : vector<24x16xf32>
      %c2_50 = arith.constant 2 : index
      %c2_51 = arith.constant 2 : index
      %c0_52 = arith.constant 0 : index
      %c0_53 = arith.constant 0 : index
      %58 = vector.load %arg3[%c2_50, %c2_51, %c0_52, %c0_53] : memref<3x3x24x24xbf16, #tpu.memory_space<vmem>>, vector<1x1x24x24xbf16>
      %59 = vector.shape_cast %58 : vector<1x1x24x24xbf16> to vector<24x24xbf16>
      %60 = vector.extract_strided_slice %47 {offsets = [0, 2], sizes = [24, 16], strides = [1, 1]} : vector<24x18xbf16> to vector<24x16xbf16>
      %cst_54 = arith.constant dense<0.000000e+00> : vector<24x16xf32>
      %61 = tpu.matmul %59, %60, %cst_54 {dimension_numbers = #tpu.dot_dimension_numbers<[1], [0], [0], [1], [0, 0, 1, 1], [], []>} : vector<24x24xbf16>, vector<24x16xbf16>, vector<24x16xf32> -> vector<24x16xf32>
      %62 = arith.addf %57, %61 : vector<24x16xf32>
      %c0_55 = arith.constant 0 : index
      %c0_56 = arith.constant 0 : index
      %63 = vector.load %arg4[%c0_55, %c0_56] : memref<24x1xf32, #tpu.memory_space<vmem>>, vector<24x1xf32>
      %64 = vector.broadcast %63 : vector<24x1xf32> to vector<24x16xf32>
      %65 = arith.mulf %62, %64 : vector<24x16xf32>
      %c0_57 = arith.constant 0 : index
      %c0_58 = arith.constant 0 : index
      %66 = vector.load %arg5[%c0_57, %c0_58] : memref<24x1xf32, #tpu.memory_space<vmem>>, vector<24x1xf32>
      %67 = vector.broadcast %66 : vector<24x1xf32> to vector<24x16xf32>
      %68 = arith.addf %65, %67 : vector<24x16xf32>
      %cst_59 = arith.constant 0.000000e+00 : f32
      %69 = vector.broadcast %cst_59 : f32 to vector<24x16xf32>
      %70 = arith.maximumf %68, %69 : vector<24x16xf32>
      %71 = arith.truncf %70 : vector<24x16xf32> to vector<24x16xbf16>
      %c0_60 = arith.constant 0 : index
      %72 = arith.index_cast %arg7 : i32 to index
      %c0_61 = arith.constant 0 : index
      %c0_62 = arith.constant 0 : index
      %73 = vector.load %arg6[%c0_60, %72, %c0_61, %c0_62] : memref<1x16x24x16xbf16, #tpu.memory_space<vmem>>, vector<1x1x24x16xbf16>
      %74 = vector.shape_cast %73 : vector<1x1x24x16xbf16> to vector<24x16xbf16>
      %75 = vector.shape_cast %71 : vector<24x16xbf16> to vector<1x1x24x16xbf16>
      tpu.vector_store %arg6[%c0_60, %72, %c0_61, %c0_62], %75 {strides = array<i32>} : memref<1x16x24x16xbf16, #tpu.memory_space<vmem>>, vector<1x1x24x16xbf16>,
    }
    %c16_i32_1 = arith.constant 16 : i32
    return
  }
  func.func @transform_0(%arg0: i32, %arg1: i32) -> (i32, i32, i32, i32) {
    %c0_i32 = arith.constant 0 : i32
    %c0_i32_0 = arith.constant 0 : i32
    %c0_i32_1 = arith.constant 0 : i32
    %c0_i32_2 = arith.constant 0 : i32
    return %arg0, %c0_i32, %c0_i32_0, %c0_i32_1 : i32, i32, i32, i32
  }
  func.func @transform_1(%arg0: i32, %arg1: i32) -> (i32, i32, i32, i32) {
    %c0_i32 = arith.constant 0 : i32
    %c0_i32_0 = arith.constant 0 : i32
    %c0_i32_1 = arith.constant 0 : i32
    %c0_i32_2 = arith.constant 0 : i32
    %c0_i32_3 = arith.constant 0 : i32
    return %c0_i32, %c0_i32_0, %c0_i32_1, %c0_i32_2 : i32, i32, i32, i32
  }
  func.func @transform_2(%arg0: i32, %arg1: i32) -> (i32, i32) {
    %c0_i32 = arith.constant 0 : i32
    %c0_i32_0 = arith.constant 0 : i32
    %c0_i32_1 = arith.constant 0 : i32
    return %c0_i32, %c0_i32_0 : i32, i32
  }
  func.func @transform_3(%arg0: i32, %arg1: i32) -> (i32, i32) {
    %c0_i32 = arith.constant 0 : i32
    %c0_i32_0 = arith.constant 0 : i32
    %c0_i32_1 = arith.constant 0 : i32
    return %c0_i32, %c0_i32_0 : i32, i32
  }
  func.func @transform_4(%arg0: i32, %arg1: i32) -> (i32, i32, i32, i32) {
    %c0_i32 = arith.constant 0 : i32
    %c0_i32_0 = arith.constant 0 : i32
    %c0_i32_1 = arith.constant 0 : i32
    return %arg0, %arg1, %c0_i32, %c0_i32_0 : i32, i32, i32, i32
  }
}

module attributes {stable_mosaic.version = 11 : i64} {
  func.func @_conv_kernel(%arg0: i32, %arg1: i32, %arg2: memref<1x10x24x10xbf16, #tpu.memory_space<vmem>>, %arg3: memref<3x3x48x24xbf16, #tpu.memory_space<vmem>>, %arg4: memref<48x1xf32, #tpu.memory_space<vmem>>, %arg5: memref<48x1xf32, #tpu.memory_space<vmem>>, %arg6: memref<1x8x48x8xbf16, #tpu.memory_space<vmem>>) attributes {dimension_semantics = [#tpu.dimension_semantics<parallel>, #tpu.dimension_semantics<parallel>], iteration_bounds = array<i64: 2, 1>, scalar_prefetch = 0 : i64, scratch_operands = 0 : i64, tpu.core_type = #tpu.core_type<tc>, window_params = [{transform_indices = @transform_0, window_bounds = array<i64: 1, 10, 24, 10>}, {pipeline_mode = #tpu.pipeline_mode<synchronous>, transform_indices = @transform_1, window_bounds = array<i64: 3, 3, 48, 24>}, {pipeline_mode = #tpu.pipeline_mode<synchronous>, transform_indices = @transform_2, window_bounds = array<i64: 48, 1>}, {pipeline_mode = #tpu.pipeline_mode<synchronous>, transform_indices = @transform_3, window_bounds = array<i64: 48, 1>}, {transform_indices = @transform_4, window_bounds = array<i64: 1, 8, 48, 8>}]} {
    %c8_i32 = arith.constant 8 : i32
    %0 = arith.muli %arg1, %c8_i32 : i32
    %c0_i32 = arith.constant 0 : i32
    %c8_i32_0 = arith.constant 8 : i32
    %1 = arith.addi %c0_i32, %c8_i32_0 : i32
    %c1_i32 = arith.constant 1 : i32
    scf.for %arg7 = %c0_i32 to %1 step %c1_i32  : i32 {
      %cst = arith.constant 0.000000e+00 : f32
      %2 = vector.broadcast %cst : f32 to vector<48x8xf32>
      %3 = arith.addi %0, %arg7 : i32
      %c0_i32_2 = arith.constant 0 : i32
      %4 = arith.addi %3, %c0_i32_2 : i32
      %c0 = arith.constant 0 : index
      %5 = arith.index_cast %4 : i32 to index
      %c0_3 = arith.constant 0 : index
      %c0_4 = arith.constant 0 : index
      %6 = vector.load %arg2[%c0, %5, %c0_3, %c0_4] : memref<1x10x24x10xbf16, #tpu.memory_space<vmem>>, vector<1x1x24x10xbf16>
      %7 = vector.shape_cast %6 : vector<1x1x24x10xbf16> to vector<24x10xbf16>
      %c0_5 = arith.constant 0 : index
      %c0_6 = arith.constant 0 : index
      %c0_7 = arith.constant 0 : index
      %c0_8 = arith.constant 0 : index
      %8 = vector.load %arg3[%c0_5, %c0_6, %c0_7, %c0_8] : memref<3x3x48x24xbf16, #tpu.memory_space<vmem>>, vector<1x1x48x24xbf16>
      %9 = vector.shape_cast %8 : vector<1x1x48x24xbf16> to vector<48x24xbf16>
      %10 = vector.extract_strided_slice %7 {offsets = [0, 0], sizes = [24, 8], strides = [1, 1]} : vector<24x10xbf16> to vector<24x8xbf16>
      %cst_9 = arith.constant dense<0.000000e+00> : vector<48x8xf32>
      %11 = tpu.matmul %9, %10, %cst_9 {dimension_numbers = #tpu.dot_dimension_numbers<[1], [0], [0], [1], [0, 0, 1, 1], [], []>} : vector<48x24xbf16>, vector<24x8xbf16>, vector<48x8xf32> -> vector<48x8xf32>
      %12 = arith.addf %2, %11 : vector<48x8xf32>
      %c0_10 = arith.constant 0 : index
      %c1 = arith.constant 1 : index
      %c0_11 = arith.constant 0 : index
      %c0_12 = arith.constant 0 : index
      %13 = vector.load %arg3[%c0_10, %c1, %c0_11, %c0_12] : memref<3x3x48x24xbf16, #tpu.memory_space<vmem>>, vector<1x1x48x24xbf16>
      %14 = vector.shape_cast %13 : vector<1x1x48x24xbf16> to vector<48x24xbf16>
      %15 = vector.extract_strided_slice %7 {offsets = [0, 1], sizes = [24, 8], strides = [1, 1]} : vector<24x10xbf16> to vector<24x8xbf16>
      %cst_13 = arith.constant dense<0.000000e+00> : vector<48x8xf32>
      %16 = tpu.matmul %14, %15, %cst_13 {dimension_numbers = #tpu.dot_dimension_numbers<[1], [0], [0], [1], [0, 0, 1, 1], [], []>} : vector<48x24xbf16>, vector<24x8xbf16>, vector<48x8xf32> -> vector<48x8xf32>
      %17 = arith.addf %12, %16 : vector<48x8xf32>
      %c0_14 = arith.constant 0 : index
      %c2 = arith.constant 2 : index
      %c0_15 = arith.constant 0 : index
      %c0_16 = arith.constant 0 : index
      %18 = vector.load %arg3[%c0_14, %c2, %c0_15, %c0_16] : memref<3x3x48x24xbf16, #tpu.memory_space<vmem>>, vector<1x1x48x24xbf16>
      %19 = vector.shape_cast %18 : vector<1x1x48x24xbf16> to vector<48x24xbf16>
      %20 = vector.extract_strided_slice %7 {offsets = [0, 2], sizes = [24, 8], strides = [1, 1]} : vector<24x10xbf16> to vector<24x8xbf16>
      %cst_17 = arith.constant dense<0.000000e+00> : vector<48x8xf32>
      %21 = tpu.matmul %19, %20, %cst_17 {dimension_numbers = #tpu.dot_dimension_numbers<[1], [0], [0], [1], [0, 0, 1, 1], [], []>} : vector<48x24xbf16>, vector<24x8xbf16>, vector<48x8xf32> -> vector<48x8xf32>
      %22 = arith.addf %17, %21 : vector<48x8xf32>
      %23 = arith.addi %0, %arg7 : i32
      %c1_i32_18 = arith.constant 1 : i32
      %24 = arith.addi %23, %c1_i32_18 : i32
      %c0_19 = arith.constant 0 : index
      %25 = arith.index_cast %24 : i32 to index
      %c0_20 = arith.constant 0 : index
      %c0_21 = arith.constant 0 : index
      %26 = vector.load %arg2[%c0_19, %25, %c0_20, %c0_21] : memref<1x10x24x10xbf16, #tpu.memory_space<vmem>>, vector<1x1x24x10xbf16>
      %27 = vector.shape_cast %26 : vector<1x1x24x10xbf16> to vector<24x10xbf16>
      %c1_22 = arith.constant 1 : index
      %c0_23 = arith.constant 0 : index
      %c0_24 = arith.constant 0 : index
      %c0_25 = arith.constant 0 : index
      %28 = vector.load %arg3[%c1_22, %c0_23, %c0_24, %c0_25] : memref<3x3x48x24xbf16, #tpu.memory_space<vmem>>, vector<1x1x48x24xbf16>
      %29 = vector.shape_cast %28 : vector<1x1x48x24xbf16> to vector<48x24xbf16>
      %30 = vector.extract_strided_slice %27 {offsets = [0, 0], sizes = [24, 8], strides = [1, 1]} : vector<24x10xbf16> to vector<24x8xbf16>
      %cst_26 = arith.constant dense<0.000000e+00> : vector<48x8xf32>
      %31 = tpu.matmul %29, %30, %cst_26 {dimension_numbers = #tpu.dot_dimension_numbers<[1], [0], [0], [1], [0, 0, 1, 1], [], []>} : vector<48x24xbf16>, vector<24x8xbf16>, vector<48x8xf32> -> vector<48x8xf32>
      %32 = arith.addf %22, %31 : vector<48x8xf32>
      %c1_27 = arith.constant 1 : index
      %c1_28 = arith.constant 1 : index
      %c0_29 = arith.constant 0 : index
      %c0_30 = arith.constant 0 : index
      %33 = vector.load %arg3[%c1_27, %c1_28, %c0_29, %c0_30] : memref<3x3x48x24xbf16, #tpu.memory_space<vmem>>, vector<1x1x48x24xbf16>
      %34 = vector.shape_cast %33 : vector<1x1x48x24xbf16> to vector<48x24xbf16>
      %35 = vector.extract_strided_slice %27 {offsets = [0, 1], sizes = [24, 8], strides = [1, 1]} : vector<24x10xbf16> to vector<24x8xbf16>
      %cst_31 = arith.constant dense<0.000000e+00> : vector<48x8xf32>
      %36 = tpu.matmul %34, %35, %cst_31 {dimension_numbers = #tpu.dot_dimension_numbers<[1], [0], [0], [1], [0, 0, 1, 1], [], []>} : vector<48x24xbf16>, vector<24x8xbf16>, vector<48x8xf32> -> vector<48x8xf32>
      %37 = arith.addf %32, %36 : vector<48x8xf32>
      %c1_32 = arith.constant 1 : index
      %c2_33 = arith.constant 2 : index
      %c0_34 = arith.constant 0 : index
      %c0_35 = arith.constant 0 : index
      %38 = vector.load %arg3[%c1_32, %c2_33, %c0_34, %c0_35] : memref<3x3x48x24xbf16, #tpu.memory_space<vmem>>, vector<1x1x48x24xbf16>
      %39 = vector.shape_cast %38 : vector<1x1x48x24xbf16> to vector<48x24xbf16>
      %40 = vector.extract_strided_slice %27 {offsets = [0, 2], sizes = [24, 8], strides = [1, 1]} : vector<24x10xbf16> to vector<24x8xbf16>
      %cst_36 = arith.constant dense<0.000000e+00> : vector<48x8xf32>
      %41 = tpu.matmul %39, %40, %cst_36 {dimension_numbers = #tpu.dot_dimension_numbers<[1], [0], [0], [1], [0, 0, 1, 1], [], []>} : vector<48x24xbf16>, vector<24x8xbf16>, vector<48x8xf32> -> vector<48x8xf32>
      %42 = arith.addf %37, %41 : vector<48x8xf32>
      %43 = arith.addi %0, %arg7 : i32
      %c2_i32 = arith.constant 2 : i32
      %44 = arith.addi %43, %c2_i32 : i32
      %c0_37 = arith.constant 0 : index
      %45 = arith.index_cast %44 : i32 to index
      %c0_38 = arith.constant 0 : index
      %c0_39 = arith.constant 0 : index
      %46 = vector.load %arg2[%c0_37, %45, %c0_38, %c0_39] : memref<1x10x24x10xbf16, #tpu.memory_space<vmem>>, vector<1x1x24x10xbf16>
      %47 = vector.shape_cast %46 : vector<1x1x24x10xbf16> to vector<24x10xbf16>
      %c2_40 = arith.constant 2 : index
      %c0_41 = arith.constant 0 : index
      %c0_42 = arith.constant 0 : index
      %c0_43 = arith.constant 0 : index
      %48 = vector.load %arg3[%c2_40, %c0_41, %c0_42, %c0_43] : memref<3x3x48x24xbf16, #tpu.memory_space<vmem>>, vector<1x1x48x24xbf16>
      %49 = vector.shape_cast %48 : vector<1x1x48x24xbf16> to vector<48x24xbf16>
      %50 = vector.extract_strided_slice %47 {offsets = [0, 0], sizes = [24, 8], strides = [1, 1]} : vector<24x10xbf16> to vector<24x8xbf16>
      %cst_44 = arith.constant dense<0.000000e+00> : vector<48x8xf32>
      %51 = tpu.matmul %49, %50, %cst_44 {dimension_numbers = #tpu.dot_dimension_numbers<[1], [0], [0], [1], [0, 0, 1, 1], [], []>} : vector<48x24xbf16>, vector<24x8xbf16>, vector<48x8xf32> -> vector<48x8xf32>
      %52 = arith.addf %42, %51 : vector<48x8xf32>
      %c2_45 = arith.constant 2 : index
      %c1_46 = arith.constant 1 : index
      %c0_47 = arith.constant 0 : index
      %c0_48 = arith.constant 0 : index
      %53 = vector.load %arg3[%c2_45, %c1_46, %c0_47, %c0_48] : memref<3x3x48x24xbf16, #tpu.memory_space<vmem>>, vector<1x1x48x24xbf16>
      %54 = vector.shape_cast %53 : vector<1x1x48x24xbf16> to vector<48x24xbf16>
      %55 = vector.extract_strided_slice %47 {offsets = [0, 1], sizes = [24, 8], strides = [1, 1]} : vector<24x10xbf16> to vector<24x8xbf16>
      %cst_49 = arith.constant dense<0.000000e+00> : vector<48x8xf32>
      %56 = tpu.matmul %54, %55, %cst_49 {dimension_numbers = #tpu.dot_dimension_numbers<[1], [0], [0], [1], [0, 0, 1, 1], [], []>} : vector<48x24xbf16>, vector<24x8xbf16>, vector<48x8xf32> -> vector<48x8xf32>
      %57 = arith.addf %52, %56 : vector<48x8xf32>
      %c2_50 = arith.constant 2 : index
      %c2_51 = arith.constant 2 : index
      %c0_52 = arith.constant 0 : index
      %c0_53 = arith.constant 0 : index
      %58 = vector.load %arg3[%c2_50, %c2_51, %c0_52, %c0_53] : memref<3x3x48x24xbf16, #tpu.memory_space<vmem>>, vector<1x1x48x24xbf16>
      %59 = vector.shape_cast %58 : vector<1x1x48x24xbf16> to vector<48x24xbf16>
      %60 = vector.extract_strided_slice %47 {offsets = [0, 2], sizes = [24, 8], strides = [1, 1]} : vector<24x10xbf16> to vector<24x8xbf16>
      %cst_54 = arith.constant dense<0.000000e+00> : vector<48x8xf32>
      %61 = tpu.matmul %59, %60, %cst_54 {dimension_numbers = #tpu.dot_dimension_numbers<[1], [0], [0], [1], [0, 0, 1, 1], [], []>} : vector<48x24xbf16>, vector<24x8xbf16>, vector<48x8xf32> -> vector<48x8xf32>
      %62 = arith.addf %57, %61 : vector<48x8xf32>
      %c0_55 = arith.constant 0 : index
      %c0_56 = arith.constant 0 : index
      %63 = vector.load %arg4[%c0_55, %c0_56] : memref<48x1xf32, #tpu.memory_space<vmem>>, vector<48x1xf32>
      %64 = vector.broadcast %63 : vector<48x1xf32> to vector<48x8xf32>
      %65 = arith.mulf %62, %64 : vector<48x8xf32>
      %c0_57 = arith.constant 0 : index
      %c0_58 = arith.constant 0 : index
      %66 = vector.load %arg5[%c0_57, %c0_58] : memref<48x1xf32, #tpu.memory_space<vmem>>, vector<48x1xf32>
      %67 = vector.broadcast %66 : vector<48x1xf32> to vector<48x8xf32>
      %68 = arith.addf %65, %67 : vector<48x8xf32>
      %cst_59 = arith.constant 0.000000e+00 : f32
      %69 = vector.broadcast %cst_59 : f32 to vector<48x8xf32>
      %70 = arith.maximumf %68, %69 : vector<48x8xf32>
      %71 = arith.truncf %70 : vector<48x8xf32> to vector<48x8xbf16>
      %c0_60 = arith.constant 0 : index
      %72 = arith.index_cast %arg7 : i32 to index
      %c0_61 = arith.constant 0 : index
      %c0_62 = arith.constant 0 : index
      %73 = vector.load %arg6[%c0_60, %72, %c0_61, %c0_62] : memref<1x8x48x8xbf16, #tpu.memory_space<vmem>>, vector<1x1x48x8xbf16>
      %74 = vector.shape_cast %73 : vector<1x1x48x8xbf16> to vector<48x8xbf16>
      %75 = vector.shape_cast %71 : vector<48x8xbf16> to vector<1x1x48x8xbf16>
      tpu.vector_store %arg6[%c0_60, %72, %c0_61, %c0_62], %75 {strides = array<i32>} : memref<1x8x48x8xbf16, #tpu.memory_space<vmem>>, vector<1x1x48x8xbf16>,
    }
    %c8_i32_1 = arith.constant 8 : i32
    return
  }
  func.func @transform_0(%arg0: i32, %arg1: i32) -> (i32, i32, i32, i32) {
    %c0_i32 = arith.constant 0 : i32
    %c0_i32_0 = arith.constant 0 : i32
    %c0_i32_1 = arith.constant 0 : i32
    %c0_i32_2 = arith.constant 0 : i32
    return %arg0, %c0_i32, %c0_i32_0, %c0_i32_1 : i32, i32, i32, i32
  }
  func.func @transform_1(%arg0: i32, %arg1: i32) -> (i32, i32, i32, i32) {
    %c0_i32 = arith.constant 0 : i32
    %c0_i32_0 = arith.constant 0 : i32
    %c0_i32_1 = arith.constant 0 : i32
    %c0_i32_2 = arith.constant 0 : i32
    %c0_i32_3 = arith.constant 0 : i32
    return %c0_i32, %c0_i32_0, %c0_i32_1, %c0_i32_2 : i32, i32, i32, i32
  }
  func.func @transform_2(%arg0: i32, %arg1: i32) -> (i32, i32) {
    %c0_i32 = arith.constant 0 : i32
    %c0_i32_0 = arith.constant 0 : i32
    %c0_i32_1 = arith.constant 0 : i32
    return %c0_i32, %c0_i32_0 : i32, i32
  }
  func.func @transform_3(%arg0: i32, %arg1: i32) -> (i32, i32) {
    %c0_i32 = arith.constant 0 : i32
    %c0_i32_0 = arith.constant 0 : i32
    %c0_i32_1 = arith.constant 0 : i32
    return %c0_i32, %c0_i32_0 : i32, i32
  }
  func.func @transform_4(%arg0: i32, %arg1: i32) -> (i32, i32, i32, i32) {
    %c0_i32 = arith.constant 0 : i32
    %c0_i32_0 = arith.constant 0 : i32
    %c0_i32_1 = arith.constant 0 : i32
    return %arg0, %arg1, %c0_i32, %c0_i32_0 : i32, i32, i32, i32
  }
}

module attributes {stable_mosaic.version = 11 : i64} {
  func.func @_conv_kernel(%arg0: i32, %arg1: i32, %arg2: memref<1x10x48x10xbf16, #tpu.memory_space<vmem>>, %arg3: memref<3x3x48x48xbf16, #tpu.memory_space<vmem>>, %arg4: memref<48x1xf32, #tpu.memory_space<vmem>>, %arg5: memref<48x1xf32, #tpu.memory_space<vmem>>, %arg6: memref<1x8x48x8xbf16, #tpu.memory_space<vmem>>) attributes {dimension_semantics = [#tpu.dimension_semantics<parallel>, #tpu.dimension_semantics<parallel>], iteration_bounds = array<i64: 2, 1>, scalar_prefetch = 0 : i64, scratch_operands = 0 : i64, tpu.core_type = #tpu.core_type<tc>, window_params = [{transform_indices = @transform_0, window_bounds = array<i64: 1, 10, 48, 10>}, {pipeline_mode = #tpu.pipeline_mode<synchronous>, transform_indices = @transform_1, window_bounds = array<i64: 3, 3, 48, 48>}, {pipeline_mode = #tpu.pipeline_mode<synchronous>, transform_indices = @transform_2, window_bounds = array<i64: 48, 1>}, {pipeline_mode = #tpu.pipeline_mode<synchronous>, transform_indices = @transform_3, window_bounds = array<i64: 48, 1>}, {transform_indices = @transform_4, window_bounds = array<i64: 1, 8, 48, 8>}]} {
    %c8_i32 = arith.constant 8 : i32
    %0 = arith.muli %arg1, %c8_i32 : i32
    %c0_i32 = arith.constant 0 : i32
    %c8_i32_0 = arith.constant 8 : i32
    %1 = arith.addi %c0_i32, %c8_i32_0 : i32
    %c1_i32 = arith.constant 1 : i32
    scf.for %arg7 = %c0_i32 to %1 step %c1_i32  : i32 {
      %cst = arith.constant 0.000000e+00 : f32
      %2 = vector.broadcast %cst : f32 to vector<48x8xf32>
      %3 = arith.addi %0, %arg7 : i32
      %c0_i32_2 = arith.constant 0 : i32
      %4 = arith.addi %3, %c0_i32_2 : i32
      %c0 = arith.constant 0 : index
      %5 = arith.index_cast %4 : i32 to index
      %c0_3 = arith.constant 0 : index
      %c0_4 = arith.constant 0 : index
      %6 = vector.load %arg2[%c0, %5, %c0_3, %c0_4] : memref<1x10x48x10xbf16, #tpu.memory_space<vmem>>, vector<1x1x48x10xbf16>
      %7 = vector.shape_cast %6 : vector<1x1x48x10xbf16> to vector<48x10xbf16>
      %c0_5 = arith.constant 0 : index
      %c0_6 = arith.constant 0 : index
      %c0_7 = arith.constant 0 : index
      %c0_8 = arith.constant 0 : index
      %8 = vector.load %arg3[%c0_5, %c0_6, %c0_7, %c0_8] : memref<3x3x48x48xbf16, #tpu.memory_space<vmem>>, vector<1x1x48x48xbf16>
      %9 = vector.shape_cast %8 : vector<1x1x48x48xbf16> to vector<48x48xbf16>
      %10 = vector.extract_strided_slice %7 {offsets = [0, 0], sizes = [48, 8], strides = [1, 1]} : vector<48x10xbf16> to vector<48x8xbf16>
      %cst_9 = arith.constant dense<0.000000e+00> : vector<48x8xf32>
      %11 = tpu.matmul %9, %10, %cst_9 {dimension_numbers = #tpu.dot_dimension_numbers<[1], [0], [0], [1], [0, 0, 1, 1], [], []>} : vector<48x48xbf16>, vector<48x8xbf16>, vector<48x8xf32> -> vector<48x8xf32>
      %12 = arith.addf %2, %11 : vector<48x8xf32>
      %c0_10 = arith.constant 0 : index
      %c1 = arith.constant 1 : index
      %c0_11 = arith.constant 0 : index
      %c0_12 = arith.constant 0 : index
      %13 = vector.load %arg3[%c0_10, %c1, %c0_11, %c0_12] : memref<3x3x48x48xbf16, #tpu.memory_space<vmem>>, vector<1x1x48x48xbf16>
      %14 = vector.shape_cast %13 : vector<1x1x48x48xbf16> to vector<48x48xbf16>
      %15 = vector.extract_strided_slice %7 {offsets = [0, 1], sizes = [48, 8], strides = [1, 1]} : vector<48x10xbf16> to vector<48x8xbf16>
      %cst_13 = arith.constant dense<0.000000e+00> : vector<48x8xf32>
      %16 = tpu.matmul %14, %15, %cst_13 {dimension_numbers = #tpu.dot_dimension_numbers<[1], [0], [0], [1], [0, 0, 1, 1], [], []>} : vector<48x48xbf16>, vector<48x8xbf16>, vector<48x8xf32> -> vector<48x8xf32>
      %17 = arith.addf %12, %16 : vector<48x8xf32>
      %c0_14 = arith.constant 0 : index
      %c2 = arith.constant 2 : index
      %c0_15 = arith.constant 0 : index
      %c0_16 = arith.constant 0 : index
      %18 = vector.load %arg3[%c0_14, %c2, %c0_15, %c0_16] : memref<3x3x48x48xbf16, #tpu.memory_space<vmem>>, vector<1x1x48x48xbf16>
      %19 = vector.shape_cast %18 : vector<1x1x48x48xbf16> to vector<48x48xbf16>
      %20 = vector.extract_strided_slice %7 {offsets = [0, 2], sizes = [48, 8], strides = [1, 1]} : vector<48x10xbf16> to vector<48x8xbf16>
      %cst_17 = arith.constant dense<0.000000e+00> : vector<48x8xf32>
      %21 = tpu.matmul %19, %20, %cst_17 {dimension_numbers = #tpu.dot_dimension_numbers<[1], [0], [0], [1], [0, 0, 1, 1], [], []>} : vector<48x48xbf16>, vector<48x8xbf16>, vector<48x8xf32> -> vector<48x8xf32>
      %22 = arith.addf %17, %21 : vector<48x8xf32>
      %23 = arith.addi %0, %arg7 : i32
      %c1_i32_18 = arith.constant 1 : i32
      %24 = arith.addi %23, %c1_i32_18 : i32
      %c0_19 = arith.constant 0 : index
      %25 = arith.index_cast %24 : i32 to index
      %c0_20 = arith.constant 0 : index
      %c0_21 = arith.constant 0 : index
      %26 = vector.load %arg2[%c0_19, %25, %c0_20, %c0_21] : memref<1x10x48x10xbf16, #tpu.memory_space<vmem>>, vector<1x1x48x10xbf16>
      %27 = vector.shape_cast %26 : vector<1x1x48x10xbf16> to vector<48x10xbf16>
      %c1_22 = arith.constant 1 : index
      %c0_23 = arith.constant 0 : index
      %c0_24 = arith.constant 0 : index
      %c0_25 = arith.constant 0 : index
      %28 = vector.load %arg3[%c1_22, %c0_23, %c0_24, %c0_25] : memref<3x3x48x48xbf16, #tpu.memory_space<vmem>>, vector<1x1x48x48xbf16>
      %29 = vector.shape_cast %28 : vector<1x1x48x48xbf16> to vector<48x48xbf16>
      %30 = vector.extract_strided_slice %27 {offsets = [0, 0], sizes = [48, 8], strides = [1, 1]} : vector<48x10xbf16> to vector<48x8xbf16>
      %cst_26 = arith.constant dense<0.000000e+00> : vector<48x8xf32>
      %31 = tpu.matmul %29, %30, %cst_26 {dimension_numbers = #tpu.dot_dimension_numbers<[1], [0], [0], [1], [0, 0, 1, 1], [], []>} : vector<48x48xbf16>, vector<48x8xbf16>, vector<48x8xf32> -> vector<48x8xf32>
      %32 = arith.addf %22, %31 : vector<48x8xf32>
      %c1_27 = arith.constant 1 : index
      %c1_28 = arith.constant 1 : index
      %c0_29 = arith.constant 0 : index
      %c0_30 = arith.constant 0 : index
      %33 = vector.load %arg3[%c1_27, %c1_28, %c0_29, %c0_30] : memref<3x3x48x48xbf16, #tpu.memory_space<vmem>>, vector<1x1x48x48xbf16>
      %34 = vector.shape_cast %33 : vector<1x1x48x48xbf16> to vector<48x48xbf16>
      %35 = vector.extract_strided_slice %27 {offsets = [0, 1], sizes = [48, 8], strides = [1, 1]} : vector<48x10xbf16> to vector<48x8xbf16>
      %cst_31 = arith.constant dense<0.000000e+00> : vector<48x8xf32>
      %36 = tpu.matmul %34, %35, %cst_31 {dimension_numbers = #tpu.dot_dimension_numbers<[1], [0], [0], [1], [0, 0, 1, 1], [], []>} : vector<48x48xbf16>, vector<48x8xbf16>, vector<48x8xf32> -> vector<48x8xf32>
      %37 = arith.addf %32, %36 : vector<48x8xf32>
      %c1_32 = arith.constant 1 : index
      %c2_33 = arith.constant 2 : index
      %c0_34 = arith.constant 0 : index
      %c0_35 = arith.constant 0 : index
      %38 = vector.load %arg3[%c1_32, %c2_33, %c0_34, %c0_35] : memref<3x3x48x48xbf16, #tpu.memory_space<vmem>>, vector<1x1x48x48xbf16>
      %39 = vector.shape_cast %38 : vector<1x1x48x48xbf16> to vector<48x48xbf16>
      %40 = vector.extract_strided_slice %27 {offsets = [0, 2], sizes = [48, 8], strides = [1, 1]} : vector<48x10xbf16> to vector<48x8xbf16>
      %cst_36 = arith.constant dense<0.000000e+00> : vector<48x8xf32>
      %41 = tpu.matmul %39, %40, %cst_36 {dimension_numbers = #tpu.dot_dimension_numbers<[1], [0], [0], [1], [0, 0, 1, 1], [], []>} : vector<48x48xbf16>, vector<48x8xbf16>, vector<48x8xf32> -> vector<48x8xf32>
      %42 = arith.addf %37, %41 : vector<48x8xf32>
      %43 = arith.addi %0, %arg7 : i32
      %c2_i32 = arith.constant 2 : i32
      %44 = arith.addi %43, %c2_i32 : i32
      %c0_37 = arith.constant 0 : index
      %45 = arith.index_cast %44 : i32 to index
      %c0_38 = arith.constant 0 : index
      %c0_39 = arith.constant 0 : index
      %46 = vector.load %arg2[%c0_37, %45, %c0_38, %c0_39] : memref<1x10x48x10xbf16, #tpu.memory_space<vmem>>, vector<1x1x48x10xbf16>
      %47 = vector.shape_cast %46 : vector<1x1x48x10xbf16> to vector<48x10xbf16>
      %c2_40 = arith.constant 2 : index
      %c0_41 = arith.constant 0 : index
      %c0_42 = arith.constant 0 : index
      %c0_43 = arith.constant 0 : index
      %48 = vector.load %arg3[%c2_40, %c0_41, %c0_42, %c0_43] : memref<3x3x48x48xbf16, #tpu.memory_space<vmem>>, vector<1x1x48x48xbf16>
      %49 = vector.shape_cast %48 : vector<1x1x48x48xbf16> to vector<48x48xbf16>
      %50 = vector.extract_strided_slice %47 {offsets = [0, 0], sizes = [48, 8], strides = [1, 1]} : vector<48x10xbf16> to vector<48x8xbf16>
      %cst_44 = arith.constant dense<0.000000e+00> : vector<48x8xf32>
      %51 = tpu.matmul %49, %50, %cst_44 {dimension_numbers = #tpu.dot_dimension_numbers<[1], [0], [0], [1], [0, 0, 1, 1], [], []>} : vector<48x48xbf16>, vector<48x8xbf16>, vector<48x8xf32> -> vector<48x8xf32>
      %52 = arith.addf %42, %51 : vector<48x8xf32>
      %c2_45 = arith.constant 2 : index
      %c1_46 = arith.constant 1 : index
      %c0_47 = arith.constant 0 : index
      %c0_48 = arith.constant 0 : index
      %53 = vector.load %arg3[%c2_45, %c1_46, %c0_47, %c0_48] : memref<3x3x48x48xbf16, #tpu.memory_space<vmem>>, vector<1x1x48x48xbf16>
      %54 = vector.shape_cast %53 : vector<1x1x48x48xbf16> to vector<48x48xbf16>
      %55 = vector.extract_strided_slice %47 {offsets = [0, 1], sizes = [48, 8], strides = [1, 1]} : vector<48x10xbf16> to vector<48x8xbf16>
      %cst_49 = arith.constant dense<0.000000e+00> : vector<48x8xf32>
      %56 = tpu.matmul %54, %55, %cst_49 {dimension_numbers = #tpu.dot_dimension_numbers<[1], [0], [0], [1], [0, 0, 1, 1], [], []>} : vector<48x48xbf16>, vector<48x8xbf16>, vector<48x8xf32> -> vector<48x8xf32>
      %57 = arith.addf %52, %56 : vector<48x8xf32>
      %c2_50 = arith.constant 2 : index
      %c2_51 = arith.constant 2 : index
      %c0_52 = arith.constant 0 : index
      %c0_53 = arith.constant 0 : index
      %58 = vector.load %arg3[%c2_50, %c2_51, %c0_52, %c0_53] : memref<3x3x48x48xbf16, #tpu.memory_space<vmem>>, vector<1x1x48x48xbf16>
      %59 = vector.shape_cast %58 : vector<1x1x48x48xbf16> to vector<48x48xbf16>
      %60 = vector.extract_strided_slice %47 {offsets = [0, 2], sizes = [48, 8], strides = [1, 1]} : vector<48x10xbf16> to vector<48x8xbf16>
      %cst_54 = arith.constant dense<0.000000e+00> : vector<48x8xf32>
      %61 = tpu.matmul %59, %60, %cst_54 {dimension_numbers = #tpu.dot_dimension_numbers<[1], [0], [0], [1], [0, 0, 1, 1], [], []>} : vector<48x48xbf16>, vector<48x8xbf16>, vector<48x8xf32> -> vector<48x8xf32>
      %62 = arith.addf %57, %61 : vector<48x8xf32>
      %c0_55 = arith.constant 0 : index
      %c0_56 = arith.constant 0 : index
      %63 = vector.load %arg4[%c0_55, %c0_56] : memref<48x1xf32, #tpu.memory_space<vmem>>, vector<48x1xf32>
      %64 = vector.broadcast %63 : vector<48x1xf32> to vector<48x8xf32>
      %65 = arith.mulf %62, %64 : vector<48x8xf32>
      %c0_57 = arith.constant 0 : index
      %c0_58 = arith.constant 0 : index
      %66 = vector.load %arg5[%c0_57, %c0_58] : memref<48x1xf32, #tpu.memory_space<vmem>>, vector<48x1xf32>
      %67 = vector.broadcast %66 : vector<48x1xf32> to vector<48x8xf32>
      %68 = arith.addf %65, %67 : vector<48x8xf32>
      %cst_59 = arith.constant 0.000000e+00 : f32
      %69 = vector.broadcast %cst_59 : f32 to vector<48x8xf32>
      %70 = arith.maximumf %68, %69 : vector<48x8xf32>
      %71 = arith.truncf %70 : vector<48x8xf32> to vector<48x8xbf16>
      %c0_60 = arith.constant 0 : index
      %72 = arith.index_cast %arg7 : i32 to index
      %c0_61 = arith.constant 0 : index
      %c0_62 = arith.constant 0 : index
      %73 = vector.load %arg6[%c0_60, %72, %c0_61, %c0_62] : memref<1x8x48x8xbf16, #tpu.memory_space<vmem>>, vector<1x1x48x8xbf16>
      %74 = vector.shape_cast %73 : vector<1x1x48x8xbf16> to vector<48x8xbf16>
      %75 = vector.shape_cast %71 : vector<48x8xbf16> to vector<1x1x48x8xbf16>
      tpu.vector_store %arg6[%c0_60, %72, %c0_61, %c0_62], %75 {strides = array<i32>} : memref<1x8x48x8xbf16, #tpu.memory_space<vmem>>, vector<1x1x48x8xbf16>,
    }
    %c8_i32_1 = arith.constant 8 : i32
    return
  }
  func.func @transform_0(%arg0: i32, %arg1: i32) -> (i32, i32, i32, i32) {
    %c0_i32 = arith.constant 0 : i32
    %c0_i32_0 = arith.constant 0 : i32
    %c0_i32_1 = arith.constant 0 : i32
    %c0_i32_2 = arith.constant 0 : i32
    return %arg0, %c0_i32, %c0_i32_0, %c0_i32_1 : i32, i32, i32, i32
  }
  func.func @transform_1(%arg0: i32, %arg1: i32) -> (i32, i32, i32, i32) {
    %c0_i32 = arith.constant 0 : i32
    %c0_i32_0 = arith.constant 0 : i32
    %c0_i32_1 = arith.constant 0 : i32
    %c0_i32_2 = arith.constant 0 : i32
    %c0_i32_3 = arith.constant 0 : i32
    return %c0_i32, %c0_i32_0, %c0_i32_1, %c0_i32_2 : i32, i32, i32, i32
  }
  func.func @transform_2(%arg0: i32, %arg1: i32) -> (i32, i32) {
    %c0_i32 = arith.constant 0 : i32
    %c0_i32_0 = arith.constant 0 : i32
    %c0_i32_1 = arith.constant 0 : i32
    return %c0_i32, %c0_i32_0 : i32, i32
  }
  func.func @transform_3(%arg0: i32, %arg1: i32) -> (i32, i32) {
    %c0_i32 = arith.constant 0 : i32
    %c0_i32_0 = arith.constant 0 : i32
    %c0_i32_1 = arith.constant 0 : i32
    return %c0_i32, %c0_i32_0 : i32, i32
  }
  func.func @transform_4(%arg0: i32, %arg1: i32) -> (i32, i32, i32, i32) {
    %c0_i32 = arith.constant 0 : i32
    %c0_i32_0 = arith.constant 0 : i32
    %c0_i32_1 = arith.constant 0 : i32
    return %arg0, %arg1, %c0_i32, %c0_i32_0 : i32, i32, i32, i32
  }
}

module attributes {stable_mosaic.version = 11 : i64} {
  func.func @_conv_kernel(%arg0: i32, %arg1: i32, %arg2: memref<1x6x48x6xbf16, #tpu.memory_space<vmem>>, %arg3: memref<3x3x16x48xbf16, #tpu.memory_space<vmem>>, %arg4: memref<16x1xf32, #tpu.memory_space<vmem>>, %arg5: memref<16x1xf32, #tpu.memory_space<vmem>>, %arg6: memref<1x4x16x4xbf16, #tpu.memory_space<vmem>>) attributes {dimension_semantics = [#tpu.dimension_semantics<parallel>, #tpu.dimension_semantics<parallel>], iteration_bounds = array<i64: 2, 1>, scalar_prefetch = 0 : i64, scratch_operands = 0 : i64, tpu.core_type = #tpu.core_type<tc>, window_params = [{transform_indices = @transform_0, window_bounds = array<i64: 1, 6, 48, 6>}, {pipeline_mode = #tpu.pipeline_mode<synchronous>, transform_indices = @transform_1, window_bounds = array<i64: 3, 3, 16, 48>}, {pipeline_mode = #tpu.pipeline_mode<synchronous>, transform_indices = @transform_2, window_bounds = array<i64: 16, 1>}, {pipeline_mode = #tpu.pipeline_mode<synchronous>, transform_indices = @transform_3, window_bounds = array<i64: 16, 1>}, {transform_indices = @transform_4, window_bounds = array<i64: 1, 4, 16, 4>}]} {
    %c4_i32 = arith.constant 4 : i32
    %0 = arith.muli %arg1, %c4_i32 : i32
    %c0_i32 = arith.constant 0 : i32
    %c4_i32_0 = arith.constant 4 : i32
    %1 = arith.addi %c0_i32, %c4_i32_0 : i32
    %c1_i32 = arith.constant 1 : i32
    scf.for %arg7 = %c0_i32 to %1 step %c1_i32  : i32 {
      %cst = arith.constant 0.000000e+00 : f32
      %2 = vector.broadcast %cst : f32 to vector<16x4xf32>
      %3 = arith.addi %0, %arg7 : i32
      %c0_i32_2 = arith.constant 0 : i32
      %4 = arith.addi %3, %c0_i32_2 : i32
      %c0 = arith.constant 0 : index
      %5 = arith.index_cast %4 : i32 to index
      %c0_3 = arith.constant 0 : index
      %c0_4 = arith.constant 0 : index
      %6 = vector.load %arg2[%c0, %5, %c0_3, %c0_4] : memref<1x6x48x6xbf16, #tpu.memory_space<vmem>>, vector<1x1x48x6xbf16>
      %7 = vector.shape_cast %6 : vector<1x1x48x6xbf16> to vector<48x6xbf16>
      %c0_5 = arith.constant 0 : index
      %c0_6 = arith.constant 0 : index
      %c0_7 = arith.constant 0 : index
      %c0_8 = arith.constant 0 : index
      %8 = vector.load %arg3[%c0_5, %c0_6, %c0_7, %c0_8] : memref<3x3x16x48xbf16, #tpu.memory_space<vmem>>, vector<1x1x16x48xbf16>
      %9 = vector.shape_cast %8 : vector<1x1x16x48xbf16> to vector<16x48xbf16>
      %10 = vector.extract_strided_slice %7 {offsets = [0, 0], sizes = [48, 4], strides = [1, 1]} : vector<48x6xbf16> to vector<48x4xbf16>
      %cst_9 = arith.constant dense<0.000000e+00> : vector<16x4xf32>
      %11 = tpu.matmul %9, %10, %cst_9 {dimension_numbers = #tpu.dot_dimension_numbers<[1], [0], [0], [1], [0, 0, 1, 1], [], []>} : vector<16x48xbf16>, vector<48x4xbf16>, vector<16x4xf32> -> vector<16x4xf32>
      %12 = arith.addf %2, %11 : vector<16x4xf32>
      %c0_10 = arith.constant 0 : index
      %c1 = arith.constant 1 : index
      %c0_11 = arith.constant 0 : index
      %c0_12 = arith.constant 0 : index
      %13 = vector.load %arg3[%c0_10, %c1, %c0_11, %c0_12] : memref<3x3x16x48xbf16, #tpu.memory_space<vmem>>, vector<1x1x16x48xbf16>
      %14 = vector.shape_cast %13 : vector<1x1x16x48xbf16> to vector<16x48xbf16>
      %15 = vector.extract_strided_slice %7 {offsets = [0, 1], sizes = [48, 4], strides = [1, 1]} : vector<48x6xbf16> to vector<48x4xbf16>
      %cst_13 = arith.constant dense<0.000000e+00> : vector<16x4xf32>
      %16 = tpu.matmul %14, %15, %cst_13 {dimension_numbers = #tpu.dot_dimension_numbers<[1], [0], [0], [1], [0, 0, 1, 1], [], []>} : vector<16x48xbf16>, vector<48x4xbf16>, vector<16x4xf32> -> vector<16x4xf32>
      %17 = arith.addf %12, %16 : vector<16x4xf32>
      %c0_14 = arith.constant 0 : index
      %c2 = arith.constant 2 : index
      %c0_15 = arith.constant 0 : index
      %c0_16 = arith.constant 0 : index
      %18 = vector.load %arg3[%c0_14, %c2, %c0_15, %c0_16] : memref<3x3x16x48xbf16, #tpu.memory_space<vmem>>, vector<1x1x16x48xbf16>
      %19 = vector.shape_cast %18 : vector<1x1x16x48xbf16> to vector<16x48xbf16>
      %20 = vector.extract_strided_slice %7 {offsets = [0, 2], sizes = [48, 4], strides = [1, 1]} : vector<48x6xbf16> to vector<48x4xbf16>
      %cst_17 = arith.constant dense<0.000000e+00> : vector<16x4xf32>
      %21 = tpu.matmul %19, %20, %cst_17 {dimension_numbers = #tpu.dot_dimension_numbers<[1], [0], [0], [1], [0, 0, 1, 1], [], []>} : vector<16x48xbf16>, vector<48x4xbf16>, vector<16x4xf32> -> vector<16x4xf32>
      %22 = arith.addf %17, %21 : vector<16x4xf32>
      %23 = arith.addi %0, %arg7 : i32
      %c1_i32_18 = arith.constant 1 : i32
      %24 = arith.addi %23, %c1_i32_18 : i32
      %c0_19 = arith.constant 0 : index
      %25 = arith.index_cast %24 : i32 to index
      %c0_20 = arith.constant 0 : index
      %c0_21 = arith.constant 0 : index
      %26 = vector.load %arg2[%c0_19, %25, %c0_20, %c0_21] : memref<1x6x48x6xbf16, #tpu.memory_space<vmem>>, vector<1x1x48x6xbf16>
      %27 = vector.shape_cast %26 : vector<1x1x48x6xbf16> to vector<48x6xbf16>
      %c1_22 = arith.constant 1 : index
      %c0_23 = arith.constant 0 : index
      %c0_24 = arith.constant 0 : index
      %c0_25 = arith.constant 0 : index
      %28 = vector.load %arg3[%c1_22, %c0_23, %c0_24, %c0_25] : memref<3x3x16x48xbf16, #tpu.memory_space<vmem>>, vector<1x1x16x48xbf16>
      %29 = vector.shape_cast %28 : vector<1x1x16x48xbf16> to vector<16x48xbf16>
      %30 = vector.extract_strided_slice %27 {offsets = [0, 0], sizes = [48, 4], strides = [1, 1]} : vector<48x6xbf16> to vector<48x4xbf16>
      %cst_26 = arith.constant dense<0.000000e+00> : vector<16x4xf32>
      %31 = tpu.matmul %29, %30, %cst_26 {dimension_numbers = #tpu.dot_dimension_numbers<[1], [0], [0], [1], [0, 0, 1, 1], [], []>} : vector<16x48xbf16>, vector<48x4xbf16>, vector<16x4xf32> -> vector<16x4xf32>
      %32 = arith.addf %22, %31 : vector<16x4xf32>
      %c1_27 = arith.constant 1 : index
      %c1_28 = arith.constant 1 : index
      %c0_29 = arith.constant 0 : index
      %c0_30 = arith.constant 0 : index
      %33 = vector.load %arg3[%c1_27, %c1_28, %c0_29, %c0_30] : memref<3x3x16x48xbf16, #tpu.memory_space<vmem>>, vector<1x1x16x48xbf16>
      %34 = vector.shape_cast %33 : vector<1x1x16x48xbf16> to vector<16x48xbf16>
      %35 = vector.extract_strided_slice %27 {offsets = [0, 1], sizes = [48, 4], strides = [1, 1]} : vector<48x6xbf16> to vector<48x4xbf16>
      %cst_31 = arith.constant dense<0.000000e+00> : vector<16x4xf32>
      %36 = tpu.matmul %34, %35, %cst_31 {dimension_numbers = #tpu.dot_dimension_numbers<[1], [0], [0], [1], [0, 0, 1, 1], [], []>} : vector<16x48xbf16>, vector<48x4xbf16>, vector<16x4xf32> -> vector<16x4xf32>
      %37 = arith.addf %32, %36 : vector<16x4xf32>
      %c1_32 = arith.constant 1 : index
      %c2_33 = arith.constant 2 : index
      %c0_34 = arith.constant 0 : index
      %c0_35 = arith.constant 0 : index
      %38 = vector.load %arg3[%c1_32, %c2_33, %c0_34, %c0_35] : memref<3x3x16x48xbf16, #tpu.memory_space<vmem>>, vector<1x1x16x48xbf16>
      %39 = vector.shape_cast %38 : vector<1x1x16x48xbf16> to vector<16x48xbf16>
      %40 = vector.extract_strided_slice %27 {offsets = [0, 2], sizes = [48, 4], strides = [1, 1]} : vector<48x6xbf16> to vector<48x4xbf16>
      %cst_36 = arith.constant dense<0.000000e+00> : vector<16x4xf32>
      %41 = tpu.matmul %39, %40, %cst_36 {dimension_numbers = #tpu.dot_dimension_numbers<[1], [0], [0], [1], [0, 0, 1, 1], [], []>} : vector<16x48xbf16>, vector<48x4xbf16>, vector<16x4xf32> -> vector<16x4xf32>
      %42 = arith.addf %37, %41 : vector<16x4xf32>
      %43 = arith.addi %0, %arg7 : i32
      %c2_i32 = arith.constant 2 : i32
      %44 = arith.addi %43, %c2_i32 : i32
      %c0_37 = arith.constant 0 : index
      %45 = arith.index_cast %44 : i32 to index
      %c0_38 = arith.constant 0 : index
      %c0_39 = arith.constant 0 : index
      %46 = vector.load %arg2[%c0_37, %45, %c0_38, %c0_39] : memref<1x6x48x6xbf16, #tpu.memory_space<vmem>>, vector<1x1x48x6xbf16>
      %47 = vector.shape_cast %46 : vector<1x1x48x6xbf16> to vector<48x6xbf16>
      %c2_40 = arith.constant 2 : index
      %c0_41 = arith.constant 0 : index
      %c0_42 = arith.constant 0 : index
      %c0_43 = arith.constant 0 : index
      %48 = vector.load %arg3[%c2_40, %c0_41, %c0_42, %c0_43] : memref<3x3x16x48xbf16, #tpu.memory_space<vmem>>, vector<1x1x16x48xbf16>
      %49 = vector.shape_cast %48 : vector<1x1x16x48xbf16> to vector<16x48xbf16>
      %50 = vector.extract_strided_slice %47 {offsets = [0, 0], sizes = [48, 4], strides = [1, 1]} : vector<48x6xbf16> to vector<48x4xbf16>
      %cst_44 = arith.constant dense<0.000000e+00> : vector<16x4xf32>
      %51 = tpu.matmul %49, %50, %cst_44 {dimension_numbers = #tpu.dot_dimension_numbers<[1], [0], [0], [1], [0, 0, 1, 1], [], []>} : vector<16x48xbf16>, vector<48x4xbf16>, vector<16x4xf32> -> vector<16x4xf32>
      %52 = arith.addf %42, %51 : vector<16x4xf32>
      %c2_45 = arith.constant 2 : index
      %c1_46 = arith.constant 1 : index
      %c0_47 = arith.constant 0 : index
      %c0_48 = arith.constant 0 : index
      %53 = vector.load %arg3[%c2_45, %c1_46, %c0_47, %c0_48] : memref<3x3x16x48xbf16, #tpu.memory_space<vmem>>, vector<1x1x16x48xbf16>
      %54 = vector.shape_cast %53 : vector<1x1x16x48xbf16> to vector<16x48xbf16>
      %55 = vector.extract_strided_slice %47 {offsets = [0, 1], sizes = [48, 4], strides = [1, 1]} : vector<48x6xbf16> to vector<48x4xbf16>
      %cst_49 = arith.constant dense<0.000000e+00> : vector<16x4xf32>
      %56 = tpu.matmul %54, %55, %cst_49 {dimension_numbers = #tpu.dot_dimension_numbers<[1], [0], [0], [1], [0, 0, 1, 1], [], []>} : vector<16x48xbf16>, vector<48x4xbf16>, vector<16x4xf32> -> vector<16x4xf32>
      %57 = arith.addf %52, %56 : vector<16x4xf32>
      %c2_50 = arith.constant 2 : index
      %c2_51 = arith.constant 2 : index
      %c0_52 = arith.constant 0 : index
      %c0_53 = arith.constant 0 : index
      %58 = vector.load %arg3[%c2_50, %c2_51, %c0_52, %c0_53] : memref<3x3x16x48xbf16, #tpu.memory_space<vmem>>, vector<1x1x16x48xbf16>
      %59 = vector.shape_cast %58 : vector<1x1x16x48xbf16> to vector<16x48xbf16>
      %60 = vector.extract_strided_slice %47 {offsets = [0, 2], sizes = [48, 4], strides = [1, 1]} : vector<48x6xbf16> to vector<48x4xbf16>
      %cst_54 = arith.constant dense<0.000000e+00> : vector<16x4xf32>
      %61 = tpu.matmul %59, %60, %cst_54 {dimension_numbers = #tpu.dot_dimension_numbers<[1], [0], [0], [1], [0, 0, 1, 1], [], []>} : vector<16x48xbf16>, vector<48x4xbf16>, vector<16x4xf32> -> vector<16x4xf32>
      %62 = arith.addf %57, %61 : vector<16x4xf32>
      %c0_55 = arith.constant 0 : index
      %c0_56 = arith.constant 0 : index
      %63 = vector.load %arg4[%c0_55, %c0_56] : memref<16x1xf32, #tpu.memory_space<vmem>>, vector<16x1xf32>
      %64 = vector.broadcast %63 : vector<16x1xf32> to vector<16x4xf32>
      %65 = arith.mulf %62, %64 : vector<16x4xf32>
      %c0_57 = arith.constant 0 : index
      %c0_58 = arith.constant 0 : index
      %66 = vector.load %arg5[%c0_57, %c0_58] : memref<16x1xf32, #tpu.memory_space<vmem>>, vector<16x1xf32>
      %67 = vector.broadcast %66 : vector<16x1xf32> to vector<16x4xf32>
      %68 = arith.addf %65, %67 : vector<16x4xf32>
      %cst_59 = arith.constant 0.000000e+00 : f32
      %69 = vector.broadcast %cst_59 : f32 to vector<16x4xf32>
      %70 = arith.maximumf %68, %69 : vector<16x4xf32>
      %71 = arith.truncf %70 : vector<16x4xf32> to vector<16x4xbf16>
      %c0_60 = arith.constant 0 : index
      %72 = arith.index_cast %arg7 : i32 to index
      %c0_61 = arith.constant 0 : index
      %c0_62 = arith.constant 0 : index
      %73 = vector.load %arg6[%c0_60, %72, %c0_61, %c0_62] : memref<1x4x16x4xbf16, #tpu.memory_space<vmem>>, vector<1x1x16x4xbf16>
      %74 = vector.shape_cast %73 : vector<1x1x16x4xbf16> to vector<16x4xbf16>
      %75 = vector.shape_cast %71 : vector<16x4xbf16> to vector<1x1x16x4xbf16>
      tpu.vector_store %arg6[%c0_60, %72, %c0_61, %c0_62], %75 {strides = array<i32>} : memref<1x4x16x4xbf16, #tpu.memory_space<vmem>>, vector<1x1x16x4xbf16>,
    }
    %c4_i32_1 = arith.constant 4 : i32
    return
  }
  func.func @transform_0(%arg0: i32, %arg1: i32) -> (i32, i32, i32, i32) {
    %c0_i32 = arith.constant 0 : i32
    %c0_i32_0 = arith.constant 0 : i32
    %c0_i32_1 = arith.constant 0 : i32
    %c0_i32_2 = arith.constant 0 : i32
    return %arg0, %c0_i32, %c0_i32_0, %c0_i32_1 : i32, i32, i32, i32
  }
  func.func @transform_1(%arg0: i32, %arg1: i32) -> (i32, i32, i32, i32) {
    %c0_i32 = arith.constant 0 : i32
    %c0_i32_0 = arith.constant 0 : i32
    %c0_i32_1 = arith.constant 0 : i32
    %c0_i32_2 = arith.constant 0 : i32
    %c0_i32_3 = arith.constant 0 : i32
    return %c0_i32, %c0_i32_0, %c0_i32_1, %c0_i32_2 : i32, i32, i32, i32
  }
  func.func @transform_2(%arg0: i32, %arg1: i32) -> (i32, i32) {
    %c0_i32 = arith.constant 0 : i32
    %c0_i32_0 = arith.constant 0 : i32
    %c0_i32_1 = arith.constant 0 : i32
    return %c0_i32, %c0_i32_0 : i32, i32
  }
  func.func @transform_3(%arg0: i32, %arg1: i32) -> (i32, i32) {
    %c0_i32 = arith.constant 0 : i32
    %c0_i32_0 = arith.constant 0 : i32
    %c0_i32_1 = arith.constant 0 : i32
    return %c0_i32, %c0_i32_0 : i32, i32
  }
  func.func @transform_4(%arg0: i32, %arg1: i32) -> (i32, i32, i32, i32) {
    %c0_i32 = arith.constant 0 : i32
    %c0_i32_0 = arith.constant 0 : i32
    %c0_i32_1 = arith.constant 0 : i32
    return %arg0, %arg1, %c0_i32, %c0_i32_0 : i32, i32, i32, i32
  }
}

module attributes {stable_mosaic.version = 11 : i64} {
  func.func @_conv_kernel(%arg0: i32, %arg1: i32, %arg2: memref<1x6x16x6xbf16, #tpu.memory_space<vmem>>, %arg3: memref<3x3x16x16xbf16, #tpu.memory_space<vmem>>, %arg4: memref<16x1xf32, #tpu.memory_space<vmem>>, %arg5: memref<16x1xf32, #tpu.memory_space<vmem>>, %arg6: memref<1x4x16x4xbf16, #tpu.memory_space<vmem>>) attributes {dimension_semantics = [#tpu.dimension_semantics<parallel>, #tpu.dimension_semantics<parallel>], iteration_bounds = array<i64: 2, 1>, scalar_prefetch = 0 : i64, scratch_operands = 0 : i64, tpu.core_type = #tpu.core_type<tc>, window_params = [{transform_indices = @transform_0, window_bounds = array<i64: 1, 6, 16, 6>}, {pipeline_mode = #tpu.pipeline_mode<synchronous>, transform_indices = @transform_1, window_bounds = array<i64: 3, 3, 16, 16>}, {pipeline_mode = #tpu.pipeline_mode<synchronous>, transform_indices = @transform_2, window_bounds = array<i64: 16, 1>}, {pipeline_mode = #tpu.pipeline_mode<synchronous>, transform_indices = @transform_3, window_bounds = array<i64: 16, 1>}, {transform_indices = @transform_4, window_bounds = array<i64: 1, 4, 16, 4>}]} {
    %c4_i32 = arith.constant 4 : i32
    %0 = arith.muli %arg1, %c4_i32 : i32
    %c0_i32 = arith.constant 0 : i32
    %c4_i32_0 = arith.constant 4 : i32
    %1 = arith.addi %c0_i32, %c4_i32_0 : i32
    %c1_i32 = arith.constant 1 : i32
    scf.for %arg7 = %c0_i32 to %1 step %c1_i32  : i32 {
      %cst = arith.constant 0.000000e+00 : f32
      %2 = vector.broadcast %cst : f32 to vector<16x4xf32>
      %3 = arith.addi %0, %arg7 : i32
      %c0_i32_2 = arith.constant 0 : i32
      %4 = arith.addi %3, %c0_i32_2 : i32
      %c0 = arith.constant 0 : index
      %5 = arith.index_cast %4 : i32 to index
      %c0_3 = arith.constant 0 : index
      %c0_4 = arith.constant 0 : index
      %6 = vector.load %arg2[%c0, %5, %c0_3, %c0_4] : memref<1x6x16x6xbf16, #tpu.memory_space<vmem>>, vector<1x1x16x6xbf16>
      %7 = vector.shape_cast %6 : vector<1x1x16x6xbf16> to vector<16x6xbf16>
      %c0_5 = arith.constant 0 : index
      %c0_6 = arith.constant 0 : index
      %c0_7 = arith.constant 0 : index
      %c0_8 = arith.constant 0 : index
      %8 = vector.load %arg3[%c0_5, %c0_6, %c0_7, %c0_8] : memref<3x3x16x16xbf16, #tpu.memory_space<vmem>>, vector<1x1x16x16xbf16>
      %9 = vector.shape_cast %8 : vector<1x1x16x16xbf16> to vector<16x16xbf16>
      %10 = vector.extract_strided_slice %7 {offsets = [0, 0], sizes = [16, 4], strides = [1, 1]} : vector<16x6xbf16> to vector<16x4xbf16>
      %cst_9 = arith.constant dense<0.000000e+00> : vector<16x4xf32>
      %11 = tpu.matmul %9, %10, %cst_9 {dimension_numbers = #tpu.dot_dimension_numbers<[1], [0], [0], [1], [0, 0, 1, 1], [], []>} : vector<16x16xbf16>, vector<16x4xbf16>, vector<16x4xf32> -> vector<16x4xf32>
      %12 = arith.addf %2, %11 : vector<16x4xf32>
      %c0_10 = arith.constant 0 : index
      %c1 = arith.constant 1 : index
      %c0_11 = arith.constant 0 : index
      %c0_12 = arith.constant 0 : index
      %13 = vector.load %arg3[%c0_10, %c1, %c0_11, %c0_12] : memref<3x3x16x16xbf16, #tpu.memory_space<vmem>>, vector<1x1x16x16xbf16>
      %14 = vector.shape_cast %13 : vector<1x1x16x16xbf16> to vector<16x16xbf16>
      %15 = vector.extract_strided_slice %7 {offsets = [0, 1], sizes = [16, 4], strides = [1, 1]} : vector<16x6xbf16> to vector<16x4xbf16>
      %cst_13 = arith.constant dense<0.000000e+00> : vector<16x4xf32>
      %16 = tpu.matmul %14, %15, %cst_13 {dimension_numbers = #tpu.dot_dimension_numbers<[1], [0], [0], [1], [0, 0, 1, 1], [], []>} : vector<16x16xbf16>, vector<16x4xbf16>, vector<16x4xf32> -> vector<16x4xf32>
      %17 = arith.addf %12, %16 : vector<16x4xf32>
      %c0_14 = arith.constant 0 : index
      %c2 = arith.constant 2 : index
      %c0_15 = arith.constant 0 : index
      %c0_16 = arith.constant 0 : index
      %18 = vector.load %arg3[%c0_14, %c2, %c0_15, %c0_16] : memref<3x3x16x16xbf16, #tpu.memory_space<vmem>>, vector<1x1x16x16xbf16>
      %19 = vector.shape_cast %18 : vector<1x1x16x16xbf16> to vector<16x16xbf16>
      %20 = vector.extract_strided_slice %7 {offsets = [0, 2], sizes = [16, 4], strides = [1, 1]} : vector<16x6xbf16> to vector<16x4xbf16>
      %cst_17 = arith.constant dense<0.000000e+00> : vector<16x4xf32>
      %21 = tpu.matmul %19, %20, %cst_17 {dimension_numbers = #tpu.dot_dimension_numbers<[1], [0], [0], [1], [0, 0, 1, 1], [], []>} : vector<16x16xbf16>, vector<16x4xbf16>, vector<16x4xf32> -> vector<16x4xf32>
      %22 = arith.addf %17, %21 : vector<16x4xf32>
      %23 = arith.addi %0, %arg7 : i32
      %c1_i32_18 = arith.constant 1 : i32
      %24 = arith.addi %23, %c1_i32_18 : i32
      %c0_19 = arith.constant 0 : index
      %25 = arith.index_cast %24 : i32 to index
      %c0_20 = arith.constant 0 : index
      %c0_21 = arith.constant 0 : index
      %26 = vector.load %arg2[%c0_19, %25, %c0_20, %c0_21] : memref<1x6x16x6xbf16, #tpu.memory_space<vmem>>, vector<1x1x16x6xbf16>
      %27 = vector.shape_cast %26 : vector<1x1x16x6xbf16> to vector<16x6xbf16>
      %c1_22 = arith.constant 1 : index
      %c0_23 = arith.constant 0 : index
      %c0_24 = arith.constant 0 : index
      %c0_25 = arith.constant 0 : index
      %28 = vector.load %arg3[%c1_22, %c0_23, %c0_24, %c0_25] : memref<3x3x16x16xbf16, #tpu.memory_space<vmem>>, vector<1x1x16x16xbf16>
      %29 = vector.shape_cast %28 : vector<1x1x16x16xbf16> to vector<16x16xbf16>
      %30 = vector.extract_strided_slice %27 {offsets = [0, 0], sizes = [16, 4], strides = [1, 1]} : vector<16x6xbf16> to vector<16x4xbf16>
      %cst_26 = arith.constant dense<0.000000e+00> : vector<16x4xf32>
      %31 = tpu.matmul %29, %30, %cst_26 {dimension_numbers = #tpu.dot_dimension_numbers<[1], [0], [0], [1], [0, 0, 1, 1], [], []>} : vector<16x16xbf16>, vector<16x4xbf16>, vector<16x4xf32> -> vector<16x4xf32>
      %32 = arith.addf %22, %31 : vector<16x4xf32>
      %c1_27 = arith.constant 1 : index
      %c1_28 = arith.constant 1 : index
      %c0_29 = arith.constant 0 : index
      %c0_30 = arith.constant 0 : index
      %33 = vector.load %arg3[%c1_27, %c1_28, %c0_29, %c0_30] : memref<3x3x16x16xbf16, #tpu.memory_space<vmem>>, vector<1x1x16x16xbf16>
      %34 = vector.shape_cast %33 : vector<1x1x16x16xbf16> to vector<16x16xbf16>
      %35 = vector.extract_strided_slice %27 {offsets = [0, 1], sizes = [16, 4], strides = [1, 1]} : vector<16x6xbf16> to vector<16x4xbf16>
      %cst_31 = arith.constant dense<0.000000e+00> : vector<16x4xf32>
      %36 = tpu.matmul %34, %35, %cst_31 {dimension_numbers = #tpu.dot_dimension_numbers<[1], [0], [0], [1], [0, 0, 1, 1], [], []>} : vector<16x16xbf16>, vector<16x4xbf16>, vector<16x4xf32> -> vector<16x4xf32>
      %37 = arith.addf %32, %36 : vector<16x4xf32>
      %c1_32 = arith.constant 1 : index
      %c2_33 = arith.constant 2 : index
      %c0_34 = arith.constant 0 : index
      %c0_35 = arith.constant 0 : index
      %38 = vector.load %arg3[%c1_32, %c2_33, %c0_34, %c0_35] : memref<3x3x16x16xbf16, #tpu.memory_space<vmem>>, vector<1x1x16x16xbf16>
      %39 = vector.shape_cast %38 : vector<1x1x16x16xbf16> to vector<16x16xbf16>
      %40 = vector.extract_strided_slice %27 {offsets = [0, 2], sizes = [16, 4], strides = [1, 1]} : vector<16x6xbf16> to vector<16x4xbf16>
      %cst_36 = arith.constant dense<0.000000e+00> : vector<16x4xf32>
      %41 = tpu.matmul %39, %40, %cst_36 {dimension_numbers = #tpu.dot_dimension_numbers<[1], [0], [0], [1], [0, 0, 1, 1], [], []>} : vector<16x16xbf16>, vector<16x4xbf16>, vector<16x4xf32> -> vector<16x4xf32>
      %42 = arith.addf %37, %41 : vector<16x4xf32>
      %43 = arith.addi %0, %arg7 : i32
      %c2_i32 = arith.constant 2 : i32
      %44 = arith.addi %43, %c2_i32 : i32
      %c0_37 = arith.constant 0 : index
      %45 = arith.index_cast %44 : i32 to index
      %c0_38 = arith.constant 0 : index
      %c0_39 = arith.constant 0 : index
      %46 = vector.load %arg2[%c0_37, %45, %c0_38, %c0_39] : memref<1x6x16x6xbf16, #tpu.memory_space<vmem>>, vector<1x1x16x6xbf16>
      %47 = vector.shape_cast %46 : vector<1x1x16x6xbf16> to vector<16x6xbf16>
      %c2_40 = arith.constant 2 : index
      %c0_41 = arith.constant 0 : index
      %c0_42 = arith.constant 0 : index
      %c0_43 = arith.constant 0 : index
      %48 = vector.load %arg3[%c2_40, %c0_41, %c0_42, %c0_43] : memref<3x3x16x16xbf16, #tpu.memory_space<vmem>>, vector<1x1x16x16xbf16>
      %49 = vector.shape_cast %48 : vector<1x1x16x16xbf16> to vector<16x16xbf16>
      %50 = vector.extract_strided_slice %47 {offsets = [0, 0], sizes = [16, 4], strides = [1, 1]} : vector<16x6xbf16> to vector<16x4xbf16>
      %cst_44 = arith.constant dense<0.000000e+00> : vector<16x4xf32>
      %51 = tpu.matmul %49, %50, %cst_44 {dimension_numbers = #tpu.dot_dimension_numbers<[1], [0], [0], [1], [0, 0, 1, 1], [], []>} : vector<16x16xbf16>, vector<16x4xbf16>, vector<16x4xf32> -> vector<16x4xf32>
      %52 = arith.addf %42, %51 : vector<16x4xf32>
      %c2_45 = arith.constant 2 : index
      %c1_46 = arith.constant 1 : index
      %c0_47 = arith.constant 0 : index
      %c0_48 = arith.constant 0 : index
      %53 = vector.load %arg3[%c2_45, %c1_46, %c0_47, %c0_48] : memref<3x3x16x16xbf16, #tpu.memory_space<vmem>>, vector<1x1x16x16xbf16>
      %54 = vector.shape_cast %53 : vector<1x1x16x16xbf16> to vector<16x16xbf16>
      %55 = vector.extract_strided_slice %47 {offsets = [0, 1], sizes = [16, 4], strides = [1, 1]} : vector<16x6xbf16> to vector<16x4xbf16>
      %cst_49 = arith.constant dense<0.000000e+00> : vector<16x4xf32>
      %56 = tpu.matmul %54, %55, %cst_49 {dimension_numbers = #tpu.dot_dimension_numbers<[1], [0], [0], [1], [0, 0, 1, 1], [], []>} : vector<16x16xbf16>, vector<16x4xbf16>, vector<16x4xf32> -> vector<16x4xf32>
      %57 = arith.addf %52, %56 : vector<16x4xf32>
      %c2_50 = arith.constant 2 : index
      %c2_51 = arith.constant 2 : index
      %c0_52 = arith.constant 0 : index
      %c0_53 = arith.constant 0 : index
      %58 = vector.load %arg3[%c2_50, %c2_51, %c0_52, %c0_53] : memref<3x3x16x16xbf16, #tpu.memory_space<vmem>>, vector<1x1x16x16xbf16>
      %59 = vector.shape_cast %58 : vector<1x1x16x16xbf16> to vector<16x16xbf16>
      %60 = vector.extract_strided_slice %47 {offsets = [0, 2], sizes = [16, 4], strides = [1, 1]} : vector<16x6xbf16> to vector<16x4xbf16>
      %cst_54 = arith.constant dense<0.000000e+00> : vector<16x4xf32>
      %61 = tpu.matmul %59, %60, %cst_54 {dimension_numbers = #tpu.dot_dimension_numbers<[1], [0], [0], [1], [0, 0, 1, 1], [], []>} : vector<16x16xbf16>, vector<16x4xbf16>, vector<16x4xf32> -> vector<16x4xf32>
      %62 = arith.addf %57, %61 : vector<16x4xf32>
      %c0_55 = arith.constant 0 : index
      %c0_56 = arith.constant 0 : index
      %63 = vector.load %arg4[%c0_55, %c0_56] : memref<16x1xf32, #tpu.memory_space<vmem>>, vector<16x1xf32>
      %64 = vector.broadcast %63 : vector<16x1xf32> to vector<16x4xf32>
      %65 = arith.mulf %62, %64 : vector<16x4xf32>
      %c0_57 = arith.constant 0 : index
      %c0_58 = arith.constant 0 : index
      %66 = vector.load %arg5[%c0_57, %c0_58] : memref<16x1xf32, #tpu.memory_space<vmem>>, vector<16x1xf32>
      %67 = vector.broadcast %66 : vector<16x1xf32> to vector<16x4xf32>
      %68 = arith.addf %65, %67 : vector<16x4xf32>
      %cst_59 = arith.constant 0.000000e+00 : f32
      %69 = vector.broadcast %cst_59 : f32 to vector<16x4xf32>
      %70 = arith.maximumf %68, %69 : vector<16x4xf32>
      %71 = arith.truncf %70 : vector<16x4xf32> to vector<16x4xbf16>
      %c0_60 = arith.constant 0 : index
      %72 = arith.index_cast %arg7 : i32 to index
      %c0_61 = arith.constant 0 : index
      %c0_62 = arith.constant 0 : index
      %73 = vector.load %arg6[%c0_60, %72, %c0_61, %c0_62] : memref<1x4x16x4xbf16, #tpu.memory_space<vmem>>, vector<1x1x16x4xbf16>
      %74 = vector.shape_cast %73 : vector<1x1x16x4xbf16> to vector<16x4xbf16>
      %75 = vector.shape_cast %71 : vector<16x4xbf16> to vector<1x1x16x4xbf16>
      tpu.vector_store %arg6[%c0_60, %72, %c0_61, %c0_62], %75 {strides = array<i32>} : memref<1x4x16x4xbf16, #tpu.memory_space<vmem>>, vector<1x1x16x4xbf16>,
    }
    %c4_i32_1 = arith.constant 4 : i32
    return
  }
  func.func @transform_0(%arg0: i32, %arg1: i32) -> (i32, i32, i32, i32) {
    %c0_i32 = arith.constant 0 : i32
    %c0_i32_0 = arith.constant 0 : i32
    %c0_i32_1 = arith.constant 0 : i32
    %c0_i32_2 = arith.constant 0 : i32
    return %arg0, %c0_i32, %c0_i32_0, %c0_i32_1 : i32, i32, i32, i32
  }
  func.func @transform_1(%arg0: i32, %arg1: i32) -> (i32, i32, i32, i32) {
    %c0_i32 = arith.constant 0 : i32
    %c0_i32_0 = arith.constant 0 : i32
    %c0_i32_1 = arith.constant 0 : i32
    %c0_i32_2 = arith.constant 0 : i32
    %c0_i32_3 = arith.constant 0 : i32
    return %c0_i32, %c0_i32_0, %c0_i32_1, %c0_i32_2 : i32, i32, i32, i32
  }
  func.func @transform_2(%arg0: i32, %arg1: i32) -> (i32, i32) {
    %c0_i32 = arith.constant 0 : i32
    %c0_i32_0 = arith.constant 0 : i32
    %c0_i32_1 = arith.constant 0 : i32
    return %c0_i32, %c0_i32_0 : i32, i32
  }
  func.func @transform_3(%arg0: i32, %arg1: i32) -> (i32, i32) {
    %c0_i32 = arith.constant 0 : i32
    %c0_i32_0 = arith.constant 0 : i32
    %c0_i32_1 = arith.constant 0 : i32
    return %c0_i32, %c0_i32_0 : i32, i32
  }
  func.func @transform_4(%arg0: i32, %arg1: i32) -> (i32, i32, i32, i32) {
    %c0_i32 = arith.constant 0 : i32
    %c0_i32_0 = arith.constant 0 : i32
    %c0_i32_1 = arith.constant 0 : i32
    return %arg0, %arg1, %c0_i32, %c0_i32_0 : i32, i32, i32, i32
  }
}

module attributes {stable_mosaic.version = 11 : i64} {
  func.func @_conv_kernel(%arg0: i32, %arg1: i32, %arg2: memref<1x4x16x4xbf16, #tpu.memory_space<vmem>>, %arg3: memref<3x3x16x16xbf16, #tpu.memory_space<vmem>>, %arg4: memref<16x1xf32, #tpu.memory_space<vmem>>, %arg5: memref<16x1xf32, #tpu.memory_space<vmem>>, %arg6: memref<1x2x16x2xbf16, #tpu.memory_space<vmem>>) attributes {dimension_semantics = [#tpu.dimension_semantics<parallel>, #tpu.dimension_semantics<parallel>], iteration_bounds = array<i64: 2, 1>, scalar_prefetch = 0 : i64, scratch_operands = 0 : i64, tpu.core_type = #tpu.core_type<tc>, window_params = [{transform_indices = @transform_0, window_bounds = array<i64: 1, 4, 16, 4>}, {pipeline_mode = #tpu.pipeline_mode<synchronous>, transform_indices = @transform_1, window_bounds = array<i64: 3, 3, 16, 16>}, {pipeline_mode = #tpu.pipeline_mode<synchronous>, transform_indices = @transform_2, window_bounds = array<i64: 16, 1>}, {pipeline_mode = #tpu.pipeline_mode<synchronous>, transform_indices = @transform_3, window_bounds = array<i64: 16, 1>}, {transform_indices = @transform_4, window_bounds = array<i64: 1, 2, 16, 2>}]} {
    %c2_i32 = arith.constant 2 : i32
    %0 = arith.muli %arg1, %c2_i32 : i32
    %c0_i32 = arith.constant 0 : i32
    %c2_i32_0 = arith.constant 2 : i32
    %1 = arith.addi %c0_i32, %c2_i32_0 : i32
    %c1_i32 = arith.constant 1 : i32
    scf.for %arg7 = %c0_i32 to %1 step %c1_i32  : i32 {
      %cst = arith.constant 0.000000e+00 : f32
      %2 = vector.broadcast %cst : f32 to vector<16x2xf32>
      %3 = arith.addi %0, %arg7 : i32
      %c0_i32_2 = arith.constant 0 : i32
      %4 = arith.addi %3, %c0_i32_2 : i32
      %c0 = arith.constant 0 : index
      %5 = arith.index_cast %4 : i32 to index
      %c0_3 = arith.constant 0 : index
      %c0_4 = arith.constant 0 : index
      %6 = vector.load %arg2[%c0, %5, %c0_3, %c0_4] : memref<1x4x16x4xbf16, #tpu.memory_space<vmem>>, vector<1x1x16x4xbf16>
      %7 = vector.shape_cast %6 : vector<1x1x16x4xbf16> to vector<16x4xbf16>
      %c0_5 = arith.constant 0 : index
      %c0_6 = arith.constant 0 : index
      %c0_7 = arith.constant 0 : index
      %c0_8 = arith.constant 0 : index
      %8 = vector.load %arg3[%c0_5, %c0_6, %c0_7, %c0_8] : memref<3x3x16x16xbf16, #tpu.memory_space<vmem>>, vector<1x1x16x16xbf16>
      %9 = vector.shape_cast %8 : vector<1x1x16x16xbf16> to vector<16x16xbf16>
      %10 = vector.extract_strided_slice %7 {offsets = [0, 0], sizes = [16, 2], strides = [1, 1]} : vector<16x4xbf16> to vector<16x2xbf16>
      %cst_9 = arith.constant dense<0.000000e+00> : vector<16x2xf32>
      %11 = tpu.matmul %9, %10, %cst_9 {dimension_numbers = #tpu.dot_dimension_numbers<[1], [0], [0], [1], [0, 0, 1, 1], [], []>} : vector<16x16xbf16>, vector<16x2xbf16>, vector<16x2xf32> -> vector<16x2xf32>
      %12 = arith.addf %2, %11 : vector<16x2xf32>
      %c0_10 = arith.constant 0 : index
      %c1 = arith.constant 1 : index
      %c0_11 = arith.constant 0 : index
      %c0_12 = arith.constant 0 : index
      %13 = vector.load %arg3[%c0_10, %c1, %c0_11, %c0_12] : memref<3x3x16x16xbf16, #tpu.memory_space<vmem>>, vector<1x1x16x16xbf16>
      %14 = vector.shape_cast %13 : vector<1x1x16x16xbf16> to vector<16x16xbf16>
      %15 = vector.extract_strided_slice %7 {offsets = [0, 1], sizes = [16, 2], strides = [1, 1]} : vector<16x4xbf16> to vector<16x2xbf16>
      %cst_13 = arith.constant dense<0.000000e+00> : vector<16x2xf32>
      %16 = tpu.matmul %14, %15, %cst_13 {dimension_numbers = #tpu.dot_dimension_numbers<[1], [0], [0], [1], [0, 0, 1, 1], [], []>} : vector<16x16xbf16>, vector<16x2xbf16>, vector<16x2xf32> -> vector<16x2xf32>
      %17 = arith.addf %12, %16 : vector<16x2xf32>
      %c0_14 = arith.constant 0 : index
      %c2 = arith.constant 2 : index
      %c0_15 = arith.constant 0 : index
      %c0_16 = arith.constant 0 : index
      %18 = vector.load %arg3[%c0_14, %c2, %c0_15, %c0_16] : memref<3x3x16x16xbf16, #tpu.memory_space<vmem>>, vector<1x1x16x16xbf16>
      %19 = vector.shape_cast %18 : vector<1x1x16x16xbf16> to vector<16x16xbf16>
      %20 = vector.extract_strided_slice %7 {offsets = [0, 2], sizes = [16, 2], strides = [1, 1]} : vector<16x4xbf16> to vector<16x2xbf16>
      %cst_17 = arith.constant dense<0.000000e+00> : vector<16x2xf32>
      %21 = tpu.matmul %19, %20, %cst_17 {dimension_numbers = #tpu.dot_dimension_numbers<[1], [0], [0], [1], [0, 0, 1, 1], [], []>} : vector<16x16xbf16>, vector<16x2xbf16>, vector<16x2xf32> -> vector<16x2xf32>
      %22 = arith.addf %17, %21 : vector<16x2xf32>
      %23 = arith.addi %0, %arg7 : i32
      %c1_i32_18 = arith.constant 1 : i32
      %24 = arith.addi %23, %c1_i32_18 : i32
      %c0_19 = arith.constant 0 : index
      %25 = arith.index_cast %24 : i32 to index
      %c0_20 = arith.constant 0 : index
      %c0_21 = arith.constant 0 : index
      %26 = vector.load %arg2[%c0_19, %25, %c0_20, %c0_21] : memref<1x4x16x4xbf16, #tpu.memory_space<vmem>>, vector<1x1x16x4xbf16>
      %27 = vector.shape_cast %26 : vector<1x1x16x4xbf16> to vector<16x4xbf16>
      %c1_22 = arith.constant 1 : index
      %c0_23 = arith.constant 0 : index
      %c0_24 = arith.constant 0 : index
      %c0_25 = arith.constant 0 : index
      %28 = vector.load %arg3[%c1_22, %c0_23, %c0_24, %c0_25] : memref<3x3x16x16xbf16, #tpu.memory_space<vmem>>, vector<1x1x16x16xbf16>
      %29 = vector.shape_cast %28 : vector<1x1x16x16xbf16> to vector<16x16xbf16>
      %30 = vector.extract_strided_slice %27 {offsets = [0, 0], sizes = [16, 2], strides = [1, 1]} : vector<16x4xbf16> to vector<16x2xbf16>
      %cst_26 = arith.constant dense<0.000000e+00> : vector<16x2xf32>
      %31 = tpu.matmul %29, %30, %cst_26 {dimension_numbers = #tpu.dot_dimension_numbers<[1], [0], [0], [1], [0, 0, 1, 1], [], []>} : vector<16x16xbf16>, vector<16x2xbf16>, vector<16x2xf32> -> vector<16x2xf32>
      %32 = arith.addf %22, %31 : vector<16x2xf32>
      %c1_27 = arith.constant 1 : index
      %c1_28 = arith.constant 1 : index
      %c0_29 = arith.constant 0 : index
      %c0_30 = arith.constant 0 : index
      %33 = vector.load %arg3[%c1_27, %c1_28, %c0_29, %c0_30] : memref<3x3x16x16xbf16, #tpu.memory_space<vmem>>, vector<1x1x16x16xbf16>
      %34 = vector.shape_cast %33 : vector<1x1x16x16xbf16> to vector<16x16xbf16>
      %35 = vector.extract_strided_slice %27 {offsets = [0, 1], sizes = [16, 2], strides = [1, 1]} : vector<16x4xbf16> to vector<16x2xbf16>
      %cst_31 = arith.constant dense<0.000000e+00> : vector<16x2xf32>
      %36 = tpu.matmul %34, %35, %cst_31 {dimension_numbers = #tpu.dot_dimension_numbers<[1], [0], [0], [1], [0, 0, 1, 1], [], []>} : vector<16x16xbf16>, vector<16x2xbf16>, vector<16x2xf32> -> vector<16x2xf32>
      %37 = arith.addf %32, %36 : vector<16x2xf32>
      %c1_32 = arith.constant 1 : index
      %c2_33 = arith.constant 2 : index
      %c0_34 = arith.constant 0 : index
      %c0_35 = arith.constant 0 : index
      %38 = vector.load %arg3[%c1_32, %c2_33, %c0_34, %c0_35] : memref<3x3x16x16xbf16, #tpu.memory_space<vmem>>, vector<1x1x16x16xbf16>
      %39 = vector.shape_cast %38 : vector<1x1x16x16xbf16> to vector<16x16xbf16>
      %40 = vector.extract_strided_slice %27 {offsets = [0, 2], sizes = [16, 2], strides = [1, 1]} : vector<16x4xbf16> to vector<16x2xbf16>
      %cst_36 = arith.constant dense<0.000000e+00> : vector<16x2xf32>
      %41 = tpu.matmul %39, %40, %cst_36 {dimension_numbers = #tpu.dot_dimension_numbers<[1], [0], [0], [1], [0, 0, 1, 1], [], []>} : vector<16x16xbf16>, vector<16x2xbf16>, vector<16x2xf32> -> vector<16x2xf32>
      %42 = arith.addf %37, %41 : vector<16x2xf32>
      %43 = arith.addi %0, %arg7 : i32
      %c2_i32_37 = arith.constant 2 : i32
      %44 = arith.addi %43, %c2_i32_37 : i32
      %c0_38 = arith.constant 0 : index
      %45 = arith.index_cast %44 : i32 to index
      %c0_39 = arith.constant 0 : index
      %c0_40 = arith.constant 0 : index
      %46 = vector.load %arg2[%c0_38, %45, %c0_39, %c0_40] : memref<1x4x16x4xbf16, #tpu.memory_space<vmem>>, vector<1x1x16x4xbf16>
      %47 = vector.shape_cast %46 : vector<1x1x16x4xbf16> to vector<16x4xbf16>
      %c2_41 = arith.constant 2 : index
      %c0_42 = arith.constant 0 : index
      %c0_43 = arith.constant 0 : index
      %c0_44 = arith.constant 0 : index
      %48 = vector.load %arg3[%c2_41, %c0_42, %c0_43, %c0_44] : memref<3x3x16x16xbf16, #tpu.memory_space<vmem>>, vector<1x1x16x16xbf16>
      %49 = vector.shape_cast %48 : vector<1x1x16x16xbf16> to vector<16x16xbf16>
      %50 = vector.extract_strided_slice %47 {offsets = [0, 0], sizes = [16, 2], strides = [1, 1]} : vector<16x4xbf16> to vector<16x2xbf16>
      %cst_45 = arith.constant dense<0.000000e+00> : vector<16x2xf32>
      %51 = tpu.matmul %49, %50, %cst_45 {dimension_numbers = #tpu.dot_dimension_numbers<[1], [0], [0], [1], [0, 0, 1, 1], [], []>} : vector<16x16xbf16>, vector<16x2xbf16>, vector<16x2xf32> -> vector<16x2xf32>
      %52 = arith.addf %42, %51 : vector<16x2xf32>
      %c2_46 = arith.constant 2 : index
      %c1_47 = arith.constant 1 : index
      %c0_48 = arith.constant 0 : index
      %c0_49 = arith.constant 0 : index
      %53 = vector.load %arg3[%c2_46, %c1_47, %c0_48, %c0_49] : memref<3x3x16x16xbf16, #tpu.memory_space<vmem>>, vector<1x1x16x16xbf16>
      %54 = vector.shape_cast %53 : vector<1x1x16x16xbf16> to vector<16x16xbf16>
      %55 = vector.extract_strided_slice %47 {offsets = [0, 1], sizes = [16, 2], strides = [1, 1]} : vector<16x4xbf16> to vector<16x2xbf16>
      %cst_50 = arith.constant dense<0.000000e+00> : vector<16x2xf32>
      %56 = tpu.matmul %54, %55, %cst_50 {dimension_numbers = #tpu.dot_dimension_numbers<[1], [0], [0], [1], [0, 0, 1, 1], [], []>} : vector<16x16xbf16>, vector<16x2xbf16>, vector<16x2xf32> -> vector<16x2xf32>
      %57 = arith.addf %52, %56 : vector<16x2xf32>
      %c2_51 = arith.constant 2 : index
      %c2_52 = arith.constant 2 : index
      %c0_53 = arith.constant 0 : index
      %c0_54 = arith.constant 0 : index
      %58 = vector.load %arg3[%c2_51, %c2_52, %c0_53, %c0_54] : memref<3x3x16x16xbf16, #tpu.memory_space<vmem>>, vector<1x1x16x16xbf16>
      %59 = vector.shape_cast %58 : vector<1x1x16x16xbf16> to vector<16x16xbf16>
      %60 = vector.extract_strided_slice %47 {offsets = [0, 2], sizes = [16, 2], strides = [1, 1]} : vector<16x4xbf16> to vector<16x2xbf16>
      %cst_55 = arith.constant dense<0.000000e+00> : vector<16x2xf32>
      %61 = tpu.matmul %59, %60, %cst_55 {dimension_numbers = #tpu.dot_dimension_numbers<[1], [0], [0], [1], [0, 0, 1, 1], [], []>} : vector<16x16xbf16>, vector<16x2xbf16>, vector<16x2xf32> -> vector<16x2xf32>
      %62 = arith.addf %57, %61 : vector<16x2xf32>
      %c0_56 = arith.constant 0 : index
      %c0_57 = arith.constant 0 : index
      %63 = vector.load %arg4[%c0_56, %c0_57] : memref<16x1xf32, #tpu.memory_space<vmem>>, vector<16x1xf32>
      %64 = vector.broadcast %63 : vector<16x1xf32> to vector<16x2xf32>
      %65 = arith.mulf %62, %64 : vector<16x2xf32>
      %c0_58 = arith.constant 0 : index
      %c0_59 = arith.constant 0 : index
      %66 = vector.load %arg5[%c0_58, %c0_59] : memref<16x1xf32, #tpu.memory_space<vmem>>, vector<16x1xf32>
      %67 = vector.broadcast %66 : vector<16x1xf32> to vector<16x2xf32>
      %68 = arith.addf %65, %67 : vector<16x2xf32>
      %cst_60 = arith.constant 0.000000e+00 : f32
      %69 = vector.broadcast %cst_60 : f32 to vector<16x2xf32>
      %70 = arith.maximumf %68, %69 : vector<16x2xf32>
      %71 = arith.truncf %70 : vector<16x2xf32> to vector<16x2xbf16>
      %c0_61 = arith.constant 0 : index
      %72 = arith.index_cast %arg7 : i32 to index
      %c0_62 = arith.constant 0 : index
      %c0_63 = arith.constant 0 : index
      %73 = vector.load %arg6[%c0_61, %72, %c0_62, %c0_63] : memref<1x2x16x2xbf16, #tpu.memory_space<vmem>>, vector<1x1x16x2xbf16>
      %74 = vector.shape_cast %73 : vector<1x1x16x2xbf16> to vector<16x2xbf16>
      %75 = vector.shape_cast %71 : vector<16x2xbf16> to vector<1x1x16x2xbf16>
      tpu.vector_store %arg6[%c0_61, %72, %c0_62, %c0_63], %75 {strides = array<i32>} : memref<1x2x16x2xbf16, #tpu.memory_space<vmem>>, vector<1x1x16x2xbf16>,
    }
    %c2_i32_1 = arith.constant 2 : i32
    return
  }
  func.func @transform_0(%arg0: i32, %arg1: i32) -> (i32, i32, i32, i32) {
    %c0_i32 = arith.constant 0 : i32
    %c0_i32_0 = arith.constant 0 : i32
    %c0_i32_1 = arith.constant 0 : i32
    %c0_i32_2 = arith.constant 0 : i32
    return %arg0, %c0_i32, %c0_i32_0, %c0_i32_1 : i32, i32, i32, i32
  }
  func.func @transform_1(%arg0: i32, %arg1: i32) -> (i32, i32, i32, i32) {
    %c0_i32 = arith.constant 0 : i32
    %c0_i32_0 = arith.constant 0 : i32
    %c0_i32_1 = arith.constant 0 : i32
    %c0_i32_2 = arith.constant 0 : i32
    %c0_i32_3 = arith.constant 0 : i32
    return %c0_i32, %c0_i32_0, %c0_i32_1, %c0_i32_2 : i32, i32, i32, i32
  }
  func.func @transform_2(%arg0: i32, %arg1: i32) -> (i32, i32) {
    %c0_i32 = arith.constant 0 : i32
    %c0_i32_0 = arith.constant 0 : i32
    %c0_i32_1 = arith.constant 0 : i32
    return %c0_i32, %c0_i32_0 : i32, i32
  }
  func.func @transform_3(%arg0: i32, %arg1: i32) -> (i32, i32) {
    %c0_i32 = arith.constant 0 : i32
    %c0_i32_0 = arith.constant 0 : i32
    %c0_i32_1 = arith.constant 0 : i32
    return %c0_i32, %c0_i32_0 : i32, i32
  }
  func.func @transform_4(%arg0: i32, %arg1: i32) -> (i32, i32, i32, i32) {
    %c0_i32 = arith.constant 0 : i32
    %c0_i32_0 = arith.constant 0 : i32
    %c0_i32_1 = arith.constant 0 : i32
    return %arg0, %arg1, %c0_i32, %c0_i32_0 : i32, i32, i32, i32
  }
}

module attributes {stable_mosaic.version = 11 : i64} {
  func.func @_conv_kernel(%arg0: i32, %arg1: i32, %arg2: memref<1x4x16x4xbf16, #tpu.memory_space<vmem>>, %arg3: memref<3x3x16x16xbf16, #tpu.memory_space<vmem>>, %arg4: memref<16x1xf32, #tpu.memory_space<vmem>>, %arg5: memref<16x1xf32, #tpu.memory_space<vmem>>, %arg6: memref<1x2x16x2xf32, #tpu.memory_space<vmem>>) attributes {dimension_semantics = [#tpu.dimension_semantics<parallel>, #tpu.dimension_semantics<parallel>], iteration_bounds = array<i64: 2, 1>, scalar_prefetch = 0 : i64, scratch_operands = 0 : i64, tpu.core_type = #tpu.core_type<tc>, window_params = [{transform_indices = @transform_0, window_bounds = array<i64: 1, 4, 16, 4>}, {pipeline_mode = #tpu.pipeline_mode<synchronous>, transform_indices = @transform_1, window_bounds = array<i64: 3, 3, 16, 16>}, {pipeline_mode = #tpu.pipeline_mode<synchronous>, transform_indices = @transform_2, window_bounds = array<i64: 16, 1>}, {pipeline_mode = #tpu.pipeline_mode<synchronous>, transform_indices = @transform_3, window_bounds = array<i64: 16, 1>}, {transform_indices = @transform_4, window_bounds = array<i64: 1, 2, 16, 2>}]} {
    %c2_i32 = arith.constant 2 : i32
    %0 = arith.muli %arg1, %c2_i32 : i32
    %c0_i32 = arith.constant 0 : i32
    %c2_i32_0 = arith.constant 2 : i32
    %1 = arith.addi %c0_i32, %c2_i32_0 : i32
    %c1_i32 = arith.constant 1 : i32
    scf.for %arg7 = %c0_i32 to %1 step %c1_i32  : i32 {
      %cst = arith.constant 0.000000e+00 : f32
      %2 = vector.broadcast %cst : f32 to vector<16x2xf32>
      %3 = arith.addi %0, %arg7 : i32
      %c0_i32_2 = arith.constant 0 : i32
      %4 = arith.addi %3, %c0_i32_2 : i32
      %c0 = arith.constant 0 : index
      %5 = arith.index_cast %4 : i32 to index
      %c0_3 = arith.constant 0 : index
      %c0_4 = arith.constant 0 : index
      %6 = vector.load %arg2[%c0, %5, %c0_3, %c0_4] : memref<1x4x16x4xbf16, #tpu.memory_space<vmem>>, vector<1x1x16x4xbf16>
      %7 = vector.shape_cast %6 : vector<1x1x16x4xbf16> to vector<16x4xbf16>
      %c0_5 = arith.constant 0 : index
      %c0_6 = arith.constant 0 : index
      %c0_7 = arith.constant 0 : index
      %c0_8 = arith.constant 0 : index
      %8 = vector.load %arg3[%c0_5, %c0_6, %c0_7, %c0_8] : memref<3x3x16x16xbf16, #tpu.memory_space<vmem>>, vector<1x1x16x16xbf16>
      %9 = vector.shape_cast %8 : vector<1x1x16x16xbf16> to vector<16x16xbf16>
      %10 = vector.extract_strided_slice %7 {offsets = [0, 0], sizes = [16, 2], strides = [1, 1]} : vector<16x4xbf16> to vector<16x2xbf16>
      %cst_9 = arith.constant dense<0.000000e+00> : vector<16x2xf32>
      %11 = tpu.matmul %9, %10, %cst_9 {dimension_numbers = #tpu.dot_dimension_numbers<[1], [0], [0], [1], [0, 0, 1, 1], [], []>} : vector<16x16xbf16>, vector<16x2xbf16>, vector<16x2xf32> -> vector<16x2xf32>
      %12 = arith.addf %2, %11 : vector<16x2xf32>
      %c0_10 = arith.constant 0 : index
      %c1 = arith.constant 1 : index
      %c0_11 = arith.constant 0 : index
      %c0_12 = arith.constant 0 : index
      %13 = vector.load %arg3[%c0_10, %c1, %c0_11, %c0_12] : memref<3x3x16x16xbf16, #tpu.memory_space<vmem>>, vector<1x1x16x16xbf16>
      %14 = vector.shape_cast %13 : vector<1x1x16x16xbf16> to vector<16x16xbf16>
      %15 = vector.extract_strided_slice %7 {offsets = [0, 1], sizes = [16, 2], strides = [1, 1]} : vector<16x4xbf16> to vector<16x2xbf16>
      %cst_13 = arith.constant dense<0.000000e+00> : vector<16x2xf32>
      %16 = tpu.matmul %14, %15, %cst_13 {dimension_numbers = #tpu.dot_dimension_numbers<[1], [0], [0], [1], [0, 0, 1, 1], [], []>} : vector<16x16xbf16>, vector<16x2xbf16>, vector<16x2xf32> -> vector<16x2xf32>
      %17 = arith.addf %12, %16 : vector<16x2xf32>
      %c0_14 = arith.constant 0 : index
      %c2 = arith.constant 2 : index
      %c0_15 = arith.constant 0 : index
      %c0_16 = arith.constant 0 : index
      %18 = vector.load %arg3[%c0_14, %c2, %c0_15, %c0_16] : memref<3x3x16x16xbf16, #tpu.memory_space<vmem>>, vector<1x1x16x16xbf16>
      %19 = vector.shape_cast %18 : vector<1x1x16x16xbf16> to vector<16x16xbf16>
      %20 = vector.extract_strided_slice %7 {offsets = [0, 2], sizes = [16, 2], strides = [1, 1]} : vector<16x4xbf16> to vector<16x2xbf16>
      %cst_17 = arith.constant dense<0.000000e+00> : vector<16x2xf32>
      %21 = tpu.matmul %19, %20, %cst_17 {dimension_numbers = #tpu.dot_dimension_numbers<[1], [0], [0], [1], [0, 0, 1, 1], [], []>} : vector<16x16xbf16>, vector<16x2xbf16>, vector<16x2xf32> -> vector<16x2xf32>
      %22 = arith.addf %17, %21 : vector<16x2xf32>
      %23 = arith.addi %0, %arg7 : i32
      %c1_i32_18 = arith.constant 1 : i32
      %24 = arith.addi %23, %c1_i32_18 : i32
      %c0_19 = arith.constant 0 : index
      %25 = arith.index_cast %24 : i32 to index
      %c0_20 = arith.constant 0 : index
      %c0_21 = arith.constant 0 : index
      %26 = vector.load %arg2[%c0_19, %25, %c0_20, %c0_21] : memref<1x4x16x4xbf16, #tpu.memory_space<vmem>>, vector<1x1x16x4xbf16>
      %27 = vector.shape_cast %26 : vector<1x1x16x4xbf16> to vector<16x4xbf16>
      %c1_22 = arith.constant 1 : index
      %c0_23 = arith.constant 0 : index
      %c0_24 = arith.constant 0 : index
      %c0_25 = arith.constant 0 : index
      %28 = vector.load %arg3[%c1_22, %c0_23, %c0_24, %c0_25] : memref<3x3x16x16xbf16, #tpu.memory_space<vmem>>, vector<1x1x16x16xbf16>
      %29 = vector.shape_cast %28 : vector<1x1x16x16xbf16> to vector<16x16xbf16>
      %30 = vector.extract_strided_slice %27 {offsets = [0, 0], sizes = [16, 2], strides = [1, 1]} : vector<16x4xbf16> to vector<16x2xbf16>
      %cst_26 = arith.constant dense<0.000000e+00> : vector<16x2xf32>
      %31 = tpu.matmul %29, %30, %cst_26 {dimension_numbers = #tpu.dot_dimension_numbers<[1], [0], [0], [1], [0, 0, 1, 1], [], []>} : vector<16x16xbf16>, vector<16x2xbf16>, vector<16x2xf32> -> vector<16x2xf32>
      %32 = arith.addf %22, %31 : vector<16x2xf32>
      %c1_27 = arith.constant 1 : index
      %c1_28 = arith.constant 1 : index
      %c0_29 = arith.constant 0 : index
      %c0_30 = arith.constant 0 : index
      %33 = vector.load %arg3[%c1_27, %c1_28, %c0_29, %c0_30] : memref<3x3x16x16xbf16, #tpu.memory_space<vmem>>, vector<1x1x16x16xbf16>
      %34 = vector.shape_cast %33 : vector<1x1x16x16xbf16> to vector<16x16xbf16>
      %35 = vector.extract_strided_slice %27 {offsets = [0, 1], sizes = [16, 2], strides = [1, 1]} : vector<16x4xbf16> to vector<16x2xbf16>
      %cst_31 = arith.constant dense<0.000000e+00> : vector<16x2xf32>
      %36 = tpu.matmul %34, %35, %cst_31 {dimension_numbers = #tpu.dot_dimension_numbers<[1], [0], [0], [1], [0, 0, 1, 1], [], []>} : vector<16x16xbf16>, vector<16x2xbf16>, vector<16x2xf32> -> vector<16x2xf32>
      %37 = arith.addf %32, %36 : vector<16x2xf32>
      %c1_32 = arith.constant 1 : index
      %c2_33 = arith.constant 2 : index
      %c0_34 = arith.constant 0 : index
      %c0_35 = arith.constant 0 : index
      %38 = vector.load %arg3[%c1_32, %c2_33, %c0_34, %c0_35] : memref<3x3x16x16xbf16, #tpu.memory_space<vmem>>, vector<1x1x16x16xbf16>
      %39 = vector.shape_cast %38 : vector<1x1x16x16xbf16> to vector<16x16xbf16>
      %40 = vector.extract_strided_slice %27 {offsets = [0, 2], sizes = [16, 2], strides = [1, 1]} : vector<16x4xbf16> to vector<16x2xbf16>
      %cst_36 = arith.constant dense<0.000000e+00> : vector<16x2xf32>
      %41 = tpu.matmul %39, %40, %cst_36 {dimension_numbers = #tpu.dot_dimension_numbers<[1], [0], [0], [1], [0, 0, 1, 1], [], []>} : vector<16x16xbf16>, vector<16x2xbf16>, vector<16x2xf32> -> vector<16x2xf32>
      %42 = arith.addf %37, %41 : vector<16x2xf32>
      %43 = arith.addi %0, %arg7 : i32
      %c2_i32_37 = arith.constant 2 : i32
      %44 = arith.addi %43, %c2_i32_37 : i32
      %c0_38 = arith.constant 0 : index
      %45 = arith.index_cast %44 : i32 to index
      %c0_39 = arith.constant 0 : index
      %c0_40 = arith.constant 0 : index
      %46 = vector.load %arg2[%c0_38, %45, %c0_39, %c0_40] : memref<1x4x16x4xbf16, #tpu.memory_space<vmem>>, vector<1x1x16x4xbf16>
      %47 = vector.shape_cast %46 : vector<1x1x16x4xbf16> to vector<16x4xbf16>
      %c2_41 = arith.constant 2 : index
      %c0_42 = arith.constant 0 : index
      %c0_43 = arith.constant 0 : index
      %c0_44 = arith.constant 0 : index
      %48 = vector.load %arg3[%c2_41, %c0_42, %c0_43, %c0_44] : memref<3x3x16x16xbf16, #tpu.memory_space<vmem>>, vector<1x1x16x16xbf16>
      %49 = vector.shape_cast %48 : vector<1x1x16x16xbf16> to vector<16x16xbf16>
      %50 = vector.extract_strided_slice %47 {offsets = [0, 0], sizes = [16, 2], strides = [1, 1]} : vector<16x4xbf16> to vector<16x2xbf16>
      %cst_45 = arith.constant dense<0.000000e+00> : vector<16x2xf32>
      %51 = tpu.matmul %49, %50, %cst_45 {dimension_numbers = #tpu.dot_dimension_numbers<[1], [0], [0], [1], [0, 0, 1, 1], [], []>} : vector<16x16xbf16>, vector<16x2xbf16>, vector<16x2xf32> -> vector<16x2xf32>
      %52 = arith.addf %42, %51 : vector<16x2xf32>
      %c2_46 = arith.constant 2 : index
      %c1_47 = arith.constant 1 : index
      %c0_48 = arith.constant 0 : index
      %c0_49 = arith.constant 0 : index
      %53 = vector.load %arg3[%c2_46, %c1_47, %c0_48, %c0_49] : memref<3x3x16x16xbf16, #tpu.memory_space<vmem>>, vector<1x1x16x16xbf16>
      %54 = vector.shape_cast %53 : vector<1x1x16x16xbf16> to vector<16x16xbf16>
      %55 = vector.extract_strided_slice %47 {offsets = [0, 1], sizes = [16, 2], strides = [1, 1]} : vector<16x4xbf16> to vector<16x2xbf16>
      %cst_50 = arith.constant dense<0.000000e+00> : vector<16x2xf32>
      %56 = tpu.matmul %54, %55, %cst_50 {dimension_numbers = #tpu.dot_dimension_numbers<[1], [0], [0], [1], [0, 0, 1, 1], [], []>} : vector<16x16xbf16>, vector<16x2xbf16>, vector<16x2xf32> -> vector<16x2xf32>
      %57 = arith.addf %52, %56 : vector<16x2xf32>
      %c2_51 = arith.constant 2 : index
      %c2_52 = arith.constant 2 : index
      %c0_53 = arith.constant 0 : index
      %c0_54 = arith.constant 0 : index
      %58 = vector.load %arg3[%c2_51, %c2_52, %c0_53, %c0_54] : memref<3x3x16x16xbf16, #tpu.memory_space<vmem>>, vector<1x1x16x16xbf16>
      %59 = vector.shape_cast %58 : vector<1x1x16x16xbf16> to vector<16x16xbf16>
      %60 = vector.extract_strided_slice %47 {offsets = [0, 2], sizes = [16, 2], strides = [1, 1]} : vector<16x4xbf16> to vector<16x2xbf16>
      %cst_55 = arith.constant dense<0.000000e+00> : vector<16x2xf32>
      %61 = tpu.matmul %59, %60, %cst_55 {dimension_numbers = #tpu.dot_dimension_numbers<[1], [0], [0], [1], [0, 0, 1, 1], [], []>} : vector<16x16xbf16>, vector<16x2xbf16>, vector<16x2xf32> -> vector<16x2xf32>
      %62 = arith.addf %57, %61 : vector<16x2xf32>
      %c0_56 = arith.constant 0 : index
      %c0_57 = arith.constant 0 : index
      %63 = vector.load %arg4[%c0_56, %c0_57] : memref<16x1xf32, #tpu.memory_space<vmem>>, vector<16x1xf32>
      %64 = vector.broadcast %63 : vector<16x1xf32> to vector<16x2xf32>
      %65 = arith.mulf %62, %64 : vector<16x2xf32>
      %c0_58 = arith.constant 0 : index
      %c0_59 = arith.constant 0 : index
      %66 = vector.load %arg5[%c0_58, %c0_59] : memref<16x1xf32, #tpu.memory_space<vmem>>, vector<16x1xf32>
      %67 = vector.broadcast %66 : vector<16x1xf32> to vector<16x2xf32>
      %68 = arith.addf %65, %67 : vector<16x2xf32>
      %cst_60 = arith.constant 0.000000e+00 : f32
      %69 = vector.broadcast %cst_60 : f32 to vector<16x2xf32>
      %70 = arith.maximumf %68, %69 : vector<16x2xf32>
      %c0_61 = arith.constant 0 : index
      %71 = arith.index_cast %arg7 : i32 to index
      %c0_62 = arith.constant 0 : index
      %c0_63 = arith.constant 0 : index
      %72 = vector.load %arg6[%c0_61, %71, %c0_62, %c0_63] : memref<1x2x16x2xf32, #tpu.memory_space<vmem>>, vector<1x1x16x2xf32>
      %73 = vector.shape_cast %72 : vector<1x1x16x2xf32> to vector<16x2xf32>
      %74 = vector.shape_cast %70 : vector<16x2xf32> to vector<1x1x16x2xf32>
      tpu.vector_store %arg6[%c0_61, %71, %c0_62, %c0_63], %74 {strides = array<i32>} : memref<1x2x16x2xf32, #tpu.memory_space<vmem>>, vector<1x1x16x2xf32>,
    }
    %c2_i32_1 = arith.constant 2 : i32
    return
  }
  func.func @transform_0(%arg0: i32, %arg1: i32) -> (i32, i32, i32, i32) {
    %c0_i32 = arith.constant 0 : i32
    %c0_i32_0 = arith.constant 0 : i32
    %c0_i32_1 = arith.constant 0 : i32
    %c0_i32_2 = arith.constant 0 : i32
    return %arg0, %c0_i32, %c0_i32_0, %c0_i32_1 : i32, i32, i32, i32
  }
  func.func @transform_1(%arg0: i32, %arg1: i32) -> (i32, i32, i32, i32) {
    %c0_i32 = arith.constant 0 : i32
    %c0_i32_0 = arith.constant 0 : i32
    %c0_i32_1 = arith.constant 0 : i32
    %c0_i32_2 = arith.constant 0 : i32
    %c0_i32_3 = arith.constant 0 : i32
    return %c0_i32, %c0_i32_0, %c0_i32_1, %c0_i32_2 : i32, i32, i32, i32
  }
  func.func @transform_2(%arg0: i32, %arg1: i32) -> (i32, i32) {
    %c0_i32 = arith.constant 0 : i32
    %c0_i32_0 = arith.constant 0 : i32
    %c0_i32_1 = arith.constant 0 : i32
    return %c0_i32, %c0_i32_0 : i32, i32
  }
  func.func @transform_3(%arg0: i32, %arg1: i32) -> (i32, i32) {
    %c0_i32 = arith.constant 0 : i32
    %c0_i32_0 = arith.constant 0 : i32
    %c0_i32_1 = arith.constant 0 : i32
    return %c0_i32, %c0_i32_0 : i32, i32
  }
  func.func @transform_4(%arg0: i32, %arg1: i32) -> (i32, i32, i32, i32) {
    %c0_i32 = arith.constant 0 : i32
    %c0_i32_0 = arith.constant 0 : i32
    %c0_i32_1 = arith.constant 0 : i32
    return %arg0, %arg1, %c0_i32, %c0_i32_0 : i32, i32, i32, i32
  }
}

module attributes {stable_mosaic.version = 11 : i64} {
  func.func @_l2norm_kernel(%arg0: i32, %arg1: memref<1x32x2xf32, #tpu.memory_space<vmem>>, %arg2: memref<1x32x2xf32, #tpu.memory_space<vmem>>, %arg3: memref<1x1x1xf32, #tpu.memory_space<vmem>>) attributes {dimension_semantics = [#tpu.dimension_semantics<parallel>], iteration_bounds = array<i64: 2>, scalar_prefetch = 0 : i64, scratch_operands = 0 : i64, tpu.core_type = #tpu.core_type<tc>, window_params = [{transform_indices = @transform_0, window_bounds = array<i64: 1, 32, 2>}, {transform_indices = @transform_1, window_bounds = array<i64: 1, 32, 2>}, {transform_indices = @transform_2, window_bounds = array<i64: 1, 1, 1>}]} {
    %c0 = arith.constant 0 : index
    %c0_0 = arith.constant 0 : index
    %c0_1 = arith.constant 0 : index
    %0 = vector.load %arg1[%c0, %c0_0, %c0_1] : memref<1x32x2xf32, #tpu.memory_space<vmem>>, vector<1x32x2xf32>
    %1 = vector.shape_cast %0 : vector<1x32x2xf32> to vector<32x2xf32>
    %2 = arith.mulf %1, %1 : vector<32x2xf32>
    %3 = vector.shape_cast %2 : vector<32x2xf32> to vector<1x32x2xf32>
    %cst = arith.constant dense<0.000000e+00> : vector<1xf32>
    %4 = vector.multi_reduction <add>, %3, %cst [1, 2] : vector<1x32x2xf32> to vector<1xf32>
    %5 = vector.shape_cast %4 : vector<1xf32> to vector<1x1x1xf32>
    %6 = vector.extract %5[0, 0, 0] : f32 from vector<1x1x1xf32>
    %7 = math.rsqrt %6 : f32
    %8 = vector.broadcast %7 : f32 to vector<32x2xf32>
    %9 = arith.mulf %1, %8 : vector<32x2xf32>
    %c0_2 = arith.constant 0 : index
    %c0_3 = arith.constant 0 : index
    %c0_4 = arith.constant 0 : index
    %10 = vector.load %arg2[%c0_2, %c0_3, %c0_4] : memref<1x32x2xf32, #tpu.memory_space<vmem>>, vector<1x32x2xf32>
    %11 = vector.shape_cast %10 : vector<1x32x2xf32> to vector<32x2xf32>
    %12 = vector.shape_cast %9 : vector<32x2xf32> to vector<1x32x2xf32>
    tpu.vector_store %arg2[%c0_2, %c0_3, %c0_4], %12 {strides = array<i32>} : memref<1x32x2xf32, #tpu.memory_space<vmem>>, vector<1x32x2xf32>,
    %13 = arith.mulf %6, %7 : f32
    %cst_5 = arith.constant 1.000000e+00 : f32
    %14 = vector.broadcast %cst_5 : f32 to vector<1x1xf32>
    %15 = vector.broadcast %13 : f32 to vector<1x1xf32>
    %16 = arith.mulf %15, %14 : vector<1x1xf32>
    %c0_6 = arith.constant 0 : index
    %c0_7 = arith.constant 0 : index
    %c0_8 = arith.constant 0 : index
    %17 = vector.load %arg3[%c0_6, %c0_7, %c0_8] : memref<1x1x1xf32, #tpu.memory_space<vmem>>, vector<1x1x1xf32>
    %18 = vector.shape_cast %17 : vector<1x1x1xf32> to vector<1x1xf32>
    %19 = vector.shape_cast %16 : vector<1x1xf32> to vector<1x1x1xf32>
    tpu.vector_store %arg3[%c0_6, %c0_7, %c0_8], %19 {strides = array<i32>} : memref<1x1x1xf32, #tpu.memory_space<vmem>>, vector<1x1x1xf32>,
    return
  }
  func.func @transform_0(%arg0: i32) -> (i32, i32, i32) {
    %c0_i32 = arith.constant 0 : i32
    %c0_i32_0 = arith.constant 0 : i32
    %c0_i32_1 = arith.constant 0 : i32
    return %arg0, %c0_i32, %c0_i32_0 : i32, i32, i32
  }
  func.func @transform_1(%arg0: i32) -> (i32, i32, i32) {
    %c0_i32 = arith.constant 0 : i32
    %c0_i32_0 = arith.constant 0 : i32
    %c0_i32_1 = arith.constant 0 : i32
    return %arg0, %c0_i32, %c0_i32_0 : i32, i32, i32
  }
  func.func @transform_2(%arg0: i32) -> (i32, i32, i32) {
    %c0_i32 = arith.constant 0 : i32
    %c0_i32_0 = arith.constant 0 : i32
    %c0_i32_1 = arith.constant 0 : i32
    return %arg0, %c0_i32, %c0_i32_0 : i32, i32, i32
  }
}

module attributes {stable_mosaic.version = 11 : i64} {
  func.func @_conv_kernel(%arg0: i32, %arg1: i32, %arg2: memref<1x6x16x6xbf16, #tpu.memory_space<vmem>>, %arg3: memref<3x3x48x16xbf16, #tpu.memory_space<vmem>>, %arg4: memref<48x1xf32, #tpu.memory_space<vmem>>, %arg5: memref<48x1xf32, #tpu.memory_space<vmem>>, %arg6: memref<1x4x48x4xbf16, #tpu.memory_space<vmem>>) attributes {dimension_semantics = [#tpu.dimension_semantics<parallel>, #tpu.dimension_semantics<parallel>], iteration_bounds = array<i64: 2, 1>, scalar_prefetch = 0 : i64, scratch_operands = 0 : i64, tpu.core_type = #tpu.core_type<tc>, window_params = [{transform_indices = @transform_0, window_bounds = array<i64: 1, 6, 16, 6>}, {pipeline_mode = #tpu.pipeline_mode<synchronous>, transform_indices = @transform_1, window_bounds = array<i64: 3, 3, 48, 16>}, {pipeline_mode = #tpu.pipeline_mode<synchronous>, transform_indices = @transform_2, window_bounds = array<i64: 48, 1>}, {pipeline_mode = #tpu.pipeline_mode<synchronous>, transform_indices = @transform_3, window_bounds = array<i64: 48, 1>}, {transform_indices = @transform_4, window_bounds = array<i64: 1, 4, 48, 4>}]} {
    %c4_i32 = arith.constant 4 : i32
    %0 = arith.muli %arg1, %c4_i32 : i32
    %c0_i32 = arith.constant 0 : i32
    %c4_i32_0 = arith.constant 4 : i32
    %1 = arith.addi %c0_i32, %c4_i32_0 : i32
    %c1_i32 = arith.constant 1 : i32
    scf.for %arg7 = %c0_i32 to %1 step %c1_i32  : i32 {
      %cst = arith.constant 0.000000e+00 : f32
      %2 = vector.broadcast %cst : f32 to vector<48x4xf32>
      %3 = arith.addi %0, %arg7 : i32
      %c0_i32_2 = arith.constant 0 : i32
      %4 = arith.addi %3, %c0_i32_2 : i32
      %c0 = arith.constant 0 : index
      %5 = arith.index_cast %4 : i32 to index
      %c0_3 = arith.constant 0 : index
      %c0_4 = arith.constant 0 : index
      %6 = vector.load %arg2[%c0, %5, %c0_3, %c0_4] : memref<1x6x16x6xbf16, #tpu.memory_space<vmem>>, vector<1x1x16x6xbf16>
      %7 = vector.shape_cast %6 : vector<1x1x16x6xbf16> to vector<16x6xbf16>
      %c0_5 = arith.constant 0 : index
      %c0_6 = arith.constant 0 : index
      %c0_7 = arith.constant 0 : index
      %c0_8 = arith.constant 0 : index
      %8 = vector.load %arg3[%c0_5, %c0_6, %c0_7, %c0_8] : memref<3x3x48x16xbf16, #tpu.memory_space<vmem>>, vector<1x1x48x16xbf16>
      %9 = vector.shape_cast %8 : vector<1x1x48x16xbf16> to vector<48x16xbf16>
      %10 = vector.extract_strided_slice %7 {offsets = [0, 0], sizes = [16, 4], strides = [1, 1]} : vector<16x6xbf16> to vector<16x4xbf16>
      %cst_9 = arith.constant dense<0.000000e+00> : vector<48x4xf32>
      %11 = tpu.matmul %9, %10, %cst_9 {dimension_numbers = #tpu.dot_dimension_numbers<[1], [0], [0], [1], [0, 0, 1, 1], [], []>} : vector<48x16xbf16>, vector<16x4xbf16>, vector<48x4xf32> -> vector<48x4xf32>
      %12 = arith.addf %2, %11 : vector<48x4xf32>
      %c0_10 = arith.constant 0 : index
      %c1 = arith.constant 1 : index
      %c0_11 = arith.constant 0 : index
      %c0_12 = arith.constant 0 : index
      %13 = vector.load %arg3[%c0_10, %c1, %c0_11, %c0_12] : memref<3x3x48x16xbf16, #tpu.memory_space<vmem>>, vector<1x1x48x16xbf16>
      %14 = vector.shape_cast %13 : vector<1x1x48x16xbf16> to vector<48x16xbf16>
      %15 = vector.extract_strided_slice %7 {offsets = [0, 1], sizes = [16, 4], strides = [1, 1]} : vector<16x6xbf16> to vector<16x4xbf16>
      %cst_13 = arith.constant dense<0.000000e+00> : vector<48x4xf32>
      %16 = tpu.matmul %14, %15, %cst_13 {dimension_numbers = #tpu.dot_dimension_numbers<[1], [0], [0], [1], [0, 0, 1, 1], [], []>} : vector<48x16xbf16>, vector<16x4xbf16>, vector<48x4xf32> -> vector<48x4xf32>
      %17 = arith.addf %12, %16 : vector<48x4xf32>
      %c0_14 = arith.constant 0 : index
      %c2 = arith.constant 2 : index
      %c0_15 = arith.constant 0 : index
      %c0_16 = arith.constant 0 : index
      %18 = vector.load %arg3[%c0_14, %c2, %c0_15, %c0_16] : memref<3x3x48x16xbf16, #tpu.memory_space<vmem>>, vector<1x1x48x16xbf16>
      %19 = vector.shape_cast %18 : vector<1x1x48x16xbf16> to vector<48x16xbf16>
      %20 = vector.extract_strided_slice %7 {offsets = [0, 2], sizes = [16, 4], strides = [1, 1]} : vector<16x6xbf16> to vector<16x4xbf16>
      %cst_17 = arith.constant dense<0.000000e+00> : vector<48x4xf32>
      %21 = tpu.matmul %19, %20, %cst_17 {dimension_numbers = #tpu.dot_dimension_numbers<[1], [0], [0], [1], [0, 0, 1, 1], [], []>} : vector<48x16xbf16>, vector<16x4xbf16>, vector<48x4xf32> -> vector<48x4xf32>
      %22 = arith.addf %17, %21 : vector<48x4xf32>
      %23 = arith.addi %0, %arg7 : i32
      %c1_i32_18 = arith.constant 1 : i32
      %24 = arith.addi %23, %c1_i32_18 : i32
      %c0_19 = arith.constant 0 : index
      %25 = arith.index_cast %24 : i32 to index
      %c0_20 = arith.constant 0 : index
      %c0_21 = arith.constant 0 : index
      %26 = vector.load %arg2[%c0_19, %25, %c0_20, %c0_21] : memref<1x6x16x6xbf16, #tpu.memory_space<vmem>>, vector<1x1x16x6xbf16>
      %27 = vector.shape_cast %26 : vector<1x1x16x6xbf16> to vector<16x6xbf16>
      %c1_22 = arith.constant 1 : index
      %c0_23 = arith.constant 0 : index
      %c0_24 = arith.constant 0 : index
      %c0_25 = arith.constant 0 : index
      %28 = vector.load %arg3[%c1_22, %c0_23, %c0_24, %c0_25] : memref<3x3x48x16xbf16, #tpu.memory_space<vmem>>, vector<1x1x48x16xbf16>
      %29 = vector.shape_cast %28 : vector<1x1x48x16xbf16> to vector<48x16xbf16>
      %30 = vector.extract_strided_slice %27 {offsets = [0, 0], sizes = [16, 4], strides = [1, 1]} : vector<16x6xbf16> to vector<16x4xbf16>
      %cst_26 = arith.constant dense<0.000000e+00> : vector<48x4xf32>
      %31 = tpu.matmul %29, %30, %cst_26 {dimension_numbers = #tpu.dot_dimension_numbers<[1], [0], [0], [1], [0, 0, 1, 1], [], []>} : vector<48x16xbf16>, vector<16x4xbf16>, vector<48x4xf32> -> vector<48x4xf32>
      %32 = arith.addf %22, %31 : vector<48x4xf32>
      %c1_27 = arith.constant 1 : index
      %c1_28 = arith.constant 1 : index
      %c0_29 = arith.constant 0 : index
      %c0_30 = arith.constant 0 : index
      %33 = vector.load %arg3[%c1_27, %c1_28, %c0_29, %c0_30] : memref<3x3x48x16xbf16, #tpu.memory_space<vmem>>, vector<1x1x48x16xbf16>
      %34 = vector.shape_cast %33 : vector<1x1x48x16xbf16> to vector<48x16xbf16>
      %35 = vector.extract_strided_slice %27 {offsets = [0, 1], sizes = [16, 4], strides = [1, 1]} : vector<16x6xbf16> to vector<16x4xbf16>
      %cst_31 = arith.constant dense<0.000000e+00> : vector<48x4xf32>
      %36 = tpu.matmul %34, %35, %cst_31 {dimension_numbers = #tpu.dot_dimension_numbers<[1], [0], [0], [1], [0, 0, 1, 1], [], []>} : vector<48x16xbf16>, vector<16x4xbf16>, vector<48x4xf32> -> vector<48x4xf32>
      %37 = arith.addf %32, %36 : vector<48x4xf32>
      %c1_32 = arith.constant 1 : index
      %c2_33 = arith.constant 2 : index
      %c0_34 = arith.constant 0 : index
      %c0_35 = arith.constant 0 : index
      %38 = vector.load %arg3[%c1_32, %c2_33, %c0_34, %c0_35] : memref<3x3x48x16xbf16, #tpu.memory_space<vmem>>, vector<1x1x48x16xbf16>
      %39 = vector.shape_cast %38 : vector<1x1x48x16xbf16> to vector<48x16xbf16>
      %40 = vector.extract_strided_slice %27 {offsets = [0, 2], sizes = [16, 4], strides = [1, 1]} : vector<16x6xbf16> to vector<16x4xbf16>
      %cst_36 = arith.constant dense<0.000000e+00> : vector<48x4xf32>
      %41 = tpu.matmul %39, %40, %cst_36 {dimension_numbers = #tpu.dot_dimension_numbers<[1], [0], [0], [1], [0, 0, 1, 1], [], []>} : vector<48x16xbf16>, vector<16x4xbf16>, vector<48x4xf32> -> vector<48x4xf32>
      %42 = arith.addf %37, %41 : vector<48x4xf32>
      %43 = arith.addi %0, %arg7 : i32
      %c2_i32 = arith.constant 2 : i32
      %44 = arith.addi %43, %c2_i32 : i32
      %c0_37 = arith.constant 0 : index
      %45 = arith.index_cast %44 : i32 to index
      %c0_38 = arith.constant 0 : index
      %c0_39 = arith.constant 0 : index
      %46 = vector.load %arg2[%c0_37, %45, %c0_38, %c0_39] : memref<1x6x16x6xbf16, #tpu.memory_space<vmem>>, vector<1x1x16x6xbf16>
      %47 = vector.shape_cast %46 : vector<1x1x16x6xbf16> to vector<16x6xbf16>
      %c2_40 = arith.constant 2 : index
      %c0_41 = arith.constant 0 : index
      %c0_42 = arith.constant 0 : index
      %c0_43 = arith.constant 0 : index
      %48 = vector.load %arg3[%c2_40, %c0_41, %c0_42, %c0_43] : memref<3x3x48x16xbf16, #tpu.memory_space<vmem>>, vector<1x1x48x16xbf16>
      %49 = vector.shape_cast %48 : vector<1x1x48x16xbf16> to vector<48x16xbf16>
      %50 = vector.extract_strided_slice %47 {offsets = [0, 0], sizes = [16, 4], strides = [1, 1]} : vector<16x6xbf16> to vector<16x4xbf16>
      %cst_44 = arith.constant dense<0.000000e+00> : vector<48x4xf32>
      %51 = tpu.matmul %49, %50, %cst_44 {dimension_numbers = #tpu.dot_dimension_numbers<[1], [0], [0], [1], [0, 0, 1, 1], [], []>} : vector<48x16xbf16>, vector<16x4xbf16>, vector<48x4xf32> -> vector<48x4xf32>
      %52 = arith.addf %42, %51 : vector<48x4xf32>
      %c2_45 = arith.constant 2 : index
      %c1_46 = arith.constant 1 : index
      %c0_47 = arith.constant 0 : index
      %c0_48 = arith.constant 0 : index
      %53 = vector.load %arg3[%c2_45, %c1_46, %c0_47, %c0_48] : memref<3x3x48x16xbf16, #tpu.memory_space<vmem>>, vector<1x1x48x16xbf16>
      %54 = vector.shape_cast %53 : vector<1x1x48x16xbf16> to vector<48x16xbf16>
      %55 = vector.extract_strided_slice %47 {offsets = [0, 1], sizes = [16, 4], strides = [1, 1]} : vector<16x6xbf16> to vector<16x4xbf16>
      %cst_49 = arith.constant dense<0.000000e+00> : vector<48x4xf32>
      %56 = tpu.matmul %54, %55, %cst_49 {dimension_numbers = #tpu.dot_dimension_numbers<[1], [0], [0], [1], [0, 0, 1, 1], [], []>} : vector<48x16xbf16>, vector<16x4xbf16>, vector<48x4xf32> -> vector<48x4xf32>
      %57 = arith.addf %52, %56 : vector<48x4xf32>
      %c2_50 = arith.constant 2 : index
      %c2_51 = arith.constant 2 : index
      %c0_52 = arith.constant 0 : index
      %c0_53 = arith.constant 0 : index
      %58 = vector.load %arg3[%c2_50, %c2_51, %c0_52, %c0_53] : memref<3x3x48x16xbf16, #tpu.memory_space<vmem>>, vector<1x1x48x16xbf16>
      %59 = vector.shape_cast %58 : vector<1x1x48x16xbf16> to vector<48x16xbf16>
      %60 = vector.extract_strided_slice %47 {offsets = [0, 2], sizes = [16, 4], strides = [1, 1]} : vector<16x6xbf16> to vector<16x4xbf16>
      %cst_54 = arith.constant dense<0.000000e+00> : vector<48x4xf32>
      %61 = tpu.matmul %59, %60, %cst_54 {dimension_numbers = #tpu.dot_dimension_numbers<[1], [0], [0], [1], [0, 0, 1, 1], [], []>} : vector<48x16xbf16>, vector<16x4xbf16>, vector<48x4xf32> -> vector<48x4xf32>
      %62 = arith.addf %57, %61 : vector<48x4xf32>
      %c0_55 = arith.constant 0 : index
      %c0_56 = arith.constant 0 : index
      %63 = vector.load %arg4[%c0_55, %c0_56] : memref<48x1xf32, #tpu.memory_space<vmem>>, vector<48x1xf32>
      %64 = vector.broadcast %63 : vector<48x1xf32> to vector<48x4xf32>
      %65 = arith.mulf %62, %64 : vector<48x4xf32>
      %c0_57 = arith.constant 0 : index
      %c0_58 = arith.constant 0 : index
      %66 = vector.load %arg5[%c0_57, %c0_58] : memref<48x1xf32, #tpu.memory_space<vmem>>, vector<48x1xf32>
      %67 = vector.broadcast %66 : vector<48x1xf32> to vector<48x4xf32>
      %68 = arith.addf %65, %67 : vector<48x4xf32>
      %cst_59 = arith.constant 0.000000e+00 : f32
      %69 = vector.broadcast %cst_59 : f32 to vector<48x4xf32>
      %70 = arith.maximumf %68, %69 : vector<48x4xf32>
      %71 = arith.truncf %70 : vector<48x4xf32> to vector<48x4xbf16>
      %c0_60 = arith.constant 0 : index
      %72 = arith.index_cast %arg7 : i32 to index
      %c0_61 = arith.constant 0 : index
      %c0_62 = arith.constant 0 : index
      %73 = vector.load %arg6[%c0_60, %72, %c0_61, %c0_62] : memref<1x4x48x4xbf16, #tpu.memory_space<vmem>>, vector<1x1x48x4xbf16>
      %74 = vector.shape_cast %73 : vector<1x1x48x4xbf16> to vector<48x4xbf16>
      %75 = vector.shape_cast %71 : vector<48x4xbf16> to vector<1x1x48x4xbf16>
      tpu.vector_store %arg6[%c0_60, %72, %c0_61, %c0_62], %75 {strides = array<i32>} : memref<1x4x48x4xbf16, #tpu.memory_space<vmem>>, vector<1x1x48x4xbf16>,
    }
    %c4_i32_1 = arith.constant 4 : i32
    return
  }
  func.func @transform_0(%arg0: i32, %arg1: i32) -> (i32, i32, i32, i32) {
    %c0_i32 = arith.constant 0 : i32
    %c0_i32_0 = arith.constant 0 : i32
    %c0_i32_1 = arith.constant 0 : i32
    %c0_i32_2 = arith.constant 0 : i32
    return %arg0, %c0_i32, %c0_i32_0, %c0_i32_1 : i32, i32, i32, i32
  }
  func.func @transform_1(%arg0: i32, %arg1: i32) -> (i32, i32, i32, i32) {
    %c0_i32 = arith.constant 0 : i32
    %c0_i32_0 = arith.constant 0 : i32
    %c0_i32_1 = arith.constant 0 : i32
    %c0_i32_2 = arith.constant 0 : i32
    %c0_i32_3 = arith.constant 0 : i32
    return %c0_i32, %c0_i32_0, %c0_i32_1, %c0_i32_2 : i32, i32, i32, i32
  }
  func.func @transform_2(%arg0: i32, %arg1: i32) -> (i32, i32) {
    %c0_i32 = arith.constant 0 : i32
    %c0_i32_0 = arith.constant 0 : i32
    %c0_i32_1 = arith.constant 0 : i32
    return %c0_i32, %c0_i32_0 : i32, i32
  }
  func.func @transform_3(%arg0: i32, %arg1: i32) -> (i32, i32) {
    %c0_i32 = arith.constant 0 : i32
    %c0_i32_0 = arith.constant 0 : i32
    %c0_i32_1 = arith.constant 0 : i32
    return %c0_i32, %c0_i32_0 : i32, i32
  }
  func.func @transform_4(%arg0: i32, %arg1: i32) -> (i32, i32, i32, i32) {
    %c0_i32 = arith.constant 0 : i32
    %c0_i32_0 = arith.constant 0 : i32
    %c0_i32_1 = arith.constant 0 : i32
    return %arg0, %arg1, %c0_i32, %c0_i32_0 : i32, i32, i32, i32
  }
}

module attributes {stable_mosaic.version = 11 : i64} {
  func.func @_conv_kernel(%arg0: i32, %arg1: i32, %arg2: memref<1x6x48x6xbf16, #tpu.memory_space<vmem>>, %arg3: memref<3x3x48x48xbf16, #tpu.memory_space<vmem>>, %arg4: memref<48x1xf32, #tpu.memory_space<vmem>>, %arg5: memref<48x1xf32, #tpu.memory_space<vmem>>, %arg6: memref<1x4x48x4xbf16, #tpu.memory_space<vmem>>) attributes {dimension_semantics = [#tpu.dimension_semantics<parallel>, #tpu.dimension_semantics<parallel>], iteration_bounds = array<i64: 2, 1>, scalar_prefetch = 0 : i64, scratch_operands = 0 : i64, tpu.core_type = #tpu.core_type<tc>, window_params = [{transform_indices = @transform_0, window_bounds = array<i64: 1, 6, 48, 6>}, {pipeline_mode = #tpu.pipeline_mode<synchronous>, transform_indices = @transform_1, window_bounds = array<i64: 3, 3, 48, 48>}, {pipeline_mode = #tpu.pipeline_mode<synchronous>, transform_indices = @transform_2, window_bounds = array<i64: 48, 1>}, {pipeline_mode = #tpu.pipeline_mode<synchronous>, transform_indices = @transform_3, window_bounds = array<i64: 48, 1>}, {transform_indices = @transform_4, window_bounds = array<i64: 1, 4, 48, 4>}]} {
    %c4_i32 = arith.constant 4 : i32
    %0 = arith.muli %arg1, %c4_i32 : i32
    %c0_i32 = arith.constant 0 : i32
    %c4_i32_0 = arith.constant 4 : i32
    %1 = arith.addi %c0_i32, %c4_i32_0 : i32
    %c1_i32 = arith.constant 1 : i32
    scf.for %arg7 = %c0_i32 to %1 step %c1_i32  : i32 {
      %cst = arith.constant 0.000000e+00 : f32
      %2 = vector.broadcast %cst : f32 to vector<48x4xf32>
      %3 = arith.addi %0, %arg7 : i32
      %c0_i32_2 = arith.constant 0 : i32
      %4 = arith.addi %3, %c0_i32_2 : i32
      %c0 = arith.constant 0 : index
      %5 = arith.index_cast %4 : i32 to index
      %c0_3 = arith.constant 0 : index
      %c0_4 = arith.constant 0 : index
      %6 = vector.load %arg2[%c0, %5, %c0_3, %c0_4] : memref<1x6x48x6xbf16, #tpu.memory_space<vmem>>, vector<1x1x48x6xbf16>
      %7 = vector.shape_cast %6 : vector<1x1x48x6xbf16> to vector<48x6xbf16>
      %c0_5 = arith.constant 0 : index
      %c0_6 = arith.constant 0 : index
      %c0_7 = arith.constant 0 : index
      %c0_8 = arith.constant 0 : index
      %8 = vector.load %arg3[%c0_5, %c0_6, %c0_7, %c0_8] : memref<3x3x48x48xbf16, #tpu.memory_space<vmem>>, vector<1x1x48x48xbf16>
      %9 = vector.shape_cast %8 : vector<1x1x48x48xbf16> to vector<48x48xbf16>
      %10 = vector.extract_strided_slice %7 {offsets = [0, 0], sizes = [48, 4], strides = [1, 1]} : vector<48x6xbf16> to vector<48x4xbf16>
      %cst_9 = arith.constant dense<0.000000e+00> : vector<48x4xf32>
      %11 = tpu.matmul %9, %10, %cst_9 {dimension_numbers = #tpu.dot_dimension_numbers<[1], [0], [0], [1], [0, 0, 1, 1], [], []>} : vector<48x48xbf16>, vector<48x4xbf16>, vector<48x4xf32> -> vector<48x4xf32>
      %12 = arith.addf %2, %11 : vector<48x4xf32>
      %c0_10 = arith.constant 0 : index
      %c1 = arith.constant 1 : index
      %c0_11 = arith.constant 0 : index
      %c0_12 = arith.constant 0 : index
      %13 = vector.load %arg3[%c0_10, %c1, %c0_11, %c0_12] : memref<3x3x48x48xbf16, #tpu.memory_space<vmem>>, vector<1x1x48x48xbf16>
      %14 = vector.shape_cast %13 : vector<1x1x48x48xbf16> to vector<48x48xbf16>
      %15 = vector.extract_strided_slice %7 {offsets = [0, 1], sizes = [48, 4], strides = [1, 1]} : vector<48x6xbf16> to vector<48x4xbf16>
      %cst_13 = arith.constant dense<0.000000e+00> : vector<48x4xf32>
      %16 = tpu.matmul %14, %15, %cst_13 {dimension_numbers = #tpu.dot_dimension_numbers<[1], [0], [0], [1], [0, 0, 1, 1], [], []>} : vector<48x48xbf16>, vector<48x4xbf16>, vector<48x4xf32> -> vector<48x4xf32>
      %17 = arith.addf %12, %16 : vector<48x4xf32>
      %c0_14 = arith.constant 0 : index
      %c2 = arith.constant 2 : index
      %c0_15 = arith.constant 0 : index
      %c0_16 = arith.constant 0 : index
      %18 = vector.load %arg3[%c0_14, %c2, %c0_15, %c0_16] : memref<3x3x48x48xbf16, #tpu.memory_space<vmem>>, vector<1x1x48x48xbf16>
      %19 = vector.shape_cast %18 : vector<1x1x48x48xbf16> to vector<48x48xbf16>
      %20 = vector.extract_strided_slice %7 {offsets = [0, 2], sizes = [48, 4], strides = [1, 1]} : vector<48x6xbf16> to vector<48x4xbf16>
      %cst_17 = arith.constant dense<0.000000e+00> : vector<48x4xf32>
      %21 = tpu.matmul %19, %20, %cst_17 {dimension_numbers = #tpu.dot_dimension_numbers<[1], [0], [0], [1], [0, 0, 1, 1], [], []>} : vector<48x48xbf16>, vector<48x4xbf16>, vector<48x4xf32> -> vector<48x4xf32>
      %22 = arith.addf %17, %21 : vector<48x4xf32>
      %23 = arith.addi %0, %arg7 : i32
      %c1_i32_18 = arith.constant 1 : i32
      %24 = arith.addi %23, %c1_i32_18 : i32
      %c0_19 = arith.constant 0 : index
      %25 = arith.index_cast %24 : i32 to index
      %c0_20 = arith.constant 0 : index
      %c0_21 = arith.constant 0 : index
      %26 = vector.load %arg2[%c0_19, %25, %c0_20, %c0_21] : memref<1x6x48x6xbf16, #tpu.memory_space<vmem>>, vector<1x1x48x6xbf16>
      %27 = vector.shape_cast %26 : vector<1x1x48x6xbf16> to vector<48x6xbf16>
      %c1_22 = arith.constant 1 : index
      %c0_23 = arith.constant 0 : index
      %c0_24 = arith.constant 0 : index
      %c0_25 = arith.constant 0 : index
      %28 = vector.load %arg3[%c1_22, %c0_23, %c0_24, %c0_25] : memref<3x3x48x48xbf16, #tpu.memory_space<vmem>>, vector<1x1x48x48xbf16>
      %29 = vector.shape_cast %28 : vector<1x1x48x48xbf16> to vector<48x48xbf16>
      %30 = vector.extract_strided_slice %27 {offsets = [0, 0], sizes = [48, 4], strides = [1, 1]} : vector<48x6xbf16> to vector<48x4xbf16>
      %cst_26 = arith.constant dense<0.000000e+00> : vector<48x4xf32>
      %31 = tpu.matmul %29, %30, %cst_26 {dimension_numbers = #tpu.dot_dimension_numbers<[1], [0], [0], [1], [0, 0, 1, 1], [], []>} : vector<48x48xbf16>, vector<48x4xbf16>, vector<48x4xf32> -> vector<48x4xf32>
      %32 = arith.addf %22, %31 : vector<48x4xf32>
      %c1_27 = arith.constant 1 : index
      %c1_28 = arith.constant 1 : index
      %c0_29 = arith.constant 0 : index
      %c0_30 = arith.constant 0 : index
      %33 = vector.load %arg3[%c1_27, %c1_28, %c0_29, %c0_30] : memref<3x3x48x48xbf16, #tpu.memory_space<vmem>>, vector<1x1x48x48xbf16>
      %34 = vector.shape_cast %33 : vector<1x1x48x48xbf16> to vector<48x48xbf16>
      %35 = vector.extract_strided_slice %27 {offsets = [0, 1], sizes = [48, 4], strides = [1, 1]} : vector<48x6xbf16> to vector<48x4xbf16>
      %cst_31 = arith.constant dense<0.000000e+00> : vector<48x4xf32>
      %36 = tpu.matmul %34, %35, %cst_31 {dimension_numbers = #tpu.dot_dimension_numbers<[1], [0], [0], [1], [0, 0, 1, 1], [], []>} : vector<48x48xbf16>, vector<48x4xbf16>, vector<48x4xf32> -> vector<48x4xf32>
      %37 = arith.addf %32, %36 : vector<48x4xf32>
      %c1_32 = arith.constant 1 : index
      %c2_33 = arith.constant 2 : index
      %c0_34 = arith.constant 0 : index
      %c0_35 = arith.constant 0 : index
      %38 = vector.load %arg3[%c1_32, %c2_33, %c0_34, %c0_35] : memref<3x3x48x48xbf16, #tpu.memory_space<vmem>>, vector<1x1x48x48xbf16>
      %39 = vector.shape_cast %38 : vector<1x1x48x48xbf16> to vector<48x48xbf16>
      %40 = vector.extract_strided_slice %27 {offsets = [0, 2], sizes = [48, 4], strides = [1, 1]} : vector<48x6xbf16> to vector<48x4xbf16>
      %cst_36 = arith.constant dense<0.000000e+00> : vector<48x4xf32>
      %41 = tpu.matmul %39, %40, %cst_36 {dimension_numbers = #tpu.dot_dimension_numbers<[1], [0], [0], [1], [0, 0, 1, 1], [], []>} : vector<48x48xbf16>, vector<48x4xbf16>, vector<48x4xf32> -> vector<48x4xf32>
      %42 = arith.addf %37, %41 : vector<48x4xf32>
      %43 = arith.addi %0, %arg7 : i32
      %c2_i32 = arith.constant 2 : i32
      %44 = arith.addi %43, %c2_i32 : i32
      %c0_37 = arith.constant 0 : index
      %45 = arith.index_cast %44 : i32 to index
      %c0_38 = arith.constant 0 : index
      %c0_39 = arith.constant 0 : index
      %46 = vector.load %arg2[%c0_37, %45, %c0_38, %c0_39] : memref<1x6x48x6xbf16, #tpu.memory_space<vmem>>, vector<1x1x48x6xbf16>
      %47 = vector.shape_cast %46 : vector<1x1x48x6xbf16> to vector<48x6xbf16>
      %c2_40 = arith.constant 2 : index
      %c0_41 = arith.constant 0 : index
      %c0_42 = arith.constant 0 : index
      %c0_43 = arith.constant 0 : index
      %48 = vector.load %arg3[%c2_40, %c0_41, %c0_42, %c0_43] : memref<3x3x48x48xbf16, #tpu.memory_space<vmem>>, vector<1x1x48x48xbf16>
      %49 = vector.shape_cast %48 : vector<1x1x48x48xbf16> to vector<48x48xbf16>
      %50 = vector.extract_strided_slice %47 {offsets = [0, 0], sizes = [48, 4], strides = [1, 1]} : vector<48x6xbf16> to vector<48x4xbf16>
      %cst_44 = arith.constant dense<0.000000e+00> : vector<48x4xf32>
      %51 = tpu.matmul %49, %50, %cst_44 {dimension_numbers = #tpu.dot_dimension_numbers<[1], [0], [0], [1], [0, 0, 1, 1], [], []>} : vector<48x48xbf16>, vector<48x4xbf16>, vector<48x4xf32> -> vector<48x4xf32>
      %52 = arith.addf %42, %51 : vector<48x4xf32>
      %c2_45 = arith.constant 2 : index
      %c1_46 = arith.constant 1 : index
      %c0_47 = arith.constant 0 : index
      %c0_48 = arith.constant 0 : index
      %53 = vector.load %arg3[%c2_45, %c1_46, %c0_47, %c0_48] : memref<3x3x48x48xbf16, #tpu.memory_space<vmem>>, vector<1x1x48x48xbf16>
      %54 = vector.shape_cast %53 : vector<1x1x48x48xbf16> to vector<48x48xbf16>
      %55 = vector.extract_strided_slice %47 {offsets = [0, 1], sizes = [48, 4], strides = [1, 1]} : vector<48x6xbf16> to vector<48x4xbf16>
      %cst_49 = arith.constant dense<0.000000e+00> : vector<48x4xf32>
      %56 = tpu.matmul %54, %55, %cst_49 {dimension_numbers = #tpu.dot_dimension_numbers<[1], [0], [0], [1], [0, 0, 1, 1], [], []>} : vector<48x48xbf16>, vector<48x4xbf16>, vector<48x4xf32> -> vector<48x4xf32>
      %57 = arith.addf %52, %56 : vector<48x4xf32>
      %c2_50 = arith.constant 2 : index
      %c2_51 = arith.constant 2 : index
      %c0_52 = arith.constant 0 : index
      %c0_53 = arith.constant 0 : index
      %58 = vector.load %arg3[%c2_50, %c2_51, %c0_52, %c0_53] : memref<3x3x48x48xbf16, #tpu.memory_space<vmem>>, vector<1x1x48x48xbf16>
      %59 = vector.shape_cast %58 : vector<1x1x48x48xbf16> to vector<48x48xbf16>
      %60 = vector.extract_strided_slice %47 {offsets = [0, 2], sizes = [48, 4], strides = [1, 1]} : vector<48x6xbf16> to vector<48x4xbf16>
      %cst_54 = arith.constant dense<0.000000e+00> : vector<48x4xf32>
      %61 = tpu.matmul %59, %60, %cst_54 {dimension_numbers = #tpu.dot_dimension_numbers<[1], [0], [0], [1], [0, 0, 1, 1], [], []>} : vector<48x48xbf16>, vector<48x4xbf16>, vector<48x4xf32> -> vector<48x4xf32>
      %62 = arith.addf %57, %61 : vector<48x4xf32>
      %c0_55 = arith.constant 0 : index
      %c0_56 = arith.constant 0 : index
      %63 = vector.load %arg4[%c0_55, %c0_56] : memref<48x1xf32, #tpu.memory_space<vmem>>, vector<48x1xf32>
      %64 = vector.broadcast %63 : vector<48x1xf32> to vector<48x4xf32>
      %65 = arith.mulf %62, %64 : vector<48x4xf32>
      %c0_57 = arith.constant 0 : index
      %c0_58 = arith.constant 0 : index
      %66 = vector.load %arg5[%c0_57, %c0_58] : memref<48x1xf32, #tpu.memory_space<vmem>>, vector<48x1xf32>
      %67 = vector.broadcast %66 : vector<48x1xf32> to vector<48x4xf32>
      %68 = arith.addf %65, %67 : vector<48x4xf32>
      %cst_59 = arith.constant 0.000000e+00 : f32
      %69 = vector.broadcast %cst_59 : f32 to vector<48x4xf32>
      %70 = arith.maximumf %68, %69 : vector<48x4xf32>
      %71 = arith.truncf %70 : vector<48x4xf32> to vector<48x4xbf16>
      %c0_60 = arith.constant 0 : index
      %72 = arith.index_cast %arg7 : i32 to index
      %c0_61 = arith.constant 0 : index
      %c0_62 = arith.constant 0 : index
      %73 = vector.load %arg6[%c0_60, %72, %c0_61, %c0_62] : memref<1x4x48x4xbf16, #tpu.memory_space<vmem>>, vector<1x1x48x4xbf16>
      %74 = vector.shape_cast %73 : vector<1x1x48x4xbf16> to vector<48x4xbf16>
      %75 = vector.shape_cast %71 : vector<48x4xbf16> to vector<1x1x48x4xbf16>
      tpu.vector_store %arg6[%c0_60, %72, %c0_61, %c0_62], %75 {strides = array<i32>} : memref<1x4x48x4xbf16, #tpu.memory_space<vmem>>, vector<1x1x48x4xbf16>,
    }
    %c4_i32_1 = arith.constant 4 : i32
    return
  }
  func.func @transform_0(%arg0: i32, %arg1: i32) -> (i32, i32, i32, i32) {
    %c0_i32 = arith.constant 0 : i32
    %c0_i32_0 = arith.constant 0 : i32
    %c0_i32_1 = arith.constant 0 : i32
    %c0_i32_2 = arith.constant 0 : i32
    return %arg0, %c0_i32, %c0_i32_0, %c0_i32_1 : i32, i32, i32, i32
  }
  func.func @transform_1(%arg0: i32, %arg1: i32) -> (i32, i32, i32, i32) {
    %c0_i32 = arith.constant 0 : i32
    %c0_i32_0 = arith.constant 0 : i32
    %c0_i32_1 = arith.constant 0 : i32
    %c0_i32_2 = arith.constant 0 : i32
    %c0_i32_3 = arith.constant 0 : i32
    return %c0_i32, %c0_i32_0, %c0_i32_1, %c0_i32_2 : i32, i32, i32, i32
  }
  func.func @transform_2(%arg0: i32, %arg1: i32) -> (i32, i32) {
    %c0_i32 = arith.constant 0 : i32
    %c0_i32_0 = arith.constant 0 : i32
    %c0_i32_1 = arith.constant 0 : i32
    return %c0_i32, %c0_i32_0 : i32, i32
  }
  func.func @transform_3(%arg0: i32, %arg1: i32) -> (i32, i32) {
    %c0_i32 = arith.constant 0 : i32
    %c0_i32_0 = arith.constant 0 : i32
    %c0_i32_1 = arith.constant 0 : i32
    return %c0_i32, %c0_i32_0 : i32, i32
  }
  func.func @transform_4(%arg0: i32, %arg1: i32) -> (i32, i32, i32, i32) {
    %c0_i32 = arith.constant 0 : i32
    %c0_i32_0 = arith.constant 0 : i32
    %c0_i32_1 = arith.constant 0 : i32
    return %arg0, %arg1, %c0_i32, %c0_i32_0 : i32, i32, i32, i32
  }
}

module attributes {stable_mosaic.version = 11 : i64} {
  func.func @_conv_kernel(%arg0: i32, %arg1: i32, %arg2: memref<1x18x48x18xbf16, #tpu.memory_space<vmem>>, %arg3: memref<3x3x24x48xbf16, #tpu.memory_space<vmem>>, %arg4: memref<24x1xf32, #tpu.memory_space<vmem>>, %arg5: memref<24x1xf32, #tpu.memory_space<vmem>>, %arg6: memref<1x16x24x16xbf16, #tpu.memory_space<vmem>>) attributes {dimension_semantics = [#tpu.dimension_semantics<parallel>, #tpu.dimension_semantics<parallel>], iteration_bounds = array<i64: 2, 1>, scalar_prefetch = 0 : i64, scratch_operands = 0 : i64, tpu.core_type = #tpu.core_type<tc>, window_params = [{transform_indices = @transform_0, window_bounds = array<i64: 1, 18, 48, 18>}, {pipeline_mode = #tpu.pipeline_mode<synchronous>, transform_indices = @transform_1, window_bounds = array<i64: 3, 3, 24, 48>}, {pipeline_mode = #tpu.pipeline_mode<synchronous>, transform_indices = @transform_2, window_bounds = array<i64: 24, 1>}, {pipeline_mode = #tpu.pipeline_mode<synchronous>, transform_indices = @transform_3, window_bounds = array<i64: 24, 1>}, {transform_indices = @transform_4, window_bounds = array<i64: 1, 16, 24, 16>}]} {
    %c16_i32 = arith.constant 16 : i32
    %0 = arith.muli %arg1, %c16_i32 : i32
    %c0_i32 = arith.constant 0 : i32
    %c16_i32_0 = arith.constant 16 : i32
    %1 = arith.addi %c0_i32, %c16_i32_0 : i32
    %c1_i32 = arith.constant 1 : i32
    scf.for %arg7 = %c0_i32 to %1 step %c1_i32  : i32 {
      %cst = arith.constant 0.000000e+00 : f32
      %2 = vector.broadcast %cst : f32 to vector<24x16xf32>
      %3 = arith.addi %0, %arg7 : i32
      %c0_i32_2 = arith.constant 0 : i32
      %4 = arith.addi %3, %c0_i32_2 : i32
      %c0 = arith.constant 0 : index
      %5 = arith.index_cast %4 : i32 to index
      %c0_3 = arith.constant 0 : index
      %c0_4 = arith.constant 0 : index
      %6 = vector.load %arg2[%c0, %5, %c0_3, %c0_4] : memref<1x18x48x18xbf16, #tpu.memory_space<vmem>>, vector<1x1x48x18xbf16>
      %7 = vector.shape_cast %6 : vector<1x1x48x18xbf16> to vector<48x18xbf16>
      %c0_5 = arith.constant 0 : index
      %c0_6 = arith.constant 0 : index
      %c0_7 = arith.constant 0 : index
      %c0_8 = arith.constant 0 : index
      %8 = vector.load %arg3[%c0_5, %c0_6, %c0_7, %c0_8] : memref<3x3x24x48xbf16, #tpu.memory_space<vmem>>, vector<1x1x24x48xbf16>
      %9 = vector.shape_cast %8 : vector<1x1x24x48xbf16> to vector<24x48xbf16>
      %10 = vector.extract_strided_slice %7 {offsets = [0, 0], sizes = [48, 16], strides = [1, 1]} : vector<48x18xbf16> to vector<48x16xbf16>
      %cst_9 = arith.constant dense<0.000000e+00> : vector<24x16xf32>
      %11 = tpu.matmul %9, %10, %cst_9 {dimension_numbers = #tpu.dot_dimension_numbers<[1], [0], [0], [1], [0, 0, 1, 1], [], []>} : vector<24x48xbf16>, vector<48x16xbf16>, vector<24x16xf32> -> vector<24x16xf32>
      %12 = arith.addf %2, %11 : vector<24x16xf32>
      %c0_10 = arith.constant 0 : index
      %c1 = arith.constant 1 : index
      %c0_11 = arith.constant 0 : index
      %c0_12 = arith.constant 0 : index
      %13 = vector.load %arg3[%c0_10, %c1, %c0_11, %c0_12] : memref<3x3x24x48xbf16, #tpu.memory_space<vmem>>, vector<1x1x24x48xbf16>
      %14 = vector.shape_cast %13 : vector<1x1x24x48xbf16> to vector<24x48xbf16>
      %15 = vector.extract_strided_slice %7 {offsets = [0, 1], sizes = [48, 16], strides = [1, 1]} : vector<48x18xbf16> to vector<48x16xbf16>
      %cst_13 = arith.constant dense<0.000000e+00> : vector<24x16xf32>
      %16 = tpu.matmul %14, %15, %cst_13 {dimension_numbers = #tpu.dot_dimension_numbers<[1], [0], [0], [1], [0, 0, 1, 1], [], []>} : vector<24x48xbf16>, vector<48x16xbf16>, vector<24x16xf32> -> vector<24x16xf32>
      %17 = arith.addf %12, %16 : vector<24x16xf32>
      %c0_14 = arith.constant 0 : index
      %c2 = arith.constant 2 : index
      %c0_15 = arith.constant 0 : index
      %c0_16 = arith.constant 0 : index
      %18 = vector.load %arg3[%c0_14, %c2, %c0_15, %c0_16] : memref<3x3x24x48xbf16, #tpu.memory_space<vmem>>, vector<1x1x24x48xbf16>
      %19 = vector.shape_cast %18 : vector<1x1x24x48xbf16> to vector<24x48xbf16>
      %20 = vector.extract_strided_slice %7 {offsets = [0, 2], sizes = [48, 16], strides = [1, 1]} : vector<48x18xbf16> to vector<48x16xbf16>
      %cst_17 = arith.constant dense<0.000000e+00> : vector<24x16xf32>
      %21 = tpu.matmul %19, %20, %cst_17 {dimension_numbers = #tpu.dot_dimension_numbers<[1], [0], [0], [1], [0, 0, 1, 1], [], []>} : vector<24x48xbf16>, vector<48x16xbf16>, vector<24x16xf32> -> vector<24x16xf32>
      %22 = arith.addf %17, %21 : vector<24x16xf32>
      %23 = arith.addi %0, %arg7 : i32
      %c1_i32_18 = arith.constant 1 : i32
      %24 = arith.addi %23, %c1_i32_18 : i32
      %c0_19 = arith.constant 0 : index
      %25 = arith.index_cast %24 : i32 to index
      %c0_20 = arith.constant 0 : index
      %c0_21 = arith.constant 0 : index
      %26 = vector.load %arg2[%c0_19, %25, %c0_20, %c0_21] : memref<1x18x48x18xbf16, #tpu.memory_space<vmem>>, vector<1x1x48x18xbf16>
      %27 = vector.shape_cast %26 : vector<1x1x48x18xbf16> to vector<48x18xbf16>
      %c1_22 = arith.constant 1 : index
      %c0_23 = arith.constant 0 : index
      %c0_24 = arith.constant 0 : index
      %c0_25 = arith.constant 0 : index
      %28 = vector.load %arg3[%c1_22, %c0_23, %c0_24, %c0_25] : memref<3x3x24x48xbf16, #tpu.memory_space<vmem>>, vector<1x1x24x48xbf16>
      %29 = vector.shape_cast %28 : vector<1x1x24x48xbf16> to vector<24x48xbf16>
      %30 = vector.extract_strided_slice %27 {offsets = [0, 0], sizes = [48, 16], strides = [1, 1]} : vector<48x18xbf16> to vector<48x16xbf16>
      %cst_26 = arith.constant dense<0.000000e+00> : vector<24x16xf32>
      %31 = tpu.matmul %29, %30, %cst_26 {dimension_numbers = #tpu.dot_dimension_numbers<[1], [0], [0], [1], [0, 0, 1, 1], [], []>} : vector<24x48xbf16>, vector<48x16xbf16>, vector<24x16xf32> -> vector<24x16xf32>
      %32 = arith.addf %22, %31 : vector<24x16xf32>
      %c1_27 = arith.constant 1 : index
      %c1_28 = arith.constant 1 : index
      %c0_29 = arith.constant 0 : index
      %c0_30 = arith.constant 0 : index
      %33 = vector.load %arg3[%c1_27, %c1_28, %c0_29, %c0_30] : memref<3x3x24x48xbf16, #tpu.memory_space<vmem>>, vector<1x1x24x48xbf16>
      %34 = vector.shape_cast %33 : vector<1x1x24x48xbf16> to vector<24x48xbf16>
      %35 = vector.extract_strided_slice %27 {offsets = [0, 1], sizes = [48, 16], strides = [1, 1]} : vector<48x18xbf16> to vector<48x16xbf16>
      %cst_31 = arith.constant dense<0.000000e+00> : vector<24x16xf32>
      %36 = tpu.matmul %34, %35, %cst_31 {dimension_numbers = #tpu.dot_dimension_numbers<[1], [0], [0], [1], [0, 0, 1, 1], [], []>} : vector<24x48xbf16>, vector<48x16xbf16>, vector<24x16xf32> -> vector<24x16xf32>
      %37 = arith.addf %32, %36 : vector<24x16xf32>
      %c1_32 = arith.constant 1 : index
      %c2_33 = arith.constant 2 : index
      %c0_34 = arith.constant 0 : index
      %c0_35 = arith.constant 0 : index
      %38 = vector.load %arg3[%c1_32, %c2_33, %c0_34, %c0_35] : memref<3x3x24x48xbf16, #tpu.memory_space<vmem>>, vector<1x1x24x48xbf16>
      %39 = vector.shape_cast %38 : vector<1x1x24x48xbf16> to vector<24x48xbf16>
      %40 = vector.extract_strided_slice %27 {offsets = [0, 2], sizes = [48, 16], strides = [1, 1]} : vector<48x18xbf16> to vector<48x16xbf16>
      %cst_36 = arith.constant dense<0.000000e+00> : vector<24x16xf32>
      %41 = tpu.matmul %39, %40, %cst_36 {dimension_numbers = #tpu.dot_dimension_numbers<[1], [0], [0], [1], [0, 0, 1, 1], [], []>} : vector<24x48xbf16>, vector<48x16xbf16>, vector<24x16xf32> -> vector<24x16xf32>
      %42 = arith.addf %37, %41 : vector<24x16xf32>
      %43 = arith.addi %0, %arg7 : i32
      %c2_i32 = arith.constant 2 : i32
      %44 = arith.addi %43, %c2_i32 : i32
      %c0_37 = arith.constant 0 : index
      %45 = arith.index_cast %44 : i32 to index
      %c0_38 = arith.constant 0 : index
      %c0_39 = arith.constant 0 : index
      %46 = vector.load %arg2[%c0_37, %45, %c0_38, %c0_39] : memref<1x18x48x18xbf16, #tpu.memory_space<vmem>>, vector<1x1x48x18xbf16>
      %47 = vector.shape_cast %46 : vector<1x1x48x18xbf16> to vector<48x18xbf16>
      %c2_40 = arith.constant 2 : index
      %c0_41 = arith.constant 0 : index
      %c0_42 = arith.constant 0 : index
      %c0_43 = arith.constant 0 : index
      %48 = vector.load %arg3[%c2_40, %c0_41, %c0_42, %c0_43] : memref<3x3x24x48xbf16, #tpu.memory_space<vmem>>, vector<1x1x24x48xbf16>
      %49 = vector.shape_cast %48 : vector<1x1x24x48xbf16> to vector<24x48xbf16>
      %50 = vector.extract_strided_slice %47 {offsets = [0, 0], sizes = [48, 16], strides = [1, 1]} : vector<48x18xbf16> to vector<48x16xbf16>
      %cst_44 = arith.constant dense<0.000000e+00> : vector<24x16xf32>
      %51 = tpu.matmul %49, %50, %cst_44 {dimension_numbers = #tpu.dot_dimension_numbers<[1], [0], [0], [1], [0, 0, 1, 1], [], []>} : vector<24x48xbf16>, vector<48x16xbf16>, vector<24x16xf32> -> vector<24x16xf32>
      %52 = arith.addf %42, %51 : vector<24x16xf32>
      %c2_45 = arith.constant 2 : index
      %c1_46 = arith.constant 1 : index
      %c0_47 = arith.constant 0 : index
      %c0_48 = arith.constant 0 : index
      %53 = vector.load %arg3[%c2_45, %c1_46, %c0_47, %c0_48] : memref<3x3x24x48xbf16, #tpu.memory_space<vmem>>, vector<1x1x24x48xbf16>
      %54 = vector.shape_cast %53 : vector<1x1x24x48xbf16> to vector<24x48xbf16>
      %55 = vector.extract_strided_slice %47 {offsets = [0, 1], sizes = [48, 16], strides = [1, 1]} : vector<48x18xbf16> to vector<48x16xbf16>
      %cst_49 = arith.constant dense<0.000000e+00> : vector<24x16xf32>
      %56 = tpu.matmul %54, %55, %cst_49 {dimension_numbers = #tpu.dot_dimension_numbers<[1], [0], [0], [1], [0, 0, 1, 1], [], []>} : vector<24x48xbf16>, vector<48x16xbf16>, vector<24x16xf32> -> vector<24x16xf32>
      %57 = arith.addf %52, %56 : vector<24x16xf32>
      %c2_50 = arith.constant 2 : index
      %c2_51 = arith.constant 2 : index
      %c0_52 = arith.constant 0 : index
      %c0_53 = arith.constant 0 : index
      %58 = vector.load %arg3[%c2_50, %c2_51, %c0_52, %c0_53] : memref<3x3x24x48xbf16, #tpu.memory_space<vmem>>, vector<1x1x24x48xbf16>
      %59 = vector.shape_cast %58 : vector<1x1x24x48xbf16> to vector<24x48xbf16>
      %60 = vector.extract_strided_slice %47 {offsets = [0, 2], sizes = [48, 16], strides = [1, 1]} : vector<48x18xbf16> to vector<48x16xbf16>
      %cst_54 = arith.constant dense<0.000000e+00> : vector<24x16xf32>
      %61 = tpu.matmul %59, %60, %cst_54 {dimension_numbers = #tpu.dot_dimension_numbers<[1], [0], [0], [1], [0, 0, 1, 1], [], []>} : vector<24x48xbf16>, vector<48x16xbf16>, vector<24x16xf32> -> vector<24x16xf32>
      %62 = arith.addf %57, %61 : vector<24x16xf32>
      %c0_55 = arith.constant 0 : index
      %c0_56 = arith.constant 0 : index
      %63 = vector.load %arg4[%c0_55, %c0_56] : memref<24x1xf32, #tpu.memory_space<vmem>>, vector<24x1xf32>
      %64 = vector.broadcast %63 : vector<24x1xf32> to vector<24x16xf32>
      %65 = arith.mulf %62, %64 : vector<24x16xf32>
      %c0_57 = arith.constant 0 : index
      %c0_58 = arith.constant 0 : index
      %66 = vector.load %arg5[%c0_57, %c0_58] : memref<24x1xf32, #tpu.memory_space<vmem>>, vector<24x1xf32>
      %67 = vector.broadcast %66 : vector<24x1xf32> to vector<24x16xf32>
      %68 = arith.addf %65, %67 : vector<24x16xf32>
      %cst_59 = arith.constant 0.000000e+00 : f32
      %69 = vector.broadcast %cst_59 : f32 to vector<24x16xf32>
      %70 = arith.maximumf %68, %69 : vector<24x16xf32>
      %71 = arith.truncf %70 : vector<24x16xf32> to vector<24x16xbf16>
      %c0_60 = arith.constant 0 : index
      %72 = arith.index_cast %arg7 : i32 to index
      %c0_61 = arith.constant 0 : index
      %c0_62 = arith.constant 0 : index
      %73 = vector.load %arg6[%c0_60, %72, %c0_61, %c0_62] : memref<1x16x24x16xbf16, #tpu.memory_space<vmem>>, vector<1x1x24x16xbf16>
      %74 = vector.shape_cast %73 : vector<1x1x24x16xbf16> to vector<24x16xbf16>
      %75 = vector.shape_cast %71 : vector<24x16xbf16> to vector<1x1x24x16xbf16>
      tpu.vector_store %arg6[%c0_60, %72, %c0_61, %c0_62], %75 {strides = array<i32>} : memref<1x16x24x16xbf16, #tpu.memory_space<vmem>>, vector<1x1x24x16xbf16>,
    }
    %c16_i32_1 = arith.constant 16 : i32
    return
  }
  func.func @transform_0(%arg0: i32, %arg1: i32) -> (i32, i32, i32, i32) {
    %c0_i32 = arith.constant 0 : i32
    %c0_i32_0 = arith.constant 0 : i32
    %c0_i32_1 = arith.constant 0 : i32
    %c0_i32_2 = arith.constant 0 : i32
    return %arg0, %c0_i32, %c0_i32_0, %c0_i32_1 : i32, i32, i32, i32
  }
  func.func @transform_1(%arg0: i32, %arg1: i32) -> (i32, i32, i32, i32) {
    %c0_i32 = arith.constant 0 : i32
    %c0_i32_0 = arith.constant 0 : i32
    %c0_i32_1 = arith.constant 0 : i32
    %c0_i32_2 = arith.constant 0 : i32
    %c0_i32_3 = arith.constant 0 : i32
    return %c0_i32, %c0_i32_0, %c0_i32_1, %c0_i32_2 : i32, i32, i32, i32
  }
  func.func @transform_2(%arg0: i32, %arg1: i32) -> (i32, i32) {
    %c0_i32 = arith.constant 0 : i32
    %c0_i32_0 = arith.constant 0 : i32
    %c0_i32_1 = arith.constant 0 : i32
    return %c0_i32, %c0_i32_0 : i32, i32
  }
  func.func @transform_3(%arg0: i32, %arg1: i32) -> (i32, i32) {
    %c0_i32 = arith.constant 0 : i32
    %c0_i32_0 = arith.constant 0 : i32
    %c0_i32_1 = arith.constant 0 : i32
    return %c0_i32, %c0_i32_0 : i32, i32
  }
  func.func @transform_4(%arg0: i32, %arg1: i32) -> (i32, i32, i32, i32) {
    %c0_i32 = arith.constant 0 : i32
    %c0_i32_0 = arith.constant 0 : i32
    %c0_i32_1 = arith.constant 0 : i32
    return %arg0, %arg1, %c0_i32, %c0_i32_0 : i32, i32, i32, i32
  }
}

module attributes {stable_mosaic.version = 11 : i64} {
  func.func @_conv_kernel(%arg0: i32, %arg1: i32, %arg2: memref<1x32x24x32xbf16, #tpu.memory_space<vmem>>, %arg3: memref<1x1x1x24xbf16, #tpu.memory_space<vmem>>, %arg4: memref<1x1xf32, #tpu.memory_space<vmem>>, %arg5: memref<1x1xf32, #tpu.memory_space<vmem>>, %arg6: memref<1x32x1x32xf32, #tpu.memory_space<vmem>>) attributes {dimension_semantics = [#tpu.dimension_semantics<parallel>, #tpu.dimension_semantics<parallel>], iteration_bounds = array<i64: 2, 1>, scalar_prefetch = 0 : i64, scratch_operands = 0 : i64, tpu.core_type = #tpu.core_type<tc>, window_params = [{transform_indices = @transform_0, window_bounds = array<i64: 1, 32, 24, 32>}, {pipeline_mode = #tpu.pipeline_mode<synchronous>, transform_indices = @transform_1, window_bounds = array<i64: 1, 1, 1, 24>}, {pipeline_mode = #tpu.pipeline_mode<synchronous>, transform_indices = @transform_2, window_bounds = array<i64: 1, 1>}, {pipeline_mode = #tpu.pipeline_mode<synchronous>, transform_indices = @transform_3, window_bounds = array<i64: 1, 1>}, {transform_indices = @transform_4, window_bounds = array<i64: 1, 32, 1, 32>}]} {
    %c32_i32 = arith.constant 32 : i32
    %0 = arith.muli %arg1, %c32_i32 : i32
    %c0_i32 = arith.constant 0 : i32
    %c32_i32_0 = arith.constant 32 : i32
    %1 = arith.addi %c0_i32, %c32_i32_0 : i32
    %c1_i32 = arith.constant 1 : i32
    scf.for %arg7 = %c0_i32 to %1 step %c1_i32  : i32 {
      %cst = arith.constant 0.000000e+00 : f32
      %2 = vector.broadcast %cst : f32 to vector<1x32xf32>
      %3 = arith.addi %0, %arg7 : i32
      %c0_i32_2 = arith.constant 0 : i32
      %4 = arith.addi %3, %c0_i32_2 : i32
      %c0 = arith.constant 0 : index
      %5 = arith.index_cast %4 : i32 to index
      %c0_3 = arith.constant 0 : index
      %c0_4 = arith.constant 0 : index
      %6 = vector.load %arg2[%c0, %5, %c0_3, %c0_4] : memref<1x32x24x32xbf16, #tpu.memory_space<vmem>>, vector<1x1x24x32xbf16>
      %7 = vector.shape_cast %6 : vector<1x1x24x32xbf16> to vector<24x32xbf16>
      %c0_5 = arith.constant 0 : index
      %c0_6 = arith.constant 0 : index
      %c0_7 = arith.constant 0 : index
      %c0_8 = arith.constant 0 : index
      %8 = vector.load %arg3[%c0_5, %c0_6, %c0_7, %c0_8] : memref<1x1x1x24xbf16, #tpu.memory_space<vmem>>, vector<1x1x1x24xbf16>
      %9 = vector.shape_cast %8 : vector<1x1x1x24xbf16> to vector<1x24xbf16>
      %cst_9 = arith.constant dense<0.000000e+00> : vector<1x32xf32>
      %10 = tpu.matmul %9, %7, %cst_9 {dimension_numbers = #tpu.dot_dimension_numbers<[1], [0], [0], [1], [0, 0, 1, 1], [], []>} : vector<1x24xbf16>, vector<24x32xbf16>, vector<1x32xf32> -> vector<1x32xf32>
      %11 = arith.addf %2, %10 : vector<1x32xf32>
      %c0_10 = arith.constant 0 : index
      %c0_11 = arith.constant 0 : index
      %12 = vector.load %arg4[%c0_10, %c0_11] : memref<1x1xf32, #tpu.memory_space<vmem>>, vector<1x1xf32>
      %13 = vector.broadcast %12 : vector<1x1xf32> to vector<1x32xf32>
      %14 = arith.mulf %11, %13 : vector<1x32xf32>
      %c0_12 = arith.constant 0 : index
      %c0_13 = arith.constant 0 : index
      %15 = vector.load %arg5[%c0_12, %c0_13] : memref<1x1xf32, #tpu.memory_space<vmem>>, vector<1x1xf32>
      %16 = vector.broadcast %15 : vector<1x1xf32> to vector<1x32xf32>
      %17 = arith.addf %14, %16 : vector<1x32xf32>
      %c0_14 = arith.constant 0 : index
      %18 = arith.index_cast %arg7 : i32 to index
      %c0_15 = arith.constant 0 : index
      %c0_16 = arith.constant 0 : index
      %19 = vector.load %arg6[%c0_14, %18, %c0_15, %c0_16] : memref<1x32x1x32xf32, #tpu.memory_space<vmem>>, vector<1x1x1x32xf32>
      %20 = vector.shape_cast %19 : vector<1x1x1x32xf32> to vector<1x32xf32>
      %21 = vector.shape_cast %17 : vector<1x32xf32> to vector<1x1x1x32xf32>
      tpu.vector_store %arg6[%c0_14, %18, %c0_15, %c0_16], %21 {strides = array<i32>} : memref<1x32x1x32xf32, #tpu.memory_space<vmem>>, vector<1x1x1x32xf32>,
    }
    %c32_i32_1 = arith.constant 32 : i32
    return
  }
  func.func @transform_0(%arg0: i32, %arg1: i32) -> (i32, i32, i32, i32) {
    %c0_i32 = arith.constant 0 : i32
    %c0_i32_0 = arith.constant 0 : i32
    %c0_i32_1 = arith.constant 0 : i32
    %c0_i32_2 = arith.constant 0 : i32
    return %arg0, %c0_i32, %c0_i32_0, %c0_i32_1 : i32, i32, i32, i32
  }
  func.func @transform_1(%arg0: i32, %arg1: i32) -> (i32, i32, i32, i32) {
    %c0_i32 = arith.constant 0 : i32
    %c0_i32_0 = arith.constant 0 : i32
    %c0_i32_1 = arith.constant 0 : i32
    %c0_i32_2 = arith.constant 0 : i32
    %c0_i32_3 = arith.constant 0 : i32
    return %c0_i32, %c0_i32_0, %c0_i32_1, %c0_i32_2 : i32, i32, i32, i32
  }
  func.func @transform_2(%arg0: i32, %arg1: i32) -> (i32, i32) {
    %c0_i32 = arith.constant 0 : i32
    %c0_i32_0 = arith.constant 0 : i32
    %c0_i32_1 = arith.constant 0 : i32
    return %c0_i32, %c0_i32_0 : i32, i32
  }
  func.func @transform_3(%arg0: i32, %arg1: i32) -> (i32, i32) {
    %c0_i32 = arith.constant 0 : i32
    %c0_i32_0 = arith.constant 0 : i32
    %c0_i32_1 = arith.constant 0 : i32
    return %c0_i32, %c0_i32_0 : i32, i32
  }
  func.func @transform_4(%arg0: i32, %arg1: i32) -> (i32, i32, i32, i32) {
    %c0_i32 = arith.constant 0 : i32
    %c0_i32_0 = arith.constant 0 : i32
    %c0_i32_1 = arith.constant 0 : i32
    return %arg0, %arg1, %c0_i32, %c0_i32_0 : i32, i32, i32, i32
  }
}

module attributes {stable_mosaic.version = 11 : i64} {
  func.func @_l2norm_kernel(%arg0: i32, %arg1: memref<1x32x32xf32, #tpu.memory_space<vmem>>, %arg2: memref<1x32x32xf32, #tpu.memory_space<vmem>>, %arg3: memref<1x1x1xf32, #tpu.memory_space<vmem>>) attributes {dimension_semantics = [#tpu.dimension_semantics<parallel>], iteration_bounds = array<i64: 2>, scalar_prefetch = 0 : i64, scratch_operands = 0 : i64, tpu.core_type = #tpu.core_type<tc>, window_params = [{transform_indices = @transform_0, window_bounds = array<i64: 1, 32, 32>}, {transform_indices = @transform_1, window_bounds = array<i64: 1, 32, 32>}, {transform_indices = @transform_2, window_bounds = array<i64: 1, 1, 1>}]} {
    %c0 = arith.constant 0 : index
    %c0_0 = arith.constant 0 : index
    %c0_1 = arith.constant 0 : index
    %0 = vector.load %arg1[%c0, %c0_0, %c0_1] : memref<1x32x32xf32, #tpu.memory_space<vmem>>, vector<1x32x32xf32>
    %1 = vector.shape_cast %0 : vector<1x32x32xf32> to vector<32x32xf32>
    %2 = arith.mulf %1, %1 : vector<32x32xf32>
    %3 = vector.shape_cast %2 : vector<32x32xf32> to vector<1x32x32xf32>
    %cst = arith.constant dense<0.000000e+00> : vector<1xf32>
    %4 = vector.multi_reduction <add>, %3, %cst [1, 2] : vector<1x32x32xf32> to vector<1xf32>
    %5 = vector.shape_cast %4 : vector<1xf32> to vector<1x1x1xf32>
    %6 = vector.extract %5[0, 0, 0] : f32 from vector<1x1x1xf32>
    %7 = math.rsqrt %6 : f32
    %8 = vector.broadcast %7 : f32 to vector<32x32xf32>
    %9 = arith.mulf %1, %8 : vector<32x32xf32>
    %c0_2 = arith.constant 0 : index
    %c0_3 = arith.constant 0 : index
    %c0_4 = arith.constant 0 : index
    %10 = vector.load %arg2[%c0_2, %c0_3, %c0_4] : memref<1x32x32xf32, #tpu.memory_space<vmem>>, vector<1x32x32xf32>
    %11 = vector.shape_cast %10 : vector<1x32x32xf32> to vector<32x32xf32>
    %12 = vector.shape_cast %9 : vector<32x32xf32> to vector<1x32x32xf32>
    tpu.vector_store %arg2[%c0_2, %c0_3, %c0_4], %12 {strides = array<i32>} : memref<1x32x32xf32, #tpu.memory_space<vmem>>, vector<1x32x32xf32>,
    %13 = arith.mulf %6, %7 : f32
    %cst_5 = arith.constant 1.000000e+00 : f32
    %14 = vector.broadcast %cst_5 : f32 to vector<1x1xf32>
    %15 = vector.broadcast %13 : f32 to vector<1x1xf32>
    %16 = arith.mulf %15, %14 : vector<1x1xf32>
    %c0_6 = arith.constant 0 : index
    %c0_7 = arith.constant 0 : index
    %c0_8 = arith.constant 0 : index
    %17 = vector.load %arg3[%c0_6, %c0_7, %c0_8] : memref<1x1x1xf32, #tpu.memory_space<vmem>>, vector<1x1x1xf32>
    %18 = vector.shape_cast %17 : vector<1x1x1xf32> to vector<1x1xf32>
    %19 = vector.shape_cast %16 : vector<1x1xf32> to vector<1x1x1xf32>
    tpu.vector_store %arg3[%c0_6, %c0_7, %c0_8], %19 {strides = array<i32>} : memref<1x1x1xf32, #tpu.memory_space<vmem>>, vector<1x1x1xf32>,
    return
  }
  func.func @transform_0(%arg0: i32) -> (i32, i32, i32) {
    %c0_i32 = arith.constant 0 : i32
    %c0_i32_0 = arith.constant 0 : i32
    %c0_i32_1 = arith.constant 0 : i32
    return %arg0, %c0_i32, %c0_i32_0 : i32, i32, i32
  }
  func.func @transform_1(%arg0: i32) -> (i32, i32, i32) {
    %c0_i32 = arith.constant 0 : i32
    %c0_i32_0 = arith.constant 0 : i32
    %c0_i32_1 = arith.constant 0 : i32
    return %arg0, %c0_i32, %c0_i32_0 : i32, i32, i32
  }
  func.func @transform_2(%arg0: i32) -> (i32, i32, i32) {
    %c0_i32 = arith.constant 0 : i32
    %c0_i32_0 = arith.constant 0 : i32
    %c0_i32_1 = arith.constant 0 : i32
    return %arg0, %c0_i32, %c0_i32_0 : i32, i32, i32
  }
}

</mosaic_0001>

<bundles_post_ra>
// kernel: forward.24
= control target key start
LH: loop header
LB: loop body
LE: loop exit
PB: predicated region body
PF: predicated region fallthrough
CT: control target
= control target key end

     0   :  { %s324_s9 = smov 0   ;;  %s360_s0 = inlined_call_operand.vmem [shape: f32[2,32,32], index: 0, kind: input, shape index: {}]   ;;  %s361_s1 = inlined_call_operand.vmem [shape: f32[2,32,32], index: 1, kind: output, shape index: {0}]   ;;  %s362_s2 = inlined_call_operand.vmem [shape: f32[2,1,1], index: 2, kind: output, shape index: {1}]  }
   0x1 LB: > { %s274_s10 = sadd.s32 4294967295, %s307_s9   ;;  %p278_p0 = scmp.ge.s32.totalorder %s307_s9, 1  ;;  %s307_s9 = sphi %s324_s9, %s13_s9  }
   0x2   : > { %p115_p1 = scmp.lt.s32.totalorder %s307_s9, 3 }
   0x4   : > { %p116_p2 = pnand %p278_p0, %p115_p1 }
   0x5   : > { %p140_p3 = scmp.lt.s32.totalorder (!%p116_p2), %s274_s10, 1 }
   0x6   : > { %119 = sbr.rel (%p116_p2) target bundleno = 295 (0x127), region = 24 }
   0xb   : > { %s364_s10 = smov (!%p140_p3, %s274_s10), 1  ;;  %vm161_vm0 = vcmask 261120   ;;  %vm192_vm1 = vcmask 0  }
   0xc   : > { %s285_s11 = sshll.u32 %s364_s10, 5  ;;  %s152_s22 = scalar_lea.vmem %s362_s2, %s364_s10 }
   0xd   : > { %s144_s14 = scalar_lea.vmem %s360_s0, %s285_s11  ;;  %s149_s18 = scalar_lea.vmem %s361_s1, %s285_s11 }
   0xe   : > { %v153_v0 = vld [vmem:[%s144_s14] sm:$0xff]  ;;  %v154_v1 = vld [vmem:[%s144_s14 + $0x8] sm:$0xff]  ;;  %v155_v2 = vld [vmem:[%s144_s14 + $0x10] sm:$0xff] }
   0xf   : > { %v156_v3 = vld [vmem:[%s144_s14 + $0x18] sm:$0xff]  ;;  %v157_v4 = vmul.f32 %v153_v0, %v153_v0  ;;  %v158_v5 = vmul.f32 %v154_v1, %v154_v1  ;;  %v159_v6 = vmul.f32 %v155_v2, %v155_v2 }
  0x10   : > { %v160_v7 = vmul.f32 %v156_v3, %v156_v3 }
  0x11   : > { %v162_v8 = vsel %vm161_vm0, %v157_v4, 0.0  ;;  %v163_v9 = vsel %vm161_vm0, %v158_v5, 0.0  ;;  %v165_v10 = vsel %vm161_vm0, %v159_v6, 0.0 }
  0x12   : > { %v164_v11 = vadd.f32 %v163_v9, %v162_v8  ;;  %v167_v12 = vsel %vm161_vm0, %v160_v7, 0.0 }
  0x14   : > { %v166_v13 = vadd.f32 %v165_v10, %v164_v11 }
  0x16   : > { %v168_v14 = vadd.f32 %v167_v12, %v166_v13 }
  0x18   : > { %169 = vadd.xlane.f32.xlu0 %v168_v14 }
  0xa1   : > { %v170_v15 = vpop.xlane.xlu0 %169 }
  0xa2   : > { %v171_v16 = vrot.slane %v170_v15, 4 }
  0xa4   : > { %v172_v17 = vadd.f32 %v171_v16, %v170_v15 }
  0xa6   : > { %v173_v18 = vrot.slane %v172_v17, 2 }
  0xa8   : > { %v174_v19 = vadd.f32 %v173_v18, %v172_v17 }
  0xaa   : > { %v175_v20 = vrot.slane %v174_v19, 1 }
  0xac   : > { %v176_v21 = vadd.f32 %v175_v20, %v174_v19 }
  0xae   : > { %287 = vpush %v176_v21 }
  0xdf   : > { %s288_s15 = spop %287 }
  0xe0   : > { %v178_v22 = vstv %s288_s15 }
  0xe1   : > { %299 = vrsqrt.f32 %v178_v22 }
  0xee   : > { %v300_v23 = vpop.eup %299 }
  0xef   : > { %289 = vpush %v300_v23 }
 0x120   : > { %s290_s19 = spop %289 }
 0x121   : > { %v181_v24 = vstv %s290_s19  ;;  %s190_s23 = smul.f32 %s290_s19, %s288_s15 }
 0x122   : > { %v182_v25 = vmul.f32 %v181_v24, %v153_v0  ;;  %v183_v26 = vmul.f32 %v181_v24, %v154_v1  ;;  %v184_v27 = vmul.f32 %v181_v24, %v155_v2  ;;  %v185_v28 = vmul.f32 %v181_v24, %v156_v3 }
 0x123   : > { %v191_v29 = vstv %s190_s23 }
 0x124   : > { %186 = vst.msk [vmem:[%s149_s18] sm:$0xff] %vm161_vm0, %v182_v25  ;;  %187 = vst.msk [vmem:[%s149_s18 + $0x8] sm:$0xff] %vm161_vm0, %v183_v26 }
 0x125   : > { %188 = vst.msk [vmem:[%s149_s18 + $0x10] sm:$0xff] %vm161_vm0, %v184_v27  ;;  %189 = vst.msk [vmem:[%s149_s18 + $0x18] sm:$0xff] %vm161_vm0, %v185_v28 }
 0x126   : > { %193 = vst.msk [vmem:[%s152_s22] sm:$0x1] %vm192_vm1, %v191_v29 }
 0x127 PF: > { %s13_s9 = sadd.s32 1, %s307_s9  }
 0x128   : > { %p10_p4 = scmp.ge.s32.totalorder %s13_s9, 4  }
 0x12a   :  { %12 = sbr.rel (!%p10_p4) target bundleno = 1 (0x1), region = 66 }

// kernel: forward.25
= control target key start
LH: loop header
LB: loop body
LE: loop exit
PB: predicated region body
PF: predicated region fallthrough
CT: control target
= control target key end

     0   :  { %s1375_s15 = smov 0   ;;  %s1377_s16 = smov 0   ;;  %s1538_s0 = inlined_call_operand.vmem [shape: bf16[2,34,8,34], index: 0, kind: input, shape index: {}]   ;;  %s1539_s1 = inlined_call_operand.vmem [shape: bf16[3,3,24,8], index: 1, kind: input, shape index: {}]   ;;  %s1540_s2 = inlined_call_operand.vmem [shape: f32[24,1], index: 2, kind: input, shape index: {}]   ;;  %s1541_s3 = inlined_call_operand.vmem [shape: f32[24,1], index: 3, kind: input, shape index: {}]   ;;  %s1542_s4 = inlined_call_operand.vmem [shape: bf16[2,32,24,32], index: 4, kind: output, shape index: {}]  }
   0x1   :  { %s1379_s17 = smov 0  }
   0x2 LB: > { %s26_s18 = sadd.s32 1, %s1337_s16  ;;  %p1084_p0 = scmp.ge.s32.totalorder %s1341_s17, 1  ;;  %s1341_s17 = sphi %s1379_s17, %s14_s17   ;;  %s1337_s16 = sphi %s1377_s16, %s1544_s16   ;;  %s1333_s15 = sphi %s1375_s15, %s1543_s15  }
   0x3   : > { %p28_p1 = scmp.ge.s32.totalorder %s26_s18, 2  ;;  %p176_p2 = scmp.lt.s32.totalorder %s1341_s17, 3 }
   0x5   : > { %s1546_s18 = smov (%p28_p1, %s26_s18), 0  ;;  %p177_p3 = pnand %p1084_p0, %p176_p2 }
   0x6   : > { %p207_p4 = scmp.lt.s32.totalorder (!%p177_p3), %s1333_s15, 1  ;;  %s1403_s27 = smov (!%p177_p3), 0  }
   0x7   : > { %180 = sbr.rel (%p177_p3) target bundleno = 383 (0x17f), region = 36 }
   0xc   : > { %s1548_s15 = smov (!%p207_p4, %s1333_s15), 1 }
   0xd   : > { %s1255_s19 = smul.u32 136, %s1548_s15 }
   0xe   : > { %s1256_s20 = smul.u32 384, %s1548_s15 }
   0xf   : > { %s1396_s23 = scalar_lea.vmem %s1538_s0, %s1255_s19 }
  0x10   : > { %s1401_s26 = scalar_lea.vmem %s1542_s4, %s1256_s20 }
  0x11 LB: >> { %v1297_v0 = vld [vmem:[%s1539_s1 + $0xc] sm:$0xff]   ;;  %vm255_vm0 = vcmask 64512   ;;  %v1298_v1 = vld [vmem:[%s1539_s1] sm:$0xff]   ;;  %s1087_s6 = sshll.u32 %s1345_s27, 2  ;;  %vm262_vm1 = vcmask 1043456   ;;  %s1347_s12 = smov 127   ;;  %s1345_s27 = sphi %s1403_s27, %s230_s27  }
  0x12   : >> { %s233_s7 = scalar_lea.vmem %s1396_s23, %s1087_s6  ;;  %1194 = vmatprep.mubr.msk.bf16.mxu0 %vm255_vm0, %v1297_v0  ;;  %1200 = vmatprep.mubr.msk.bf16.mxu1 %vm255_vm0, %v1298_v1  ;;  %v1300_v4 = vld [vmem:[%s1539_s1 + $0x8] ss:$0 sps:$4 sm:$0xff]   ;;  %s1348_s13 = smov 126   ;;  %v1304_v12 = vld [vmem:[%s1539_s1 + $0x2c] ss:$0 sps:$4 sm:$0xff]   ;;  %v1307_v13 = vld [vmem:[%s1539_s1 + $0x3c] sm:$0xff]  }
  0x13   : >> { %v234_v2 = vld [vmem:[%s233_s7] sm:$0xf]  ;;  %v1108_v3 = vld [vmem:[%s233_s7 + $0x4] sm:$0xf]  ;;  %v1427_v10 = vld [vmem:[%s233_s7 + $0x8] sm:$0xf] }
  0x14   : >> { %v1093_v5 = vcombine.low %v234_v2, %v234_v2  ;;  %v1121_v6 = vcombine.low %v1108_v3, %v1108_v3  ;;  %1247 = vmatprep.subr.msk.bf16.mxu1 %vm262_vm1, %v234_v2  ;;  %v329_v7 = vsel %vm262_vm1, %v234_v2, 0  ;;  %v1303_v8 = vld [vmem:[%s1539_s1 + $0x24] sm:$0xff]   ;;  %v476_v9 = vsel %vm262_vm1, %v1108_v3, 0  ;;  %v909_v17 = vld [vmem:[%s1540_s2 + $0x10] sm:$0xff]  ;;  %v1301_v25 = vld [vmem:[%s1539_s1 + $0x18] sm:$0xff]   ;;  %s1164_s14 = smul.u32 12, %s1345_s27 }
  0x15   : >> { %1199 = vmatpush3.bf16.msra.mxu1 %v329_v7  ;;  %v1145_v11 = vcombine.low %v1427_v10, %v1427_v10  ;;  %v908_v14 = vld [vmem:[%s1540_s2 + $0x8] sm:$0xff]  ;;  %v907_v15 = vld [vmem:[%s1540_s2] sm:$0xff]  ;;  %v1349_v16 = vmov 0   ;;  %v930_v20 = vld [vmem:[%s1541_s3 + $0x10] sm:$0xff]  ;;  %v703_v40 = vsel %vm262_vm1, %v1427_v10, 0  ;;  %vm968_vm2 = vcmask 257024  }
  0x16   : >> { %253 = vrot.lane.b32.xlu0 %v1093_v5, %s1347_s12  ;;  %544 = vrot.lane.b32.xlu1 %v1121_v6, %s1347_s12  ;;  %v928_v18 = vld [vmem:[%s1541_s3] sm:$0xff]  ;;  %v929_v19 = vld [vmem:[%s1541_s3 + $0x8] sm:$0xff]  ;;  %s967_s15 = scalar_lea.vmem %s1401_s26, %s1164_s14  ;;  %s230_s27 = sadd.s32 1, %s1345_s27  }
  0x17   : >> { %1249 = vmatprep.subr.msk.bf16.mxu1 %vm262_vm1, %v1108_v3  ;;  %1293 = vset.pattern.permute.xlu1 %v1349_v16  ;;  %v1299_v24 = vld [vmem:[%s1539_s1 + $0x14] ss:$0 sps:$4 sm:$0xff]   ;;  %v1308_v30 = vld [vmem:[%s1539_s1 + $0x44] ss:$0 sps:$4 sm:$0xff]   ;;  %v1302_v33 = vld [vmem:[%s1539_s1 + $0x20] ss:$0 sps:$4 sm:$0xff]  }
  0x18   : >> { %1201 = vmatmul.mubr.msk.bf16.vlgmr.msra.gmra.mxu1 %vm255_vm0, %v1300_v4  ;;  %1292 = vset.pattern.permute.xlu0 %v1349_v16  ;;  %v1311_v32 = vld [vmem:[%s1539_s1 + $0x54] sm:$0xff]   ;;  %v1312_v37 = vld [vmem:[%s1539_s1 + $0x5c] ss:$0 sps:$4 sm:$0xff]   ;;  %v1309_v39 = vld [vmem:[%s1539_s1 + $0x48] sm:$0xff]   ;;  %p227_p5 = scmp.ge.s32.totalorder %s230_s27, 32  }
  0x19   : >> { %1211 = vmatpush3.bf16.msra.mxu1 %v476_v9  ;;  %1212 = vmatprep.mubr.msk.bf16.mxu1 %vm255_vm0, %v1303_v8  ;;  %v1305_v35 = vld [vmem:[%s1539_s1 + $0x30] sm:$0xff]   ;;  %v1306_v38 = vld [vmem:[%s1539_s1 + $0x38] ss:$0 sps:$4 sm:$0xff]   ;;  %v1313_v43 = vld [vmem:[%s1539_s1 + $0x60] sm:$0xff]  }
  0x1a   : >> { %391 = vrot.lane.b32.xlu0 %v1093_v5, %s1348_s13  ;;  %618 = vrot.lane.b32.xlu1 %v1121_v6, %s1348_s13  ;;  %v1310_v42 = vld [vmem:[%s1539_s1 + $0x50] ss:$0 sps:$4 sm:$0xff]   ;;  %v1314_v45 = vld [vmem:[%s1539_s1 + $0x68] ss:$0 sps:$4 sm:$0xff]  }
  0x1e   : >> { %771 = vrot.lane.b32.xlu0 %v1145_v11, %s1347_s12  ;;  %845 = vrot.lane.b32.xlu1 %v1145_v11, %s1348_s13 }
  0x20   : >> { %1213 = vmatmul.mubr.msk.bf16.vlgmr.msra.gmra.mxu1 %vm255_vm0, %v1304_v12 }
  0x21   : >> { %1224 = vmatprep.mubr.msk.bf16.mxu1 %vm255_vm0, %v1307_v13 }
  0x22   : >> { %917 = vperm.xlu1 %1293, %v908_v14   ;;  %912 = vperm.xlu0 %1292, %v907_v15  }
  0x26   : >> { %922 = vperm.xlu1 %1293, %v909_v17   ;;  %933 = vperm.xlu0 %1292, %v928_v18  }
  0x2a   : >> { %938 = vperm.xlu1 %1293, %v929_v19   ;;  %943 = vperm.xlu0 %1292, %v930_v20  }
  0x88   : >> { %v254_v21 = vpop.permute.xlu0 %253  ;;  %v545_v22 = vpop.permute.xlu1 %544 }
  0x89   : >> { %1246 = vmatprep.subr.msk.bf16.mxu0 %vm262_vm1, %v254_v21  ;;  %v264_v23 = vsel %vm262_vm1, %v254_v21, 0  ;;  %v553_v36 = vsel %vm262_vm1, %v545_v22, 0 }
  0x8a   : >> { %1193 = vmatpush3.bf16.msra.mxu0 %v264_v23 }
  0x8c   : >> { %v392_v26 = vpop.permute.xlu0 %391  ;;  %v619_v27 = vpop.permute.xlu1 %618 }
  0x8d   : >> { %v400_v28 = vsel %vm262_vm1, %v392_v26, 0  ;;  %1195 = vmatmul.mubr.msk.bf16.vlgmr.msra.gmra.mxu0 %vm255_vm0, %v1299_v24  ;;  %1248 = vmatprep.subr.msk.bf16.mxu0 %vm262_vm1, %v392_v26  ;;  %v627_v29 = vsel %vm262_vm1, %v619_v27, 0 }
  0x8e   : >> { %1205 = vmatpush3.bf16.msra.mxu0 %v400_v28  ;;  %1206 = vmatprep.mubr.msk.bf16.mxu0 %vm255_vm0, %v1301_v25 }
  0x8f   : >> { %1250 = vmatprep.subr.msk.bf16.mxu0 %vm262_vm1, %v545_v22  ;;  %1251 = vmatprep.subr.msk.bf16.mxu1 %vm262_vm1, %v619_v27 }
  0x90   : >> { %1223 = vmatpush3.bf16.msra.mxu1 %v627_v29  ;;  %v772_v31 = vpop.permute.xlu0 %771  ;;  %v846_v41 = vpop.permute.xlu1 %845 }
  0x91   : >> { %v780_v34 = vsel %vm262_vm1, %v772_v31, 0  ;;  %1253 = vmatprep.subr.msk.bf16.mxu1 %vm262_vm1, %v772_v31  ;;  %v854_v44 = vsel %vm262_vm1, %v846_v41, 0 }
  0x93   : >> { %1225 = vmatmul.mubr.msk.bf16.vlgmr.msra.gmra.mxu1 %vm255_vm0, %v1308_v30 }
  0x94   : >> { %1235 = vmatpush3.bf16.msra.mxu1 %v780_v34  ;;  %1236 = vmatprep.mubr.msk.bf16.mxu1 %vm255_vm0, %v1311_v32 }
  0x95   : >> { %1207 = vmatmul.mubr.msk.bf16.vlgmr.msra.gmra.mxu0 %vm255_vm0, %v1302_v33 }
  0x96   : >> { %1217 = vmatpush3.bf16.msra.mxu0 %v553_v36  ;;  %1218 = vmatprep.mubr.msk.bf16.mxu0 %vm255_vm0, %v1305_v35 }
  0x97   : >> { %1252 = vmatprep.subr.msk.bf16.mxu0 %vm262_vm1, %v1427_v10 }
  0x9b   : >> { %1237 = vmatmul.mubr.msk.bf16.vlgmr.msra.gmra.mxu1 %vm255_vm0, %v1312_v37 }
  0x9d   : >> { %1219 = vmatmul.mubr.msk.bf16.vlgmr.msra.gmra.mxu0 %vm255_vm0, %v1306_v38  ;;  %v913_v19 = vpop.permute.xlu0 %912  ;;  %v918_v27 = vpop.permute.xlu1 %917 }
  0x9e   : >> { %1229 = vmatpush3.bf16.msra.mxu0 %v703_v40  ;;  %1230 = vmatprep.mubr.msk.bf16.mxu0 %vm255_vm0, %v1309_v39 }
  0x9f   : >> { %1254 = vmatprep.subr.msk.bf16.mxu0 %vm262_vm1, %v846_v41 }
  0xa1   : >> { %v934_v30 = vpop.permute.xlu0 %933  ;;  %v923_v38 = vpop.permute.xlu1 %922 }
  0xa5   : >> { %1231 = vmatmul.mubr.msk.bf16.vlgmr.msra.gmra.mxu0 %vm255_vm0, %v1310_v42  ;;  %v944_v42 = vpop.permute.xlu0 %943 }
  0xa6   : >> { %1241 = vmatpush3.bf16.msra.mxu0 %v854_v44  ;;  %1242 = vmatprep.mubr.msk.bf16.mxu0 %vm255_vm0, %v1313_v43 }
  0xad   : >> { %1243 = vmatmul.mubr.msk.bf16.vlgmr.msra.gmra.mxu0 %vm255_vm0, %v1314_v45 }
  0xd8   : >> { %v1202_v46 = vpop.f32.mrf.mxu1 }
  0xda   : >> { %v365_v47 = vpop.f32.mrf.mxu1 }
  0xdc   : >> { %v1203_v48 = vpop.f32.mrf.mxu1 }
  0xde   : >> { %v368_v49 = vpop.f32.mrf.mxu1 }
  0xe0   : >> { %v1214_v50 = vpop.f32.mrf.mxu1 }
  0xe2   : >> { %v512_v51 = vpop.f32.mrf.mxu1 }
  0xe4   : >> { %v1215_v52 = vpop.f32.mrf.mxu1 }
  0xe6   : >> { %v515_v55 = vpop.f32.mrf.mxu1 }
 0x14d   : >> { %v1196_v53 = vpop.f32.mrf.mxu0 }
 0x14e   : >> { %v374_v1 = vadd.f32 %v1202_v46, %v1196_v53 }
 0x14f   : >> { %v300_v54 = vpop.f32.mrf.mxu0 }
 0x150   : >> { %v366_v4 = vadd.f32 %v365_v47, %v300_v54 }
 0x151   : >> { %v1197_v56 = vpop.f32.mrf.mxu0 }
 0x153   : >> { %v303_v57 = vpop.f32.mrf.mxu0  ;;  %v1226_v58 = vpop.f32.mrf.mxu1 }
 0x154   : >> { %v369_v11 = vadd.f32 %v368_v49, %v303_v57 }
 0x155   : >> { %v1208_v59 = vpop.f32.mrf.mxu0  ;;  %v663_v60 = vpop.f32.mrf.mxu1 }
 0x156   : >> { %v452_v5 = vadd.f32 %v1208_v59, %v374_v1 }
 0x157   : >> { %v436_v61 = vpop.f32.mrf.mxu0  ;;  %v1227_v62 = vpop.f32.mrf.mxu1 }
 0x158   : >> { %v450_v8 = vadd.f32 %v436_v61, %v366_v4  ;;  %v528_v12 = vadd.f32 %v1214_v50, %v452_v5 }
 0x159   : >> { %v1209_v63 = vpop.f32.mrf.mxu0  ;;  %v666_v0 = vpop.f32.mrf.mxu1 }
 0x15a   : >> { %v526_v14 = vadd.f32 %v512_v51, %v450_v8 }
 0x15b   : >> { %v439_v2 = vpop.f32.mrf.mxu0  ;;  %v1238_v3 = vpop.f32.mrf.mxu1 }
 0x15c   : >> { %v451_v15 = vadd.f32 %v439_v2, %v369_v11 }
 0x15d   : >> { %v1220_v6 = vpop.f32.mrf.mxu0  ;;  %v816_v7 = vpop.f32.mrf.mxu1 }
 0x15e   : >> { %v605_v16 = vadd.f32 %v1220_v6, %v528_v12  ;;  %v527_v21 = vadd.f32 %v515_v55, %v451_v15  ;;  %v939_v55 = vpop.permute.xlu1 %938 }
 0x15f   : >> { %v589_v9 = vpop.f32.mrf.mxu0  ;;  %v1239_v10 = vpop.f32.mrf.mxu1 }
 0x160   : >> { %v603_v18 = vadd.f32 %v589_v9, %v526_v14  ;;  %v679_v22 = vadd.f32 %v1226_v58, %v605_v16 }
 0x161   : >> { %v1221_v13 = vpop.f32.mrf.mxu0  ;;  %v819_v43 = vpop.f32.mrf.mxu1 }
 0x162   : >> { %v677_v24 = vadd.f32 %v663_v60, %v603_v18 }
 0x163   : >> { %v592_v17 = vpop.f32.mrf.mxu0 }
 0x164   : >> { %v604_v25 = vadd.f32 %v592_v17, %v527_v21 }
 0x165   : >> { %v1232_v20 = vpop.f32.mrf.mxu0 }
 0x166   : >> { %v755_v26 = vadd.f32 %v1232_v20, %v679_v22  ;;  %v678_v32 = vadd.f32 %v666_v0, %v604_v25 }
 0x167   : >> { %v739_v23 = vpop.f32.mrf.mxu0 }
 0x168   : >> { %v753_v29 = vadd.f32 %v739_v23, %v677_v24  ;;  %v832_v33 = vadd.f32 %v1238_v3, %v755_v26 }
 0x169   : >> { %v1233_v28 = vpop.f32.mrf.mxu0 }
 0x16a   : >> { %v830_v35 = vadd.f32 %v816_v7, %v753_v29 }
 0x16b   : >> { %v742_v31 = vpop.f32.mrf.mxu0 }
 0x16c   : >> { %v754_v36 = vadd.f32 %v742_v31, %v678_v32 }
 0x16d   : >> { %v1244_v34 = vpop.f32.mrf.mxu0 }
 0x16e   : >> { %v906_v37 = vadd.f32 %v1244_v34, %v832_v33  ;;  %v831_v45 = vadd.f32 %v819_v43, %v754_v36 }
 0x16f   : >> { %v890_v39 = vpop.f32.mrf.mxu0 }
 0x170   : >> { %v904_v40 = vadd.f32 %v890_v39, %v830_v35  ;;  %v927_v41 = vmul.f32 %v923_v38, %v906_v37 }
 0x171   : >> { %v1245_v44 = vpop.f32.mrf.mxu0 }
 0x172   : >> { %v925_v46 = vmul.f32 %v913_v19, %v904_v40  ;;  %v948_v47 = vadd.f32 %v944_v42, %v927_v41 }
 0x173   : >> { %v893_v48 = vpop.f32.mrf.mxu0 }
 0x174   : >> { %v946_v49 = vadd.f32 %v934_v30, %v925_v46  ;;  %v951_v50 = vmax.f32 %v948_v47, 0.0  ;;  %v905_v51 = vadd.f32 %v893_v48, %v831_v45 }
 0x176   : >> { %v949_v52 = vmax.f32 %v946_v49, 0.0  ;;  %v1163_v53 = vpack.c.bf16 %v951_v50, %v951_v50  ;;  %v926_v54 = vmul.f32 %v918_v27, %v905_v51 }
 0x178   : >> { %v1161_v56 = vpack.c.bf16 %v949_v52, %v949_v52  ;;  %971 = vst.msk [vmem:[%s967_s15 + $0x8] sm:$0xf] %vm968_vm2, %v1163_v53  ;;  %v947_v57 = vadd.f32 %v939_v55, %v926_v54 }
 0x17a   : >> { %969 = vst.msk [vmem:[%s967_s15] sm:$0xf] %vm968_vm2, %v1161_v56  ;;  %v950_v58 = vmax.f32 %v947_v57, 0.0  ;;  %229 = sbr.rel (!%p227_p5) target bundleno = 17 (0x11), region = 85 }
 0x17c   : >> { %v1162_v59 = vpack.c.bf16 %v950_v58, %v950_v58 }
 0x17e   : >> { %970 = vst.msk [vmem:[%s967_s15 + $0x4] sm:$0xf] %vm968_vm2, %v1162_v59 }
 0x17f PF: > { %s14_s17 = sadd.s32 1, %s1341_s17   ;;  %s1543_s15 = smov %s1337_s16 }
 0x180   : > { %p11_p6 = scmp.ge.s32.totalorder %s14_s17, 4   ;;  %s1544_s16 = smov %s1546_s18 }
 0x182   :  { %13 = sbr.rel (!%p11_p6) target bundleno = 2 (0x2), region = 96 }

// kernel: forward.26
= control target key start
LH: loop header
LB: loop body
LE: loop exit
PB: predicated region body
PF: predicated region fallthrough
CT: control target
= control target key end

     0   :  { %s1456_s15 = smov 0   ;;  %s1458_s16 = smov 0   ;;  %s1648_s0 = inlined_call_operand.vmem [shape: bf16[2,34,24,34], index: 0, kind: input, shape index: {}]   ;;  %s1649_s1 = inlined_call_operand.vmem [shape: bf16[3,3,24,24], index: 1, kind: input, shape index: {}]   ;;  %s1650_s2 = inlined_call_operand.vmem [shape: f32[24,1], index: 2, kind: input, shape index: {}]   ;;  %s1651_s3 = inlined_call_operand.vmem [shape: f32[24,1], index: 3, kind: input, shape index: {}]   ;;  %s1652_s4 = inlined_call_operand.vmem [shape: bf16[2,32,24,32], index: 4, kind: output, shape index: {}]  }
   0x1   :  { %s1460_s17 = smov 0  }
   0x2 LB: > { %s26_s18 = sadd.s32 1, %s1418_s16  ;;  %p1129_p0 = scmp.ge.s32.totalorder %s1422_s17, 1  ;;  %s1422_s17 = sphi %s1460_s17, %s14_s17   ;;  %s1418_s16 = sphi %s1458_s16, %s1654_s16   ;;  %s1414_s15 = sphi %s1456_s15, %s1653_s15  }
   0x3   : > { %p28_p1 = scmp.ge.s32.totalorder %s26_s18, 2  ;;  %p176_p2 = scmp.lt.s32.totalorder %s1422_s17, 3 }
   0x5   : > { %s1656_s18 = smov (%p28_p1, %s26_s18), 0  ;;  %p177_p3 = pnand %p1129_p0, %p176_p2 }
   0x6   : > { %p207_p4 = scmp.lt.s32.totalorder (!%p177_p3), %s1414_s15, 1  ;;  %s1484_s27 = smov (!%p177_p3), 0  }
   0x7   : > { %180 = sbr.rel (%p177_p3) target bundleno = 386 (0x182), region = 36 }
   0xc   : > { %s1658_s15 = smov (!%p207_p4, %s1414_s15), 1 }
   0xd   : > { %s1333_s19 = smul.u32 408, %s1658_s15 }
   0xe   : > { %s1334_s20 = smul.u32 384, %s1658_s15 }
   0xf   : > { %s1477_s23 = scalar_lea.vmem %s1648_s0, %s1333_s19 }
  0x10   : > { %s1482_s26 = scalar_lea.vmem %s1652_s4, %s1334_s20 }
  0x11 LB: >> { %v1378_v0 = vld [vmem:[%s1649_s1 + $0xc] sm:$0xff]   ;;  %vm266_vm0 = vcmask 195584   ;;  %v1379_v1 = vld [vmem:[%s1649_s1] sm:$0xff]   ;;  %s1211_s6 = smul.u32 12, %s1426_s27  ;;  %vm273_vm1 = vcmask 1043456   ;;  %s1428_s8 = smov 127   ;;  %s1426_s27 = sphi %s1484_s27, %s230_s27  }
  0x12   : >> { %1256 = vmatprep.mubr.msk.bf16.mxu0 %vm266_vm0, %v1378_v0  ;;  %1264 = vmatprep.mubr.msk.bf16.mxu1 %vm266_vm0, %v1379_v1  ;;  %s1429_s9 = smov 126   ;;  %v1381_v7 = vld [vmem:[%s1649_s1 + $0x8] ss:$0 sps:$4 sm:$0xff]   ;;  %v1385_v11 = vld [vmem:[%s1649_s1 + $0x2c] ss:$0 sps:$4 sm:$0xff]   ;;  %v1388_v12 = vld [vmem:[%s1649_s1 + $0x3c] sm:$0xff]  }
  0x13   : >> { %s1501_s7 = scalar_lea.vmem %s1477_s23, %s1211_s6  ;;  %v1384_v9 = vld [vmem:[%s1649_s1 + $0x24] sm:$0xff]   ;;  %v1430_v16 = vmov 0   ;;  %v954_v17 = vld [vmem:[%s1650_s2 + $0x10] sm:$0xff]  ;;  %v1382_v27 = vld [vmem:[%s1649_s1 + $0x18] sm:$0xff]   ;;  %s1012_s19 = scalar_lea.vmem %s1482_s26, %s1211_s6  ;;  %vm1013_vm2 = vcmask 257024  }
  0x14   : >> { %v1372_v2 = vld [vmem:[%s1501_s7 + $0x8] ss:$0 sps:$4 sm:$0xff]   ;;  %v1373_v3 = vld [vmem:[%s1501_s7] sm:$0xff]   ;;  %v1374_v5 = vld [vmem:[%s1501_s7 + $0x14] ss:$0 sps:$4 sm:$0xff]   ;;  %1371 = vset.pattern.permute.xlu1 %v1430_v16  ;;  %1370 = vset.pattern.permute.xlu0 %v1430_v16  ;;  %s230_s27 = sadd.s32 1, %s1426_s27  }
  0x15   : >> { %263 = vrot.lane.b32.xlu0 %v1372_v2, %s1428_s8  ;;  %405 = vrot.lane.b32.xlu1 %v1372_v2, %s1429_s9  ;;  %v341_v4 = vsel %vm273_vm1, %v1372_v2, 0  ;;  %v1375_v6 = vld [vmem:[%s1501_s7 + $0xc] sm:$0xff]   ;;  %v503_v8 = vsel %vm273_vm1, %v1374_v5, 0  ;;  %v1526_v10 = vld [vmem:[%s1501_s7 + $0x20] ss:$0 sps:$4 sm:$0xff]   ;;  %p227_p5 = scmp.ge.s32.totalorder %s230_s27, 32  }
  0x16   : >> { %1325 = vmatprep.subr.msk.bf16.mxu1 %vm273_vm1, %v1372_v2  ;;  %v1539_v13 = vld [vmem:[%s1501_s7 + $0x18] sm:$0xff]   ;;  %v953_v14 = vld [vmem:[%s1650_s2 + $0x8] sm:$0xff]  ;;  %v952_v15 = vld [vmem:[%s1650_s2] sm:$0xff]  ;;  %v745_v43 = vsel %vm273_vm1, %v1526_v10, 0 }
  0x17   : >> { %1261 = vmatpush3.bf16.msra.mxu1 %v341_v4  ;;  %v973_v18 = vld [vmem:[%s1651_s3] sm:$0xff]  ;;  %v974_v19 = vld [vmem:[%s1651_s3 + $0x8] sm:$0xff]  ;;  %v975_v20 = vld [vmem:[%s1651_s3 + $0x10] sm:$0xff] }
  0x18   : >> { %1262 = vmatprep.subr.bf16.mxu1 %v1373_v3  ;;  %v1380_v26 = vld [vmem:[%s1649_s1 + $0x14] ss:$0 sps:$4 sm:$0xff]   ;;  %v1383_v33 = vld [vmem:[%s1649_s1 + $0x20] ss:$0 sps:$4 sm:$0xff]   ;;  %v1389_v38 = vld [vmem:[%s1649_s1 + $0x44] ss:$0 sps:$4 sm:$0xff]  }
  0x19   : >> { %261 = vrot.lane.b32.xlu0 %v1373_v3, %s1428_s8  ;;  %403 = vrot.lane.b32.xlu1 %v1373_v3, %s1429_s9  ;;  %v1386_v36 = vld [vmem:[%s1649_s1 + $0x30] sm:$0xff]   ;;  %v1387_v42 = vld [vmem:[%s1649_s1 + $0x38] ss:$0 sps:$4 sm:$0xff]  }
  0x1a   : >> { %v1392_v41 = vld [vmem:[%s1649_s1 + $0x54] sm:$0xff]   ;;  %v1390_v44 = vld [vmem:[%s1649_s1 + $0x48] sm:$0xff]   ;;  %v1393_v45 = vld [vmem:[%s1649_s1 + $0x5c] ss:$0 sps:$4 sm:$0xff]  }
  0x1b   : >> { %1263 = vmatpush3.bf16.msra.mxu1 %v1373_v3  ;;  %v1391_v47 = vld [vmem:[%s1649_s1 + $0x50] ss:$0 sps:$4 sm:$0xff]   ;;  %v1394_v48 = vld [vmem:[%s1649_s1 + $0x60] sm:$0xff]   ;;  %v1395_v51 = vld [vmem:[%s1649_s1 + $0x68] ss:$0 sps:$4 sm:$0xff]  }
  0x1c   : >> { %1327 = vmatprep.subr.msk.bf16.mxu1 %vm273_vm1, %v1374_v5 }
  0x1d   : >> { %570 = vrot.lane.b32.xlu0 %v1374_v5, %s1428_s8  ;;  %568 = vrot.lane.b32.xlu1 %v1375_v6, %s1428_s8 }
  0x1e   : >> { %1265 = vmatmul.mubr.msk.bf16.vlgmr.msra.gmra.mxu1 %vm266_vm0, %v1381_v7 }
  0x1f   : >> { %1277 = vmatpush3.bf16.msra.mxu1 %v503_v8  ;;  %1280 = vmatprep.mubr.msk.bf16.mxu1 %vm266_vm0, %v1384_v9 }
  0x20   : >> { %1278 = vmatprep.subr.bf16.mxu1 %v1375_v6 }
  0x21   : >> { %647 = vrot.lane.b32.xlu0 %v1374_v5, %s1429_s9  ;;  %645 = vrot.lane.b32.xlu1 %v1375_v6, %s1429_s9 }
  0x23   : >> { %1279 = vmatpush3.bf16.msra.mxu1 %v1375_v6 }
  0x25   : >> { %812 = vrot.lane.b32.xlu0 %v1526_v10, %s1428_s8  ;;  %889 = vrot.lane.b32.xlu1 %v1526_v10, %s1429_s9 }
  0x26   : >> { %1281 = vmatmul.mubr.msk.bf16.vlgmr.msra.gmra.mxu1 %vm266_vm0, %v1385_v11 }
  0x27   : >> { %1296 = vmatprep.mubr.msk.bf16.mxu1 %vm266_vm0, %v1388_v12 }
  0x29   : >> { %810 = vrot.lane.b32.xlu0 %v1539_v13, %s1428_s8  ;;  %887 = vrot.lane.b32.xlu1 %v1539_v13, %s1429_s9 }
  0x2d   : >> { %962 = vperm.xlu1 %1371, %v953_v14   ;;  %957 = vperm.xlu0 %1370, %v952_v15  }
  0x31   : >> { %967 = vperm.xlu1 %1371, %v954_v17   ;;  %978 = vperm.xlu0 %1370, %v973_v18  }
  0x35   : >> { %983 = vperm.xlu1 %1371, %v974_v19   ;;  %988 = vperm.xlu0 %1370, %v975_v20  }
  0x87   : >> { %v264_v21 = vpop.permute.xlu0 %263  ;;  %v406_v22 = vpop.permute.xlu1 %405 }
  0x88   : >> { %1324 = vmatprep.subr.msk.bf16.mxu0 %vm273_vm1, %v264_v21  ;;  %v275_v23 = vsel %vm273_vm1, %v264_v21, 0  ;;  %v415_v28 = vsel %vm273_vm1, %v406_v22, 0 }
  0x89   : >> { %1253 = vmatpush3.bf16.msra.mxu0 %v275_v23 }
  0x8b   : >> { %v262_v24 = vpop.permute.xlu0 %261  ;;  %v404_v25 = vpop.permute.xlu1 %403 }
  0x8c   : >> { %1254 = vmatprep.subr.bf16.mxu0 %v262_v24 }
  0x8d   : >> { %1255 = vmatpush3.bf16.msra.mxu0 %v262_v24 }
  0x8e   : >> { %1326 = vmatprep.subr.msk.bf16.mxu0 %vm273_vm1, %v406_v22 }
  0x8f   : >> { %v571_v29 = vpop.permute.xlu0 %570  ;;  %v569_v30 = vpop.permute.xlu1 %568 }
  0x90   : >> { %1257 = vmatmul.mubr.msk.bf16.vlgmr.msra.gmra.mxu0 %vm266_vm0, %v1380_v26  ;;  %v580_v35 = vsel %vm273_vm1, %v571_v29, 0 }
  0x91   : >> { %1269 = vmatpush3.bf16.msra.mxu0 %v415_v28  ;;  %1272 = vmatprep.mubr.msk.bf16.mxu0 %vm266_vm0, %v1382_v27 }
  0x92   : >> { %1270 = vmatprep.subr.bf16.mxu0 %v404_v25 }
  0x93   : >> { %v648_v31 = vpop.permute.xlu0 %647  ;;  %v646_v32 = vpop.permute.xlu1 %645 }
  0x94   : >> { %v657_v34 = vsel %vm273_vm1, %v648_v31, 0  ;;  %1329 = vmatprep.subr.msk.bf16.mxu1 %vm273_vm1, %v648_v31 }
  0x95   : >> { %1271 = vmatpush3.bf16.msra.mxu0 %v404_v25  ;;  %1293 = vmatpush3.bf16.msra.mxu1 %v657_v34 }
  0x96   : >> { %1328 = vmatprep.subr.msk.bf16.mxu0 %vm273_vm1, %v571_v29  ;;  %1294 = vmatprep.subr.bf16.mxu1 %v646_v32 }
  0x97   : >> { %v813_v37 = vpop.permute.xlu0 %812  ;;  %v890_v46 = vpop.permute.xlu1 %889 }
  0x98   : >> { %1273 = vmatmul.mubr.msk.bf16.vlgmr.msra.gmra.mxu0 %vm266_vm0, %v1383_v33  ;;  %v822_v39 = vsel %vm273_vm1, %v813_v37, 0  ;;  %v899_v49 = vsel %vm273_vm1, %v890_v46, 0 }
  0x99   : >> { %1285 = vmatpush3.bf16.msra.mxu0 %v580_v35  ;;  %1295 = vmatpush3.bf16.msra.mxu1 %v646_v32 }
  0x9a   : >> { %1286 = vmatprep.subr.bf16.mxu0 %v569_v30  ;;  %1288 = vmatprep.mubr.msk.bf16.mxu0 %vm266_vm0, %v1386_v36 }
  0x9b   : >> { %1331 = vmatprep.subr.msk.bf16.mxu1 %vm273_vm1, %v813_v37  ;;  %v811_v40 = vpop.permute.xlu0 %810  ;;  %v888_v50 = vpop.permute.xlu1 %887 }
  0x9c   : >> { %1297 = vmatmul.mubr.msk.bf16.vlgmr.msra.gmra.mxu1 %vm266_vm0, %v1389_v38 }
  0x9d   : >> { %1287 = vmatpush3.bf16.msra.mxu0 %v569_v30  ;;  %1309 = vmatpush3.bf16.msra.mxu1 %v822_v39 }
  0x9e   : >> { %1330 = vmatprep.subr.msk.bf16.mxu0 %vm273_vm1, %v1526_v10  ;;  %1310 = vmatprep.subr.bf16.mxu1 %v811_v40 }
  0x9f   : >> { %1312 = vmatprep.mubr.msk.bf16.mxu1 %vm266_vm0, %v1392_v41 }
  0xa0   : >> { %1289 = vmatmul.mubr.msk.bf16.vlgmr.msra.gmra.mxu0 %vm266_vm0, %v1387_v42 }
  0xa1   : >> { %1301 = vmatpush3.bf16.msra.mxu0 %v745_v43  ;;  %1311 = vmatpush3.bf16.msra.mxu1 %v811_v40 }
  0xa2   : >> { %1302 = vmatprep.subr.bf16.mxu0 %v1539_v13  ;;  %1304 = vmatprep.mubr.msk.bf16.mxu0 %vm266_vm0, %v1390_v44 }
  0xa4   : >> { %1313 = vmatmul.mubr.msk.bf16.vlgmr.msra.gmra.mxu1 %vm266_vm0, %v1393_v45 }
  0xa5   : >> { %1303 = vmatpush3.bf16.msra.mxu0 %v1539_v13 }
  0xa6   : >> { %1332 = vmatprep.subr.msk.bf16.mxu0 %vm273_vm1, %v890_v46 }
  0xa8   : >> { %1305 = vmatmul.mubr.msk.bf16.vlgmr.msra.gmra.mxu0 %vm266_vm0, %v1391_v47  ;;  %v958_v24 = vpop.permute.xlu0 %957  ;;  %v963_v33 = vpop.permute.xlu1 %962 }
  0xa9   : >> { %1317 = vmatpush3.bf16.msra.mxu0 %v899_v49  ;;  %1320 = vmatprep.mubr.msk.bf16.mxu0 %vm266_vm0, %v1394_v48 }
  0xaa   : >> { %1318 = vmatprep.subr.bf16.mxu0 %v888_v50 }
  0xac   : >> { %v979_v36 = vpop.permute.xlu0 %978  ;;  %v968_v44 = vpop.permute.xlu1 %967 }
  0xad   : >> { %1319 = vmatpush3.bf16.msra.mxu0 %v888_v50 }
  0xb0   : >> { %1321 = vmatmul.mubr.msk.bf16.vlgmr.msra.gmra.mxu0 %vm266_vm0, %v1395_v51  ;;  %v989_v47 = vpop.permute.xlu0 %988 }
  0xde   : >> { %v1266_v52 = vpop.f32.mrf.mxu1 }
  0xe0   : >> { %v377_v53 = vpop.f32.mrf.mxu1 }
  0xe2   : >> { %v1267_v54 = vpop.f32.mrf.mxu1 }
  0xe4   : >> { %v380_v55 = vpop.f32.mrf.mxu1 }
  0xe6   : >> { %v1282_v56 = vpop.f32.mrf.mxu1 }
  0xe8   : >> { %v539_v57 = vpop.f32.mrf.mxu1 }
  0xea   : >> { %v1283_v58 = vpop.f32.mrf.mxu1 }
  0xec   : >> { %v542_v0 = vpop.f32.mrf.mxu1 }
 0x150   : >> { %v1258_v59 = vpop.f32.mrf.mxu0 }
 0x151   : >> { %v386_v4 = vadd.f32 %v1266_v52, %v1258_v59 }
 0x152   : >> { %v311_v60 = vpop.f32.mrf.mxu0 }
 0x153   : >> { %v378_v7 = vadd.f32 %v377_v53, %v311_v60 }
 0x154   : >> { %v1259_v61 = vpop.f32.mrf.mxu0 }
 0x155   : >> { %v984_v61 = vpop.permute.xlu1 %983 }
 0x156   : >> { %v314_v62 = vpop.f32.mrf.mxu0 }
 0x157   : >> { %v381_v14 = vadd.f32 %v380_v55, %v314_v62 }
 0x158   : >> { %v1274_v63 = vpop.f32.mrf.mxu0 }
 0x159   : >> { %v467_v8 = vadd.f32 %v1274_v63, %v386_v4 }
 0x15a   : >> { %v451_v1 = vpop.f32.mrf.mxu0 }
 0x15b   : >> { %v465_v11 = vadd.f32 %v451_v1, %v378_v7  ;;  %v555_v15 = vadd.f32 %v1282_v56, %v467_v8 }
 0x15c   : >> { %v1275_v2 = vpop.f32.mrf.mxu0  ;;  %v1298_v3 = vpop.f32.mrf.mxu1 }
 0x15d   : >> { %v553_v18 = vadd.f32 %v539_v57, %v465_v11 }
 0x15e   : >> { %v454_v5 = vpop.f32.mrf.mxu0  ;;  %v693_v6 = vpop.f32.mrf.mxu1 }
 0x15f   : >> { %v466_v19 = vadd.f32 %v454_v5, %v381_v14 }
 0x160   : >> { %v1290_v9 = vpop.f32.mrf.mxu0  ;;  %v1299_v10 = vpop.f32.mrf.mxu1 }
 0x161   : >> { %v632_v20 = vadd.f32 %v1290_v9, %v555_v15  ;;  %v554_v27 = vadd.f32 %v542_v0, %v466_v19 }
 0x162   : >> { %v616_v12 = vpop.f32.mrf.mxu0  ;;  %v696_v13 = vpop.f32.mrf.mxu1 }
 0x163   : >> { %v630_v23 = vadd.f32 %v616_v12, %v553_v18  ;;  %v709_v28 = vadd.f32 %v1298_v3, %v632_v20 }
 0x164   : >> { %v1291_v16 = vpop.f32.mrf.mxu0  ;;  %v1314_v17 = vpop.f32.mrf.mxu1 }
 0x165   : >> { %v707_v30 = vadd.f32 %v693_v6, %v630_v23 }
 0x166   : >> { %v619_v21 = vpop.f32.mrf.mxu0  ;;  %v858_v22 = vpop.f32.mrf.mxu1 }
 0x167   : >> { %v631_v31 = vadd.f32 %v619_v21, %v554_v27 }
 0x168   : >> { %v1306_v25 = vpop.f32.mrf.mxu0  ;;  %v1315_v26 = vpop.f32.mrf.mxu1 }
 0x169   : >> { %v797_v32 = vadd.f32 %v1306_v25, %v709_v28  ;;  %v708_v38 = vadd.f32 %v696_v13, %v631_v31 }
 0x16a   : >> { %v781_v29 = vpop.f32.mrf.mxu0  ;;  %v861_v49 = vpop.f32.mrf.mxu1 }
 0x16b   : >> { %v795_v35 = vadd.f32 %v781_v29, %v707_v30  ;;  %v874_v39 = vadd.f32 %v1314_v17, %v797_v32 }
 0x16c   : >> { %v1307_v34 = vpop.f32.mrf.mxu0 }
 0x16d   : >> { %v872_v41 = vadd.f32 %v858_v22, %v795_v35 }
 0x16e   : >> { %v784_v37 = vpop.f32.mrf.mxu0 }
 0x16f   : >> { %v796_v42 = vadd.f32 %v784_v37, %v708_v38 }
 0x170   : >> { %v1322_v40 = vpop.f32.mrf.mxu0 }
 0x171   : >> { %v951_v43 = vadd.f32 %v1322_v40, %v874_v39  ;;  %v873_v51 = vadd.f32 %v861_v49, %v796_v42 }
 0x172   : >> { %v935_v45 = vpop.f32.mrf.mxu0 }
 0x173   : >> { %v949_v46 = vadd.f32 %v935_v45, %v872_v41  ;;  %v972_v48 = vmul.f32 %v968_v44, %v951_v43 }
 0x174   : >> { %v1323_v50 = vpop.f32.mrf.mxu0 }
 0x175   : >> { %v970_v52 = vmul.f32 %v958_v24, %v949_v46  ;;  %v993_v53 = vadd.f32 %v989_v47, %v972_v48 }
 0x176   : >> { %v938_v54 = vpop.f32.mrf.mxu0 }
 0x177   : >> { %v991_v55 = vadd.f32 %v979_v36, %v970_v52  ;;  %v996_v56 = vmax.f32 %v993_v53, 0.0  ;;  %v950_v57 = vadd.f32 %v938_v54, %v873_v51 }
 0x179   : >> { %v994_v58 = vmax.f32 %v991_v55, 0.0  ;;  %v1214_v59 = vpack.c.bf16 %v996_v56, %v996_v56  ;;  %v971_v60 = vmul.f32 %v963_v33, %v950_v57 }
 0x17b   : >> { %v1212_v62 = vpack.c.bf16 %v994_v58, %v994_v58  ;;  %1016 = vst.msk [vmem:[%s1012_s19 + $0x8] sm:$0xf] %vm1013_vm2, %v1214_v59  ;;  %v992_v63 = vadd.f32 %v984_v61, %v971_v60 }
 0x17d   : >> { %1014 = vst.msk [vmem:[%s1012_s19] sm:$0xf] %vm1013_vm2, %v1212_v62  ;;  %v995_v0 = vmax.f32 %v992_v63, 0.0  ;;  %229 = sbr.rel (!%p227_p5) target bundleno = 17 (0x11), region = 85 }
 0x17f   : >> { %v1213_v1 = vpack.c.bf16 %v995_v0, %v995_v0 }
 0x181   : >> { %1015 = vst.msk [vmem:[%s1012_s19 + $0x4] sm:$0xf] %vm1013_vm2, %v1213_v1 }
 0x182 PF: > { %s14_s17 = sadd.s32 1, %s1422_s17   ;;  %s1653_s15 = smov %s1418_s16 }
 0x183   : > { %p11_p6 = scmp.ge.s32.totalorder %s14_s17, 4   ;;  %s1654_s16 = smov %s1656_s18 }
 0x185   :  { %13 = sbr.rel (!%p11_p6) target bundleno = 2 (0x2), region = 96 }

// kernel: forward.27
= control target key start
LH: loop header
LB: loop body
LE: loop exit
PB: predicated region body
PF: predicated region fallthrough
CT: control target
= control target key end

     0   :  { %s1456_s15 = smov 0   ;;  %s1458_s16 = smov 0   ;;  %s1648_s0 = inlined_call_operand.vmem [shape: bf16[2,18,24,18], index: 0, kind: input, shape index: {}]   ;;  %s1649_s1 = inlined_call_operand.vmem [shape: bf16[3,3,24,24], index: 1, kind: input, shape index: {}]   ;;  %s1650_s2 = inlined_call_operand.vmem [shape: f32[24,1], index: 2, kind: input, shape index: {}]   ;;  %s1651_s3 = inlined_call_operand.vmem [shape: f32[24,1], index: 3, kind: input, shape index: {}]   ;;  %s1652_s4 = inlined_call_operand.vmem [shape: bf16[2,16,24,16], index: 4, kind: output, shape index: {}]  }
   0x1   :  { %s1460_s17 = smov 0  }
   0x2 LB: > { %s26_s18 = sadd.s32 1, %s1418_s16  ;;  %p1129_p0 = scmp.ge.s32.totalorder %s1422_s17, 1  ;;  %s1422_s17 = sphi %s1460_s17, %s14_s17   ;;  %s1418_s16 = sphi %s1458_s16, %s1654_s16   ;;  %s1414_s15 = sphi %s1456_s15, %s1653_s15  }
   0x3   : > { %p28_p1 = scmp.ge.s32.totalorder %s26_s18, 2  ;;  %p176_p2 = scmp.lt.s32.totalorder %s1422_s17, 3 }
   0x5   : > { %s1656_s18 = smov (%p28_p1, %s26_s18), 0  ;;  %p177_p3 = pnand %p1129_p0, %p176_p2 }
   0x6   : > { %p207_p4 = scmp.lt.s32.totalorder (!%p177_p3), %s1414_s15, 1  ;;  %s1484_s27 = smov (!%p177_p3), 0  }
   0x7   : > { %180 = sbr.rel (%p177_p3) target bundleno = 386 (0x182), region = 36 }
   0xc   : > { %s1658_s15 = smov (!%p207_p4, %s1414_s15), 1 }
   0xd   : > { %s1333_s19 = smul.u32 216, %s1658_s15 }
   0xe   : > { %s1334_s20 = smul.u32 192, %s1658_s15 }
   0xf   : > { %s1477_s23 = scalar_lea.vmem %s1648_s0, %s1333_s19 }
  0x10   : > { %s1482_s26 = scalar_lea.vmem %s1652_s4, %s1334_s20 }
  0x11 LB: >> { %v1378_v0 = vld [vmem:[%s1649_s1 + $0xc] sm:$0xff]   ;;  %vm266_vm0 = vcmask 195584   ;;  %v1379_v1 = vld [vmem:[%s1649_s1] sm:$0xff]   ;;  %s1211_s6 = smul.u32 12, %s1426_s27  ;;  %vm273_vm1 = vcmask 1043456   ;;  %s1428_s8 = smov 127   ;;  %s1426_s27 = sphi %s1484_s27, %s230_s27  }
  0x12   : >> { %1256 = vmatprep.mubr.msk.bf16.mxu0 %vm266_vm0, %v1378_v0  ;;  %1264 = vmatprep.mubr.msk.bf16.mxu1 %vm266_vm0, %v1379_v1  ;;  %s1429_s9 = smov 126   ;;  %v1381_v7 = vld [vmem:[%s1649_s1 + $0x8] ss:$0 sps:$4 sm:$0xff]   ;;  %v1385_v11 = vld [vmem:[%s1649_s1 + $0x2c] ss:$0 sps:$4 sm:$0xff]   ;;  %v1388_v12 = vld [vmem:[%s1649_s1 + $0x3c] sm:$0xff]  }
  0x13   : >> { %s1501_s7 = scalar_lea.vmem %s1477_s23, %s1211_s6  ;;  %v1384_v9 = vld [vmem:[%s1649_s1 + $0x24] sm:$0xff]   ;;  %v1430_v16 = vmov 0   ;;  %v954_v17 = vld [vmem:[%s1650_s2 + $0x10] sm:$0xff]  ;;  %v1382_v27 = vld [vmem:[%s1649_s1 + $0x18] sm:$0xff]   ;;  %s1012_s19 = scalar_lea.vmem %s1482_s26, %s1211_s6  ;;  %vm1013_vm2 = vcmask 125952  }
  0x14   : >> { %v1372_v2 = vld [vmem:[%s1501_s7 + $0x8] ss:$0 sps:$4 sm:$0xff]   ;;  %v1373_v3 = vld [vmem:[%s1501_s7] sm:$0xff]   ;;  %v1374_v5 = vld [vmem:[%s1501_s7 + $0x14] ss:$0 sps:$4 sm:$0xff]   ;;  %1371 = vset.pattern.permute.xlu1 %v1430_v16  ;;  %1370 = vset.pattern.permute.xlu0 %v1430_v16  ;;  %s230_s27 = sadd.s32 1, %s1426_s27  }
  0x15   : >> { %263 = vrot.lane.b32.xlu0 %v1372_v2, %s1428_s8  ;;  %405 = vrot.lane.b32.xlu1 %v1372_v2, %s1429_s9  ;;  %v341_v4 = vsel %vm273_vm1, %v1372_v2, 0  ;;  %v1375_v6 = vld [vmem:[%s1501_s7 + $0xc] sm:$0xff]   ;;  %v503_v8 = vsel %vm273_vm1, %v1374_v5, 0  ;;  %v1526_v10 = vld [vmem:[%s1501_s7 + $0x20] ss:$0 sps:$4 sm:$0xff]   ;;  %p227_p5 = scmp.ge.s32.totalorder %s230_s27, 16  }
  0x16   : >> { %1325 = vmatprep.subr.msk.bf16.mxu1 %vm273_vm1, %v1372_v2  ;;  %v1539_v13 = vld [vmem:[%s1501_s7 + $0x18] sm:$0xff]   ;;  %v953_v14 = vld [vmem:[%s1650_s2 + $0x8] sm:$0xff]  ;;  %v952_v15 = vld [vmem:[%s1650_s2] sm:$0xff]  ;;  %v745_v43 = vsel %vm273_vm1, %v1526_v10, 0 }
  0x17   : >> { %1261 = vmatpush3.bf16.msra.mxu1 %v341_v4  ;;  %v973_v18 = vld [vmem:[%s1651_s3] sm:$0xff]  ;;  %v974_v19 = vld [vmem:[%s1651_s3 + $0x8] sm:$0xff]  ;;  %v975_v20 = vld [vmem:[%s1651_s3 + $0x10] sm:$0xff] }
  0x18   : >> { %1262 = vmatprep.subr.bf16.mxu1 %v1373_v3  ;;  %v1380_v26 = vld [vmem:[%s1649_s1 + $0x14] ss:$0 sps:$4 sm:$0xff]   ;;  %v1383_v33 = vld [vmem:[%s1649_s1 + $0x20] ss:$0 sps:$4 sm:$0xff]   ;;  %v1389_v38 = vld [vmem:[%s1649_s1 + $0x44] ss:$0 sps:$4 sm:$0xff]  }
  0x19   : >> { %261 = vrot.lane.b32.xlu0 %v1373_v3, %s1428_s8  ;;  %403 = vrot.lane.b32.xlu1 %v1373_v3, %s1429_s9  ;;  %v1386_v36 = vld [vmem:[%s1649_s1 + $0x30] sm:$0xff]   ;;  %v1387_v42 = vld [vmem:[%s1649_s1 + $0x38] ss:$0 sps:$4 sm:$0xff]  }
  0x1a   : >> { %v1392_v41 = vld [vmem:[%s1649_s1 + $0x54] sm:$0xff]   ;;  %v1390_v44 = vld [vmem:[%s1649_s1 + $0x48] sm:$0xff]   ;;  %v1393_v45 = vld [vmem:[%s1649_s1 + $0x5c] ss:$0 sps:$4 sm:$0xff]  }
  0x1b   : >> { %1263 = vmatpush3.bf16.msra.mxu1 %v1373_v3  ;;  %v1391_v47 = vld [vmem:[%s1649_s1 + $0x50] ss:$0 sps:$4 sm:$0xff]   ;;  %v1394_v48 = vld [vmem:[%s1649_s1 + $0x60] sm:$0xff]   ;;  %v1395_v51 = vld [vmem:[%s1649_s1 + $0x68] ss:$0 sps:$4 sm:$0xff]  }
  0x1c   : >> { %1327 = vmatprep.subr.msk.bf16.mxu1 %vm273_vm1, %v1374_v5 }
  0x1d   : >> { %570 = vrot.lane.b32.xlu0 %v1374_v5, %s1428_s8  ;;  %568 = vrot.lane.b32.xlu1 %v1375_v6, %s1428_s8 }
  0x1e   : >> { %1265 = vmatmul.mubr.msk.bf16.vlgmr.msra.gmra.mxu1 %vm266_vm0, %v1381_v7 }
  0x1f   : >> { %1277 = vmatpush3.bf16.msra.mxu1 %v503_v8  ;;  %1280 = vmatprep.mubr.msk.bf16.mxu1 %vm266_vm0, %v1384_v9 }
  0x20   : >> { %1278 = vmatprep.subr.bf16.mxu1 %v1375_v6 }
  0x21   : >> { %647 = vrot.lane.b32.xlu0 %v1374_v5, %s1429_s9  ;;  %645 = vrot.lane.b32.xlu1 %v1375_v6, %s1429_s9 }
  0x23   : >> { %1279 = vmatpush3.bf16.msra.mxu1 %v1375_v6 }
  0x25   : >> { %812 = vrot.lane.b32.xlu0 %v1526_v10, %s1428_s8  ;;  %889 = vrot.lane.b32.xlu1 %v1526_v10, %s1429_s9 }
  0x26   : >> { %1281 = vmatmul.mubr.msk.bf16.vlgmr.msra.gmra.mxu1 %vm266_vm0, %v1385_v11 }
  0x27   : >> { %1296 = vmatprep.mubr.msk.bf16.mxu1 %vm266_vm0, %v1388_v12 }
  0x29   : >> { %810 = vrot.lane.b32.xlu0 %v1539_v13, %s1428_s8  ;;  %887 = vrot.lane.b32.xlu1 %v1539_v13, %s1429_s9 }
  0x2d   : >> { %962 = vperm.xlu1 %1371, %v953_v14   ;;  %957 = vperm.xlu0 %1370, %v952_v15  }
  0x31   : >> { %967 = vperm.xlu1 %1371, %v954_v17   ;;  %978 = vperm.xlu0 %1370, %v973_v18  }
  0x35   : >> { %983 = vperm.xlu1 %1371, %v974_v19   ;;  %988 = vperm.xlu0 %1370, %v975_v20  }
  0x87   : >> { %v264_v21 = vpop.permute.xlu0 %263  ;;  %v406_v22 = vpop.permute.xlu1 %405 }
  0x88   : >> { %1324 = vmatprep.subr.msk.bf16.mxu0 %vm273_vm1, %v264_v21  ;;  %v275_v23 = vsel %vm273_vm1, %v264_v21, 0  ;;  %v415_v28 = vsel %vm273_vm1, %v406_v22, 0 }
  0x89   : >> { %1253 = vmatpush3.bf16.msra.mxu0 %v275_v23 }
  0x8b   : >> { %v262_v24 = vpop.permute.xlu0 %261  ;;  %v404_v25 = vpop.permute.xlu1 %403 }
  0x8c   : >> { %1254 = vmatprep.subr.bf16.mxu0 %v262_v24 }
  0x8d   : >> { %1255 = vmatpush3.bf16.msra.mxu0 %v262_v24 }
  0x8e   : >> { %1326 = vmatprep.subr.msk.bf16.mxu0 %vm273_vm1, %v406_v22 }
  0x8f   : >> { %v571_v29 = vpop.permute.xlu0 %570  ;;  %v569_v30 = vpop.permute.xlu1 %568 }
  0x90   : >> { %1257 = vmatmul.mubr.msk.bf16.vlgmr.msra.gmra.mxu0 %vm266_vm0, %v1380_v26  ;;  %v580_v35 = vsel %vm273_vm1, %v571_v29, 0 }
  0x91   : >> { %1269 = vmatpush3.bf16.msra.mxu0 %v415_v28  ;;  %1272 = vmatprep.mubr.msk.bf16.mxu0 %vm266_vm0, %v1382_v27 }
  0x92   : >> { %1270 = vmatprep.subr.bf16.mxu0 %v404_v25 }
  0x93   : >> { %v648_v31 = vpop.permute.xlu0 %647  ;;  %v646_v32 = vpop.permute.xlu1 %645 }
  0x94   : >> { %v657_v34 = vsel %vm273_vm1, %v648_v31, 0  ;;  %1329 = vmatprep.subr.msk.bf16.mxu1 %vm273_vm1, %v648_v31 }
  0x95   : >> { %1271 = vmatpush3.bf16.msra.mxu0 %v404_v25  ;;  %1293 = vmatpush3.bf16.msra.mxu1 %v657_v34 }
  0x96   : >> { %1328 = vmatprep.subr.msk.bf16.mxu0 %vm273_vm1, %v571_v29  ;;  %1294 = vmatprep.subr.bf16.mxu1 %v646_v32 }
  0x97   : >> { %v813_v37 = vpop.permute.xlu0 %812  ;;  %v890_v46 = vpop.permute.xlu1 %889 }
  0x98   : >> { %1273 = vmatmul.mubr.msk.bf16.vlgmr.msra.gmra.mxu0 %vm266_vm0, %v1383_v33  ;;  %v822_v39 = vsel %vm273_vm1, %v813_v37, 0  ;;  %v899_v49 = vsel %vm273_vm1, %v890_v46, 0 }
  0x99   : >> { %1285 = vmatpush3.bf16.msra.mxu0 %v580_v35  ;;  %1295 = vmatpush3.bf16.msra.mxu1 %v646_v32 }
  0x9a   : >> { %1286 = vmatprep.subr.bf16.mxu0 %v569_v30  ;;  %1288 = vmatprep.mubr.msk.bf16.mxu0 %vm266_vm0, %v1386_v36 }
  0x9b   : >> { %1331 = vmatprep.subr.msk.bf16.mxu1 %vm273_vm1, %v813_v37  ;;  %v811_v40 = vpop.permute.xlu0 %810  ;;  %v888_v50 = vpop.permute.xlu1 %887 }
  0x9c   : >> { %1297 = vmatmul.mubr.msk.bf16.vlgmr.msra.gmra.mxu1 %vm266_vm0, %v1389_v38 }
  0x9d   : >> { %1287 = vmatpush3.bf16.msra.mxu0 %v569_v30  ;;  %1309 = vmatpush3.bf16.msra.mxu1 %v822_v39 }
  0x9e   : >> { %1330 = vmatprep.subr.msk.bf16.mxu0 %vm273_vm1, %v1526_v10  ;;  %1310 = vmatprep.subr.bf16.mxu1 %v811_v40 }
  0x9f   : >> { %1312 = vmatprep.mubr.msk.bf16.mxu1 %vm266_vm0, %v1392_v41 }
  0xa0   : >> { %1289 = vmatmul.mubr.msk.bf16.vlgmr.msra.gmra.mxu0 %vm266_vm0, %v1387_v42 }
  0xa1   : >> { %1301 = vmatpush3.bf16.msra.mxu0 %v745_v43  ;;  %1311 = vmatpush3.bf16.msra.mxu1 %v811_v40 }
  0xa2   : >> { %1302 = vmatprep.subr.bf16.mxu0 %v1539_v13  ;;  %1304 = vmatprep.mubr.msk.bf16.mxu0 %vm266_vm0, %v1390_v44 }
  0xa4   : >> { %1313 = vmatmul.mubr.msk.bf16.vlgmr.msra.gmra.mxu1 %vm266_vm0, %v1393_v45 }
  0xa5   : >> { %1303 = vmatpush3.bf16.msra.mxu0 %v1539_v13 }
  0xa6   : >> { %1332 = vmatprep.subr.msk.bf16.mxu0 %vm273_vm1, %v890_v46 }
  0xa8   : >> { %1305 = vmatmul.mubr.msk.bf16.vlgmr.msra.gmra.mxu0 %vm266_vm0, %v1391_v47  ;;  %v958_v24 = vpop.permute.xlu0 %957  ;;  %v963_v33 = vpop.permute.xlu1 %962 }
  0xa9   : >> { %1317 = vmatpush3.bf16.msra.mxu0 %v899_v49  ;;  %1320 = vmatprep.mubr.msk.bf16.mxu0 %vm266_vm0, %v1394_v48 }
  0xaa   : >> { %1318 = vmatprep.subr.bf16.mxu0 %v888_v50 }
  0xac   : >> { %v979_v36 = vpop.permute.xlu0 %978  ;;  %v968_v44 = vpop.permute.xlu1 %967 }
  0xad   : >> { %1319 = vmatpush3.bf16.msra.mxu0 %v888_v50 }
  0xb0   : >> { %1321 = vmatmul.mubr.msk.bf16.vlgmr.msra.gmra.mxu0 %vm266_vm0, %v1395_v51  ;;  %v989_v47 = vpop.permute.xlu0 %988 }
  0xde   : >> { %v1266_v52 = vpop.f32.mrf.mxu1 }
  0xe0   : >> { %v377_v53 = vpop.f32.mrf.mxu1 }
  0xe2   : >> { %v1267_v54 = vpop.f32.mrf.mxu1 }
  0xe4   : >> { %v380_v55 = vpop.f32.mrf.mxu1 }
  0xe6   : >> { %v1282_v56 = vpop.f32.mrf.mxu1 }
  0xe8   : >> { %v539_v57 = vpop.f32.mrf.mxu1 }
  0xea   : >> { %v1283_v58 = vpop.f32.mrf.mxu1 }
  0xec   : >> { %v542_v0 = vpop.f32.mrf.mxu1 }
 0x150   : >> { %v1258_v59 = vpop.f32.mrf.mxu0 }
 0x151   : >> { %v386_v4 = vadd.f32 %v1266_v52, %v1258_v59 }
 0x152   : >> { %v311_v60 = vpop.f32.mrf.mxu0 }
 0x153   : >> { %v378_v7 = vadd.f32 %v377_v53, %v311_v60 }
 0x154   : >> { %v1259_v61 = vpop.f32.mrf.mxu0 }
 0x155   : >> { %v984_v61 = vpop.permute.xlu1 %983 }
 0x156   : >> { %v314_v62 = vpop.f32.mrf.mxu0 }
 0x157   : >> { %v381_v14 = vadd.f32 %v380_v55, %v314_v62 }
 0x158   : >> { %v1274_v63 = vpop.f32.mrf.mxu0 }
 0x159   : >> { %v467_v8 = vadd.f32 %v1274_v63, %v386_v4 }
 0x15a   : >> { %v451_v1 = vpop.f32.mrf.mxu0 }
 0x15b   : >> { %v465_v11 = vadd.f32 %v451_v1, %v378_v7  ;;  %v555_v15 = vadd.f32 %v1282_v56, %v467_v8 }
 0x15c   : >> { %v1275_v2 = vpop.f32.mrf.mxu0  ;;  %v1298_v3 = vpop.f32.mrf.mxu1 }
 0x15d   : >> { %v553_v18 = vadd.f32 %v539_v57, %v465_v11 }
 0x15e   : >> { %v454_v5 = vpop.f32.mrf.mxu0  ;;  %v693_v6 = vpop.f32.mrf.mxu1 }
 0x15f   : >> { %v466_v19 = vadd.f32 %v454_v5, %v381_v14 }
 0x160   : >> { %v1290_v9 = vpop.f32.mrf.mxu0  ;;  %v1299_v10 = vpop.f32.mrf.mxu1 }
 0x161   : >> { %v632_v20 = vadd.f32 %v1290_v9, %v555_v15  ;;  %v554_v27 = vadd.f32 %v542_v0, %v466_v19 }
 0x162   : >> { %v616_v12 = vpop.f32.mrf.mxu0  ;;  %v696_v13 = vpop.f32.mrf.mxu1 }
 0x163   : >> { %v630_v23 = vadd.f32 %v616_v12, %v553_v18  ;;  %v709_v28 = vadd.f32 %v1298_v3, %v632_v20 }
 0x164   : >> { %v1291_v16 = vpop.f32.mrf.mxu0  ;;  %v1314_v17 = vpop.f32.mrf.mxu1 }
 0x165   : >> { %v707_v30 = vadd.f32 %v693_v6, %v630_v23 }
 0x166   : >> { %v619_v21 = vpop.f32.mrf.mxu0  ;;  %v858_v22 = vpop.f32.mrf.mxu1 }
 0x167   : >> { %v631_v31 = vadd.f32 %v619_v21, %v554_v27 }
 0x168   : >> { %v1306_v25 = vpop.f32.mrf.mxu0  ;;  %v1315_v26 = vpop.f32.mrf.mxu1 }
 0x169   : >> { %v797_v32 = vadd.f32 %v1306_v25, %v709_v28  ;;  %v708_v38 = vadd.f32 %v696_v13, %v631_v31 }
 0x16a   : >> { %v781_v29 = vpop.f32.mrf.mxu0  ;;  %v861_v49 = vpop.f32.mrf.mxu1 }
 0x16b   : >> { %v795_v35 = vadd.f32 %v781_v29, %v707_v30  ;;  %v874_v39 = vadd.f32 %v1314_v17, %v797_v32 }
 0x16c   : >> { %v1307_v34 = vpop.f32.mrf.mxu0 }
 0x16d   : >> { %v872_v41 = vadd.f32 %v858_v22, %v795_v35 }
 0x16e   : >> { %v784_v37 = vpop.f32.mrf.mxu0 }
 0x16f   : >> { %v796_v42 = vadd.f32 %v784_v37, %v708_v38 }
 0x170   : >> { %v1322_v40 = vpop.f32.mrf.mxu0 }
 0x171   : >> { %v951_v43 = vadd.f32 %v1322_v40, %v874_v39  ;;  %v873_v51 = vadd.f32 %v861_v49, %v796_v42 }
 0x172   : >> { %v935_v45 = vpop.f32.mrf.mxu0 }
 0x173   : >> { %v949_v46 = vadd.f32 %v935_v45, %v872_v41  ;;  %v972_v48 = vmul.f32 %v968_v44, %v951_v43 }
 0x174   : >> { %v1323_v50 = vpop.f32.mrf.mxu0 }
 0x175   : >> { %v970_v52 = vmul.f32 %v958_v24, %v949_v46  ;;  %v993_v53 = vadd.f32 %v989_v47, %v972_v48 }
 0x176   : >> { %v938_v54 = vpop.f32.mrf.mxu0 }
 0x177   : >> { %v991_v55 = vadd.f32 %v979_v36, %v970_v52  ;;  %v996_v56 = vmax.f32 %v993_v53, 0.0  ;;  %v950_v57 = vadd.f32 %v938_v54, %v873_v51 }
 0x179   : >> { %v994_v58 = vmax.f32 %v991_v55, 0.0  ;;  %v1214_v59 = vpack.c.bf16 %v996_v56, %v996_v56  ;;  %v971_v60 = vmul.f32 %v963_v33, %v950_v57 }
 0x17b   : >> { %v1212_v62 = vpack.c.bf16 %v994_v58, %v994_v58  ;;  %1016 = vst.msk [vmem:[%s1012_s19 + $0x8] sm:$0xf] %vm1013_vm2, %v1214_v59  ;;  %v992_v63 = vadd.f32 %v984_v61, %v971_v60 }
 0x17d   : >> { %1014 = vst.msk [vmem:[%s1012_s19] sm:$0xf] %vm1013_vm2, %v1212_v62  ;;  %v995_v0 = vmax.f32 %v992_v63, 0.0  ;;  %229 = sbr.rel (!%p227_p5) target bundleno = 17 (0x11), region = 85 }
 0x17f   : >> { %v1213_v1 = vpack.c.bf16 %v995_v0, %v995_v0 }
 0x181   : >> { %1015 = vst.msk [vmem:[%s1012_s19 + $0x4] sm:$0xf] %vm1013_vm2, %v1213_v1 }
 0x182 PF: > { %s14_s17 = sadd.s32 1, %s1422_s17   ;;  %s1653_s15 = smov %s1418_s16 }
 0x183   : > { %p11_p6 = scmp.ge.s32.totalorder %s14_s17, 4   ;;  %s1654_s16 = smov %s1656_s18 }
 0x185   :  { %13 = sbr.rel (!%p11_p6) target bundleno = 2 (0x2), region = 96 }

// kernel: forward.29
= control target key start
LH: loop header
LB: loop body
LE: loop exit
PB: predicated region body
PF: predicated region fallthrough
CT: control target
= control target key end

     0   :  { %s1871_s15 = smov 0   ;;  %s1873_s16 = smov 0   ;;  %s2240_s0 = inlined_call_operand.vmem [shape: bf16[2,10,24,10], index: 0, kind: input, shape index: {}]   ;;  %s2241_s1 = inlined_call_operand.vmem [shape: bf16[3,3,48,24], index: 1, kind: input, shape index: {}]   ;;  %s2242_s2 = inlined_call_operand.vmem [shape: f32[48,1], index: 2, kind: input, shape index: {}]   ;;  %s2243_s3 = inlined_call_operand.vmem [shape: f32[48,1], index: 3, kind: input, shape index: {}]   ;;  %s2244_s4 = inlined_call_operand.vmem [shape: bf16[2,8,48,8], index: 4, kind: output, shape index: {}]  }
   0x1   :  { %s1875_s17 = smov 0  }
   0x2 LB: > { %s26_s18 = sadd.s32 1, %s1831_s16  ;;  %p1407_p0 = scmp.ge.s32.totalorder %s1835_s17, 1  ;;  %s1835_s17 = sphi %s1875_s17, %s14_s17   ;;  %s1831_s16 = sphi %s1873_s16, %s2246_s16   ;;  %s1827_s15 = sphi %s1871_s15, %s2245_s15  }
   0x3   : > { %p28_p1 = scmp.ge.s32.totalorder %s26_s18, 2  ;;  %p176_p2 = scmp.lt.s32.totalorder %s1835_s17, 3 }
   0x5   : > { %s2248_s18 = smov (%p28_p1, %s26_s18), 0  ;;  %p177_p3 = pnand %p1407_p0, %p176_p2 }
   0x6   : > { %p207_p4 = scmp.lt.s32.totalorder (!%p177_p3), %s1827_s15, 1  ;;  %s1899_s27 = smov (!%p177_p3), 0  }
   0x7   : > { %180 = sbr.rel (%p177_p3) target bundleno = 458 (0x1ca), region = 36 }
   0xc   : > { %s2250_s15 = smov (!%p207_p4, %s1827_s15), 1 }
   0xd   : > { %s1735_s19 = smul.u32 120, %s2250_s15 }
   0xe   : > { %s1736_s20 = smul.u32 192, %s2250_s15 }
   0xf   : > { %s1892_s23 = scalar_lea.vmem %s2240_s0, %s1735_s19 }
  0x10   : > { %s1897_s26 = scalar_lea.vmem %s2244_s4, %s1736_s20 }
  0x11 LB: >> { %v1841_v0 = vmov 0.0   ;;  %s1534_s28 = smul.u32 12, %s1839_s27  ;;  %vm1842_vm0 = vmmov 0   ;;  %s1843_s30 = smov 127   ;;  %v1172_v7 = vld [vmem:[%s2242_s2 + $0x8] sm:$0xff]  ;;  %v1171_v8 = vld [vmem:[%s2242_s2] sm:$0xff]  ;;  %s1839_s27 = sphi %s1899_s27, %s230_s27  }
  0x12   : >> { %1587 = vmatprep.subr.bf16.mxu0 %v1841_v0  ;;  %1731 = vmatprep.subr.bf16.mxu1 %v1841_v0  ;;  %s1844_s5 = smov 126   ;;  %v1845_v9 = vmov 0   ;;  %v1173_v10 = vld [vmem:[%s2242_s2 + $0x10] sm:$0xff]  ;;  %v1174_v11 = vld [vmem:[%s2242_s2 + $0x18] sm:$0xff]  ;;  %v1175_v12 = vld [vmem:[%s2242_s2 + $0x20] sm:$0xff]  ;;  %vm289_vm1 = vcmask 1043456  }
  0x13   : >> { %1595 = vmatprep.mubr.msk.bf16.mxu1 %vm1842_vm0, %v1841_v0  ;;  %1591 = vmatprep.mubr.msk.bf16.mxu0 %vm1842_vm0, %v1841_v0  ;;  %s234_s29 = scalar_lea.vmem %s1892_s23, %s1534_s28  ;;  %v1176_v13 = vld [vmem:[%s2242_s2 + $0x28] sm:$0xff]  ;;  %v1213_v14 = vld [vmem:[%s2243_s3] sm:$0xff]  ;;  %v1215_v18 = vld [vmem:[%s2243_s3 + $0x10] sm:$0xff]  ;;  %vm279_vm2 = vcmask 195584   ;;  %vm1288_vm3 = vcmask 60416  }
  0x14   : >> { %v1776_v1 = vld [vmem:[%s234_s29 + $0x8] ss:$0 sps:$4 sm:$0xff]   ;;  %v1912_v2 = vld [vmem:[%s234_s29] sm:$0xff]   ;;  %v1914_v3 = vld [vmem:[%s234_s29 + $0x14] ss:$0 sps:$4 sm:$0xff]   ;;  %1775 = vset.pattern.permute.xlu1 %v1845_v9  ;;  %1774 = vset.pattern.permute.xlu0 %v1845_v9 }
  0x15   : >> { %276 = vrot.lane.b32.xlu0 %v1776_v1, %s1843_s30  ;;  %459 = vrot.lane.b32.xlu1 %v1776_v1, %s1844_s5  ;;  %v1918_v4 = vld [vmem:[%s234_s29 + $0xc] sm:$0xff]   ;;  %v1924_v5 = vld [vmem:[%s234_s29 + $0x20] ss:$0 sps:$4 sm:$0xff]   ;;  %v376_v26 = vsel %vm289_vm1, %v1776_v1, 0  ;;  %v585_v36 = vsel %vm289_vm1, %v1914_v3, 0 }
  0x16   : >> { %v1926_v6 = vld [vmem:[%s234_s29 + $0x18] sm:$0xff]   ;;  %v1214_v15 = vld [vmem:[%s2243_s3 + $0x8] sm:$0xff]  ;;  %v1782_v21 = vld [vmem:[%s2241_s1 + $0x20] sm:$0xff]   ;;  %v902_v41 = vsel %vm289_vm1, %v1924_v5, 0 }
  0x17   : >> { %v1216_v19 = vld [vmem:[%s2243_s3 + $0x18] sm:$0xff]  ;;  %v1217_v24 = vld [vmem:[%s2243_s3 + $0x20] sm:$0xff]  ;;  %v1218_v25 = vld [vmem:[%s2243_s3 + $0x28] sm:$0xff] }
  0x18   : >> { %v1783_v23 = vld [vmem:[%s2241_s1 + $0x18] sm:$0xff]   ;;  %v1784_v30 = vld [vmem:[%s2241_s1 + $0x28] sm:$0xff]   ;;  %v1785_v31 = vld [vmem:[%s2241_s1 + $0x30] sm:$0xff]  }
  0x19   : >> { %274 = vrot.lane.b32.xlu0 %v1912_v2, %s1843_s30  ;;  %457 = vrot.lane.b32.xlu1 %v1912_v2, %s1844_s5  ;;  %v1786_v34 = vld [vmem:[%s2241_s1] sm:$0xff]   ;;  %v1787_v35 = vld [vmem:[%s2241_s1 + $0x38] sm:$0xff]  }
  0x1a   : >> { %v1788_v37 = vld [vmem:[%s2241_s1 + $0x8] sm:$0xff]   ;;  %v1789_v38 = vld [vmem:[%s2241_s1 + $0x40] sm:$0xff]   ;;  %v1790_v39 = vld [vmem:[%s2241_s1 + $0x10] sm:$0xff]  }
  0x1b   : >> { %v1791_v40 = vld [vmem:[%s2241_s1 + $0x60] sm:$0xff]   ;;  %v1792_v43 = vld [vmem:[%s2241_s1 + $0x48] sm:$0xff]   ;;  %v1794_v47 = vld [vmem:[%s2241_s1 + $0x50] sm:$0xff]  }
  0x1c   : >> { %v1793_v44 = vld [vmem:[%s2241_s1 + $0x68] sm:$0xff]   ;;  %v1795_v48 = vld [vmem:[%s2241_s1 + $0x70] sm:$0xff]   ;;  %v1796_v50 = vld [vmem:[%s2241_s1 + $0x58] sm:$0xff]  }
  0x1d   : >> { %674 = vrot.lane.b32.xlu0 %v1914_v3, %s1843_s30  ;;  %672 = vrot.lane.b32.xlu1 %v1918_v4, %s1843_s30  ;;  %v1797_v51 = vld [vmem:[%s2241_s1 + $0x90] sm:$0xff]   ;;  %v1798_v55 = vld [vmem:[%s2241_s1 + $0x78] sm:$0xff]  }
  0x1e   : >> { %v1799_v56 = vld [vmem:[%s2241_s1 + $0x98] sm:$0xff]   ;;  %v1800_v59 = vld [vmem:[%s2241_s1 + $0x80] sm:$0xff]   ;;  %v1802_v61 = vld [vmem:[%s2241_s1 + $0x88] sm:$0xff]  }
  0x1f   : >> { %v1801_v60 = vld [vmem:[%s2241_s1 + $0xa0] sm:$0xff]   ;;  %v1804_v63 = vld [vmem:[%s2241_s1 + $0xa8] sm:$0xff]  }
  0x20   : >> { %v1803_v62 = vld [vmem:[%s2241_s1 + $0xc0] sm:$0xff]   ;;  %v1805_v1 = vld [vmem:[%s2241_s1 + $0xc8] sm:$0xff]  }
  0x21   : >> { %776 = vrot.lane.b32.xlu0 %v1914_v3, %s1844_s5  ;;  %774 = vrot.lane.b32.xlu1 %v1918_v4, %s1844_s5  ;;  %v1807_v3 = vld [vmem:[%s2241_s1 + $0xd0] sm:$0xff]  }
  0x25   : >> { %991 = vrot.lane.b32.xlu0 %v1924_v5, %s1843_s30  ;;  %1093 = vrot.lane.b32.xlu1 %v1924_v5, %s1844_s5 }
  0x29   : >> { %989 = vrot.lane.b32.xlu0 %v1926_v6, %s1843_s30  ;;  %1091 = vrot.lane.b32.xlu1 %v1926_v6, %s1844_s5  ;;  %s1541_s30 = smul.u32 24, %s1839_s27  ;;  %s230_s27 = sadd.s32 1, %s1839_s27  }
  0x2a   : >> { %p227_p5 = scmp.ge.s32.totalorder %s230_s27, 8  }
  0x2b   : >> { %s2206_s5 = scalar_lea.vmem %s1897_s26, %s1541_s30 }
  0x2d   : >> { %1184 = vperm.xlu1 %1775, %v1172_v7   ;;  %1179 = vperm.xlu0 %1774, %v1171_v8  }
  0x31   : >> { %1189 = vperm.xlu1 %1775, %v1173_v10   ;;  %1194 = vperm.xlu0 %1774, %v1174_v11  }
  0x35   : >> { %1199 = vperm.xlu1 %1775, %v1175_v12   ;;  %1204 = vperm.xlu0 %1774, %v1176_v13  }
  0x39   : >> { %1221 = vperm.xlu1 %1775, %v1213_v14   ;;  %1226 = vperm.xlu0 %1774, %v1214_v15  }
  0x3d   : >> { %1231 = vperm.xlu1 %1775, %v1215_v18   ;;  %1236 = vperm.xlu0 %1774, %v1216_v19  }
  0x41   : >> { %1241 = vperm.xlu1 %1775, %v1217_v24   ;;  %1246 = vperm.xlu0 %1774, %v1218_v25  }
  0x87   : >> { %v277_v16 = vpop.permute.xlu0 %276  ;;  %v460_v22 = vpop.permute.xlu1 %459 }
  0x88   : >> { %v291_v17 = vsel %vm289_vm1, %v277_v16, 0  ;;  %v472_v27 = vsel %vm289_vm1, %v460_v22, 0 }
  0x89   : >> { %1588 = vmatpush3.bf16.msra.mxu0 %v291_v17  ;;  %1733 = vmatpush3.bf16.msra.mxu1 %v291_v17 }
  0x8a   : >> { %1589 = vmatprep.subr.bf16.mxu0 %v1841_v0  ;;  %1732 = vmatprep.subr.bf16.mxu1 %v1841_v0 }
  0x8b   : >> { %v275_v20 = vpop.permute.xlu0 %274  ;;  %v458_v28 = vpop.permute.xlu1 %457 }
  0x8d   : >> { %1590 = vmatpush3.bf16.msra.mxu0 %v275_v20  ;;  %1734 = vmatpush3.bf16.msra.mxu1 %v275_v20 }
  0x8e   : >> { %1603 = vmatprep.subr.bf16.mxu1 %v1841_v0  ;;  %1619 = vmatprep.subr.bf16.mxu0 %v1841_v0 }
  0x8f   : >> { %v675_v29 = vpop.permute.xlu0 %674  ;;  %v673_v33 = vpop.permute.xlu1 %672 }
  0x90   : >> { %1596 = vmatmul.mubr.msk.bf16.vlgmr.msra.gmra.mxu1 %vm279_vm2, %v1782_v21  ;;  %1592 = vmatmul.mubr.msk.bf16.vlgmr.msra.gmra.mxu0 %vm279_vm2, %v1783_v23  ;;  %v687_v32 = vsel %vm289_vm1, %v675_v29, 0 }
  0x91   : >> { %1604 = vmatpush3.bf16.msra.mxu1 %v376_v26  ;;  %1620 = vmatpush3.bf16.msra.mxu0 %v472_v27 }
  0x92   : >> { %1599 = vmatprep.mubr.msk.bf16.mxu1 %vm1842_vm0, %v1841_v0  ;;  %1605 = vmatprep.subr.bf16.mxu1 %v1841_v0 }
  0x93   : >> { %1621 = vmatprep.subr.bf16.mxu0 %v1841_v0  ;;  %1623 = vmatprep.mubr.msk.bf16.mxu0 %vm1842_vm0, %v1841_v0  ;;  %v777_v42 = vpop.permute.xlu0 %776  ;;  %v775_v46 = vpop.permute.xlu1 %774 }
  0x94   : >> { %v789_v45 = vsel %vm289_vm1, %v777_v42, 0 }
  0x95   : >> { %1606 = vmatpush3.bf16.msra.mxu1 %v1912_v2  ;;  %1622 = vmatpush3.bf16.msra.mxu0 %v458_v28  ;;  %v1806_v2 = vld [vmem:[%s2241_s1 + $0xb0] sm:$0xff]  }
  0x96   : >> { %1635 = vmatprep.subr.bf16.mxu1 %v1841_v0  ;;  %1651 = vmatprep.subr.bf16.mxu0 %v1841_v0 }
  0x97   : >> { %v1094_v49 = vpop.permute.xlu1 %1093  ;;  %v992_v54 = vpop.permute.xlu0 %991 }
  0x98   : >> { %1600 = vmatmul.mubr.msk.bf16.gmra.mxu1 %vm279_vm2, %v1784_v30  ;;  %1624 = vmatmul.mubr.msk.bf16.vlgmr.msra.gmra.mxu0 %vm279_vm2, %v1785_v31  ;;  %v1106_v52 = vsel %vm289_vm1, %v1094_v49, 0  ;;  %v1004_v57 = vsel %vm289_vm1, %v992_v54, 0 }
  0x99   : >> { %1607 = vmatprep.mubr.msk.bf16.mxu1 %vm1842_vm0, %v1841_v0  ;;  %1652 = vmatpush3.bf16.msra.mxu0 %v687_v32 }
  0x9a   : >> { %1627 = vmatprep.mubr.msk.bf16.mxu0 %vm1842_vm0, %v1841_v0  ;;  %1653 = vmatprep.subr.bf16.mxu0 %v1841_v0 }
  0x9b   : >> { %v1092_v53 = vpop.permute.xlu1 %1091  ;;  %v990_v58 = vpop.permute.xlu0 %989 }
  0x9d   : >> { %1654 = vmatpush3.bf16.msra.mxu0 %v673_v33 }
  0x9e   : >> { %1683 = vmatprep.subr.bf16.mxu0 %v1841_v0 }
  0xa0   : >> { %1608 = vmatmul.mubr.msk.bf16.vlgmr.msra.gmra.mxu1 %vm279_vm2, %v1786_v34  ;;  %1628 = vmatmul.mubr.msk.bf16.gmra.mxu0 %vm279_vm2, %v1787_v35 }
  0xa1   : >> { %1636 = vmatpush3.bf16.msra.mxu1 %v585_v36  ;;  %1611 = vmatprep.mubr.msk.bf16.mxu1 %vm1842_vm0, %v1841_v0 }
  0xa2   : >> { %1631 = vmatprep.mubr.msk.bf16.mxu0 %vm1842_vm0, %v1841_v0  ;;  %1637 = vmatprep.subr.bf16.mxu1 %v1841_v0 }
  0xa5   : >> { %1638 = vmatpush3.bf16.msra.mxu1 %v1918_v4  ;;  %v1808_v4 = vld [vmem:[%s2241_s1 + $0xb8] sm:$0xff]  }
  0xa6   : >> { %1667 = vmatprep.subr.bf16.mxu1 %v1841_v0 }
  0xa8   : >> { %1612 = vmatmul.mubr.msk.bf16.gmra.mxu1 %vm279_vm2, %v1788_v37  ;;  %1632 = vmatmul.mubr.msk.bf16.gmra.mxu0 %vm279_vm2, %v1789_v38 }
  0xa9   : >> { %1615 = vmatprep.mubr.msk.bf16.mxu1 %vm1842_vm0, %v1841_v0  ;;  %1655 = vmatprep.mubr.msk.bf16.mxu0 %vm1842_vm0, %v1841_v0 }
  0xb0   : >> { %1616 = vmatmul.mubr.msk.bf16.gmra.mxu1 %vm279_vm2, %v1790_v39  ;;  %1656 = vmatmul.mubr.msk.bf16.vlgmr.msra.gmra.mxu0 %vm279_vm2, %v1791_v40 }
  0xb1   : >> { %1639 = vmatprep.mubr.msk.bf16.mxu1 %vm1842_vm0, %v1841_v0  ;;  %1684 = vmatpush3.bf16.msra.mxu0 %v902_v41 }
  0xb2   : >> { %1659 = vmatprep.mubr.msk.bf16.mxu0 %vm1842_vm0, %v1841_v0  ;;  %1685 = vmatprep.subr.bf16.mxu0 %v1841_v0 }
  0xb5   : >> { %1686 = vmatpush3.bf16.msra.mxu0 %v1926_v6 }
  0xb6   : >> { %1715 = vmatprep.subr.bf16.mxu0 %v1841_v0 }
  0xb8   : >> { %1640 = vmatmul.mubr.msk.bf16.vlgmr.msra.gmra.mxu1 %vm279_vm2, %v1792_v43  ;;  %1660 = vmatmul.mubr.msk.bf16.gmra.mxu0 %vm279_vm2, %v1793_v44 }
  0xb9   : >> { %1668 = vmatpush3.bf16.msra.mxu1 %v789_v45  ;;  %1643 = vmatprep.mubr.msk.bf16.mxu1 %vm1842_vm0, %v1841_v0 }
  0xba   : >> { %1663 = vmatprep.mubr.msk.bf16.mxu0 %vm1842_vm0, %v1841_v0  ;;  %1669 = vmatprep.subr.bf16.mxu1 %v1841_v0 }
  0xbd   : >> { %1670 = vmatpush3.bf16.msra.mxu1 %v775_v46 }
  0xbe   : >> { %1699 = vmatprep.subr.bf16.mxu1 %v1841_v0 }
  0xc0   : >> { %1644 = vmatmul.mubr.msk.bf16.gmra.mxu1 %vm279_vm2, %v1794_v47  ;;  %1664 = vmatmul.mubr.msk.bf16.gmra.mxu0 %vm279_vm2, %v1795_v48 }
  0xc1   : >> { %1647 = vmatprep.mubr.msk.bf16.mxu1 %vm1842_vm0, %v1841_v0  ;;  %1687 = vmatprep.mubr.msk.bf16.mxu0 %vm1842_vm0, %v1841_v0 }
  0xc8   : >> { %1648 = vmatmul.mubr.msk.bf16.gmra.mxu1 %vm279_vm2, %v1796_v50  ;;  %1688 = vmatmul.mubr.msk.bf16.vlgmr.msra.gmra.mxu0 %vm279_vm2, %v1797_v51 }
  0xc9   : >> { %1671 = vmatprep.mubr.msk.bf16.mxu1 %vm1842_vm0, %v1841_v0  ;;  %1716 = vmatpush3.bf16.msra.mxu0 %v1106_v52 }
  0xca   : >> { %1691 = vmatprep.mubr.msk.bf16.mxu0 %vm1842_vm0, %v1841_v0  ;;  %1717 = vmatprep.subr.bf16.mxu0 %v1841_v0 }
  0xcd   : >> { %1718 = vmatpush3.bf16.msra.mxu0 %v1092_v53 }
  0xd0   : >> { %1672 = vmatmul.mubr.msk.bf16.vlgmr.msra.gmra.mxu1 %vm279_vm2, %v1798_v55  ;;  %1692 = vmatmul.mubr.msk.bf16.gmra.mxu0 %vm279_vm2, %v1799_v56 }
  0xd1   : >> { %1700 = vmatpush3.bf16.msra.mxu1 %v1004_v57  ;;  %1675 = vmatprep.mubr.msk.bf16.mxu1 %vm1842_vm0, %v1841_v0 }
  0xd2   : >> { %1695 = vmatprep.mubr.msk.bf16.mxu0 %vm1842_vm0, %v1841_v0  ;;  %1701 = vmatprep.subr.bf16.mxu1 %v1841_v0 }
  0xd5   : >> { %1702 = vmatpush3.bf16.msra.mxu1 %v990_v58 }
  0xd8   : >> { %1676 = vmatmul.mubr.msk.bf16.gmra.mxu1 %vm279_vm2, %v1800_v59  ;;  %1696 = vmatmul.mubr.msk.bf16.gmra.mxu0 %vm279_vm2, %v1801_v60 }
  0xd9   : >> { %1679 = vmatprep.mubr.msk.bf16.mxu1 %vm1842_vm0, %v1841_v0  ;;  %1719 = vmatprep.mubr.msk.bf16.mxu0 %vm1842_vm0, %v1841_v0 }
  0xe0   : >> { %1680 = vmatmul.mubr.msk.bf16.gmra.mxu1 %vm279_vm2, %v1802_v61  ;;  %1720 = vmatmul.mubr.msk.bf16.vlgmr.msra.gmra.mxu0 %vm279_vm2, %v1803_v62 }
  0xe1   : >> { %1703 = vmatprep.mubr.msk.bf16.mxu1 %vm1842_vm0, %v1841_v0  ;;  %1723 = vmatprep.mubr.msk.bf16.mxu0 %vm1842_vm0, %v1841_v0 }
  0xe8   : >> { %1704 = vmatmul.mubr.msk.bf16.vlgmr.msra.gmra.mxu1 %vm279_vm2, %v1804_v63  ;;  %1724 = vmatmul.mubr.msk.bf16.gmra.mxu0 %vm279_vm2, %v1805_v1 }
  0xe9   : >> { %1707 = vmatprep.mubr.msk.bf16.mxu1 %vm1842_vm0, %v1841_v0  ;;  %1727 = vmatprep.mubr.msk.bf16.mxu0 %vm1842_vm0, %v1841_v0 }
  0xf0   : >> { %1708 = vmatmul.mubr.msk.bf16.gmra.mxu1 %vm279_vm2, %v1806_v2  ;;  %1728 = vmatmul.mubr.msk.bf16.gmra.mxu0 %vm279_vm2, %v1807_v3 }
  0xf1   : >> { %1711 = vmatprep.mubr.msk.bf16.mxu1 %vm1842_vm0, %v1841_v0 }
  0xf8   : >> { %1712 = vmatmul.mubr.msk.bf16.gmra.mxu1 %vm279_vm2, %v1808_v4 }
 0x150   : >> { %v335_v5 = vpop.f32.mrf.mxu1  ;;  %v327_v6 = vpop.f32.mrf.mxu0 }
 0x152   : >> { %v1597_v7 = vpop.f32.mrf.mxu1  ;;  %v1593_v8 = vpop.f32.mrf.mxu0 }
 0x154   : >> { %v338_v9 = vpop.f32.mrf.mxu1  ;;  %v330_v10 = vpop.f32.mrf.mxu0 }
 0x156   : >> { %v1598_v11 = vpop.f32.mrf.mxu1  ;;  %v1594_v12 = vpop.f32.mrf.mxu0 }
 0x158   : >> { %v343_v13 = vpop.f32.mrf.mxu1  ;;  %v508_v14 = vpop.f32.mrf.mxu0 }
 0x15a   : >> { %v1601_v15 = vpop.f32.mrf.mxu1  ;;  %v1625_v16 = vpop.f32.mrf.mxu0 }
 0x15c   : >> { %v346_v17 = vpop.f32.mrf.mxu1  ;;  %v511_v0 = vpop.f32.mrf.mxu0 }
 0x15e   : >> { %v1602_v18 = vpop.f32.mrf.mxu1  ;;  %v1626_v19 = vpop.f32.mrf.mxu0 }
 0x160   : >> { %v412_v20 = vpop.f32.mrf.mxu1  ;;  %v516_v21 = vpop.f32.mrf.mxu0 }
 0x161   : >> { %v413_v22 = vadd.f32 %v412_v20, %v327_v6 }
 0x162   : >> { %v1609_v23 = vpop.f32.mrf.mxu1  ;;  %v1629_v24 = vpop.f32.mrf.mxu0 }
 0x163   : >> { %v2158_v25 = vadd.f32 %v508_v14, %v413_v22 }
 0x164   : >> { %v415_v26 = vpop.f32.mrf.mxu1  ;;  %v519_v27 = vpop.f32.mrf.mxu0 }
 0x165   : >> { %v416_v28 = vadd.f32 %v415_v26, %v330_v10 }
 0x166   : >> { %v1610_v29 = vpop.f32.mrf.mxu1  ;;  %v1630_v30 = vpop.f32.mrf.mxu0 }
 0x167   : >> { %v2160_v31 = vadd.f32 %v511_v0, %v416_v28  ;;  %v1185_v29 = vpop.permute.xlu1 %1184 }
 0x168   : >> { %v420_v32 = vpop.f32.mrf.mxu1  ;;  %v524_v33 = vpop.f32.mrf.mxu0 }
 0x169   : >> { %v421_v34 = vadd.f32 %v420_v32, %v335_v5 }
 0x16a   : >> { %v1613_v35 = vpop.f32.mrf.mxu1  ;;  %v1633_v36 = vpop.f32.mrf.mxu0 }
 0x16b   : >> { %v2162_v37 = vadd.f32 %v516_v21, %v421_v34  ;;  %v1180_v36 = vpop.permute.xlu0 %1179 }
 0x16c   : >> { %v423_v38 = vpop.f32.mrf.mxu1  ;;  %v527_v39 = vpop.f32.mrf.mxu0 }
 0x16d   : >> { %v424_v40 = vadd.f32 %v423_v38, %v338_v9 }
 0x16e   : >> { %v1614_v41 = vpop.f32.mrf.mxu1  ;;  %v1634_v42 = vpop.f32.mrf.mxu0 }
 0x16f   : >> { %v2164_v43 = vadd.f32 %v519_v27, %v424_v40  ;;  %v1190_v42 = vpop.permute.xlu1 %1189 }
 0x170   : >> { %v428_v44 = vpop.f32.mrf.mxu1  ;;  %v723_v45 = vpop.f32.mrf.mxu0 }
 0x171   : >> { %v429_v46 = vadd.f32 %v428_v44, %v343_v13 }
 0x172   : >> { %v1617_v47 = vpop.f32.mrf.mxu1  ;;  %v1657_v48 = vpop.f32.mrf.mxu0 }
 0x173   : >> { %v2166_v49 = vadd.f32 %v524_v33, %v429_v46 }
 0x174   : >> { %v431_v50 = vpop.f32.mrf.mxu1  ;;  %v726_v51 = vpop.f32.mrf.mxu0 }
 0x175   : >> { %v432_v52 = vadd.f32 %v431_v50, %v346_v17 }
 0x176   : >> { %v1618_v53 = vpop.f32.mrf.mxu1  ;;  %v1658_v54 = vpop.f32.mrf.mxu0 }
 0x177   : >> { %v2168_v55 = vadd.f32 %v527_v39, %v432_v52  ;;  %v2191_v54 = vpop.permute.xlu0 %1194 }
 0x178   : >> { %v621_v56 = vpop.f32.mrf.mxu1  ;;  %v2170_v57 = vpop.f32.mrf.mxu0 }
 0x179   : >> { %v644_v33 = vadd.f32 %v621_v56, %v2158_v25 }
 0x17a   : >> { %v1641_v58 = vpop.f32.mrf.mxu1  ;;  %v1661_v59 = vpop.f32.mrf.mxu0 }
 0x17b   : >> { %v746_v41 = vadd.f32 %v723_v45, %v644_v33  ;;  %v2193_v59 = vpop.permute.xlu1 %1199 }
 0x17c   : >> { %v624_v60 = vpop.f32.mrf.mxu1  ;;  %v2172_v61 = vpop.f32.mrf.mxu0 }
 0x17d   : >> { %v645_v40 = vadd.f32 %v624_v60, %v2160_v31 }
 0x17e   : >> { %v1642_v62 = vpop.f32.mrf.mxu1  ;;  %v1662_v63 = vpop.f32.mrf.mxu0 }
 0x17f   : >> { %v747_v53 = vadd.f32 %v726_v51, %v645_v40  ;;  %v2197_v51 = vpop.permute.xlu0 %1204 }
 0x180   : >> { %v629_v1 = vpop.f32.mrf.mxu1  ;;  %v2174_v2 = vpop.f32.mrf.mxu0 }
 0x181   : >> { %v646_v52 = vadd.f32 %v629_v1, %v2162_v37 }
 0x182   : >> { %v1645_v3 = vpop.f32.mrf.mxu1  ;;  %v1665_v4 = vpop.f32.mrf.mxu0 }
 0x183   : >> { %v748_v63 = vadd.f32 %v2170_v57, %v646_v52 }
 0x184   : >> { %v632_v5 = vpop.f32.mrf.mxu1  ;;  %v2176_v6 = vpop.f32.mrf.mxu0 }
 0x185   : >> { %v647_v60 = vadd.f32 %v632_v5, %v2164_v43 }
 0x186   : >> { %v1646_v7 = vpop.f32.mrf.mxu1  ;;  %v1666_v8 = vpop.f32.mrf.mxu0 }
 0x188   : >> { %v637_v9 = vpop.f32.mrf.mxu1  ;;  %v938_v10 = vpop.f32.mrf.mxu0 }
 0x18a   : >> { %v1649_v11 = vpop.f32.mrf.mxu1  ;;  %v1689_v12 = vpop.f32.mrf.mxu0 }
 0x18b   : >> { %v648_v11 = vadd.f32 %v637_v9, %v2166_v49  ;;  %v1227_v9 = vpop.permute.xlu0 %1226 }
 0x18c   : >> { %v2178_v13 = vpop.f32.mrf.mxu1  ;;  %v941_v14 = vpop.f32.mrf.mxu0 }
 0x18d   : >> { %v649_v49 = vadd.f32 %v2178_v13, %v2168_v55 }
 0x18e   : >> { %v1650_v15 = vpop.f32.mrf.mxu1  ;;  %v1690_v16 = vpop.f32.mrf.mxu0 }
 0x18f   : >> { %v1222_v16 = vpop.permute.xlu1 %1221  ;;  %v751_v55 = vadd.f32 %v2176_v6, %v649_v49 }
 0x190   : >> { %v825_v17 = vpop.f32.mrf.mxu1  ;;  %v946_v0 = vpop.f32.mrf.mxu0 }
 0x191   : >> { %v848_v47 = vadd.f32 %v825_v17, %v746_v41 }
 0x192   : >> { %v1673_v18 = vpop.f32.mrf.mxu1  ;;  %v1693_v19 = vpop.f32.mrf.mxu0 }
 0x193   : >> { %v961_v62 = vadd.f32 %v938_v10, %v848_v47  ;;  %v749_v10 = vadd.f32 %v2172_v61, %v647_v60  ;;  %v1232_v13 = vpop.permute.xlu1 %1231 }
 0x194   : >> { %v828_v20 = vpop.f32.mrf.mxu1  ;;  %v2180_v21 = vpop.f32.mrf.mxu0 }
 0x195   : >> { %v849_v58 = vadd.f32 %v828_v20, %v747_v53 }
 0x196   : >> { %v1674_v22 = vpop.f32.mrf.mxu1  ;;  %v1694_v23 = vpop.f32.mrf.mxu0 }
 0x197   : >> { %v962_v8 = vadd.f32 %v941_v14, %v849_v58  ;;  %v750_v23 = vadd.f32 %v2174_v2, %v648_v11 }
 0x198   : >> { %v833_v24 = vpop.f32.mrf.mxu1  ;;  %v2182_v26 = vpop.f32.mrf.mxu0 }
 0x199   : >> { %v850_v37 = vadd.f32 %v833_v24, %v748_v63 }
 0x19a   : >> { %v1677_v27 = vpop.f32.mrf.mxu1  ;;  %v1697_v28 = vpop.f32.mrf.mxu0 }
 0x19b   : >> { %v963_v22 = vadd.f32 %v946_v0, %v850_v37 }
 0x19c   : >> { %v836_v30 = vpop.f32.mrf.mxu1  ;;  %v2184_v32 = vpop.f32.mrf.mxu0 }
 0x19d   : >> { %v851_v18 = vadd.f32 %v836_v30, %v749_v10 }
 0x19e   : >> { %v1678_v34 = vpop.f32.mrf.mxu1  ;;  %v1698_v35 = vpop.f32.mrf.mxu0 }
 0x19f   : >> { %v964_v2 = vadd.f32 %v2180_v21, %v851_v18 }
 0x1a0   : >> { %v841_v38 = vpop.f32.mrf.mxu1  ;;  %v1142_v39 = vpop.f32.mrf.mxu0 }
 0x1a1   : >> { %v852_v33 = vadd.f32 %v841_v38, %v750_v23 }
 0x1a2   : >> { %v1681_v44 = vpop.f32.mrf.mxu1  ;;  %v1721_v46 = vpop.f32.mrf.mxu0 }
 0x1a3   : >> { %v965_v46 = vadd.f32 %v2182_v26, %v852_v33 }
 0x1a4   : >> { %v2188_v48 = vpop.f32.mrf.mxu1  ;;  %v1145_v50 = vpop.f32.mrf.mxu0 }
 0x1a6   : >> { %v1682_v25 = vpop.f32.mrf.mxu1  ;;  %v1722_v56 = vpop.f32.mrf.mxu0 }
 0x1a8   : >> { %v1040_v31 = vpop.f32.mrf.mxu1  ;;  %v1150_v45 = vpop.f32.mrf.mxu0 }
 0x1a9   : >> { %v1063_v3 = vadd.f32 %v1040_v31, %v961_v62  ;;  %v1237_v62 = vpop.permute.xlu0 %1236 }
 0x1aa   : >> { %v1705_v4 = vpop.f32.mrf.mxu1  ;;  %v1725_v7 = vpop.f32.mrf.mxu0 }
 0x1ab   : >> { %v1165_v1 = vadd.f32 %v1142_v39, %v1063_v3  ;;  %v1242_v7 = vpop.permute.xlu1 %1241 }
 0x1ac   : >> { %v1043_v12 = vpop.f32.mrf.mxu1  ;;  %v1153_v15 = vpop.f32.mrf.mxu0 }
 0x1ad   : >> { %v1207_v17 = vmul.f32 %v1180_v36, %v1165_v1  ;;  %v1064_v43 = vadd.f32 %v1043_v12, %v962_v8 }
 0x1ae   : >> { %v1706_v57 = vpop.f32.mrf.mxu1  ;;  %v1726_v5 = vpop.f32.mrf.mxu0 }
 0x1af   : >> { %v1249_v19 = vadd.f32 %v1222_v16, %v1207_v17  ;;  %v1166_v20 = vadd.f32 %v1145_v50, %v1064_v43  ;;  %v853_v50 = vadd.f32 %v2188_v48, %v751_v55 }
 0x1b0   : >> { %v1048_v14 = vpop.f32.mrf.mxu1  ;;  %v1158_v24 = vpop.f32.mrf.mxu0 }
 0x1b1   : >> { %v1255_v61 = vmax.f32 %v1249_v19, 0.0  ;;  %v1208_v27 = vmul.f32 %v1185_v29, %v1166_v20  ;;  %v1065_v28 = vadd.f32 %v1048_v14, %v963_v22  ;;  %v966_v60 = vadd.f32 %v2184_v32, %v853_v50  ;;  %v1247_v32 = vpop.permute.xlu0 %1246 }
 0x1b2   : >> { %v1709_v30 = vpop.f32.mrf.mxu1  ;;  %v1729_v34 = vpop.f32.mrf.mxu0 }
 0x1b3   : >> { %v1535_v35 = vpack.c.bf16 %v1255_v61, %v1255_v61  ;;  %v1250_v0 = vadd.f32 %v1227_v9, %v1208_v27  ;;  %v1167_v36 = vadd.f32 %v1150_v45, %v1065_v28 }
 0x1b4   : >> { %v1051_v39 = vpop.f32.mrf.mxu1  ;;  %v1161_v40 = vpop.f32.mrf.mxu0 }
 0x1b5   : >> { %1289 = vst.msk [vmem:[%s2206_s5] sm:$0xf] %vm1288_vm3, %v1535_v35  ;;  %v1256_v29 = vmax.f32 %v1250_v0, 0.0  ;;  %v1209_v38 = vmul.f32 %v1190_v42, %v1167_v36  ;;  %v1066_v41 = vadd.f32 %v1051_v39, %v964_v2 }
 0x1b6   : >> { %v1710_v44 = vpop.f32.mrf.mxu1  ;;  %v1730_v47 = vpop.f32.mrf.mxu0 }
 0x1b7   : >> { %v1536_v52 = vpack.c.bf16 %v1256_v29, %v1256_v29  ;;  %v1251_v21 = vadd.f32 %v1232_v13, %v1209_v38  ;;  %v1168_v53 = vadd.f32 %v1153_v15, %v1066_v41 }
 0x1b8   : >> { %v1056_v25 = vpop.f32.mrf.mxu1 }
 0x1b9   : >> { %1290 = vst.msk [vmem:[%s2206_s5 + $0x4] sm:$0xf] %vm1288_vm3, %v1536_v52  ;;  %v1257_v6 = vmax.f32 %v1251_v21, 0.0  ;;  %v1210_v56 = vmul.f32 %v2191_v54, %v1168_v53  ;;  %v1067_v58 = vadd.f32 %v1056_v25, %v965_v46 }
 0x1ba   : >> { %v1713_v42 = vpop.f32.mrf.mxu1 }
 0x1bb   : >> { %v1537_v31 = vpack.c.bf16 %v1257_v6, %v1257_v6  ;;  %v1252_v45 = vadd.f32 %v1237_v62, %v1210_v56  ;;  %v1169_v26 = vadd.f32 %v1158_v24, %v1067_v58 }
 0x1bc   : >> { %v1059_v48 = vpop.f32.mrf.mxu1 }
 0x1bd   : >> { %1291 = vst.msk [vmem:[%s2206_s5 + $0x8] sm:$0xf] %vm1288_vm3, %v1537_v31  ;;  %v1258_v63 = vmax.f32 %v1252_v45, 0.0  ;;  %v1211_v3 = vmul.f32 %v2193_v59, %v1169_v26  ;;  %v1068_v4 = vadd.f32 %v1059_v48, %v966_v60 }
 0x1be   : >> { %v1714_v54 = vpop.f32.mrf.mxu1 }
 0x1bf   : >> { %v1538_v37 = vpack.c.bf16 %v1258_v63, %v1258_v63  ;;  %v1253_v1 = vadd.f32 %v1242_v7, %v1211_v3  ;;  %v1170_v8 = vadd.f32 %v1161_v40, %v1068_v4 }
 0x1c1   : >> { %1292 = vst.msk [vmem:[%s2206_s5 + $0xc] sm:$0xf] %vm1288_vm3, %v1538_v37  ;;  %v1259_v11 = vmax.f32 %v1253_v1, 0.0  ;;  %v1212_v12 = vmul.f32 %v2197_v51, %v1170_v8 }
 0x1c3   : >> { %v1539_v15 = vpack.c.bf16 %v1259_v11, %v1259_v11  ;;  %v1254_v10 = vadd.f32 %v1247_v32, %v1212_v12 }
 0x1c5   : >> { %1293 = vst.msk [vmem:[%s2206_s5 + $0x10] sm:$0xf] %vm1288_vm3, %v1539_v15  ;;  %v1260_v16 = vmax.f32 %v1254_v10, 0.0  ;;  %229 = sbr.rel (!%p227_p5) target bundleno = 17 (0x11), region = 85 }
 0x1c7   : >> { %v1540_v17 = vpack.c.bf16 %v1260_v16, %v1260_v16 }
 0x1c9   : >> { %1294 = vst.msk [vmem:[%s2206_s5 + $0x14] sm:$0xf] %vm1288_vm3, %v1540_v17 }
 0x1ca PF: > { %s14_s17 = sadd.s32 1, %s1835_s17   ;;  %s2245_s15 = smov %s1831_s16 }
 0x1cb   : > { %p11_p6 = scmp.ge.s32.totalorder %s14_s17, 4   ;;  %s2246_s16 = smov %s2248_s18 }
 0x1cd   :  { %13 = sbr.rel (!%p11_p6) target bundleno = 2 (0x2), region = 96 }

// kernel: forward.30
= control target key start
LH: loop header
LB: loop body
LE: loop exit
PB: predicated region body
PF: predicated region fallthrough
CT: control target
= control target key end

     0   :  { %s1944_s15 = smov 0   ;;  %s1946_s16 = smov 0   ;;  %s2391_s0 = inlined_call_operand.vmem [shape: bf16[2,10,48,10], index: 0, kind: input, shape index: {}]   ;;  %s2392_s1 = inlined_call_operand.vmem [shape: bf16[3,3,48,48], index: 1, kind: input, shape index: {}]   ;;  %s2393_s2 = inlined_call_operand.vmem [shape: f32[48,1], index: 2, kind: input, shape index: {}]   ;;  %s2394_s3 = inlined_call_operand.vmem [shape: f32[48,1], index: 3, kind: input, shape index: {}]   ;;  %s2395_s4 = inlined_call_operand.vmem [shape: bf16[2,8,48,8], index: 4, kind: output, shape index: {}]  }
   0x1   :  { %s1948_s17 = smov 0  }
   0x2 LB: > { %s26_s18 = sadd.s32 1, %s1904_s16  ;;  %p1439_p0 = scmp.ge.s32.totalorder %s1908_s17, 1  ;;  %s1908_s17 = sphi %s1948_s17, %s14_s17   ;;  %s1904_s16 = sphi %s1946_s16, %s2397_s16   ;;  %s1900_s15 = sphi %s1944_s15, %s2396_s15  }
   0x3   : > { %p28_p1 = scmp.ge.s32.totalorder %s26_s18, 2  ;;  %p176_p2 = scmp.lt.s32.totalorder %s1908_s17, 3 }
   0x5   : > { %s2399_s18 = smov (%p28_p1, %s26_s18), 0  ;;  %p177_p3 = pnand %p1439_p0, %p176_p2 }
   0x6   : > { %p207_p4 = scmp.lt.s32.totalorder (!%p177_p3), %s1900_s15, 1  ;;  %s1972_s27 = smov (!%p177_p3), 0  }
   0x7   : > { %180 = sbr.rel (%p177_p3) target bundleno = 459 (0x1cb), region = 36 }
   0xc   : > { %s2401_s15 = smov (!%p207_p4, %s1900_s15), 1 }
   0xd   : > { %s1805_s19 = smul.u32 240, %s2401_s15 }
   0xe   : > { %s1806_s20 = smul.u32 192, %s2401_s15 }
   0xf   : > { %s1965_s23 = scalar_lea.vmem %s2391_s0, %s1805_s19 }
  0x10   : > { %s1970_s26 = scalar_lea.vmem %s2395_s4, %s1806_s20 }
  0x11 LB: >> { %v1914_v0 = vmov 0.0   ;;  %s1575_s28 = smul.u32 24, %s1912_s27  ;;  %vm1915_vm0 = vmmov 0   ;;  %s1916_s30 = smov 127   ;;  %v1203_v10 = vld [vmem:[%s2393_s2] sm:$0xff]  ;;  %v1204_v11 = vld [vmem:[%s2393_s2 + $0x8] sm:$0xff]  ;;  %s1912_s27 = sphi %s1972_s27, %s230_s27  }
  0x12   : >> { %1637 = vmatprep.subr.bf16.mxu0 %v1914_v0  ;;  %1799 = vmatprep.subr.bf16.mxu1 %v1914_v0  ;;  %s1917_s5 = smov 126   ;;  %v1918_v12 = vmov 0   ;;  %v1206_v13 = vld [vmem:[%s2393_s2 + $0x18] sm:$0xff]  ;;  %v1205_v14 = vld [vmem:[%s2393_s2 + $0x10] sm:$0xff]  ;;  %v1208_v15 = vld [vmem:[%s2393_s2 + $0x28] sm:$0xff]  ;;  %vm293_vm1 = vcmask 392192  }
  0x13   : >> { %1643 = vmatprep.mubr.msk.bf16.mxu0 %vm1915_vm0, %v1914_v0  ;;  %1651 = vmatprep.mubr.msk.bf16.mxu1 %vm1915_vm0, %v1914_v0  ;;  %s234_s29 = scalar_lea.vmem %s1965_s23, %s1575_s28  ;;  %v1207_v16 = vld [vmem:[%s2393_s2 + $0x20] sm:$0xff]  ;;  %v1246_v18 = vld [vmem:[%s2394_s3 + $0x8] sm:$0xff]  ;;  %v1248_v21 = vld [vmem:[%s2394_s3 + $0x18] sm:$0xff]  ;;  %s2354_s8 = scalar_lea.vmem %s1970_s26, %s1575_s28  ;;  %vm1320_vm2 = vcmask 60416  }
  0x14   : >> { %v1987_v1 = vld [vmem:[%s234_s29 + $0x10] sm:$0xff]   ;;  %v1989_v2 = vld [vmem:[%s234_s29 + $0x8] sm:$0xff]   ;;  %v1992_v3 = vld [vmem:[%s234_s29] sm:$0xff]   ;;  %1845 = vset.pattern.permute.xlu1 %v1918_v12  ;;  %1844 = vset.pattern.permute.xlu0 %v1918_v12  ;;  %s230_s27 = sadd.s32 1, %s1912_s27  }
  0x15   : >> { %288 = vrot.lane.b32.xlu0 %v1987_v1, %s1916_s30  ;;  %284 = vrot.lane.b32.xlu1 %v1992_v3, %s1916_s30  ;;  %v1997_v4 = vld [vmem:[%s234_s29 + $0x28] sm:$0xff]   ;;  %v2000_v5 = vld [vmem:[%s234_s29 + $0x20] sm:$0xff]   ;;  %p227_p5 = scmp.ge.s32.totalorder %s230_s27, 8  }
  0x16   : >> { %v2003_v6 = vld [vmem:[%s234_s29 + $0x18] sm:$0xff]   ;;  %v2009_v7 = vld [vmem:[%s234_s29 + $0x40] sm:$0xff]   ;;  %v2018_v9 = vld [vmem:[%s234_s29 + $0x30] sm:$0xff]  }
  0x17   : >> { %v2014_v8 = vld [vmem:[%s234_s29 + $0x38] sm:$0xff]   ;;  %v1245_v19 = vld [vmem:[%s2394_s3] sm:$0xff]  ;;  %v1247_v22 = vld [vmem:[%s2394_s3 + $0x10] sm:$0xff] }
  0x18   : >> { %v1855_v24 = vld [vmem:[%s2392_s1 + $0x18] sm:$0xff]   ;;  %v1856_v25 = vld [vmem:[%s2392_s1 + $0x28] sm:$0xff]   ;;  %v1249_v27 = vld [vmem:[%s2394_s3 + $0x20] sm:$0xff] }
  0x19   : >> { %286 = vrot.lane.b32.xlu0 %v1989_v2, %s1916_s30  ;;  %470 = vrot.lane.b32.xlu1 %v1987_v1, %s1917_s5  ;;  %v1250_v26 = vld [vmem:[%s2394_s3 + $0x28] sm:$0xff]  ;;  %v1857_v30 = vld [vmem:[%s2392_s1 + $0x20] sm:$0xff]  }
  0x1a   : >> { %v1858_v32 = vld [vmem:[%s2392_s1] sm:$0xff]   ;;  %v1859_v33 = vld [vmem:[%s2392_s1 + $0x30] sm:$0xff]   ;;  %v1860_v35 = vld [vmem:[%s2392_s1 + $0x8] sm:$0xff]  }
  0x1b   : >> { %v1861_v37 = vld [vmem:[%s2392_s1 + $0x38] sm:$0xff]   ;;  %v1862_v39 = vld [vmem:[%s2392_s1 + $0x10] sm:$0xff]   ;;  %v1863_v40 = vld [vmem:[%s2392_s1 + $0x40] sm:$0xff]  }
  0x1c   : >> { %v1864_v41 = vld [vmem:[%s2392_s1 + $0x48] sm:$0xff]   ;;  %v1865_v43 = vld [vmem:[%s2392_s1 + $0x60] sm:$0xff]   ;;  %v1866_v45 = vld [vmem:[%s2392_s1 + $0x50] sm:$0xff]  }
  0x1d   : >> { %468 = vrot.lane.b32.xlu0 %v1989_v2, %s1917_s5  ;;  %466 = vrot.lane.b32.xlu1 %v1992_v3, %s1917_s5  ;;  %v1867_v47 = vld [vmem:[%s2392_s1 + $0x68] sm:$0xff]   ;;  %v1868_v48 = vld [vmem:[%s2392_s1 + $0x58] sm:$0xff]  }
  0x1e   : >> { %v1869_v49 = vld [vmem:[%s2392_s1 + $0x70] sm:$0xff]   ;;  %v1870_v51 = vld [vmem:[%s2392_s1 + $0x78] sm:$0xff]   ;;  %v1872_v55 = vld [vmem:[%s2392_s1 + $0x80] sm:$0xff]  }
  0x1f   : >> { %v1871_v53 = vld [vmem:[%s2392_s1 + $0x90] sm:$0xff]   ;;  %v1873_v58 = vld [vmem:[%s2392_s1 + $0x98] sm:$0xff]   ;;  %v1874_v60 = vld [vmem:[%s2392_s1 + $0x88] sm:$0xff]  }
  0x20   : >> { %v1875_v61 = vld [vmem:[%s2392_s1 + $0xa0] sm:$0xff]   ;;  %v1876_v62 = vld [vmem:[%s2392_s1 + $0xa8] sm:$0xff]  }
  0x21   : >> { %695 = vrot.lane.b32.xlu0 %v1997_v4, %s1916_s30  ;;  %693 = vrot.lane.b32.xlu1 %v2000_v5, %s1916_s30  ;;  %v1877_v63 = vld [vmem:[%s2392_s1 + $0xc0] sm:$0xff]  }
  0x25   : >> { %691 = vrot.lane.b32.xlu0 %v2003_v6, %s1916_s30  ;;  %798 = vrot.lane.b32.xlu1 %v1997_v4, %s1917_s5 }
  0x29   : >> { %796 = vrot.lane.b32.xlu0 %v2000_v5, %s1917_s5  ;;  %794 = vrot.lane.b32.xlu1 %v2003_v6, %s1917_s5 }
  0x2d   : >> { %1023 = vrot.lane.b32.xlu0 %v2009_v7, %s1916_s30  ;;  %1126 = vrot.lane.b32.xlu1 %v2009_v7, %s1917_s5 }
  0x31   : >> { %1021 = vrot.lane.b32.xlu0 %v2014_v8, %s1916_s30  ;;  %1124 = vrot.lane.b32.xlu1 %v2014_v8, %s1917_s5 }
  0x35   : >> { %1019 = vrot.lane.b32.xlu0 %v2018_v9, %s1916_s30  ;;  %1122 = vrot.lane.b32.xlu1 %v2018_v9, %s1917_s5 }
  0x39   : >> { %1211 = vperm.xlu0 %1844, %v1203_v10   ;;  %1216 = vperm.xlu1 %1845, %v1204_v11  }
  0x3d   : >> { %1226 = vperm.xlu0 %1844, %v1206_v13   ;;  %1221 = vperm.xlu1 %1845, %v1205_v14  }
  0x41   : >> { %1236 = vperm.xlu0 %1844, %v1208_v15   ;;  %1231 = vperm.xlu1 %1845, %v1207_v16  }
  0x45   : >> { %1258 = vperm.xlu0 %1844, %v1246_v18   ;;  %1253 = vperm.xlu1 %1845, %v1245_v19  }
  0x49   : >> { %1268 = vperm.xlu0 %1844, %v1248_v21   ;;  %1263 = vperm.xlu1 %1845, %v1247_v22  }
  0x4d   : >> { %1278 = vperm.xlu0 %1844, %v1250_v26   ;;  %1273 = vperm.xlu1 %1845, %v1249_v27  }
  0x87   : >> { %v289_v17 = vpop.permute.xlu0 %288  ;;  %v285_v23 = vpop.permute.xlu1 %284 }
  0x88   : >> { %1638 = vmatpush3.bf16.msra.mxu0 %v289_v17  ;;  %1802 = vmatpush3.bf16.msra.mxu1 %v289_v17 }
  0x89   : >> { %1639 = vmatprep.subr.bf16.mxu0 %v1914_v0  ;;  %1800 = vmatprep.subr.bf16.mxu1 %v1914_v0 }
  0x8b   : >> { %v287_v20 = vpop.permute.xlu0 %286  ;;  %v471_v28 = vpop.permute.xlu1 %470 }
  0x8c   : >> { %1640 = vmatpush3.bf16.msra.mxu0 %v287_v20  ;;  %1803 = vmatpush3.bf16.msra.mxu1 %v287_v20 }
  0x8d   : >> { %1641 = vmatprep.subr.bf16.mxu0 %v1914_v0  ;;  %1801 = vmatprep.subr.bf16.mxu1 %v1914_v0 }
  0x8f   : >> { %v469_v29 = vpop.permute.xlu0 %468  ;;  %v467_v31 = vpop.permute.xlu1 %466 }
  0x90   : >> { %1642 = vmatpush3.bf16.msra.mxu0 %v285_v23  ;;  %1804 = vmatpush3.bf16.msra.mxu1 %v285_v23 }
  0x91   : >> { %1655 = vmatprep.subr.bf16.mxu1 %v1914_v0  ;;  %1673 = vmatprep.subr.bf16.mxu0 %v1914_v0 }
  0x93   : >> { %1644 = vmatmul.mubr.msk.bf16.vlgmr.msra.gmra.mxu0 %vm293_vm1, %v1855_v24  ;;  %1652 = vmatmul.mubr.msk.bf16.vlgmr.msra.gmra.mxu1 %vm293_vm1, %v1856_v25  ;;  %v696_v34 = vpop.permute.xlu0 %695  ;;  %v694_v36 = vpop.permute.xlu1 %693 }
  0x94   : >> { %1656 = vmatpush3.bf16.msra.mxu1 %v1987_v1  ;;  %1674 = vmatpush3.bf16.msra.mxu0 %v471_v28  ;;  %v1878_v1 = vld [vmem:[%s2392_s1 + $0xb0] sm:$0xff]  }
  0x95   : >> { %1657 = vmatprep.subr.bf16.mxu1 %v1914_v0  ;;  %1675 = vmatprep.subr.bf16.mxu0 %v1914_v0 }
  0x96   : >> { %1647 = vmatprep.mubr.msk.bf16.mxu0 %vm1915_vm0, %v1914_v0  ;;  %1661 = vmatprep.mubr.msk.bf16.mxu1 %vm1915_vm0, %v1914_v0 }
  0x97   : >> { %v692_v38 = vpop.permute.xlu0 %691  ;;  %v799_v42 = vpop.permute.xlu1 %798 }
  0x98   : >> { %1658 = vmatpush3.bf16.msra.mxu1 %v1989_v2  ;;  %1676 = vmatpush3.bf16.msra.mxu0 %v469_v29  ;;  %v1879_v2 = vld [vmem:[%s2392_s1 + $0xc8] sm:$0xff]  }
  0x99   : >> { %1659 = vmatprep.subr.bf16.mxu1 %v1914_v0  ;;  %1677 = vmatprep.subr.bf16.mxu0 %v1914_v0 }
  0x9b   : >> { %1648 = vmatmul.mubr.msk.bf16.gmra.mxu0 %vm293_vm1, %v1857_v30  ;;  %v797_v44 = vpop.permute.xlu0 %796  ;;  %v795_v46 = vpop.permute.xlu1 %794 }
  0x9c   : >> { %1660 = vmatpush3.bf16.msra.mxu1 %v1992_v3  ;;  %1678 = vmatpush3.bf16.msra.mxu0 %v467_v31  ;;  %v1880_v3 = vld [vmem:[%s2392_s1 + $0xb8] sm:$0xff]  }
  0x9d   : >> { %1691 = vmatprep.subr.bf16.mxu1 %v1914_v0  ;;  %1679 = vmatprep.mubr.msk.bf16.mxu0 %vm1915_vm0, %v1914_v0 }
  0x9e   : >> { %1709 = vmatprep.subr.bf16.mxu0 %v1914_v0 }
  0x9f   : >> { %1662 = vmatmul.mubr.msk.bf16.vlgmr.msra.gmra.mxu1 %vm293_vm1, %v1858_v32  ;;  %v1024_v50 = vpop.permute.xlu0 %1023  ;;  %v1127_v52 = vpop.permute.xlu1 %1126 }
  0xa0   : >> { %1692 = vmatpush3.bf16.msra.mxu1 %v1997_v4  ;;  %1665 = vmatprep.mubr.msk.bf16.mxu1 %vm1915_vm0, %v1914_v0  ;;  %v1881_v4 = vld [vmem:[%s2392_s1 + $0xd0] sm:$0xff]  }
  0xa1   : >> { %1693 = vmatprep.subr.bf16.mxu1 %v1914_v0 }
  0xa3   : >> { %1680 = vmatmul.mubr.msk.bf16.vlgmr.msra.gmra.mxu0 %vm293_vm1, %v1859_v33  ;;  %v1022_v54 = vpop.permute.xlu0 %1021  ;;  %v1125_v56 = vpop.permute.xlu1 %1124 }
  0xa4   : >> { %1710 = vmatpush3.bf16.msra.mxu0 %v696_v34  ;;  %1683 = vmatprep.mubr.msk.bf16.mxu0 %vm1915_vm0, %v1914_v0 }
  0xa5   : >> { %1694 = vmatpush3.bf16.msra.mxu1 %v2000_v5  ;;  %1711 = vmatprep.subr.bf16.mxu0 %v1914_v0 }
  0xa6   : >> { %1695 = vmatprep.subr.bf16.mxu1 %v1914_v0 }
  0xa7   : >> { %1666 = vmatmul.mubr.msk.bf16.gmra.mxu1 %vm293_vm1, %v1860_v35  ;;  %v1020_v57 = vpop.permute.xlu0 %1019  ;;  %v1123_v59 = vpop.permute.xlu1 %1122 }
  0xa8   : >> { %1712 = vmatpush3.bf16.msra.mxu0 %v694_v36  ;;  %1669 = vmatprep.mubr.msk.bf16.mxu1 %vm1915_vm0, %v1914_v0 }
  0xa9   : >> { %1696 = vmatpush3.bf16.msra.mxu1 %v2003_v6  ;;  %1713 = vmatprep.subr.bf16.mxu0 %v1914_v0 }
  0xaa   : >> { %1727 = vmatprep.subr.bf16.mxu1 %v1914_v0 }
  0xab   : >> { %1684 = vmatmul.mubr.msk.bf16.gmra.mxu0 %vm293_vm1, %v1861_v37 }
  0xac   : >> { %1687 = vmatprep.mubr.msk.bf16.mxu0 %vm1915_vm0, %v1914_v0  ;;  %1714 = vmatpush3.bf16.msra.mxu0 %v692_v38 }
  0xad   : >> { %1745 = vmatprep.subr.bf16.mxu0 %v1914_v0 }
  0xaf   : >> { %1670 = vmatmul.mubr.msk.bf16.gmra.mxu1 %vm293_vm1, %v1862_v39 }
  0xb0   : >> { %1697 = vmatprep.mubr.msk.bf16.mxu1 %vm1915_vm0, %v1914_v0 }
  0xb3   : >> { %1688 = vmatmul.mubr.msk.bf16.gmra.mxu0 %vm293_vm1, %v1863_v40 }
  0xb4   : >> { %1715 = vmatprep.mubr.msk.bf16.mxu0 %vm1915_vm0, %v1914_v0 }
  0xb7   : >> { %1698 = vmatmul.mubr.msk.bf16.vlgmr.msra.gmra.mxu1 %vm293_vm1, %v1864_v41 }
  0xb8   : >> { %1728 = vmatpush3.bf16.msra.mxu1 %v799_v42  ;;  %1701 = vmatprep.mubr.msk.bf16.mxu1 %vm1915_vm0, %v1914_v0 }
  0xb9   : >> { %1729 = vmatprep.subr.bf16.mxu1 %v1914_v0 }
  0xbb   : >> { %1716 = vmatmul.mubr.msk.bf16.vlgmr.msra.gmra.mxu0 %vm293_vm1, %v1865_v43 }
  0xbc   : >> { %1746 = vmatpush3.bf16.msra.mxu0 %v2009_v7  ;;  %1719 = vmatprep.mubr.msk.bf16.mxu0 %vm1915_vm0, %v1914_v0 }
  0xbd   : >> { %1730 = vmatpush3.bf16.msra.mxu1 %v797_v44  ;;  %1747 = vmatprep.subr.bf16.mxu0 %v1914_v0 }
  0xbe   : >> { %1731 = vmatprep.subr.bf16.mxu1 %v1914_v0 }
  0xbf   : >> { %1702 = vmatmul.mubr.msk.bf16.gmra.mxu1 %vm293_vm1, %v1866_v45 }
  0xc0   : >> { %1748 = vmatpush3.bf16.msra.mxu0 %v2014_v8  ;;  %1705 = vmatprep.mubr.msk.bf16.mxu1 %vm1915_vm0, %v1914_v0 }
  0xc1   : >> { %1732 = vmatpush3.bf16.msra.mxu1 %v795_v46  ;;  %1749 = vmatprep.subr.bf16.mxu0 %v1914_v0 }
  0xc2   : >> { %1763 = vmatprep.subr.bf16.mxu1 %v1914_v0 }
  0xc3   : >> { %1720 = vmatmul.mubr.msk.bf16.gmra.mxu0 %vm293_vm1, %v1867_v47 }
  0xc4   : >> { %1723 = vmatprep.mubr.msk.bf16.mxu0 %vm1915_vm0, %v1914_v0  ;;  %1750 = vmatpush3.bf16.msra.mxu0 %v2018_v9 }
  0xc5   : >> { %1781 = vmatprep.subr.bf16.mxu0 %v1914_v0 }
  0xc7   : >> { %1706 = vmatmul.mubr.msk.bf16.gmra.mxu1 %vm293_vm1, %v1868_v48 }
  0xc8   : >> { %1733 = vmatprep.mubr.msk.bf16.mxu1 %vm1915_vm0, %v1914_v0 }
  0xcb   : >> { %1724 = vmatmul.mubr.msk.bf16.gmra.mxu0 %vm293_vm1, %v1869_v49 }
  0xcc   : >> { %1751 = vmatprep.mubr.msk.bf16.mxu0 %vm1915_vm0, %v1914_v0 }
  0xcf   : >> { %1734 = vmatmul.mubr.msk.bf16.vlgmr.msra.gmra.mxu1 %vm293_vm1, %v1870_v51 }
  0xd0   : >> { %1764 = vmatpush3.bf16.msra.mxu1 %v1024_v50  ;;  %1737 = vmatprep.mubr.msk.bf16.mxu1 %vm1915_vm0, %v1914_v0 }
  0xd1   : >> { %1765 = vmatprep.subr.bf16.mxu1 %v1914_v0 }
  0xd3   : >> { %1752 = vmatmul.mubr.msk.bf16.vlgmr.msra.gmra.mxu0 %vm293_vm1, %v1871_v53 }
  0xd4   : >> { %1782 = vmatpush3.bf16.msra.mxu0 %v1127_v52  ;;  %1755 = vmatprep.mubr.msk.bf16.mxu0 %vm1915_vm0, %v1914_v0 }
  0xd5   : >> { %1766 = vmatpush3.bf16.msra.mxu1 %v1022_v54  ;;  %1783 = vmatprep.subr.bf16.mxu0 %v1914_v0 }
  0xd6   : >> { %1767 = vmatprep.subr.bf16.mxu1 %v1914_v0 }
  0xd7   : >> { %1738 = vmatmul.mubr.msk.bf16.gmra.mxu1 %vm293_vm1, %v1872_v55 }
  0xd8   : >> { %1784 = vmatpush3.bf16.msra.mxu0 %v1125_v56  ;;  %1741 = vmatprep.mubr.msk.bf16.mxu1 %vm1915_vm0, %v1914_v0 }
  0xd9   : >> { %1768 = vmatpush3.bf16.msra.mxu1 %v1020_v57  ;;  %1785 = vmatprep.subr.bf16.mxu0 %v1914_v0 }
  0xdb   : >> { %1756 = vmatmul.mubr.msk.bf16.gmra.mxu0 %vm293_vm1, %v1873_v58 }
  0xdc   : >> { %1759 = vmatprep.mubr.msk.bf16.mxu0 %vm1915_vm0, %v1914_v0  ;;  %1786 = vmatpush3.bf16.msra.mxu0 %v1123_v59 }
  0xdf   : >> { %1742 = vmatmul.mubr.msk.bf16.gmra.mxu1 %vm293_vm1, %v1874_v60 }
  0xe0   : >> { %1769 = vmatprep.mubr.msk.bf16.mxu1 %vm1915_vm0, %v1914_v0 }
  0xe3   : >> { %1760 = vmatmul.mubr.msk.bf16.gmra.mxu0 %vm293_vm1, %v1875_v61 }
  0xe4   : >> { %1787 = vmatprep.mubr.msk.bf16.mxu0 %vm1915_vm0, %v1914_v0 }
  0xe7   : >> { %1770 = vmatmul.mubr.msk.bf16.vlgmr.msra.gmra.mxu1 %vm293_vm1, %v1876_v62 }
  0xe8   : >> { %1773 = vmatprep.mubr.msk.bf16.mxu1 %vm1915_vm0, %v1914_v0 }
  0xeb   : >> { %1788 = vmatmul.mubr.msk.bf16.vlgmr.msra.gmra.mxu0 %vm293_vm1, %v1877_v63 }
  0xec   : >> { %1791 = vmatprep.mubr.msk.bf16.mxu0 %vm1915_vm0, %v1914_v0 }
  0xef   : >> { %1774 = vmatmul.mubr.msk.bf16.gmra.mxu1 %vm293_vm1, %v1878_v1 }
  0xf0   : >> { %1777 = vmatprep.mubr.msk.bf16.mxu1 %vm1915_vm0, %v1914_v0 }
  0xf3   : >> { %1792 = vmatmul.mubr.msk.bf16.gmra.mxu0 %vm293_vm1, %v1879_v2 }
  0xf4   : >> { %1795 = vmatprep.mubr.msk.bf16.mxu0 %vm1915_vm0, %v1914_v0 }
  0xf7   : >> { %1778 = vmatmul.mubr.msk.bf16.gmra.mxu1 %vm293_vm1, %v1880_v3 }
  0xfb   : >> { %1796 = vmatmul.mubr.msk.bf16.gmra.mxu0 %vm293_vm1, %v1881_v4 }
 0x153   : >> { %v2254_v5 = vpop.f32.mrf.mxu0  ;;  %v2256_v6 = vpop.f32.mrf.mxu1 }
 0x155   : >> { %v1645_v7 = vpop.f32.mrf.mxu0  ;;  %v1653_v8 = vpop.f32.mrf.mxu1 }
 0x157   : >> { %v2258_v9 = vpop.f32.mrf.mxu0  ;;  %v2260_v10 = vpop.f32.mrf.mxu1 }
 0x159   : >> { %v1646_v11 = vpop.f32.mrf.mxu0  ;;  %v1654_v0 = vpop.f32.mrf.mxu1 }
 0x15b   : >> { %v2262_v12 = vpop.f32.mrf.mxu0 }
 0x15d   : >> { %v1649_v13 = vpop.f32.mrf.mxu0 }
 0x15f   : >> { %v2264_v14 = vpop.f32.mrf.mxu0  ;;  %v2266_v15 = vpop.f32.mrf.mxu1 }
 0x161   : >> { %v1650_v16 = vpop.f32.mrf.mxu0  ;;  %v1663_v17 = vpop.f32.mrf.mxu1 }
 0x163   : >> { %v2268_v18 = vpop.f32.mrf.mxu1  ;;  %v2270_v19 = vpop.f32.mrf.mxu0 }
 0x165   : >> { %v1664_v20 = vpop.f32.mrf.mxu1  ;;  %v1681_v21 = vpop.f32.mrf.mxu0 }
 0x166   : >> { %v2306_v21 = vpop.permute.xlu1 %1216 }
 0x167   : >> { %v2272_v22 = vpop.f32.mrf.mxu1  ;;  %v2274_v23 = vpop.f32.mrf.mxu0 }
 0x169   : >> { %v1667_v24 = vpop.f32.mrf.mxu1  ;;  %v1682_v25 = vpop.f32.mrf.mxu0 }
 0x16b   : >> { %v2276_v26 = vpop.f32.mrf.mxu1  ;;  %v2278_v27 = vpop.f32.mrf.mxu0 }
 0x16d   : >> { %v1668_v28 = vpop.f32.mrf.mxu1  ;;  %v1685_v29 = vpop.f32.mrf.mxu0 }
 0x16e   : >> { %v422_v28 = vadd.f32 %v2266_v15, %v2254_v5 }
 0x16f   : >> { %v2280_v30 = vpop.f32.mrf.mxu1  ;;  %v2282_v31 = vpop.f32.mrf.mxu0 }
 0x171   : >> { %v1671_v32 = vpop.f32.mrf.mxu1  ;;  %v1686_v33 = vpop.f32.mrf.mxu0 }
 0x172   : >> { %v541_v33 = vadd.f32 %v2270_v19, %v422_v28  ;;  %v430_v19 = vadd.f32 %v2272_v22, %v2262_v12 }
 0x173   : >> { %v2284_v34 = vpop.f32.mrf.mxu1  ;;  %v2286_v35 = vpop.f32.mrf.mxu0 }
 0x175   : >> { %v1672_v36 = vpop.f32.mrf.mxu1  ;;  %v1689_v37 = vpop.f32.mrf.mxu0 }
 0x176   : >> { %v1212_v36 = vpop.permute.xlu0 %1211 }
 0x177   : >> { %v2288_v38 = vpop.f32.mrf.mxu0  ;;  %v640_v39 = vpop.f32.mrf.mxu1 }
 0x179   : >> { %v1690_v40 = vpop.f32.mrf.mxu0  ;;  %v1699_v41 = vpop.f32.mrf.mxu1 }
 0x17a   : >> { %v425_v41 = vadd.f32 %v2268_v18, %v2258_v9 }
 0x17b   : >> { %v643_v42 = vpop.f32.mrf.mxu1  ;;  %v743_v43 = vpop.f32.mrf.mxu0 }
 0x17c   : >> { %v542_v5 = vadd.f32 %v2274_v23, %v425_v41 }
 0x17d   : >> { %v1700_v44 = vpop.f32.mrf.mxu1  ;;  %v1717_v45 = vpop.f32.mrf.mxu0 }
 0x17e   : >> { %v663_v44 = vadd.f32 %v640_v39, %v541_v33  ;;  %v2317_v45 = vpop.permute.xlu1 %1221  ;;  %v543_v39 = vadd.f32 %v2278_v27, %v430_v19 }
 0x17f   : >> { %v648_v46 = vpop.f32.mrf.mxu1  ;;  %v746_v47 = vpop.f32.mrf.mxu0 }
 0x180   : >> { %v766_v15 = vadd.f32 %v743_v43, %v663_v44 }
 0x181   : >> { %v1703_v48 = vpop.f32.mrf.mxu1  ;;  %v1718_v49 = vpop.f32.mrf.mxu0 }
 0x183   : >> { %v2290_v50 = vpop.f32.mrf.mxu1  ;;  %v2292_v51 = vpop.f32.mrf.mxu0 }
 0x185   : >> { %v1704_v52 = vpop.f32.mrf.mxu1  ;;  %v1721_v53 = vpop.f32.mrf.mxu0 }
 0x187   : >> { %v2294_v54 = vpop.f32.mrf.mxu1  ;;  %v2296_v55 = vpop.f32.mrf.mxu0 }
 0x189   : >> { %v1707_v56 = vpop.f32.mrf.mxu1  ;;  %v1722_v57 = vpop.f32.mrf.mxu0 }
 0x18a   : >> { %v664_v56 = vadd.f32 %v643_v42, %v542_v5 }
 0x18b   : >> { %v2298_v58 = vpop.f32.mrf.mxu1  ;;  %v2300_v59 = vpop.f32.mrf.mxu0 }
 0x18d   : >> { %v1708_v60 = vpop.f32.mrf.mxu1  ;;  %v1725_v61 = vpop.f32.mrf.mxu0 }
 0x18e   : >> { %v2326_v60 = vpop.permute.xlu0 %1226  ;;  %v767_v61 = vadd.f32 %v746_v47, %v664_v56 }
 0x18f   : >> { %v2302_v62 = vpop.f32.mrf.mxu0  ;;  %v846_v63 = vpop.f32.mrf.mxu1 }
 0x190   : >> { %v869_v57 = vadd.f32 %v846_v63, %v766_v15 }
 0x191   : >> { %v1726_v1 = vpop.f32.mrf.mxu0  ;;  %v1735_v2 = vpop.f32.mrf.mxu1 }
 0x192   : >> { %v2331_v2 = vpop.permute.xlu1 %1231  ;;  %v2337_v27 = vpop.permute.xlu0 %1236 }
 0x193   : >> { %v849_v3 = vpop.f32.mrf.mxu1  ;;  %v968_v4 = vpop.f32.mrf.mxu0 }
 0x194   : >> { %v991_v1 = vadd.f32 %v968_v4, %v869_v57  ;;  %v870_v12 = vadd.f32 %v849_v3, %v767_v61  ;;  %v438_v4 = vadd.f32 %v2280_v30, %v2256_v6  ;;  %v441_v6 = vadd.f32 %v2284_v34, %v2260_v10 }
 0x195   : >> { %v1736_v7 = vpop.f32.mrf.mxu1  ;;  %v1753_v8 = vpop.f32.mrf.mxu0 }
 0x196   : >> { %v433_v7 = vadd.f32 %v2276_v26, %v2264_v14  ;;  %v665_v8 = vadd.f32 %v648_v46, %v543_v39  ;;  %v1254_v46 = vpop.permute.xlu1 %1253  ;;  %v1259_v5 = vpop.permute.xlu0 %1258 }
 0x197   : >> { %v854_v11 = vpop.f32.mrf.mxu1  ;;  %v971_v0 = vpop.f32.mrf.mxu0 }
 0x199   : >> { %v1739_v13 = vpop.f32.mrf.mxu1  ;;  %v1754_v16 = vpop.f32.mrf.mxu0 }
 0x19a   : >> { %v544_v13 = vadd.f32 %v2282_v31, %v433_v7  ;;  %v768_v16 = vadd.f32 %v2292_v51, %v665_v8 }
 0x19b   : >> { %v2304_v17 = vpop.f32.mrf.mxu1  ;;  %v976_v20 = vpop.f32.mrf.mxu0 }
 0x19c   : >> { %v666_v14 = vadd.f32 %v2290_v50, %v544_v13  ;;  %v871_v26 = vadd.f32 %v854_v11, %v768_v16 }
 0x19d   : >> { %v1740_v24 = vpop.f32.mrf.mxu1  ;;  %v1757_v25 = vpop.f32.mrf.mxu0 }
 0x19e   : >> { %v992_v24 = vadd.f32 %v971_v0, %v870_v12  ;;  %v769_v51 = vadd.f32 %v2296_v55, %v666_v14  ;;  %v993_v0 = vadd.f32 %v976_v20, %v871_v26 }
 0x19f   : >> { %v2310_v29 = vpop.f32.mrf.mxu1  ;;  %v2312_v32 = vpop.f32.mrf.mxu0 }
 0x1a1   : >> { %v1743_v37 = vpop.f32.mrf.mxu1  ;;  %v1758_v40 = vpop.f32.mrf.mxu0 }
 0x1a2   : >> { %v545_v37 = vadd.f32 %v2286_v35, %v438_v4 }
 0x1a3   : >> { %v2319_v48 = vpop.f32.mrf.mxu1  ;;  %v2321_v49 = vpop.f32.mrf.mxu0 }
 0x1a4   : >> { %v667_v30 = vadd.f32 %v2294_v54, %v545_v37 }
 0x1a5   : >> { %v1744_v52 = vpop.f32.mrf.mxu1  ;;  %v1761_v53 = vpop.f32.mrf.mxu0 }
 0x1a6   : >> { %v546_v53 = vadd.f32 %v2288_v38, %v441_v6  ;;  %v770_v55 = vadd.f32 %v2300_v59, %v667_v30  ;;  %v1264_v59 = vpop.permute.xlu1 %1263 }
 0x1a7   : >> { %v2328_v9 = vpop.f32.mrf.mxu0  ;;  %v1071_v18 = vpop.f32.mrf.mxu1 }
 0x1a8   : >> { %v1094_v22 = vadd.f32 %v1071_v18, %v991_v1  ;;  %v668_v56 = vadd.f32 %v2298_v58, %v546_v53  ;;  %v873_v38 = vadd.f32 %v2310_v29, %v770_v55 }
 0x1a9   : >> { %v1762_v23 = vpop.f32.mrf.mxu0  ;;  %v1771_v43 = vpop.f32.mrf.mxu1 }
 0x1aa   : >> { %v771_v1 = vadd.f32 %v2302_v62, %v668_v56  ;;  %v995_v43 = vadd.f32 %v2321_v49, %v873_v38 }
 0x1ab   : >> { %v1074_v42 = vpop.f32.mrf.mxu1  ;;  %v1174_v63 = vpop.f32.mrf.mxu0 }
 0x1ac   : >> { %v1197_v47 = vadd.f32 %v1174_v63, %v1094_v22  ;;  %v1095_v3 = vadd.f32 %v1074_v42, %v992_v24  ;;  %v874_v22 = vadd.f32 %v2319_v48, %v771_v1  ;;  %v1269_v42 = vpop.permute.xlu0 %1268 }
 0x1ad   : >> { %v1772_v25 = vpop.f32.mrf.mxu1  ;;  %v1789_v28 = vpop.f32.mrf.mxu0 }
 0x1ae   : >> { %v1239_v33 = vmul.f32 %v1212_v36, %v1197_v47  ;;  %v872_v36 = vadd.f32 %v2304_v17, %v769_v51  ;;  %v996_v24 = vadd.f32 %v2328_v9, %v874_v22 }
 0x1af   : >> { %v1079_v31 = vpop.f32.mrf.mxu1  ;;  %v1177_v40 = vpop.f32.mrf.mxu0 }
 0x1b0   : >> { %v1281_v41 = vadd.f32 %v1254_v46, %v1239_v33  ;;  %v1198_v44 = vadd.f32 %v1177_v40, %v1095_v3  ;;  %v1096_v15 = vadd.f32 %v1079_v31, %v993_v0  ;;  %v994_v54 = vadd.f32 %v2312_v32, %v872_v36  ;;  %v1274_v46 = vpop.permute.xlu1 %1273  ;;  %v1279_v51 = vpop.permute.xlu0 %1278 }
 0x1b1   : >> { %v1775_v50 = vpop.f32.mrf.mxu1  ;;  %v1790_v11 = vpop.f32.mrf.mxu0 }
 0x1b2   : >> { %v1287_v35 = vmax.f32 %v1281_v41, 0.0  ;;  %v1240_v52 = vmul.f32 %v2306_v21, %v1198_v44 }
 0x1b3   : >> { %v1082_v10 = vpop.f32.mrf.mxu1  ;;  %v1182_v34 = vpop.f32.mrf.mxu0 }
 0x1b4   : >> { %v1576_v20 = vpack.c.bf16 %v1287_v35, %v1287_v35  ;;  %v1282_v17 = vadd.f32 %v1259_v5, %v1240_v52  ;;  %v1199_v19 = vadd.f32 %v1182_v34, %v1096_v15  ;;  %v1097_v39 = vadd.f32 %v1082_v10, %v994_v54 }
 0x1b5   : >> { %v1776_v57 = vpop.f32.mrf.mxu1  ;;  %v1793_v21 = vpop.f32.mrf.mxu0 }
 0x1b6   : >> { %1321 = vst.msk [vmem:[%s2354_s8] sm:$0xf] %vm1320_vm2, %v1576_v20  ;;  %v1288_v18 = vmax.f32 %v1282_v17, 0.0  ;;  %v1241_v61 = vmul.f32 %v2317_v45, %v1199_v19 }
 0x1b7   : >> { %v1087_v32 = vpop.f32.mrf.mxu1  ;;  %v1185_v23 = vpop.f32.mrf.mxu0 }
 0x1b8   : >> { %v1577_v7 = vpack.c.bf16 %v1288_v18, %v1288_v18  ;;  %v1283_v58 = vadd.f32 %v1264_v59, %v1241_v61  ;;  %v1200_v8 = vadd.f32 %v1185_v23, %v1097_v39  ;;  %v1098_v13 = vadd.f32 %v1087_v32, %v995_v43 }
 0x1b9   : >> { %v1779_v12 = vpop.f32.mrf.mxu1  ;;  %v1794_v29 = vpop.f32.mrf.mxu0 }
 0x1ba   : >> { %1322 = vst.msk [vmem:[%s2354_s8 + $0x4] sm:$0xf] %vm1320_vm2, %v1577_v7  ;;  %v1289_v63 = vmax.f32 %v1283_v58, 0.0  ;;  %v1242_v45 = vmul.f32 %v2326_v60, %v1200_v8 }
 0x1bb   : >> { %v1090_v62 = vpop.f32.mrf.mxu1  ;;  %v1190_v16 = vpop.f32.mrf.mxu0 }
 0x1bc   : >> { %v1578_v49 = vpack.c.bf16 %v1289_v63, %v1289_v63  ;;  %v1284_v47 = vadd.f32 %v1269_v42, %v1242_v45  ;;  %v1201_v4 = vadd.f32 %v1190_v16, %v1098_v13  ;;  %v1099_v14 = vadd.f32 %v1090_v62, %v996_v24 }
 0x1bd   : >> { %v1780_v25 = vpop.f32.mrf.mxu1  ;;  %v1797_v28 = vpop.f32.mrf.mxu0 }
 0x1be   : >> { %1323 = vst.msk [vmem:[%s2354_s8 + $0x8] sm:$0xf] %vm1320_vm2, %v1578_v49  ;;  %v1290_v48 = vmax.f32 %v1284_v47, 0.0  ;;  %v1243_v26 = vmul.f32 %v2331_v2, %v1201_v4 }
 0x1bf   : >> { %v1193_v60 = vpop.f32.mrf.mxu0 }
 0x1c0   : >> { %v1579_v3 = vpack.c.bf16 %v1290_v48, %v1290_v48  ;;  %v1285_v33 = vadd.f32 %v1274_v46, %v1243_v26  ;;  %v1202_v37 = vadd.f32 %v1193_v60, %v1099_v14 }
 0x1c1   : >> { %v1798_v9 = vpop.f32.mrf.mxu0 }
 0x1c2   : >> { %1324 = vst.msk [vmem:[%s2354_s8 + $0xc] sm:$0xf] %vm1320_vm2, %v1579_v3  ;;  %v1291_v31 = vmax.f32 %v1285_v33, 0.0  ;;  %v1244_v40 = vmul.f32 %v2337_v27, %v1202_v37 }
 0x1c4   : >> { %v1580_v0 = vpack.c.bf16 %v1291_v31, %v1291_v31  ;;  %v1286_v41 = vadd.f32 %v1279_v51, %v1244_v40 }
 0x1c6   : >> { %1325 = vst.msk [vmem:[%s2354_s8 + $0x10] sm:$0xf] %vm1320_vm2, %v1580_v0  ;;  %v1292_v44 = vmax.f32 %v1286_v41, 0.0  ;;  %229 = sbr.rel (!%p227_p5) target bundleno = 17 (0x11), region = 85 }
 0x1c8   : >> { %v1581_v6 = vpack.c.bf16 %v1292_v44, %v1292_v44 }
 0x1ca   : >> { %1326 = vst.msk [vmem:[%s2354_s8 + $0x14] sm:$0xf] %vm1320_vm2, %v1581_v6 }
 0x1cb PF: > { %s14_s17 = sadd.s32 1, %s1908_s17   ;;  %s2396_s15 = smov %s1904_s16 }
 0x1cc   : > { %p11_p6 = scmp.ge.s32.totalorder %s14_s17, 4   ;;  %s2397_s16 = smov %s2399_s18 }
 0x1ce   :  { %13 = sbr.rel (!%p11_p6) target bundleno = 2 (0x2), region = 96 }

// kernel: forward.31
= control target key start
LH: loop header
LB: loop body
LE: loop exit
PB: predicated region body
PF: predicated region fallthrough
CT: control target
= control target key end

     0   :  { %s1324_s15 = smov 0   ;;  %s1326_s16 = smov 0   ;;  %s1510_s0 = inlined_call_operand.vmem [shape: bf16[2,6,48,6], index: 0, kind: input, shape index: {}]   ;;  %s1511_s1 = inlined_call_operand.vmem [shape: bf16[3,3,16,48], index: 1, kind: input, shape index: {}]   ;;  %s1512_s2 = inlined_call_operand.vmem [shape: f32[16,1], index: 2, kind: input, shape index: {}]   ;;  %s1513_s3 = inlined_call_operand.vmem [shape: f32[16,1], index: 3, kind: input, shape index: {}]   ;;  %s1514_s4 = inlined_call_operand.vmem [shape: bf16[2,4,16,4], index: 4, kind: output, shape index: {}]  }
   0x1   :  { %s1328_s17 = smov 0  }
   0x2 LB: > { %s26_s18 = sadd.s32 1, %s1284_s16  ;;  %p1007_p0 = scmp.ge.s32.totalorder %s1288_s17, 1  ;;  %s1288_s17 = sphi %s1328_s17, %s14_s17   ;;  %s1284_s16 = sphi %s1326_s16, %s1516_s16   ;;  %s1280_s15 = sphi %s1324_s15, %s1515_s15  }
   0x3   : > { %p28_p1 = scmp.ge.s32.totalorder %s26_s18, 2  ;;  %p176_p2 = scmp.lt.s32.totalorder %s1288_s17, 3 }
   0x5   : > { %s1518_s18 = smov (%p28_p1, %s26_s18), 0  ;;  %p177_p3 = pnand %p1007_p0, %p176_p2 }
   0x6   : > { %p207_p4 = scmp.lt.s32.totalorder (!%p177_p3), %s1280_s15, 1  ;;  %s1352_s27 = smov (!%p177_p3), 0  }
   0x7   : > { %180 = sbr.rel (%p177_p3) target bundleno = 402 (0x192), region = 36 }
   0xc   : > { %s1520_s15 = smov (!%p207_p4, %s1280_s15), 1 }
   0xd   : > { %s1204_s19 = smul.u32 144, %s1520_s15  ;;  %s1073_s20 = sshll.u32 %s1520_s15, 5 }
   0xe   : > { %s1345_s23 = scalar_lea.vmem %s1514_s4, %s1073_s20 }
   0xf   : > { %s1350_s26 = scalar_lea.vmem %s1510_s0, %s1204_s19 }
  0x10 LB: >> { %v1294_v0 = vmov 0.0   ;;  %s1074_s28 = smul.u32 24, %s1292_s27  ;;  %vm1295_vm0 = vmmov 0   ;;  %s1296_s30 = smov 127   ;;  %v1254_v4 = vld [vmem:[%s1511_s1] sm:$0xff]   ;;  %vm275_vm1 = vcmask 392192   ;;  %s1292_s27 = sphi %s1352_s27, %s230_s27  }
  0x11   : >> { %1114 = vmatprep.subr.bf16.mxu0 %v1294_v0  ;;  %1124 = vmatprep.subr.bf16.mxu1 %v1294_v0  ;;  %s1297_s5 = smov 126   ;;  %v1256_v8 = vld [vmem:[%s1511_s1 + $0x18] sm:$0xff]   ;;  %v851_v12 = vld [vmem:[%s1512_s2] sm:$0xff]  ;;  %v852_v13 = vld [vmem:[%s1512_s2 + $0x8] sm:$0xff]  ;;  %v1298_v14 = vmov 0   ;;  %s1077_s12 = sshll.u32 %s1292_s27, 3 }
  0x12   : >> { %1120 = vmatprep.mubr.msk.bf16.mxu0 %vm1295_vm0, %v1294_v0  ;;  %1130 = vmatprep.mubr.msk.bf16.mxu1 %vm1295_vm0, %v1294_v0  ;;  %s1365_s29 = scalar_lea.vmem %s1350_s26, %s1074_s28  ;;  %v866_v15 = vld [vmem:[%s1513_s3 + $0x8] sm:$0xff]  ;;  %v865_v16 = vld [vmem:[%s1513_s3] sm:$0xff]  ;;  %v1255_v28 = vld [vmem:[%s1511_s1 + $0x10] sm:$0xff]   ;;  %s891_s13 = scalar_lea.vmem %s1345_s23, %s1077_s12  ;;  %vm892_vm2 = vcmask 27648  }
  0x13   : >> { %v1244_v1 = vld [vmem:[%s1365_s29 + $0x10] sm:$0xff]   ;;  %v1245_v2 = vld [vmem:[%s1365_s29 + $0x8] sm:$0xff]   ;;  %v1246_v3 = vld [vmem:[%s1365_s29] sm:$0xff]   ;;  %1243 = vset.pattern.permute.xlu1 %v1298_v14  ;;  %1242 = vset.pattern.permute.xlu0 %v1298_v14  ;;  %s230_s27 = sadd.s32 1, %s1292_s27  }
  0x14   : >> { %270 = vrot.lane.b32.xlu0 %v1244_v1, %s1296_s30  ;;  %1125 = vmatpush3.bf16.msra.mxu1 %v1244_v1  ;;  %v1247_v5 = vld [vmem:[%s1365_s29 + $0x28] sm:$0xff]   ;;  %v1248_v6 = vld [vmem:[%s1365_s29 + $0x20] sm:$0xff]   ;;  %v1249_v7 = vld [vmem:[%s1365_s29 + $0x18] sm:$0xff]   ;;  %p227_p5 = scmp.ge.s32.totalorder %s230_s27, 4  }
  0x15   : >> { %1126 = vmatprep.subr.bf16.mxu1 %v1294_v0  ;;  %266 = vrot.lane.b32.xlu1 %v1246_v3, %s1296_s30  ;;  %v1399_v9 = vld [vmem:[%s1365_s29 + $0x40] sm:$0xff]   ;;  %v1407_v10 = vld [vmem:[%s1365_s29 + $0x38] sm:$0xff]   ;;  %v1416_v11 = vld [vmem:[%s1365_s29 + $0x30] sm:$0xff]  }
  0x16   : >> { %v1253_v21 = vld [vmem:[%s1511_s1 + $0x8] sm:$0xff]   ;;  %v1257_v34 = vld [vmem:[%s1511_s1 + $0x20] sm:$0xff]   ;;  %v1260_v36 = vld [vmem:[%s1511_s1 + $0x38] sm:$0xff]  }
  0x17   : >> { %v1258_v32 = vld [vmem:[%s1511_s1 + $0x28] sm:$0xff]   ;;  %v1259_v38 = vld [vmem:[%s1511_s1 + $0x30] sm:$0xff]   ;;  %v1261_v41 = vld [vmem:[%s1511_s1 + $0x40] sm:$0xff]  }
  0x18   : >> { %268 = vrot.lane.b32.xlu0 %v1245_v2, %s1296_s30  ;;  %1127 = vmatpush3.bf16.msra.mxu1 %v1245_v2 }
  0x19   : >> { %1128 = vmatprep.subr.bf16.mxu1 %v1294_v0  ;;  %384 = vrot.lane.b32.xlu1 %v1244_v1, %s1297_s5 }
  0x1c   : >> { %382 = vrot.lane.b32.xlu0 %v1245_v2, %s1297_s5  ;;  %1129 = vmatpush3.bf16.msra.mxu1 %v1246_v3 }
  0x1d   : >> { %1144 = vmatprep.subr.bf16.mxu1 %v1294_v0  ;;  %380 = vrot.lane.b32.xlu1 %v1246_v3, %s1297_s5 }
  0x1f   : >> { %1131 = vmatmul.mubr.msk.bf16.vlgmr.msra.gmra.mxu1 %vm275_vm1, %v1254_v4 }
  0x20   : >> { %529 = vrot.lane.b32.xlu0 %v1247_v5, %s1296_s30  ;;  %1145 = vmatpush3.bf16.msra.mxu1 %v1247_v5 }
  0x21   : >> { %1146 = vmatprep.subr.bf16.mxu1 %v1294_v0  ;;  %1150 = vmatprep.mubr.msk.bf16.mxu1 %vm1295_vm0, %v1294_v0 }
  0x22   : >> { %527 = vrot.lane.b32.xlu1 %v1248_v6, %s1296_s30 }
  0x24   : >> { %525 = vrot.lane.b32.xlu0 %v1249_v7, %s1296_s30  ;;  %1147 = vmatpush3.bf16.msra.mxu1 %v1248_v6 }
  0x25   : >> { %1148 = vmatprep.subr.bf16.mxu1 %v1294_v0 }
  0x26   : >> { %592 = vrot.lane.b32.xlu1 %v1247_v5, %s1297_s5 }
  0x28   : >> { %590 = vrot.lane.b32.xlu0 %v1248_v6, %s1297_s5  ;;  %1149 = vmatpush3.bf16.msra.mxu1 %v1249_v7 }
  0x29   : >> { %1164 = vmatprep.subr.bf16.mxu1 %v1294_v0 }
  0x2a   : >> { %588 = vrot.lane.b32.xlu1 %v1249_v7, %s1297_s5 }
  0x2b   : >> { %1151 = vmatmul.mubr.msk.bf16.vlgmr.msra.gmra.mxu1 %vm275_vm1, %v1256_v8 }
  0x2c   : >> { %737 = vrot.lane.b32.xlu0 %v1399_v9, %s1296_s30  ;;  %1170 = vmatprep.mubr.msk.bf16.mxu1 %vm1295_vm0, %v1294_v0 }
  0x2e   : >> { %800 = vrot.lane.b32.xlu1 %v1399_v9, %s1297_s5 }
  0x30   : >> { %735 = vrot.lane.b32.xlu0 %v1407_v10, %s1296_s30 }
  0x32   : >> { %798 = vrot.lane.b32.xlu1 %v1407_v10, %s1297_s5 }
  0x34   : >> { %733 = vrot.lane.b32.xlu0 %v1416_v11, %s1296_s30 }
  0x36   : >> { %796 = vrot.lane.b32.xlu1 %v1416_v11, %s1297_s5 }
  0x38   : >> { %855 = vperm.xlu0 %1242, %v851_v12  }
  0x3a   : >> { %860 = vperm.xlu1 %1243, %v852_v13  }
  0x3c   : >> { %874 = vperm.xlu0 %1242, %v866_v15  }
  0x3e   : >> { %869 = vperm.xlu1 %1243, %v865_v16  }
  0x86   : >> { %v271_v17 = vpop.permute.xlu0 %270 }
  0x87   : >> { %1115 = vmatpush3.bf16.msra.mxu0 %v271_v17  ;;  %v267_v18 = vpop.permute.xlu1 %266 }
  0x88   : >> { %1116 = vmatprep.subr.bf16.mxu0 %v1294_v0 }
  0x8a   : >> { %v269_v19 = vpop.permute.xlu0 %268 }
  0x8b   : >> { %1117 = vmatpush3.bf16.msra.mxu0 %v269_v19  ;;  %v385_v20 = vpop.permute.xlu1 %384 }
  0x8c   : >> { %1118 = vmatprep.subr.bf16.mxu0 %v1294_v0 }
  0x8e   : >> { %v383_v22 = vpop.permute.xlu0 %382 }
  0x8f   : >> { %1119 = vmatpush3.bf16.msra.mxu0 %v267_v18  ;;  %v381_v23 = vpop.permute.xlu1 %380 }
  0x90   : >> { %1134 = vmatprep.subr.bf16.mxu0 %v1294_v0 }
  0x92   : >> { %1121 = vmatmul.mubr.msk.bf16.vlgmr.msra.gmra.mxu0 %vm275_vm1, %v1253_v21  ;;  %v530_v24 = vpop.permute.xlu0 %529 }
  0x93   : >> { %1135 = vmatpush3.bf16.msra.mxu0 %v385_v20  ;;  %1140 = vmatprep.mubr.msk.bf16.mxu0 %vm1295_vm0, %v1294_v0 }
  0x94   : >> { %1136 = vmatprep.subr.bf16.mxu0 %v1294_v0  ;;  %v528_v25 = vpop.permute.xlu1 %527 }
  0x96   : >> { %v526_v26 = vpop.permute.xlu0 %525 }
  0x97   : >> { %1137 = vmatpush3.bf16.msra.mxu0 %v383_v22 }
  0x98   : >> { %1138 = vmatprep.subr.bf16.mxu0 %v1294_v0  ;;  %v593_v27 = vpop.permute.xlu1 %592 }
  0x99   : >> { %1165 = vmatpush3.bf16.msra.mxu1 %v593_v27 }
  0x9a   : >> { %v591_v29 = vpop.permute.xlu0 %590  ;;  %1166 = vmatprep.subr.bf16.mxu1 %v1294_v0 }
  0x9b   : >> { %1139 = vmatpush3.bf16.msra.mxu0 %v381_v23 }
  0x9c   : >> { %1154 = vmatprep.subr.bf16.mxu0 %v1294_v0  ;;  %v589_v30 = vpop.permute.xlu1 %588 }
  0x9d   : >> { %1167 = vmatpush3.bf16.msra.mxu1 %v591_v29 }
  0x9e   : >> { %1141 = vmatmul.mubr.msk.bf16.vlgmr.msra.gmra.mxu0 %vm275_vm1, %v1255_v28  ;;  %1168 = vmatprep.subr.bf16.mxu1 %v1294_v0  ;;  %v738_v31 = vpop.permute.xlu0 %737 }
  0x9f   : >> { %1155 = vmatpush3.bf16.msra.mxu0 %v530_v24  ;;  %1160 = vmatprep.mubr.msk.bf16.mxu0 %vm1295_vm0, %v1294_v0 }
  0xa0   : >> { %1156 = vmatprep.subr.bf16.mxu0 %v1294_v0  ;;  %v801_v37 = vpop.permute.xlu1 %800 }
  0xa1   : >> { %1169 = vmatpush3.bf16.msra.mxu1 %v589_v30 }
  0xa2   : >> { %1184 = vmatprep.subr.bf16.mxu1 %v1294_v0  ;;  %v736_v33 = vpop.permute.xlu0 %735 }
  0xa3   : >> { %1157 = vmatpush3.bf16.msra.mxu0 %v528_v25 }
  0xa4   : >> { %1158 = vmatprep.subr.bf16.mxu0 %v1294_v0  ;;  %1171 = vmatmul.mubr.msk.bf16.vlgmr.msra.gmra.mxu1 %vm275_vm1, %v1258_v32  ;;  %v799_v39 = vpop.permute.xlu1 %798 }
  0xa5   : >> { %1185 = vmatpush3.bf16.msra.mxu1 %v738_v31  ;;  %1190 = vmatprep.mubr.msk.bf16.mxu1 %vm1295_vm0, %v1294_v0 }
  0xa6   : >> { %1186 = vmatprep.subr.bf16.mxu1 %v1294_v0  ;;  %v734_v35 = vpop.permute.xlu0 %733 }
  0xa7   : >> { %1159 = vmatpush3.bf16.msra.mxu0 %v526_v26 }
  0xa8   : >> { %1174 = vmatprep.subr.bf16.mxu0 %v1294_v0  ;;  %v797_v40 = vpop.permute.xlu1 %796 }
  0xa9   : >> { %1187 = vmatpush3.bf16.msra.mxu1 %v736_v33 }
  0xaa   : >> { %1161 = vmatmul.mubr.msk.bf16.vlgmr.msra.gmra.mxu0 %vm275_vm1, %v1257_v34  ;;  %1188 = vmatprep.subr.bf16.mxu1 %v1294_v0 }
  0xab   : >> { %1175 = vmatpush3.bf16.msra.mxu0 %v1399_v9  ;;  %1180 = vmatprep.mubr.msk.bf16.mxu0 %vm1295_vm0, %v1294_v0 }
  0xac   : >> { %1176 = vmatprep.subr.bf16.mxu0 %v1294_v0 }
  0xad   : >> { %1189 = vmatpush3.bf16.msra.mxu1 %v734_v35 }
  0xaf   : >> { %1177 = vmatpush3.bf16.msra.mxu0 %v1407_v10 }
  0xb0   : >> { %1178 = vmatprep.subr.bf16.mxu0 %v1294_v0  ;;  %1191 = vmatmul.mubr.msk.bf16.vlgmr.msra.gmra.mxu1 %vm275_vm1, %v1260_v36 }
  0xb3   : >> { %1179 = vmatpush3.bf16.msra.mxu0 %v1416_v11  ;;  %v856_v25 = vpop.permute.xlu0 %855 }
  0xb4   : >> { %1194 = vmatprep.subr.bf16.mxu0 %v1294_v0 }
  0xb5   : >> { %v861_v20 = vpop.permute.xlu1 %860 }
  0xb6   : >> { %1181 = vmatmul.mubr.msk.bf16.vlgmr.msra.gmra.mxu0 %vm275_vm1, %v1259_v38 }
  0xb7   : >> { %1195 = vmatpush3.bf16.msra.mxu0 %v801_v37  ;;  %1200 = vmatprep.mubr.msk.bf16.mxu0 %vm1295_vm0, %v1294_v0  ;;  %v875_v37 = vpop.permute.xlu0 %874 }
  0xb8   : >> { %1196 = vmatprep.subr.bf16.mxu0 %v1294_v0 }
  0xb9   : >> { %v870_v28 = vpop.permute.xlu1 %869 }
  0xbb   : >> { %1197 = vmatpush3.bf16.msra.mxu0 %v799_v39 }
  0xbc   : >> { %1198 = vmatprep.subr.bf16.mxu0 %v1294_v0 }
  0xbf   : >> { %1199 = vmatpush3.bf16.msra.mxu0 %v797_v40 }
  0xc2   : >> { %1201 = vmatmul.mubr.msk.bf16.vlgmr.msra.gmra.mxu0 %vm275_vm1, %v1261_v41 }
  0xdf   : >> { %v365_v42 = vpop.f32.mrf.mxu1 }
  0xe1   : >> { %v1132_v43 = vpop.f32.mrf.mxu1 }
  0xe3   : >> { %v368_v44 = vpop.f32.mrf.mxu1 }
  0xe5   : >> { %v1133_v45 = vpop.f32.mrf.mxu1 }
  0xeb   : >> { %v508_v46 = vpop.f32.mrf.mxu1 }
  0xed   : >> { %v1152_v47 = vpop.f32.mrf.mxu1 }
  0xef   : >> { %v511_v48 = vpop.f32.mrf.mxu1 }
  0xf1   : >> { %v1153_v49 = vpop.f32.mrf.mxu1 }
 0x152   : >> { %v313_v50 = vpop.f32.mrf.mxu0 }
 0x153   : >> { %v366_v1 = vadd.f32 %v365_v42, %v313_v50 }
 0x154   : >> { %v1122_v51 = vpop.f32.mrf.mxu0 }
 0x156   : >> { %v316_v52 = vpop.f32.mrf.mxu0 }
 0x157   : >> { %v369_v6 = vadd.f32 %v368_v44, %v316_v52 }
 0x158   : >> { %v1123_v53 = vpop.f32.mrf.mxu0 }
 0x15e   : >> { %v426_v54 = vpop.f32.mrf.mxu0 }
 0x15f   : >> { %v433_v4 = vadd.f32 %v426_v54, %v366_v1 }
 0x160   : >> { %v1142_v55 = vpop.f32.mrf.mxu0 }
 0x161   : >> { %v515_v8 = vadd.f32 %v508_v46, %v433_v4 }
 0x162   : >> { %v429_v56 = vpop.f32.mrf.mxu0 }
 0x163   : >> { %v434_v9 = vadd.f32 %v429_v56, %v369_v6 }
 0x164   : >> { %v1143_v57 = vpop.f32.mrf.mxu0  ;;  %v634_v58 = vpop.f32.mrf.mxu1 }
 0x165   : >> { %v516_v14 = vadd.f32 %v511_v48, %v434_v9 }
 0x166   : >> { %v1172_v59 = vpop.f32.mrf.mxu1 }
 0x168   : >> { %v637_v60 = vpop.f32.mrf.mxu1 }
 0x16a   : >> { %v571_v61 = vpop.f32.mrf.mxu0  ;;  %v1173_v62 = vpop.f32.mrf.mxu1 }
 0x16b   : >> { %v578_v12 = vadd.f32 %v571_v61, %v515_v8 }
 0x16c   : >> { %v1162_v63 = vpop.f32.mrf.mxu0 }
 0x16d   : >> { %v641_v16 = vadd.f32 %v634_v58, %v578_v12 }
 0x16e   : >> { %v574_v0 = vpop.f32.mrf.mxu0 }
 0x16f   : >> { %v579_v17 = vadd.f32 %v574_v0, %v516_v14 }
 0x170   : >> { %v1163_v2 = vpop.f32.mrf.mxu0  ;;  %v779_v3 = vpop.f32.mrf.mxu1 }
 0x171   : >> { %v642_v21 = vadd.f32 %v637_v60, %v579_v17 }
 0x172   : >> { %v1192_v5 = vpop.f32.mrf.mxu1 }
 0x174   : >> { %v782_v7 = vpop.f32.mrf.mxu1 }
 0x176   : >> { %v716_v10 = vpop.f32.mrf.mxu0  ;;  %v1193_v11 = vpop.f32.mrf.mxu1 }
 0x177   : >> { %v723_v19 = vadd.f32 %v716_v10, %v641_v16 }
 0x178   : >> { %v1182_v13 = vpop.f32.mrf.mxu0 }
 0x179   : >> { %v786_v22 = vadd.f32 %v779_v3, %v723_v19 }
 0x17a   : >> { %v719_v15 = vpop.f32.mrf.mxu0 }
 0x17b   : >> { %v724_v23 = vadd.f32 %v719_v15, %v642_v21 }
 0x17c   : >> { %v1183_v18 = vpop.f32.mrf.mxu0 }
 0x17d   : >> { %v787_v29 = vadd.f32 %v782_v7, %v724_v23 }
 0x182   : >> { %v842_v24 = vpop.f32.mrf.mxu0 }
 0x183   : >> { %v849_v26 = vadd.f32 %v842_v24, %v786_v22 }
 0x184   : >> { %v1202_v27 = vpop.f32.mrf.mxu0 }
 0x185   : >> { %v863_v30 = vmul.f32 %v856_v25, %v849_v26 }
 0x186   : >> { %v845_v31 = vpop.f32.mrf.mxu0 }
 0x187   : >> { %v850_v32 = vadd.f32 %v845_v31, %v787_v29  ;;  %v877_v33 = vadd.f32 %v870_v28, %v863_v30 }
 0x188   : >> { %v1203_v34 = vpop.f32.mrf.mxu0 }
 0x189   : >> { %v864_v35 = vmul.f32 %v861_v20, %v850_v32  ;;  %v879_v36 = vmax.f32 %v877_v33, 0.0 }
 0x18b   : >> { %v878_v38 = vadd.f32 %v875_v37, %v864_v35  ;;  %v1075_v39 = vpack.c.bf16 %v879_v36, %v879_v36 }
 0x18d   : >> { %v880_v40 = vmax.f32 %v878_v38, 0.0  ;;  %893 = vst.msk [vmem:[%s891_s13] sm:$0xf] %vm892_vm2, %v1075_v39  ;;  %229 = sbr.rel (!%p227_p5) target bundleno = 16 (0x10), region = 85 }
 0x18f   : >> { %v1076_v41 = vpack.c.bf16 %v880_v40, %v880_v40 }
 0x191   : >> { %894 = vst.msk [vmem:[%s891_s13 + $0x4] sm:$0xf] %vm892_vm2, %v1076_v41 }
 0x192 PF: > { %s14_s17 = sadd.s32 1, %s1288_s17   ;;  %s1515_s15 = smov %s1284_s16 }
 0x193   : > { %p11_p6 = scmp.ge.s32.totalorder %s14_s17, 4   ;;  %s1516_s16 = smov %s1518_s18 }
 0x195   :  { %13 = sbr.rel (!%p11_p6) target bundleno = 2 (0x2), region = 96 }

// kernel: forward.32
= control target key start
LH: loop header
LB: loop body
LE: loop exit
PB: predicated region body
PF: predicated region fallthrough
CT: control target
= control target key end

     0   :  { %s1169_s15 = smov 0   ;;  %s1171_s16 = smov 0   ;;  %s1296_s0 = inlined_call_operand.vmem [shape: bf16[2,6,16,6], index: 0, kind: input, shape index: {}]   ;;  %s1297_s1 = inlined_call_operand.vmem [shape: bf16[3,3,16,16], index: 1, kind: input, shape index: {}]   ;;  %s1298_s2 = inlined_call_operand.vmem [shape: f32[16,1], index: 2, kind: input, shape index: {}]   ;;  %s1299_s3 = inlined_call_operand.vmem [shape: f32[16,1], index: 3, kind: input, shape index: {}]   ;;  %s1300_s4 = inlined_call_operand.vmem [shape: bf16[2,4,16,4], index: 4, kind: output, shape index: {}]  }
   0x1   :  { %s1173_s17 = smov 0  }
   0x2 LB: > { %s26_s18 = sadd.s32 1, %s1129_s16  ;;  %p923_p0 = scmp.ge.s32.totalorder %s1133_s17, 1  ;;  %s1133_s17 = sphi %s1173_s17, %s14_s17   ;;  %s1129_s16 = sphi %s1171_s16, %s1302_s16   ;;  %s1125_s15 = sphi %s1169_s15, %s1301_s15  }
   0x3   : > { %p28_p1 = scmp.ge.s32.totalorder %s26_s18, 2  ;;  %p176_p2 = scmp.lt.s32.totalorder %s1133_s17, 3 }
   0x5   : > { %s1304_s18 = smov (%p28_p1, %s26_s18), 0  ;;  %p177_p3 = pnand %p923_p0, %p176_p2 }
   0x6   : > { %p207_p4 = scmp.lt.s32.totalorder (!%p177_p3), %s1125_s15, 1  ;;  %s1197_s27 = smov (!%p177_p3), 0  }
   0x7   : > { %180 = sbr.rel (%p177_p3) target bundleno = 377 (0x179), region = 36 }
   0xc   : > { %s1306_s15 = smov (!%p207_p4, %s1125_s15), 1 }
   0xd   : > { %s1055_s19 = smul.u32 48, %s1306_s15  ;;  %s978_s20 = sshll.u32 %s1306_s15, 5 }
   0xe   : > { %s1190_s23 = scalar_lea.vmem %s1300_s4, %s978_s20 }
   0xf   : > { %s1195_s26 = scalar_lea.vmem %s1296_s0, %s1055_s19 }
  0x10 LB: >> { %v1139_v0 = vmov 0.0   ;;  %s979_s28 = sshll.u32 %s1137_s27, 3  ;;  %vm1140_vm0 = vmmov 0   ;;  %v1099_v1 = vld [vmem:[%s1297_s1] sm:$0xff]   ;;  %s1141_s6 = smov 127   ;;  %vm255_vm1 = vcmask 130048   ;;  %s1137_s27 = sphi %s1197_s27, %s230_s27  }
  0x11   : >> { %1001 = vmatprep.subr.bf16.mxu0 %v1139_v0  ;;  %1007 = vmatprep.subr.bf16.mxu1 %v1139_v0  ;;  %s234_s29 = scalar_lea.vmem %s1195_s26, %s979_s28  ;;  %s1142_s7 = smov 126   ;;  %v1101_v5 = vld [vmem:[%s1297_s1 + $0x18] sm:$0xff]   ;;  %v768_v6 = vld [vmem:[%s1298_s2 + $0x8] sm:$0xff]  ;;  %v767_v7 = vld [vmem:[%s1298_s2] sm:$0xff]  ;;  %v1143_v8 = vmov 0   ;;  %vm808_vm2 = vcmask 27648  }
  0x12   : >> { %1003 = vmatprep.mubr.msk.bf16.mxu0 %vm1140_vm0, %v1139_v0  ;;  %1009 = vmatprep.mubr.msk.bf16.mxu1 %vm1140_vm0, %v1139_v0  ;;  %v1095_v2 = vld [vmem:[%s234_s29] sm:$0xff]   ;;  %v1096_v3 = vld [vmem:[%s234_s29 + $0x8] sm:$0xff]   ;;  %v1097_v4 = vld [vmem:[%s234_s29 + $0x10] sm:$0xff]   ;;  %s807_s13 = scalar_lea.vmem %s1190_s23, %s979_s28  ;;  %s230_s27 = sadd.s32 1, %s1137_s27  }
  0x13   : >> { %252 = vrot.lane.b32.xlu0 %v1095_v2, %s1141_s6  ;;  %1008 = vmatpush3.bf16.msra.mxu1 %v1095_v2  ;;  %v781_v9 = vld [vmem:[%s1299_s3] sm:$0xff]  ;;  %v782_v10 = vld [vmem:[%s1299_s3 + $0x8] sm:$0xff]  ;;  %v1100_v17 = vld [vmem:[%s1297_s1 + $0x10] sm:$0xff]   ;;  %p227_p5 = scmp.ge.s32.totalorder %s230_s27, 4  }
  0x14   : >> { %481 = vrot.lane.b32.xlu1 %v1096_v3, %s1141_s6  ;;  %1019 = vmatprep.subr.bf16.mxu1 %v1139_v0  ;;  %v1098_v12 = vld [vmem:[%s1297_s1 + $0x8] sm:$0xff]   ;;  %v1105_v19 = vld [vmem:[%s1297_s1 + $0x38] sm:$0xff]   ;;  %v1102_v20 = vld [vmem:[%s1297_s1 + $0x20] sm:$0xff]  }
  0x15   : >> { %1094 = vset.pattern.permute.xlu1 %v1143_v8  ;;  %1093 = vset.pattern.permute.xlu0 %v1143_v8  ;;  %v1103_v16 = vld [vmem:[%s1297_s1 + $0x28] sm:$0xff]   ;;  %v1104_v21 = vld [vmem:[%s1297_s1 + $0x30] sm:$0xff]   ;;  %v1106_v23 = vld [vmem:[%s1297_s1 + $0x40] sm:$0xff]  }
  0x16   : >> { %1010 = vmatmul.mubr.msk.bf16.vlgmr.msra.gmra.mxu1 %vm255_vm1, %v1099_v1 }
  0x17   : >> { %358 = vrot.lane.b32.xlu0 %v1095_v2, %s1142_s7  ;;  %1020 = vmatpush3.bf16.msra.mxu1 %v1096_v3 }
  0x18   : >> { %538 = vrot.lane.b32.xlu1 %v1096_v3, %s1142_s7  ;;  %1021 = vmatprep.mubr.msk.bf16.mxu1 %vm1140_vm0, %v1139_v0 }
  0x19   : >> { %1031 = vmatprep.subr.bf16.mxu1 %v1139_v0 }
  0x1b   : >> { %661 = vrot.lane.b32.xlu0 %v1097_v4, %s1141_s6 }
  0x1c   : >> { %718 = vrot.lane.b32.xlu1 %v1097_v4, %s1142_s7 }
  0x1e   : >> { %1022 = vmatmul.mubr.msk.bf16.vlgmr.msra.gmra.mxu1 %vm255_vm1, %v1101_v5 }
  0x1f   : >> { %1033 = vmatprep.mubr.msk.bf16.mxu1 %vm1140_vm0, %v1139_v0  ;;  %771 = vperm.xlu0 %1093, %v767_v7  }
  0x20   : >> { %776 = vperm.xlu1 %1094, %v768_v6  }
  0x23   : >> { %790 = vperm.xlu0 %1093, %v782_v10  }
  0x24   : >> { %785 = vperm.xlu1 %1094, %v781_v9  }
  0x85   : >> { %v253_v11 = vpop.permute.xlu0 %252 }
  0x86   : >> { %1002 = vmatpush3.bf16.msra.mxu0 %v253_v11  ;;  %v482_v13 = vpop.permute.xlu1 %481 }
  0x87   : >> { %1013 = vmatprep.subr.bf16.mxu0 %v1139_v0 }
  0x89   : >> { %1004 = vmatmul.mubr.msk.bf16.vlgmr.msra.gmra.mxu0 %vm255_vm1, %v1098_v12  ;;  %v359_v14 = vpop.permute.xlu0 %358 }
  0x8a   : >> { %1014 = vmatpush3.bf16.msra.mxu0 %v359_v14  ;;  %1015 = vmatprep.mubr.msk.bf16.mxu0 %vm1140_vm0, %v1139_v0  ;;  %v539_v15 = vpop.permute.xlu1 %538 }
  0x8b   : >> { %1025 = vmatprep.subr.bf16.mxu0 %v1139_v0  ;;  %1032 = vmatpush3.bf16.msra.mxu1 %v539_v15 }
  0x8c   : >> { %1043 = vmatprep.subr.bf16.mxu1 %v1139_v0 }
  0x8d   : >> { %v662_v18 = vpop.permute.xlu0 %661 }
  0x8e   : >> { %1034 = vmatmul.mubr.msk.bf16.vlgmr.msra.gmra.mxu1 %vm255_vm1, %v1103_v16  ;;  %v719_v22 = vpop.permute.xlu1 %718 }
  0x8f   : >> { %1044 = vmatpush3.bf16.msra.mxu1 %v662_v18  ;;  %1045 = vmatprep.mubr.msk.bf16.mxu1 %vm1140_vm0, %v1139_v0 }
  0x91   : >> { %1016 = vmatmul.mubr.msk.bf16.vlgmr.msra.gmra.mxu0 %vm255_vm1, %v1100_v17 }
  0x92   : >> { %1026 = vmatpush3.bf16.msra.mxu0 %v482_v13  ;;  %1027 = vmatprep.mubr.msk.bf16.mxu0 %vm1140_vm0, %v1139_v0 }
  0x93   : >> { %1037 = vmatprep.subr.bf16.mxu0 %v1139_v0 }
  0x96   : >> { %1046 = vmatmul.mubr.msk.bf16.vlgmr.msra.gmra.mxu1 %vm255_vm1, %v1105_v19 }
  0x99   : >> { %1028 = vmatmul.mubr.msk.bf16.vlgmr.msra.gmra.mxu0 %vm255_vm1, %v1102_v20 }
  0x9a   : >> { %1038 = vmatpush3.bf16.msra.mxu0 %v1097_v4  ;;  %1039 = vmatprep.mubr.msk.bf16.mxu0 %vm1140_vm0, %v1139_v0  ;;  %v772_v8 = vpop.permute.xlu0 %771 }
  0x9b   : >> { %1049 = vmatprep.subr.bf16.mxu0 %v1139_v0  ;;  %v777_v1 = vpop.permute.xlu1 %776 }
  0x9e   : >> { %v791_v19 = vpop.permute.xlu0 %790 }
  0x9f   : >> { %v786_v10 = vpop.permute.xlu1 %785 }
  0xa1   : >> { %1040 = vmatmul.mubr.msk.bf16.vlgmr.msra.gmra.mxu0 %vm255_vm1, %v1104_v21 }
  0xa2   : >> { %1050 = vmatpush3.bf16.msra.mxu0 %v719_v22  ;;  %1051 = vmatprep.mubr.msk.bf16.mxu0 %vm1140_vm0, %v1139_v0 }
  0xa9   : >> { %1052 = vmatmul.mubr.msk.bf16.vlgmr.msra.gmra.mxu0 %vm255_vm1, %v1106_v23 }
  0xd6   : >> { %v343_v24 = vpop.f32.mrf.mxu1 }
  0xd8   : >> { %v1011_v25 = vpop.f32.mrf.mxu1 }
  0xda   : >> { %v346_v26 = vpop.f32.mrf.mxu1 }
  0xdc   : >> { %v1012_v27 = vpop.f32.mrf.mxu1 }
  0xde   : >> { %v464_v28 = vpop.f32.mrf.mxu1 }
  0xe0   : >> { %v1023_v29 = vpop.f32.mrf.mxu1 }
  0xe2   : >> { %v467_v30 = vpop.f32.mrf.mxu1 }
  0xe4   : >> { %v1024_v31 = vpop.f32.mrf.mxu1 }
 0x149   : >> { %v293_v32 = vpop.f32.mrf.mxu0 }
 0x14a   : >> { %v344_v43 = vadd.f32 %v343_v24, %v293_v32 }
 0x14b   : >> { %v1005_v33 = vpop.f32.mrf.mxu0 }
 0x14d   : >> { %v296_v34 = vpop.f32.mrf.mxu0 }
 0x14e   : >> { %v578_v35 = vpop.f32.mrf.mxu1  ;;  %v347_v49 = vadd.f32 %v346_v26, %v296_v34 }
 0x14f   : >> { %v1006_v36 = vpop.f32.mrf.mxu0 }
 0x150   : >> { %v1035_v37 = vpop.f32.mrf.mxu1 }
 0x151   : >> { %v398_v38 = vpop.f32.mrf.mxu0 }
 0x152   : >> { %v581_v39 = vpop.f32.mrf.mxu1  ;;  %v405_v46 = vadd.f32 %v398_v38, %v344_v43 }
 0x153   : >> { %v1017_v40 = vpop.f32.mrf.mxu0 }
 0x154   : >> { %v1036_v41 = vpop.f32.mrf.mxu1  ;;  %v471_v52 = vadd.f32 %v464_v28, %v405_v46 }
 0x155   : >> { %v401_v42 = vpop.f32.mrf.mxu0 }
 0x156   : >> { %v701_v44 = vpop.f32.mrf.mxu1  ;;  %v406_v53 = vadd.f32 %v401_v42, %v347_v49 }
 0x157   : >> { %v1018_v45 = vpop.f32.mrf.mxu0 }
 0x158   : >> { %v1047_v47 = vpop.f32.mrf.mxu1  ;;  %v472_v58 = vadd.f32 %v467_v30, %v406_v53 }
 0x159   : >> { %v521_v48 = vpop.f32.mrf.mxu0 }
 0x15a   : >> { %v704_v50 = vpop.f32.mrf.mxu1  ;;  %v528_v56 = vadd.f32 %v521_v48, %v471_v52 }
 0x15b   : >> { %v1029_v51 = vpop.f32.mrf.mxu0 }
 0x15c   : >> { %v1048_v54 = vpop.f32.mrf.mxu1  ;;  %v585_v60 = vadd.f32 %v578_v35, %v528_v56 }
 0x15d   : >> { %v524_v55 = vpop.f32.mrf.mxu0 }
 0x15e   : >> { %v529_v61 = vadd.f32 %v524_v55, %v472_v58 }
 0x15f   : >> { %v1030_v57 = vpop.f32.mrf.mxu0 }
 0x160   : >> { %v586_v2 = vadd.f32 %v581_v39, %v529_v61 }
 0x161   : >> { %v644_v59 = vpop.f32.mrf.mxu0 }
 0x162   : >> { %v651_v63 = vadd.f32 %v644_v59, %v585_v60 }
 0x163   : >> { %v1041_v62 = vpop.f32.mrf.mxu0 }
 0x164   : >> { %v708_v4 = vadd.f32 %v701_v44, %v651_v63 }
 0x165   : >> { %v647_v0 = vpop.f32.mrf.mxu0 }
 0x166   : >> { %v652_v5 = vadd.f32 %v647_v0, %v586_v2 }
 0x167   : >> { %v1042_v3 = vpop.f32.mrf.mxu0 }
 0x168   : >> { %v709_v11 = vadd.f32 %v704_v50, %v652_v5 }
 0x169   : >> { %v758_v6 = vpop.f32.mrf.mxu0 }
 0x16a   : >> { %v765_v7 = vadd.f32 %v758_v6, %v708_v4 }
 0x16b   : >> { %v1053_v9 = vpop.f32.mrf.mxu0 }
 0x16c   : >> { %v779_v12 = vmul.f32 %v772_v8, %v765_v7 }
 0x16d   : >> { %v761_v13 = vpop.f32.mrf.mxu0 }
 0x16e   : >> { %v793_v14 = vadd.f32 %v786_v10, %v779_v12  ;;  %v766_v15 = vadd.f32 %v761_v13, %v709_v11 }
 0x16f   : >> { %v1054_v16 = vpop.f32.mrf.mxu0 }
 0x170   : >> { %v795_v17 = vmax.f32 %v793_v14, 0.0  ;;  %v780_v18 = vmul.f32 %v777_v1, %v766_v15 }
 0x172   : >> { %v980_v20 = vpack.c.bf16 %v795_v17, %v795_v17  ;;  %v794_v21 = vadd.f32 %v791_v19, %v780_v18 }
 0x174   : >> { %809 = vst.msk [vmem:[%s807_s13] sm:$0xf] %vm808_vm2, %v980_v20  ;;  %v796_v22 = vmax.f32 %v794_v21, 0.0  ;;  %229 = sbr.rel (!%p227_p5) target bundleno = 16 (0x10), region = 85 }
 0x176   : >> { %v981_v23 = vpack.c.bf16 %v796_v22, %v796_v22 }
 0x178   : >> { %810 = vst.msk [vmem:[%s807_s13 + $0x4] sm:$0xf] %vm808_vm2, %v981_v23 }
 0x179 PF: > { %s14_s17 = sadd.s32 1, %s1133_s17   ;;  %s1301_s15 = smov %s1129_s16 }
 0x17a   : > { %p11_p6 = scmp.ge.s32.totalorder %s14_s17, 4   ;;  %s1302_s16 = smov %s1304_s18 }
 0x17c   :  { %13 = sbr.rel (!%p11_p6) target bundleno = 2 (0x2), region = 96 }

// kernel: forward.35
= control target key start
LH: loop header
LB: loop body
LE: loop exit
PB: predicated region body
PF: predicated region fallthrough
CT: control target
= control target key end

     0   :  { %s1170_s15 = smov 0   ;;  %s1172_s16 = smov 0   ;;  %s1297_s0 = inlined_call_operand.vmem [shape: bf16[2,4,16,4], index: 0, kind: input, shape index: {}]   ;;  %s1298_s1 = inlined_call_operand.vmem [shape: bf16[3,3,16,16], index: 1, kind: input, shape index: {}]   ;;  %s1299_s2 = inlined_call_operand.vmem [shape: f32[16,1], index: 2, kind: input, shape index: {}]   ;;  %s1300_s3 = inlined_call_operand.vmem [shape: f32[16,1], index: 3, kind: input, shape index: {}]   ;;  %s1301_s4 = inlined_call_operand.vmem [shape: bf16[2,2,16,2], index: 4, kind: output, shape index: {}]  }
   0x1   :  { %s1174_s17 = smov 0  }
   0x2 LB: > { %s26_s18 = sadd.s32 1, %s1130_s16  ;;  %p923_p0 = scmp.ge.s32.totalorder %s1134_s17, 1  ;;  %s1134_s17 = sphi %s1174_s17, %s14_s17   ;;  %s1130_s16 = sphi %s1172_s16, %s1303_s16   ;;  %s1126_s15 = sphi %s1170_s15, %s1302_s15  }
   0x3   : > { %p28_p1 = scmp.ge.s32.totalorder %s26_s18, 2  ;;  %p176_p2 = scmp.lt.s32.totalorder %s1134_s17, 3 }
   0x5   : > { %s1305_s18 = smov (%p28_p1, %s26_s18), 0  ;;  %p177_p3 = pnand %p923_p0, %p176_p2 }
   0x6   : > { %p207_p4 = scmp.lt.s32.totalorder (!%p177_p3), %s1126_s15, 1  ;;  %s1198_s27 = smov (!%p177_p3), 0  }
   0x7   : > { %180 = sbr.rel (%p177_p3) target bundleno = 376 (0x178), region = 36 }
   0xc   : > { %s1307_s15 = smov (!%p207_p4, %s1126_s15), 1 }
   0xd   : > { %s979_s19 = sshll.u32 %s1307_s15, 5  ;;  %s980_s20 = sshll.u32 %s1307_s15, 4 }
   0xe   : > { %s1191_s23 = scalar_lea.vmem %s1297_s0, %s979_s19  ;;  %s1196_s26 = scalar_lea.vmem %s1301_s4, %s980_s20 }
   0xf LB: >> { %v1140_v0 = vmov 0.0   ;;  %s981_s28 = sshll.u32 %s1138_s27, 3  ;;  %vm1141_vm0 = vmmov 0   ;;  %v1100_v1 = vld [vmem:[%s1298_s1] sm:$0xff]   ;;  %s1142_s6 = smov 127   ;;  %vm255_vm1 = vcmask 130048   ;;  %s1138_s27 = sphi %s1198_s27, %s230_s27  }
  0x10   : >> { %1003 = vmatprep.subr.bf16.mxu0 %v1140_v0  ;;  %1009 = vmatprep.subr.bf16.mxu1 %v1140_v0  ;;  %s234_s29 = scalar_lea.vmem %s1191_s23, %s981_s28  ;;  %s1143_s7 = smov 126   ;;  %v1102_v5 = vld [vmem:[%s1298_s1 + $0x18] sm:$0xff]   ;;  %v768_v6 = vld [vmem:[%s1299_s2 + $0x8] sm:$0xff]  ;;  %v767_v7 = vld [vmem:[%s1299_s2] sm:$0xff]  ;;  %v1144_v8 = vmov 0   ;;  %vm808_vm2 = vcmask 11264  }
  0x11   : >> { %1005 = vmatprep.mubr.msk.bf16.mxu0 %vm1141_vm0, %v1140_v0  ;;  %1011 = vmatprep.mubr.msk.bf16.mxu1 %vm1141_vm0, %v1140_v0  ;;  %v1096_v2 = vld [vmem:[%s234_s29] sm:$0xff]   ;;  %v1097_v3 = vld [vmem:[%s234_s29 + $0x8] sm:$0xff]   ;;  %v1098_v4 = vld [vmem:[%s234_s29 + $0x10] sm:$0xff]   ;;  %s807_s13 = scalar_lea.vmem %s1196_s26, %s981_s28  ;;  %s230_s27 = sadd.s32 1, %s1138_s27  }
  0x12   : >> { %252 = vrot.lane.b32.xlu0 %v1096_v2, %s1142_s6  ;;  %1010 = vmatpush3.bf16.msra.mxu1 %v1096_v2  ;;  %v781_v9 = vld [vmem:[%s1300_s3] sm:$0xff]  ;;  %v782_v10 = vld [vmem:[%s1300_s3 + $0x8] sm:$0xff]  ;;  %v1101_v17 = vld [vmem:[%s1298_s1 + $0x10] sm:$0xff]   ;;  %p227_p5 = scmp.ge.s32.totalorder %s230_s27, 2  }
  0x13   : >> { %481 = vrot.lane.b32.xlu1 %v1097_v3, %s1142_s6  ;;  %1021 = vmatprep.subr.bf16.mxu1 %v1140_v0  ;;  %v1099_v12 = vld [vmem:[%s1298_s1 + $0x8] sm:$0xff]   ;;  %v1106_v19 = vld [vmem:[%s1298_s1 + $0x38] sm:$0xff]   ;;  %v1103_v20 = vld [vmem:[%s1298_s1 + $0x20] sm:$0xff]  }
  0x14   : >> { %1095 = vset.pattern.permute.xlu1 %v1144_v8  ;;  %1094 = vset.pattern.permute.xlu0 %v1144_v8  ;;  %v1104_v16 = vld [vmem:[%s1298_s1 + $0x28] sm:$0xff]   ;;  %v1105_v21 = vld [vmem:[%s1298_s1 + $0x30] sm:$0xff]   ;;  %v1107_v23 = vld [vmem:[%s1298_s1 + $0x40] sm:$0xff]  }
  0x15   : >> { %1012 = vmatmul.mubr.msk.bf16.vlgmr.msra.gmra.mxu1 %vm255_vm1, %v1100_v1 }
  0x16   : >> { %358 = vrot.lane.b32.xlu0 %v1096_v2, %s1143_s7  ;;  %1022 = vmatpush3.bf16.msra.mxu1 %v1097_v3 }
  0x17   : >> { %538 = vrot.lane.b32.xlu1 %v1097_v3, %s1143_s7  ;;  %1023 = vmatprep.mubr.msk.bf16.mxu1 %vm1141_vm0, %v1140_v0 }
  0x18   : >> { %1033 = vmatprep.subr.bf16.mxu1 %v1140_v0 }
  0x1a   : >> { %661 = vrot.lane.b32.xlu0 %v1098_v4, %s1142_s6 }
  0x1b   : >> { %718 = vrot.lane.b32.xlu1 %v1098_v4, %s1143_s7 }
  0x1d   : >> { %1024 = vmatmul.mubr.msk.bf16.vlgmr.msra.gmra.mxu1 %vm255_vm1, %v1102_v5 }
  0x1e   : >> { %1035 = vmatprep.mubr.msk.bf16.mxu1 %vm1141_vm0, %v1140_v0  ;;  %771 = vperm.xlu0 %1094, %v767_v7  }
  0x1f   : >> { %776 = vperm.xlu1 %1095, %v768_v6  }
  0x22   : >> { %790 = vperm.xlu0 %1094, %v782_v10  }
  0x23   : >> { %785 = vperm.xlu1 %1095, %v781_v9  }
  0x84   : >> { %v253_v11 = vpop.permute.xlu0 %252 }
  0x85   : >> { %1004 = vmatpush3.bf16.msra.mxu0 %v253_v11  ;;  %v482_v13 = vpop.permute.xlu1 %481 }
  0x86   : >> { %1015 = vmatprep.subr.bf16.mxu0 %v1140_v0 }
  0x88   : >> { %1006 = vmatmul.mubr.msk.bf16.vlgmr.msra.gmra.mxu0 %vm255_vm1, %v1099_v12  ;;  %v359_v14 = vpop.permute.xlu0 %358 }
  0x89   : >> { %1016 = vmatpush3.bf16.msra.mxu0 %v359_v14  ;;  %1017 = vmatprep.mubr.msk.bf16.mxu0 %vm1141_vm0, %v1140_v0  ;;  %v539_v15 = vpop.permute.xlu1 %538 }
  0x8a   : >> { %1027 = vmatprep.subr.bf16.mxu0 %v1140_v0  ;;  %1034 = vmatpush3.bf16.msra.mxu1 %v539_v15 }
  0x8b   : >> { %1045 = vmatprep.subr.bf16.mxu1 %v1140_v0 }
  0x8c   : >> { %v662_v18 = vpop.permute.xlu0 %661 }
  0x8d   : >> { %1036 = vmatmul.mubr.msk.bf16.vlgmr.msra.gmra.mxu1 %vm255_vm1, %v1104_v16  ;;  %v719_v22 = vpop.permute.xlu1 %718 }
  0x8e   : >> { %1046 = vmatpush3.bf16.msra.mxu1 %v662_v18  ;;  %1047 = vmatprep.mubr.msk.bf16.mxu1 %vm1141_vm0, %v1140_v0 }
  0x90   : >> { %1018 = vmatmul.mubr.msk.bf16.vlgmr.msra.gmra.mxu0 %vm255_vm1, %v1101_v17 }
  0x91   : >> { %1028 = vmatpush3.bf16.msra.mxu0 %v482_v13  ;;  %1029 = vmatprep.mubr.msk.bf16.mxu0 %vm1141_vm0, %v1140_v0 }
  0x92   : >> { %1039 = vmatprep.subr.bf16.mxu0 %v1140_v0 }
  0x95   : >> { %1048 = vmatmul.mubr.msk.bf16.vlgmr.msra.gmra.mxu1 %vm255_vm1, %v1106_v19 }
  0x98   : >> { %1030 = vmatmul.mubr.msk.bf16.vlgmr.msra.gmra.mxu0 %vm255_vm1, %v1103_v20 }
  0x99   : >> { %1040 = vmatpush3.bf16.msra.mxu0 %v1098_v4  ;;  %1041 = vmatprep.mubr.msk.bf16.mxu0 %vm1141_vm0, %v1140_v0  ;;  %v772_v8 = vpop.permute.xlu0 %771 }
  0x9a   : >> { %1051 = vmatprep.subr.bf16.mxu0 %v1140_v0  ;;  %v777_v1 = vpop.permute.xlu1 %776 }
  0x9d   : >> { %v791_v19 = vpop.permute.xlu0 %790 }
  0x9e   : >> { %v786_v10 = vpop.permute.xlu1 %785 }
  0xa0   : >> { %1042 = vmatmul.mubr.msk.bf16.vlgmr.msra.gmra.mxu0 %vm255_vm1, %v1105_v21 }
  0xa1   : >> { %1052 = vmatpush3.bf16.msra.mxu0 %v719_v22  ;;  %1053 = vmatprep.mubr.msk.bf16.mxu0 %vm1141_vm0, %v1140_v0 }
  0xa8   : >> { %1054 = vmatmul.mubr.msk.bf16.vlgmr.msra.gmra.mxu0 %vm255_vm1, %v1107_v23 }
  0xd5   : >> { %v343_v24 = vpop.f32.mrf.mxu1 }
  0xd7   : >> { %v1013_v25 = vpop.f32.mrf.mxu1 }
  0xd9   : >> { %v346_v26 = vpop.f32.mrf.mxu1 }
  0xdb   : >> { %v1014_v27 = vpop.f32.mrf.mxu1 }
  0xdd   : >> { %v464_v28 = vpop.f32.mrf.mxu1 }
  0xdf   : >> { %v1025_v29 = vpop.f32.mrf.mxu1 }
  0xe1   : >> { %v467_v30 = vpop.f32.mrf.mxu1 }
  0xe3   : >> { %v1026_v31 = vpop.f32.mrf.mxu1 }
 0x148   : >> { %v293_v32 = vpop.f32.mrf.mxu0 }
 0x149   : >> { %v344_v43 = vadd.f32 %v343_v24, %v293_v32 }
 0x14a   : >> { %v1007_v33 = vpop.f32.mrf.mxu0 }
 0x14c   : >> { %v296_v34 = vpop.f32.mrf.mxu0 }
 0x14d   : >> { %v578_v35 = vpop.f32.mrf.mxu1  ;;  %v347_v49 = vadd.f32 %v346_v26, %v296_v34 }
 0x14e   : >> { %v1008_v36 = vpop.f32.mrf.mxu0 }
 0x14f   : >> { %v1037_v37 = vpop.f32.mrf.mxu1 }
 0x150   : >> { %v398_v38 = vpop.f32.mrf.mxu0 }
 0x151   : >> { %v581_v39 = vpop.f32.mrf.mxu1  ;;  %v405_v46 = vadd.f32 %v398_v38, %v344_v43 }
 0x152   : >> { %v1019_v40 = vpop.f32.mrf.mxu0 }
 0x153   : >> { %v1038_v41 = vpop.f32.mrf.mxu1  ;;  %v471_v52 = vadd.f32 %v464_v28, %v405_v46 }
 0x154   : >> { %v401_v42 = vpop.f32.mrf.mxu0 }
 0x155   : >> { %v701_v44 = vpop.f32.mrf.mxu1  ;;  %v406_v53 = vadd.f32 %v401_v42, %v347_v49 }
 0x156   : >> { %v1020_v45 = vpop.f32.mrf.mxu0 }
 0x157   : >> { %v1049_v47 = vpop.f32.mrf.mxu1  ;;  %v472_v58 = vadd.f32 %v467_v30, %v406_v53 }
 0x158   : >> { %v521_v48 = vpop.f32.mrf.mxu0 }
 0x159   : >> { %v704_v50 = vpop.f32.mrf.mxu1  ;;  %v528_v56 = vadd.f32 %v521_v48, %v471_v52 }
 0x15a   : >> { %v1031_v51 = vpop.f32.mrf.mxu0 }
 0x15b   : >> { %v1050_v54 = vpop.f32.mrf.mxu1  ;;  %v585_v60 = vadd.f32 %v578_v35, %v528_v56 }
 0x15c   : >> { %v524_v55 = vpop.f32.mrf.mxu0 }
 0x15d   : >> { %v529_v61 = vadd.f32 %v524_v55, %v472_v58 }
 0x15e   : >> { %v1032_v57 = vpop.f32.mrf.mxu0 }
 0x15f   : >> { %v586_v2 = vadd.f32 %v581_v39, %v529_v61 }
 0x160   : >> { %v644_v59 = vpop.f32.mrf.mxu0 }
 0x161   : >> { %v651_v63 = vadd.f32 %v644_v59, %v585_v60 }
 0x162   : >> { %v1043_v62 = vpop.f32.mrf.mxu0 }
 0x163   : >> { %v708_v4 = vadd.f32 %v701_v44, %v651_v63 }
 0x164   : >> { %v647_v0 = vpop.f32.mrf.mxu0 }
 0x165   : >> { %v652_v5 = vadd.f32 %v647_v0, %v586_v2 }
 0x166   : >> { %v1044_v3 = vpop.f32.mrf.mxu0 }
 0x167   : >> { %v709_v11 = vadd.f32 %v704_v50, %v652_v5 }
 0x168   : >> { %v758_v6 = vpop.f32.mrf.mxu0 }
 0x169   : >> { %v765_v7 = vadd.f32 %v758_v6, %v708_v4 }
 0x16a   : >> { %v1055_v9 = vpop.f32.mrf.mxu0 }
 0x16b   : >> { %v779_v12 = vmul.f32 %v772_v8, %v765_v7 }
 0x16c   : >> { %v761_v13 = vpop.f32.mrf.mxu0 }
 0x16d   : >> { %v793_v14 = vadd.f32 %v786_v10, %v779_v12  ;;  %v766_v15 = vadd.f32 %v761_v13, %v709_v11 }
 0x16e   : >> { %v1056_v16 = vpop.f32.mrf.mxu0 }
 0x16f   : >> { %v795_v17 = vmax.f32 %v793_v14, 0.0  ;;  %v780_v18 = vmul.f32 %v777_v1, %v766_v15 }
 0x171   : >> { %v982_v20 = vpack.c.bf16 %v795_v17, %v795_v17  ;;  %v794_v21 = vadd.f32 %v791_v19, %v780_v18 }
 0x173   : >> { %809 = vst.msk [vmem:[%s807_s13] sm:$0xf] %vm808_vm2, %v982_v20  ;;  %v796_v22 = vmax.f32 %v794_v21, 0.0  ;;  %229 = sbr.rel (!%p227_p5) target bundleno = 15 (0xf), region = 85 }
 0x175   : >> { %v983_v23 = vpack.c.bf16 %v796_v22, %v796_v22 }
 0x177   : >> { %810 = vst.msk [vmem:[%s807_s13 + $0x4] sm:$0xf] %vm808_vm2, %v983_v23 }
 0x178 PF: > { %s14_s17 = sadd.s32 1, %s1134_s17   ;;  %s1302_s15 = smov %s1130_s16 }
 0x179   : > { %p11_p6 = scmp.ge.s32.totalorder %s14_s17, 4   ;;  %s1303_s16 = smov %s1305_s18 }
 0x17b   :  { %13 = sbr.rel (!%p11_p6) target bundleno = 2 (0x2), region = 96 }

// kernel: forward.37
= control target key start
LH: loop header
LB: loop body
LE: loop exit
PB: predicated region body
PF: predicated region fallthrough
CT: control target
= control target key end

     0   :  { %8 = vsyncpa [#allocation3], 0  ;;  %s549_s0 = inlined_call_operand.vmem [shape: f32[2,32,2], index: 0, kind: input, shape index: {}]   ;;  %s550_s1 = inlined_call_operand.vmem [shape: f32[2,32,2], index: 1, kind: output, shape index: {0}]   ;;  %s551_s2 = inlined_call_operand.hbm [shape: f32[2,1,1], index: 2, kind: output, shape index: {1}]  }
   0x1   :  { %10 = vsyncpa [#allocation3 + $0x1], 0  ;;  %s432_s9 = smov 0   ;;  %s434_s10 = smov 0  }
   0x2   :  { %s436_s11 = smov 0   ;;  %s438_s12 = smov 0  }
   0x3 LB: > { %s453_s13 = sadd.s32 4294967295, %s414_s12   ;;  %s296_s14 = sadd.s32 4294967294, %s414_s12   ;;  %s414_s12 = sphi %s438_s12, %s557_s12   ;;  %s410_s11 = sphi %s436_s11, %s556_s11   ;;  %s406_s10 = sphi %s434_s10, %s555_s10   ;;  %s402_s9 = sphi %s432_s9, %s554_s9  }
   0x4   : > { %s457_s15 = sadd.s32 1, %s414_s12   ;;  %s75_s16 = sadd.s32 1, %s410_s11 }
   0x5   : > { %s72_s17 = ssub.s32 %s414_s12, %s457_s15  ;;  %p85_p0 = scmp.ne.s32.totalorder %s410_s11, %s406_s10 }
   0x6   : > { %p73_p1 = scmp.eq.s32.totalorder %s72_s17, 0  ;;  %p86_p2 = scmp.eq.s32.totalorder %s453_s13, 1 }
   0x7   : > { %p91_p3 = scmp.ne.s32.totalorder %s406_s10, %s402_s9  ;;  %p92_p4 = scmp.eq.s32.totalorder %s296_s14, 1 }
   0x8   : > { %s468_s18 = scalar_select %p73_p1, %s410_s11, %s75_s16  }
   0x9   : > { %p470_p5 = por %p86_p2, %p85_p0  ;;  %p474_p6 = por %p92_p4, %p91_p3 }
   0xa   : > { %p299_p7 = scmp.ge.s32.totalorder %s414_s12, 1  ;;  %p118_p8 = scmp.lt.s32.totalorder %s414_s12, 3 }
   0xc   : > { %p119_p9 = pnand %p299_p7, %p118_p8 }
   0xd   : > { %p144_p10 = scmp.lt.s32.totalorder (!%p119_p9), %s453_s13, 1  ;;  %s142_s27 = sand.u32 (!%p119_p9), 1, %s406_s10  }
   0xe   : > { %122 = sbr.rel (%p119_p9) target bundleno = 316 (0x13c), region = 24  ;;  %s304_s28 = sshll.u32 (!%p119_p9), %s453_s13, 4 }
   0xf   : > { %s143_s29 = scalar_lea.vmem (!%p119_p9), [#allocation2], %s142_s27  ;;  %s201_s16 = scalar_lea.sflag (!%p119_p9), [#allocation3], %s142_s27 }
  0x10   : > { %s216_s30 = sshll.u32 (!%p119_p9), %s143_s29, 4  ;;  %s506_s30 = int_to_ptr.vmem [resolvable:$true] %s216_s30 }
  0x11   : > { %s354_s17 = scalar_lea.vmem (!%p119_p9), %s506_s30, 16 }
  0x12   : > { %p355_p11 = scmp.ne.s32.totalorder (!%p119_p9), %s506_s30, %s354_s17 }
  0x13   : > { %s482_s21 = scalar_select %p144_p10, %s453_s13, 1  ;;  %vm162_vm0 = vcmask 15360   ;;  %vm193_vm1 = vcmask 0  }
  0x14   : > { %s504_s13 = scalar_lea.hbm %s551_s2, %s304_s28  ;;  %p356_p12 = pnand %p355_p11, %p470_p5 }
  0x15   : > { %s307_s22 = sshll.u32 %s482_s21, 5  ;;  %s416_s21 = smov [#allocation2]  }
  0x16   : > { %s148_s25 = scalar_lea.vmem %s549_s0, %s307_s22  ;;  %s153_s5 = scalar_lea.vmem %s550_s1, %s307_s22 }
  0x17   : > { %v154_v0 = vld [vmem:[%s148_s25] sm:$0xff]  ;;  %v155_v1 = vld [vmem:[%s148_s25 + $0x8] sm:$0xff]  ;;  %v156_v2 = vld [vmem:[%s148_s25 + $0x10] sm:$0xff]  ;;  %p357_p13 = pneg %p356_p12  ;;  %s358_s22 = sshll.u32 %s416_s21, 4  ;;  %s359_s22 = int_to_ptr.vmem [resolvable:$false] %s358_s22 }
  0x18   : > { %v157_v3 = vld [vmem:[%s148_s25 + $0x18] sm:$0xff]  ;;  %v158_v4 = vmul.f32 %v154_v0, %v154_v0  ;;  %v159_v5 = vmul.f32 %v155_v1, %v155_v1  ;;  %v160_v6 = vmul.f32 %v156_v2, %v156_v2  ;;  %s360_s23 = scalar_lea.vmem %s359_s22, 32  ;;  %p361_p0 = scmp.lt.s32.totalorder %s506_s30, %s359_s22 }
  0x19   : > { %v161_v7 = vmul.f32 %v157_v3, %v157_v3  ;;  %p362_p1 = scmp.lt.s32.totalorder %s360_s23, %s354_s17 }
  0x1a   : > { %v163_v8 = vsel %vm162_vm0, %v158_v4, 0.0  ;;  %v164_v9 = vsel %vm162_vm0, %v159_v5, 0.0  ;;  %v166_v10 = vsel %vm162_vm0, %v160_v6, 0.0 }
  0x1b   : > { %v165_v11 = vadd.f32 %v164_v9, %v163_v8  ;;  %v168_v12 = vsel %vm162_vm0, %v161_v7, 0.0  ;;  %p363_p2 = por %p362_p1, %p361_p0 }
  0x1d   : > { %v167_v13 = vadd.f32 %v166_v10, %v165_v11  ;;  %p364_p3 = pnand %p363_p2, %p357_p13 }
  0x1f   : > { %v169_v14 = vadd.f32 %v168_v12, %v167_v13 }
  0x21   : > { %170 = vadd.xlane.f32.xlu0 %v169_v14 }
  0xaa   : > { %v171_v15 = vpop.xlane.xlu0 %170 }
  0xab   : > { %v172_v16 = vrot.slane %v171_v15, 4 }
  0xad   : > { %v173_v17 = vadd.f32 %v172_v16, %v171_v15 }
  0xaf   : > { %v174_v18 = vrot.slane %v173_v17, 2 }
  0xb1   : > { %v175_v19 = vadd.f32 %v174_v18, %v173_v17 }
  0xb3   : > { %v176_v20 = vrot.slane %v175_v19, 1 }
  0xb5   : > { %v177_v21 = vadd.f32 %v176_v20, %v175_v19 }
  0xb7   : > { %309 = vpush %v177_v21 }
  0xe8   : > { %s310_s26 = spop %309 }
  0xe9   : > { %v179_v22 = vstv %s310_s26 }
  0xea   : > { %352 = vrsqrt.f32 %v179_v22 }
  0xf7   : > { %v353_v23 = vpop.eup %352 }
  0xf8   : > { %311 = vpush %v353_v23 }
 0x129   : > { %s312_s6 = spop %311 }
 0x12a   : > { %v182_v24 = vstv %s312_s6  ;;  %s191_s7 = smul.f32 %s312_s6, %s310_s26 }
 0x12b   : > { %v183_v25 = vmul.f32 %v182_v24, %v154_v0  ;;  %v184_v26 = vmul.f32 %v182_v24, %v155_v1  ;;  %v185_v27 = vmul.f32 %v182_v24, %v156_v2  ;;  %v186_v28 = vmul.f32 %v182_v24, %v157_v3 }
 0x12c   : > { %v192_v29 = vstv %s191_s7 }
 0x12d   : > { %187 = vst.msk [vmem:[%s153_s5] sm:$0xff] %vm162_vm0, %v183_v25  ;;  %188 = vst.msk [vmem:[%s153_s5 + $0x8] sm:$0xff] %vm162_vm0, %v184_v26 }
 0x12e   : > { %189 = vst.msk [vmem:[%s153_s5 + $0x10] sm:$0xff] %vm162_vm0, %v185_v27  ;;  %190 = vst.msk [vmem:[%s153_s5 + $0x18] sm:$0xff] %vm162_vm0, %v186_v28 }
 0x12f   : > { %194 = vst.msk [vmem:[%s143_s29] sm:$0x1] %vm193_vm1, %v192_v29 }
 0x130   : > { %367 = shalt.err (!%p364_p3)
}
 0x131   : > { %s368_s24 = scalar_lea.hbm %s504_s13, 16  ;;  %s372_s27 = scalar_lea.hbm %s551_s2, 32 }
 0x132   : > { %p369_p4 = scmp.ne.s32.totalorder %s504_s13, %s368_s24  ;;  %p373_p9 = scmp.lt.s32.totalorder %s504_s13, %s551_s2 }
 0x133   : > { %p374_p10 = scmp.lt.s32.totalorder %s372_s27, %s368_s24 }
 0x134   : > { %p370_p7 = pnand %p369_p4, %p470_p5 }
 0x135   : > { %p375_p11 = por %p374_p10, %p373_p9 }
 0x136   : > { %p371_p8 = pneg %p370_p7 }
 0x138   : > { %p376_p12 = pnand %p375_p11, %p371_p8 }
 0x13a   : > { %379 = shalt.err (!%p376_p12)
}
 0x13b   : > { %313 = dma.vmem_to_hbm [thread:$0]  (%p470_p5), %s506_s30, 16, %s504_s13, %s201_s16  }
 0x13c PF: > { %p319_p13 = scmp.ge.s32.totalorder %s414_s12, 2  ;;  %s236_s3 = sand.u32 1, %s402_s9  }
 0x13d   : > { %s237_s4 = scalar_lea.sflag [#allocation3], %s236_s3 }
 0x13e   : > { %p316_p0 = pnand %p319_p13, %p474_p6 }
 0x140   : > { %p317_p1 = pneg %p316_p0 }
 0x142   : > { %397 = dma.done.wait (%p317_p1), %s237_s4, 16  }
 0x143   : > { %399 = vsyncadd (%p317_p1), %s237_s4, 4294967280  ;;  %p13_p2 = scmp.ge.s32.totalorder %s457_s15, 4   ;;  %s554_s9 = smov %s406_s10 }
 0x144   : > { %s555_s10 = smov %s410_s11  ;;  %s556_s11 = smov %s468_s18 }
 0x145   : > { %s557_s12 = smov %s457_s15  ;;  %15 = sbr.rel (!%p13_p2) target bundleno = 3 (0x3), region = 71 }
 0x14a   :  { %241 = vsyncpa [#allocation3], 1 }
 0x14b   :  { %243 = vsyncpa [#allocation3 + $0x1], 1 }

// kernel: forward.36
= control target key start
LH: loop header
LB: loop body
LE: loop exit
PB: predicated region body
PF: predicated region fallthrough
CT: control target
= control target key end

     0   :  { %s1155_s15 = smov 0   ;;  %s1157_s16 = smov 0   ;;  %s1279_s0 = inlined_call_operand.vmem [shape: bf16[2,4,16,4], index: 0, kind: input, shape index: {}]   ;;  %s1280_s1 = inlined_call_operand.vmem [shape: bf16[3,3,16,16], index: 1, kind: input, shape index: {}]   ;;  %s1281_s2 = inlined_call_operand.vmem [shape: f32[16,1], index: 2, kind: input, shape index: {}]   ;;  %s1282_s3 = inlined_call_operand.vmem [shape: f32[16,1], index: 3, kind: input, shape index: {}]   ;;  %s1283_s4 = inlined_call_operand.vmem [shape: f32[2,2,16,2], index: 4, kind: output, shape index: {}]  }
   0x1   :  { %s1159_s17 = smov 0  }
   0x2 LB: > { %s26_s18 = sadd.s32 1, %s1115_s16  ;;  %p914_p0 = scmp.ge.s32.totalorder %s1119_s17, 1  ;;  %s1119_s17 = sphi %s1159_s17, %s14_s17   ;;  %s1115_s16 = sphi %s1157_s16, %s1285_s16   ;;  %s1111_s15 = sphi %s1155_s15, %s1284_s15  }
   0x3   : > { %p28_p1 = scmp.ge.s32.totalorder %s26_s18, 2  ;;  %p176_p2 = scmp.lt.s32.totalorder %s1119_s17, 3 }
   0x5   : > { %s1287_s18 = smov (%p28_p1, %s26_s18), 0  ;;  %p177_p3 = pnand %p914_p0, %p176_p2 }
   0x6   : > { %p207_p4 = scmp.lt.s32.totalorder (!%p177_p3), %s1111_s15, 1  ;;  %s1183_s26 = smov (!%p177_p3), 0  }
   0x7   : > { %180 = sbr.rel (%p177_p3) target bundleno = 374 (0x176), region = 36 }
   0xc   : > { %s1289_s15 = smov (!%p207_p4, %s1111_s15), 1 }
   0xd   : > { %s967_s19 = sshll.u32 %s1289_s15, 5 }
   0xe   : > { %s1176_s22 = scalar_lea.vmem %s1279_s0, %s967_s19  ;;  %s1181_s25 = scalar_lea.vmem %s1283_s4, %s967_s19 }
   0xf LB: >> { %v1125_v0 = vmov 0.0   ;;  %s969_s27 = sshll.u32 %s1123_s26, 3  ;;  %vm1126_vm0 = vmmov 0   ;;  %v1085_v1 = vld [vmem:[%s1280_s1] sm:$0xff]   ;;  %s1127_s5 = smov 127   ;;  %vm255_vm1 = vcmask 130048   ;;  %s1123_s26 = sphi %s1183_s26, %s230_s26  }
  0x10   : >> { %988 = vmatprep.subr.bf16.mxu0 %v1125_v0  ;;  %994 = vmatprep.subr.bf16.mxu1 %v1125_v0  ;;  %s234_s28 = scalar_lea.vmem %s1176_s22, %s969_s27  ;;  %s1128_s6 = smov 126   ;;  %v1087_v5 = vld [vmem:[%s1280_s1 + $0x18] sm:$0xff]   ;;  %v768_v6 = vld [vmem:[%s1281_s2 + $0x8] sm:$0xff]  ;;  %v767_v7 = vld [vmem:[%s1281_s2] sm:$0xff]  ;;  %v1129_v8 = vmov 0   ;;  %vm799_vm2 = vcmask 15360  }
  0x11   : >> { %990 = vmatprep.mubr.msk.bf16.mxu0 %vm1126_vm0, %v1125_v0  ;;  %996 = vmatprep.mubr.msk.bf16.mxu1 %vm1126_vm0, %v1125_v0  ;;  %v1081_v2 = vld [vmem:[%s234_s28] sm:$0xff]   ;;  %v1082_v3 = vld [vmem:[%s234_s28 + $0x8] sm:$0xff]   ;;  %v1083_v4 = vld [vmem:[%s234_s28 + $0x10] sm:$0xff]   ;;  %s964_s11 = sshll.u32 %s1123_s26, 4  ;;  %s230_s26 = sadd.s32 1, %s1123_s26  }
  0x12   : >> { %252 = vrot.lane.b32.xlu0 %v1081_v2, %s1127_s5  ;;  %995 = vmatpush3.bf16.msra.mxu1 %v1081_v2  ;;  %v781_v9 = vld [vmem:[%s1282_s3] sm:$0xff]  ;;  %v782_v10 = vld [vmem:[%s1282_s3 + $0x8] sm:$0xff]  ;;  %v1086_v17 = vld [vmem:[%s1280_s1 + $0x10] sm:$0xff]   ;;  %s798_s12 = scalar_lea.vmem %s1181_s25, %s964_s11  ;;  %p227_p5 = scmp.ge.s32.totalorder %s230_s26, 2  }
  0x13   : >> { %481 = vrot.lane.b32.xlu1 %v1082_v3, %s1127_s5  ;;  %1006 = vmatprep.subr.bf16.mxu1 %v1125_v0  ;;  %v1084_v12 = vld [vmem:[%s1280_s1 + $0x8] sm:$0xff]   ;;  %v1091_v19 = vld [vmem:[%s1280_s1 + $0x38] sm:$0xff]   ;;  %v1088_v20 = vld [vmem:[%s1280_s1 + $0x20] sm:$0xff]  }
  0x14   : >> { %1080 = vset.pattern.permute.xlu1 %v1129_v8  ;;  %1079 = vset.pattern.permute.xlu0 %v1129_v8  ;;  %v1089_v16 = vld [vmem:[%s1280_s1 + $0x28] sm:$0xff]   ;;  %v1090_v21 = vld [vmem:[%s1280_s1 + $0x30] sm:$0xff]   ;;  %v1092_v23 = vld [vmem:[%s1280_s1 + $0x40] sm:$0xff]  }
  0x15   : >> { %997 = vmatmul.mubr.msk.bf16.vlgmr.msra.gmra.mxu1 %vm255_vm1, %v1085_v1 }
  0x16   : >> { %358 = vrot.lane.b32.xlu0 %v1081_v2, %s1128_s6  ;;  %1007 = vmatpush3.bf16.msra.mxu1 %v1082_v3 }
  0x17   : >> { %538 = vrot.lane.b32.xlu1 %v1082_v3, %s1128_s6  ;;  %1008 = vmatprep.mubr.msk.bf16.mxu1 %vm1126_vm0, %v1125_v0 }
  0x18   : >> { %1018 = vmatprep.subr.bf16.mxu1 %v1125_v0 }
  0x1a   : >> { %661 = vrot.lane.b32.xlu0 %v1083_v4, %s1127_s5 }
  0x1b   : >> { %718 = vrot.lane.b32.xlu1 %v1083_v4, %s1128_s6 }
  0x1d   : >> { %1009 = vmatmul.mubr.msk.bf16.vlgmr.msra.gmra.mxu1 %vm255_vm1, %v1087_v5 }
  0x1e   : >> { %1020 = vmatprep.mubr.msk.bf16.mxu1 %vm1126_vm0, %v1125_v0  ;;  %771 = vperm.xlu0 %1079, %v767_v7  }
  0x1f   : >> { %776 = vperm.xlu1 %1080, %v768_v6  }
  0x22   : >> { %790 = vperm.xlu0 %1079, %v782_v10  }
  0x23   : >> { %785 = vperm.xlu1 %1080, %v781_v9  }
  0x84   : >> { %v253_v11 = vpop.permute.xlu0 %252 }
  0x85   : >> { %989 = vmatpush3.bf16.msra.mxu0 %v253_v11  ;;  %v482_v13 = vpop.permute.xlu1 %481 }
  0x86   : >> { %1000 = vmatprep.subr.bf16.mxu0 %v1125_v0 }
  0x88   : >> { %991 = vmatmul.mubr.msk.bf16.vlgmr.msra.gmra.mxu0 %vm255_vm1, %v1084_v12  ;;  %v359_v14 = vpop.permute.xlu0 %358 }
  0x89   : >> { %1001 = vmatpush3.bf16.msra.mxu0 %v359_v14  ;;  %1002 = vmatprep.mubr.msk.bf16.mxu0 %vm1126_vm0, %v1125_v0  ;;  %v539_v15 = vpop.permute.xlu1 %538 }
  0x8a   : >> { %1012 = vmatprep.subr.bf16.mxu0 %v1125_v0  ;;  %1019 = vmatpush3.bf16.msra.mxu1 %v539_v15 }
  0x8b   : >> { %1030 = vmatprep.subr.bf16.mxu1 %v1125_v0 }
  0x8c   : >> { %v662_v18 = vpop.permute.xlu0 %661 }
  0x8d   : >> { %1021 = vmatmul.mubr.msk.bf16.vlgmr.msra.gmra.mxu1 %vm255_vm1, %v1089_v16  ;;  %v719_v22 = vpop.permute.xlu1 %718 }
  0x8e   : >> { %1031 = vmatpush3.bf16.msra.mxu1 %v662_v18  ;;  %1032 = vmatprep.mubr.msk.bf16.mxu1 %vm1126_vm0, %v1125_v0 }
  0x90   : >> { %1003 = vmatmul.mubr.msk.bf16.vlgmr.msra.gmra.mxu0 %vm255_vm1, %v1086_v17 }
  0x91   : >> { %1013 = vmatpush3.bf16.msra.mxu0 %v482_v13  ;;  %1014 = vmatprep.mubr.msk.bf16.mxu0 %vm1126_vm0, %v1125_v0 }
  0x92   : >> { %1024 = vmatprep.subr.bf16.mxu0 %v1125_v0 }
  0x95   : >> { %1033 = vmatmul.mubr.msk.bf16.vlgmr.msra.gmra.mxu1 %vm255_vm1, %v1091_v19 }
  0x98   : >> { %1015 = vmatmul.mubr.msk.bf16.vlgmr.msra.gmra.mxu0 %vm255_vm1, %v1088_v20 }
  0x99   : >> { %1025 = vmatpush3.bf16.msra.mxu0 %v1083_v4  ;;  %1026 = vmatprep.mubr.msk.bf16.mxu0 %vm1126_vm0, %v1125_v0  ;;  %v772_v8 = vpop.permute.xlu0 %771 }
  0x9a   : >> { %1036 = vmatprep.subr.bf16.mxu0 %v1125_v0  ;;  %v777_v1 = vpop.permute.xlu1 %776 }
  0x9d   : >> { %v791_v19 = vpop.permute.xlu0 %790 }
  0x9e   : >> { %v786_v10 = vpop.permute.xlu1 %785 }
  0xa0   : >> { %1027 = vmatmul.mubr.msk.bf16.vlgmr.msra.gmra.mxu0 %vm255_vm1, %v1090_v21 }
  0xa1   : >> { %1037 = vmatpush3.bf16.msra.mxu0 %v719_v22  ;;  %1038 = vmatprep.mubr.msk.bf16.mxu0 %vm1126_vm0, %v1125_v0 }
  0xa8   : >> { %1039 = vmatmul.mubr.msk.bf16.vlgmr.msra.gmra.mxu0 %vm255_vm1, %v1092_v23 }
  0xd5   : >> { %v343_v24 = vpop.f32.mrf.mxu1 }
  0xd7   : >> { %v998_v25 = vpop.f32.mrf.mxu1 }
  0xd9   : >> { %v346_v26 = vpop.f32.mrf.mxu1 }
  0xdb   : >> { %v999_v27 = vpop.f32.mrf.mxu1 }
  0xdd   : >> { %v464_v28 = vpop.f32.mrf.mxu1 }
  0xdf   : >> { %v1010_v29 = vpop.f32.mrf.mxu1 }
  0xe1   : >> { %v467_v30 = vpop.f32.mrf.mxu1 }
  0xe3   : >> { %v1011_v31 = vpop.f32.mrf.mxu1 }
 0x148   : >> { %v293_v32 = vpop.f32.mrf.mxu0 }
 0x149   : >> { %v344_v43 = vadd.f32 %v343_v24, %v293_v32 }
 0x14a   : >> { %v992_v33 = vpop.f32.mrf.mxu0 }
 0x14c   : >> { %v296_v34 = vpop.f32.mrf.mxu0 }
 0x14d   : >> { %v578_v35 = vpop.f32.mrf.mxu1  ;;  %v347_v49 = vadd.f32 %v346_v26, %v296_v34 }
 0x14e   : >> { %v993_v36 = vpop.f32.mrf.mxu0 }
 0x14f   : >> { %v1022_v37 = vpop.f32.mrf.mxu1 }
 0x150   : >> { %v398_v38 = vpop.f32.mrf.mxu0 }
 0x151   : >> { %v581_v39 = vpop.f32.mrf.mxu1  ;;  %v405_v46 = vadd.f32 %v398_v38, %v344_v43 }
 0x152   : >> { %v1004_v40 = vpop.f32.mrf.mxu0 }
 0x153   : >> { %v1023_v41 = vpop.f32.mrf.mxu1  ;;  %v471_v52 = vadd.f32 %v464_v28, %v405_v46 }
 0x154   : >> { %v401_v42 = vpop.f32.mrf.mxu0 }
 0x155   : >> { %v701_v44 = vpop.f32.mrf.mxu1  ;;  %v406_v53 = vadd.f32 %v401_v42, %v347_v49 }
 0x156   : >> { %v1005_v45 = vpop.f32.mrf.mxu0 }
 0x157   : >> { %v1034_v47 = vpop.f32.mrf.mxu1  ;;  %v472_v58 = vadd.f32 %v467_v30, %v406_v53 }
 0x158   : >> { %v521_v48 = vpop.f32.mrf.mxu0 }
 0x159   : >> { %v704_v50 = vpop.f32.mrf.mxu1  ;;  %v528_v56 = vadd.f32 %v521_v48, %v471_v52 }
 0x15a   : >> { %v1016_v51 = vpop.f32.mrf.mxu0 }
 0x15b   : >> { %v1035_v54 = vpop.f32.mrf.mxu1  ;;  %v585_v60 = vadd.f32 %v578_v35, %v528_v56 }
 0x15c   : >> { %v524_v55 = vpop.f32.mrf.mxu0 }
 0x15d   : >> { %v529_v61 = vadd.f32 %v524_v55, %v472_v58 }
 0x15e   : >> { %v1017_v57 = vpop.f32.mrf.mxu0 }
 0x15f   : >> { %v586_v2 = vadd.f32 %v581_v39, %v529_v61 }
 0x160   : >> { %v644_v59 = vpop.f32.mrf.mxu0 }
 0x161   : >> { %v651_v63 = vadd.f32 %v644_v59, %v585_v60 }
 0x162   : >> { %v1028_v62 = vpop.f32.mrf.mxu0 }
 0x163   : >> { %v708_v4 = vadd.f32 %v701_v44, %v651_v63 }
 0x164   : >> { %v647_v0 = vpop.f32.mrf.mxu0 }
 0x165   : >> { %v652_v5 = vadd.f32 %v647_v0, %v586_v2 }
 0x166   : >> { %v1029_v3 = vpop.f32.mrf.mxu0 }
 0x167   : >> { %v709_v11 = vadd.f32 %v704_v50, %v652_v5 }
 0x168   : >> { %v758_v6 = vpop.f32.mrf.mxu0 }
 0x169   : >> { %v765_v7 = vadd.f32 %v758_v6, %v708_v4 }
 0x16a   : >> { %v1040_v9 = vpop.f32.mrf.mxu0 }
 0x16b   : >> { %v779_v12 = vmul.f32 %v772_v8, %v765_v7 }
 0x16c   : >> { %v761_v13 = vpop.f32.mrf.mxu0 }
 0x16d   : >> { %v793_v14 = vadd.f32 %v786_v10, %v779_v12  ;;  %v766_v15 = vadd.f32 %v761_v13, %v709_v11 }
 0x16e   : >> { %v1041_v16 = vpop.f32.mrf.mxu0 }
 0x16f   : >> { %v795_v17 = vmax.f32 %v793_v14, 0.0  ;;  %v780_v18 = vmul.f32 %v777_v1, %v766_v15 }
 0x171   : >> { %800 = vst.msk [vmem:[%s798_s12] sm:$0xff] %vm799_vm2, %v795_v17  ;;  %v794_v20 = vadd.f32 %v791_v19, %v780_v18  ;;  %229 = sbr.rel (!%p227_p5) target bundleno = 15 (0xf), region = 85 }
 0x173   : >> { %v796_v21 = vmax.f32 %v794_v20, 0.0 }
 0x175   : >> { %801 = vst.msk [vmem:[%s798_s12 + $0x8] sm:$0xff] %vm799_vm2, %v796_v21 }
 0x176 PF: > { %s14_s17 = sadd.s32 1, %s1119_s17   ;;  %s1284_s15 = smov %s1115_s16 }
 0x177   : > { %p11_p6 = scmp.ge.s32.totalorder %s14_s17, 4   ;;  %s1285_s16 = smov %s1287_s18 }
 0x179   :  { %13 = sbr.rel (!%p11_p6) target bundleno = 2 (0x2), region = 96 }

// kernel: forward.38
= control target key start
LH: loop header
LB: loop body
LE: loop exit
PB: predicated region body
PF: predicated region fallthrough
CT: control target
= control target key end

     0   :  { %s1785_s15 = smov 0   ;;  %s1787_s16 = smov 0   ;;  %s2120_s0 = inlined_call_operand.vmem [shape: bf16[2,6,16,6], index: 0, kind: input, shape index: {}]   ;;  %s2121_s1 = inlined_call_operand.vmem [shape: bf16[3,3,48,16], index: 1, kind: input, shape index: {}]   ;;  %s2122_s2 = inlined_call_operand.vmem [shape: f32[48,1], index: 2, kind: input, shape index: {}]   ;;  %s2123_s3 = inlined_call_operand.vmem [shape: f32[48,1], index: 3, kind: input, shape index: {}]   ;;  %s2124_s4 = inlined_call_operand.vmem [shape: bf16[2,4,48,4], index: 4, kind: output, shape index: {}]  }
   0x1   :  { %s1789_s17 = smov 0  }
   0x2 LB: > { %s26_s18 = sadd.s32 1, %s1745_s16  ;;  %p1355_p0 = scmp.ge.s32.totalorder %s1749_s17, 1  ;;  %s1749_s17 = sphi %s1789_s17, %s14_s17   ;;  %s1745_s16 = sphi %s1787_s16, %s2126_s16   ;;  %s1741_s15 = sphi %s1785_s15, %s2125_s15  }
   0x3   : > { %p28_p1 = scmp.ge.s32.totalorder %s26_s18, 2  ;;  %p176_p2 = scmp.lt.s32.totalorder %s1749_s17, 3 }
   0x5   : > { %s2128_s18 = smov (%p28_p1, %s26_s18), 0  ;;  %p177_p3 = pnand %p1355_p0, %p176_p2 }
   0x6   : > { %p207_p4 = scmp.lt.s32.totalorder (!%p177_p3), %s1741_s15, 1  ;;  %s1813_s27 = smov (!%p177_p3), 0  }
   0x7   : > { %180 = sbr.rel (%p177_p3) target bundleno = 452 (0x1c4), region = 36 }
   0xc   : > { %s2130_s15 = smov (!%p207_p4, %s1741_s15), 1 }
   0xd   : > { %s1652_s19 = smul.u32 48, %s2130_s15 }
   0xe   : > { %s1653_s20 = smul.u32 96, %s2130_s15 }
   0xf   : > { %s1806_s23 = scalar_lea.vmem %s2120_s0, %s1652_s19 }
  0x10   : > { %s1811_s26 = scalar_lea.vmem %s2124_s4, %s1653_s20 }
  0x11 LB: >> { %v1755_v0 = vmov 0.0   ;;  %s1480_s28 = sshll.u32 %s1753_s27, 3  ;;  %vm1756_vm0 = vmmov 0   ;;  %s1757_s30 = smov 127   ;;  %v1120_v4 = vld [vmem:[%s2122_s2 + $0x8] sm:$0xff]  ;;  %v1119_v5 = vld [vmem:[%s2122_s2] sm:$0xff]  ;;  %s1753_s27 = sphi %s1813_s27, %s230_s27  }
  0x12   : >> { %1524 = vmatprep.subr.bf16.mxu0 %v1755_v0  ;;  %1650 = vmatprep.subr.bf16.mxu1 %v1755_v0  ;;  %s234_s29 = scalar_lea.vmem %s1806_s23, %s1480_s28  ;;  %s1758_s5 = smov 126   ;;  %v1759_v6 = vmov 0   ;;  %v1121_v7 = vld [vmem:[%s2122_s2 + $0x10] sm:$0xff]  ;;  %v1122_v8 = vld [vmem:[%s2122_s2 + $0x18] sm:$0xff]  ;;  %v1123_v9 = vld [vmem:[%s2122_s2 + $0x20] sm:$0xff]  ;;  %vm273_vm1 = vcmask 130048  }
  0x13   : >> { %1530 = vmatprep.mubr.msk.bf16.mxu1 %vm1756_vm0, %v1755_v0  ;;  %1526 = vmatprep.mubr.msk.bf16.mxu0 %vm1756_vm0, %v1755_v0  ;;  %v1693_v1 = vld [vmem:[%s234_s29] sm:$0xff]   ;;  %v1826_v2 = vld [vmem:[%s234_s29 + $0x8] sm:$0xff]   ;;  %v1829_v3 = vld [vmem:[%s234_s29 + $0x10] sm:$0xff]   ;;  %vm1236_vm2 = vcmask 27648  }
  0x14   : >> { %270 = vrot.lane.b32.xlu0 %v1693_v1, %s1757_s30  ;;  %647 = vrot.lane.b32.xlu1 %v1826_v2, %s1757_s30  ;;  %v1124_v10 = vld [vmem:[%s2122_s2 + $0x28] sm:$0xff]  ;;  %v1161_v11 = vld [vmem:[%s2123_s3] sm:$0xff] }
  0x15   : >> { %1692 = vset.pattern.permute.xlu1 %v1759_v6  ;;  %1691 = vset.pattern.permute.xlu0 %v1759_v6  ;;  %v1162_v12 = vld [vmem:[%s2123_s3 + $0x8] sm:$0xff]  ;;  %v1163_v13 = vld [vmem:[%s2123_s3 + $0x10] sm:$0xff]  ;;  %v1164_v14 = vld [vmem:[%s2123_s3 + $0x18] sm:$0xff] }
  0x16   : >> { %v1696_v15 = vld [vmem:[%s2121_s1 + $0x20] sm:$0xff]   ;;  %v1697_v17 = vld [vmem:[%s2121_s1 + $0x18] sm:$0xff]   ;;  %v1166_v19 = vld [vmem:[%s2123_s3 + $0x28] sm:$0xff] }
  0x17   : >> { %v1165_v18 = vld [vmem:[%s2123_s3 + $0x20] sm:$0xff]  ;;  %v1698_v21 = vld [vmem:[%s2121_s1 + $0x28] sm:$0xff]   ;;  %v1699_v22 = vld [vmem:[%s2121_s1 + $0x30] sm:$0xff]  }
  0x18   : >> { %444 = vrot.lane.b32.xlu0 %v1693_v1, %s1758_s5  ;;  %744 = vrot.lane.b32.xlu1 %v1826_v2, %s1758_s5  ;;  %v1700_v24 = vld [vmem:[%s2121_s1] sm:$0xff]   ;;  %v1701_v25 = vld [vmem:[%s2121_s1 + $0x38] sm:$0xff]  }
  0x19   : >> { %v1702_v26 = vld [vmem:[%s2121_s1 + $0x8] sm:$0xff]   ;;  %v1703_v27 = vld [vmem:[%s2121_s1 + $0x40] sm:$0xff]   ;;  %v1704_v28 = vld [vmem:[%s2121_s1 + $0x10] sm:$0xff]  }
  0x1a   : >> { %v1705_v29 = vld [vmem:[%s2121_s1 + $0x60] sm:$0xff]   ;;  %v1706_v30 = vld [vmem:[%s2121_s1 + $0x48] sm:$0xff]   ;;  %v1708_v33 = vld [vmem:[%s2121_s1 + $0x50] sm:$0xff]  }
  0x1b   : >> { %v1707_v31 = vld [vmem:[%s2121_s1 + $0x68] sm:$0xff]   ;;  %v1709_v34 = vld [vmem:[%s2121_s1 + $0x70] sm:$0xff]   ;;  %v1710_v35 = vld [vmem:[%s2121_s1 + $0x58] sm:$0xff]  }
  0x1c   : >> { %947 = vrot.lane.b32.xlu0 %v1829_v3, %s1757_s30  ;;  %1044 = vrot.lane.b32.xlu1 %v1829_v3, %s1758_s5  ;;  %v1711_v36 = vld [vmem:[%s2121_s1 + $0x90] sm:$0xff]   ;;  %v1712_v38 = vld [vmem:[%s2121_s1 + $0x78] sm:$0xff]   ;;  %s1487_s30 = smul.u32 24, %s1753_s27  ;;  %s230_s27 = sadd.s32 1, %s1753_s27  }
  0x1d   : >> { %v1713_v39 = vld [vmem:[%s2121_s1 + $0x98] sm:$0xff]   ;;  %v1714_v41 = vld [vmem:[%s2121_s1 + $0x80] sm:$0xff]   ;;  %v1716_v43 = vld [vmem:[%s2121_s1 + $0x88] sm:$0xff]   ;;  %p227_p5 = scmp.ge.s32.totalorder %s230_s27, 4  }
  0x1e   : >> { %v1715_v42 = vld [vmem:[%s2121_s1 + $0xa0] sm:$0xff]   ;;  %v1718_v45 = vld [vmem:[%s2121_s1 + $0xa8] sm:$0xff]   ;;  %v1720_v47 = vld [vmem:[%s2121_s1 + $0xb0] sm:$0xff]   ;;  %s2086_s5 = scalar_lea.vmem %s1811_s26, %s1487_s30 }
  0x1f   : >> { %v1717_v44 = vld [vmem:[%s2121_s1 + $0xc0] sm:$0xff]   ;;  %v1719_v46 = vld [vmem:[%s2121_s1 + $0xc8] sm:$0xff]   ;;  %v1721_v48 = vld [vmem:[%s2121_s1 + $0xd0] sm:$0xff]  }
  0x20   : >> { %1132 = vperm.xlu1 %1692, %v1120_v4   ;;  %1127 = vperm.xlu0 %1691, %v1119_v5   ;;  %v1722_v49 = vld [vmem:[%s2121_s1 + $0xb8] sm:$0xff]  }
  0x24   : >> { %1137 = vperm.xlu1 %1692, %v1121_v7   ;;  %1142 = vperm.xlu0 %1691, %v1122_v8  }
  0x28   : >> { %1147 = vperm.xlu1 %1692, %v1123_v9   ;;  %1152 = vperm.xlu0 %1691, %v1124_v10  }
  0x2c   : >> { %1169 = vperm.xlu1 %1692, %v1161_v11   ;;  %1174 = vperm.xlu0 %1691, %v1162_v12  }
  0x30   : >> { %1179 = vperm.xlu1 %1692, %v1163_v13   ;;  %1184 = vperm.xlu0 %1691, %v1164_v14  }
  0x34   : >> { %1189 = vperm.xlu1 %1692, %v1165_v18   ;;  %1194 = vperm.xlu0 %1691, %v1166_v19  }
  0x86   : >> { %v271_v16 = vpop.permute.xlu0 %270  ;;  %v648_v23 = vpop.permute.xlu1 %647 }
  0x87   : >> { %1525 = vmatpush3.bf16.msra.mxu0 %v271_v16  ;;  %1651 = vmatpush3.bf16.msra.mxu1 %v271_v16 }
  0x88   : >> { %1538 = vmatprep.subr.bf16.mxu1 %v1755_v0  ;;  %1552 = vmatprep.subr.bf16.mxu0 %v1755_v0 }
  0x8a   : >> { %1531 = vmatmul.mubr.msk.bf16.vlgmr.msra.gmra.mxu1 %vm273_vm1, %v1696_v15  ;;  %1527 = vmatmul.mubr.msk.bf16.vlgmr.msra.gmra.mxu0 %vm273_vm1, %v1697_v17  ;;  %v445_v20 = vpop.permute.xlu0 %444  ;;  %v745_v32 = vpop.permute.xlu1 %744 }
  0x8b   : >> { %1539 = vmatpush3.bf16.msra.mxu1 %v1693_v1  ;;  %1534 = vmatprep.mubr.msk.bf16.mxu1 %vm1756_vm0, %v1755_v0 }
  0x8c   : >> { %1553 = vmatpush3.bf16.msra.mxu0 %v445_v20  ;;  %1554 = vmatprep.mubr.msk.bf16.mxu0 %vm1756_vm0, %v1755_v0 }
  0x8d   : >> { %1566 = vmatprep.subr.bf16.mxu1 %v1755_v0  ;;  %1580 = vmatprep.subr.bf16.mxu0 %v1755_v0 }
  0x8e   : >> { %v1045_v37 = vpop.permute.xlu1 %1044  ;;  %v948_v40 = vpop.permute.xlu0 %947 }
  0x92   : >> { %1535 = vmatmul.mubr.msk.bf16.gmra.mxu1 %vm273_vm1, %v1698_v21  ;;  %1555 = vmatmul.mubr.msk.bf16.vlgmr.msra.gmra.mxu0 %vm273_vm1, %v1699_v22 }
  0x93   : >> { %1540 = vmatprep.mubr.msk.bf16.mxu1 %vm1756_vm0, %v1755_v0  ;;  %1581 = vmatpush3.bf16.msra.mxu0 %v648_v23 }
  0x94   : >> { %1558 = vmatprep.mubr.msk.bf16.mxu0 %vm1756_vm0, %v1755_v0  ;;  %1608 = vmatprep.subr.bf16.mxu0 %v1755_v0 }
  0x9a   : >> { %1541 = vmatmul.mubr.msk.bf16.vlgmr.msra.gmra.mxu1 %vm273_vm1, %v1700_v24  ;;  %1559 = vmatmul.mubr.msk.bf16.gmra.mxu0 %vm273_vm1, %v1701_v25 }
  0x9b   : >> { %1567 = vmatpush3.bf16.msra.mxu1 %v1826_v2  ;;  %1544 = vmatprep.mubr.msk.bf16.mxu1 %vm1756_vm0, %v1755_v0 }
  0x9c   : >> { %1562 = vmatprep.mubr.msk.bf16.mxu0 %vm1756_vm0, %v1755_v0  ;;  %1594 = vmatprep.subr.bf16.mxu1 %v1755_v0 }
  0xa2   : >> { %1545 = vmatmul.mubr.msk.bf16.gmra.mxu1 %vm273_vm1, %v1702_v26  ;;  %1563 = vmatmul.mubr.msk.bf16.gmra.mxu0 %vm273_vm1, %v1703_v27 }
  0xa3   : >> { %1548 = vmatprep.mubr.msk.bf16.mxu1 %vm1756_vm0, %v1755_v0  ;;  %1582 = vmatprep.mubr.msk.bf16.mxu0 %vm1756_vm0, %v1755_v0 }
  0xaa   : >> { %1549 = vmatmul.mubr.msk.bf16.gmra.mxu1 %vm273_vm1, %v1704_v28  ;;  %1583 = vmatmul.mubr.msk.bf16.vlgmr.msra.gmra.mxu0 %vm273_vm1, %v1705_v29 }
  0xab   : >> { %1568 = vmatprep.mubr.msk.bf16.mxu1 %vm1756_vm0, %v1755_v0  ;;  %1609 = vmatpush3.bf16.msra.mxu0 %v1829_v3 }
  0xac   : >> { %1586 = vmatprep.mubr.msk.bf16.mxu0 %vm1756_vm0, %v1755_v0  ;;  %1636 = vmatprep.subr.bf16.mxu0 %v1755_v0 }
  0xb2   : >> { %1569 = vmatmul.mubr.msk.bf16.vlgmr.msra.gmra.mxu1 %vm273_vm1, %v1706_v30  ;;  %1587 = vmatmul.mubr.msk.bf16.gmra.mxu0 %vm273_vm1, %v1707_v31 }
  0xb3   : >> { %1595 = vmatpush3.bf16.msra.mxu1 %v745_v32  ;;  %1572 = vmatprep.mubr.msk.bf16.mxu1 %vm1756_vm0, %v1755_v0 }
  0xb4   : >> { %1590 = vmatprep.mubr.msk.bf16.mxu0 %vm1756_vm0, %v1755_v0  ;;  %1622 = vmatprep.subr.bf16.mxu1 %v1755_v0 }
  0xba   : >> { %1573 = vmatmul.mubr.msk.bf16.gmra.mxu1 %vm273_vm1, %v1708_v33  ;;  %1591 = vmatmul.mubr.msk.bf16.gmra.mxu0 %vm273_vm1, %v1709_v34 }
  0xbb   : >> { %1576 = vmatprep.mubr.msk.bf16.mxu1 %vm1756_vm0, %v1755_v0  ;;  %1610 = vmatprep.mubr.msk.bf16.mxu0 %vm1756_vm0, %v1755_v0 }
  0xc2   : >> { %1577 = vmatmul.mubr.msk.bf16.gmra.mxu1 %vm273_vm1, %v1710_v35  ;;  %1611 = vmatmul.mubr.msk.bf16.vlgmr.msra.gmra.mxu0 %vm273_vm1, %v1711_v36 }
  0xc3   : >> { %1596 = vmatprep.mubr.msk.bf16.mxu1 %vm1756_vm0, %v1755_v0  ;;  %1637 = vmatpush3.bf16.msra.mxu0 %v1045_v37 }
  0xc4   : >> { %1614 = vmatprep.mubr.msk.bf16.mxu0 %vm1756_vm0, %v1755_v0 }
  0xca   : >> { %1597 = vmatmul.mubr.msk.bf16.vlgmr.msra.gmra.mxu1 %vm273_vm1, %v1712_v38  ;;  %1615 = vmatmul.mubr.msk.bf16.gmra.mxu0 %vm273_vm1, %v1713_v39 }
  0xcb   : >> { %1623 = vmatpush3.bf16.msra.mxu1 %v948_v40  ;;  %1600 = vmatprep.mubr.msk.bf16.mxu1 %vm1756_vm0, %v1755_v0 }
  0xcc   : >> { %1618 = vmatprep.mubr.msk.bf16.mxu0 %vm1756_vm0, %v1755_v0 }
  0xd2   : >> { %1601 = vmatmul.mubr.msk.bf16.gmra.mxu1 %vm273_vm1, %v1714_v41  ;;  %1619 = vmatmul.mubr.msk.bf16.gmra.mxu0 %vm273_vm1, %v1715_v42 }
  0xd3   : >> { %1604 = vmatprep.mubr.msk.bf16.mxu1 %vm1756_vm0, %v1755_v0  ;;  %1638 = vmatprep.mubr.msk.bf16.mxu0 %vm1756_vm0, %v1755_v0 }
  0xda   : >> { %1605 = vmatmul.mubr.msk.bf16.gmra.mxu1 %vm273_vm1, %v1716_v43  ;;  %1639 = vmatmul.mubr.msk.bf16.vlgmr.msra.gmra.mxu0 %vm273_vm1, %v1717_v44 }
  0xdb   : >> { %1624 = vmatprep.mubr.msk.bf16.mxu1 %vm1756_vm0, %v1755_v0  ;;  %1642 = vmatprep.mubr.msk.bf16.mxu0 %vm1756_vm0, %v1755_v0 }
  0xe2   : >> { %1625 = vmatmul.mubr.msk.bf16.vlgmr.msra.gmra.mxu1 %vm273_vm1, %v1718_v45  ;;  %1643 = vmatmul.mubr.msk.bf16.gmra.mxu0 %vm273_vm1, %v1719_v46 }
  0xe3   : >> { %1628 = vmatprep.mubr.msk.bf16.mxu1 %vm1756_vm0, %v1755_v0  ;;  %1646 = vmatprep.mubr.msk.bf16.mxu0 %vm1756_vm0, %v1755_v0 }
  0xea   : >> { %1629 = vmatmul.mubr.msk.bf16.gmra.mxu1 %vm273_vm1, %v1720_v47  ;;  %1647 = vmatmul.mubr.msk.bf16.gmra.mxu0 %vm273_vm1, %v1721_v48 }
  0xeb   : >> { %1632 = vmatprep.mubr.msk.bf16.mxu1 %vm1756_vm0, %v1755_v0 }
  0xf2   : >> { %1633 = vmatmul.mubr.msk.bf16.gmra.mxu1 %vm273_vm1, %v1722_v49 }
 0x14a   : >> { %v325_v50 = vpop.f32.mrf.mxu1  ;;  %v317_v51 = vpop.f32.mrf.mxu0 }
 0x14c   : >> { %v1532_v52 = vpop.f32.mrf.mxu1  ;;  %v1528_v53 = vpop.f32.mrf.mxu0 }
 0x14e   : >> { %v328_v54 = vpop.f32.mrf.mxu1  ;;  %v320_v55 = vpop.f32.mrf.mxu0 }
 0x150   : >> { %v1533_v56 = vpop.f32.mrf.mxu1  ;;  %v1529_v57 = vpop.f32.mrf.mxu0 }
 0x152   : >> { %v333_v58 = vpop.f32.mrf.mxu1  ;;  %v490_v59 = vpop.f32.mrf.mxu0 }
 0x154   : >> { %v1536_v60 = vpop.f32.mrf.mxu1  ;;  %v1556_v61 = vpop.f32.mrf.mxu0 }
 0x156   : >> { %v336_v62 = vpop.f32.mrf.mxu1  ;;  %v493_v63 = vpop.f32.mrf.mxu0 }
 0x158   : >> { %v1537_v0 = vpop.f32.mrf.mxu1  ;;  %v1557_v1 = vpop.f32.mrf.mxu0 }
 0x15a   : >> { %v399_v2 = vpop.f32.mrf.mxu1  ;;  %v498_v3 = vpop.f32.mrf.mxu0 }
 0x15b   : >> { %v400_v4 = vadd.f32 %v399_v2, %v317_v51 }
 0x15c   : >> { %v1542_v5 = vpop.f32.mrf.mxu1  ;;  %v1560_v6 = vpop.f32.mrf.mxu0 }
 0x15d   : >> { %v2038_v7 = vadd.f32 %v490_v59, %v400_v4 }
 0x15e   : >> { %v402_v8 = vpop.f32.mrf.mxu1  ;;  %v501_v9 = vpop.f32.mrf.mxu0 }
 0x15f   : >> { %v403_v10 = vadd.f32 %v402_v8, %v320_v55 }
 0x160   : >> { %v1543_v11 = vpop.f32.mrf.mxu1  ;;  %v1561_v12 = vpop.f32.mrf.mxu0 }
 0x161   : >> { %v2040_v13 = vadd.f32 %v493_v63, %v403_v10  ;;  %v1133_v11 = vpop.permute.xlu1 %1132 }
 0x162   : >> { %v407_v14 = vpop.f32.mrf.mxu1  ;;  %v506_v15 = vpop.f32.mrf.mxu0 }
 0x163   : >> { %v408_v16 = vadd.f32 %v407_v14, %v325_v50 }
 0x164   : >> { %v1546_v17 = vpop.f32.mrf.mxu1  ;;  %v1564_v18 = vpop.f32.mrf.mxu0 }
 0x165   : >> { %v2042_v19 = vadd.f32 %v498_v3, %v408_v16  ;;  %v1128_v18 = vpop.permute.xlu0 %1127 }
 0x166   : >> { %v410_v20 = vpop.f32.mrf.mxu1  ;;  %v509_v21 = vpop.f32.mrf.mxu0 }
 0x167   : >> { %v411_v22 = vadd.f32 %v410_v20, %v328_v54 }
 0x168   : >> { %v1547_v23 = vpop.f32.mrf.mxu1  ;;  %v1565_v24 = vpop.f32.mrf.mxu0 }
 0x169   : >> { %v2044_v25 = vadd.f32 %v501_v9, %v411_v22  ;;  %v1138_v24 = vpop.permute.xlu1 %1137 }
 0x16a   : >> { %v415_v26 = vpop.f32.mrf.mxu1  ;;  %v693_v27 = vpop.f32.mrf.mxu0 }
 0x16b   : >> { %v416_v28 = vadd.f32 %v415_v26, %v333_v58 }
 0x16c   : >> { %v1550_v29 = vpop.f32.mrf.mxu1  ;;  %v1584_v30 = vpop.f32.mrf.mxu0 }
 0x16d   : >> { %v2046_v31 = vadd.f32 %v506_v15, %v416_v28 }
 0x16e   : >> { %v418_v32 = vpop.f32.mrf.mxu1  ;;  %v696_v33 = vpop.f32.mrf.mxu0 }
 0x16f   : >> { %v419_v34 = vadd.f32 %v418_v32, %v336_v62 }
 0x170   : >> { %v1551_v35 = vpop.f32.mrf.mxu1  ;;  %v1585_v36 = vpop.f32.mrf.mxu0 }
 0x171   : >> { %v2048_v37 = vadd.f32 %v509_v21, %v419_v34  ;;  %v2071_v36 = vpop.permute.xlu0 %1142 }
 0x172   : >> { %v596_v38 = vpop.f32.mrf.mxu1  ;;  %v2050_v39 = vpop.f32.mrf.mxu0 }
 0x173   : >> { %v619_v15 = vadd.f32 %v596_v38, %v2038_v7 }
 0x174   : >> { %v1570_v40 = vpop.f32.mrf.mxu1  ;;  %v1588_v41 = vpop.f32.mrf.mxu0 }
 0x175   : >> { %v716_v23 = vadd.f32 %v693_v27, %v619_v15  ;;  %v2073_v41 = vpop.permute.xlu1 %1147 }
 0x176   : >> { %v599_v42 = vpop.f32.mrf.mxu1  ;;  %v2052_v43 = vpop.f32.mrf.mxu0 }
 0x177   : >> { %v620_v22 = vadd.f32 %v599_v42, %v2040_v13 }
 0x178   : >> { %v1571_v44 = vpop.f32.mrf.mxu1  ;;  %v1589_v45 = vpop.f32.mrf.mxu0 }
 0x179   : >> { %v717_v35 = vadd.f32 %v696_v33, %v620_v22  ;;  %v2077_v33 = vpop.permute.xlu0 %1152 }
 0x17a   : >> { %v604_v46 = vpop.f32.mrf.mxu1  ;;  %v2054_v47 = vpop.f32.mrf.mxu0 }
 0x17b   : >> { %v621_v34 = vadd.f32 %v604_v46, %v2042_v19 }
 0x17c   : >> { %v1574_v48 = vpop.f32.mrf.mxu1  ;;  %v1592_v49 = vpop.f32.mrf.mxu0 }
 0x17d   : >> { %v718_v45 = vadd.f32 %v2050_v39, %v621_v34 }
 0x17e   : >> { %v607_v50 = vpop.f32.mrf.mxu1  ;;  %v2056_v51 = vpop.f32.mrf.mxu0 }
 0x17f   : >> { %v622_v42 = vadd.f32 %v607_v50, %v2044_v25 }
 0x180   : >> { %v1575_v52 = vpop.f32.mrf.mxu1  ;;  %v1593_v53 = vpop.f32.mrf.mxu0 }
 0x182   : >> { %v612_v54 = vpop.f32.mrf.mxu1  ;;  %v896_v55 = vpop.f32.mrf.mxu0 }
 0x184   : >> { %v1578_v56 = vpop.f32.mrf.mxu1  ;;  %v1612_v57 = vpop.f32.mrf.mxu0 }
 0x185   : >> { %v623_v56 = vadd.f32 %v612_v54, %v2046_v31  ;;  %v1175_v54 = vpop.permute.xlu0 %1174 }
 0x186   : >> { %v2058_v58 = vpop.f32.mrf.mxu1  ;;  %v899_v59 = vpop.f32.mrf.mxu0 }
 0x187   : >> { %v624_v31 = vadd.f32 %v2058_v58, %v2048_v37 }
 0x188   : >> { %v1579_v60 = vpop.f32.mrf.mxu1  ;;  %v1613_v61 = vpop.f32.mrf.mxu0 }
 0x189   : >> { %v1170_v61 = vpop.permute.xlu1 %1169  ;;  %v721_v37 = vadd.f32 %v2056_v51, %v624_v31 }
 0x18a   : >> { %v790_v62 = vpop.f32.mrf.mxu1  ;;  %v904_v63 = vpop.f32.mrf.mxu0 }
 0x18b   : >> { %v813_v29 = vadd.f32 %v790_v62, %v716_v23 }
 0x18c   : >> { %v1598_v0 = vpop.f32.mrf.mxu1  ;;  %v1616_v1 = vpop.f32.mrf.mxu0 }
 0x18d   : >> { %v919_v44 = vadd.f32 %v896_v55, %v813_v29  ;;  %v719_v55 = vadd.f32 %v2052_v43, %v622_v42  ;;  %v1180_v58 = vpop.permute.xlu1 %1179 }
 0x18e   : >> { %v793_v2 = vpop.f32.mrf.mxu1  ;;  %v2060_v3 = vpop.f32.mrf.mxu0 }
 0x18f   : >> { %v814_v40 = vadd.f32 %v793_v2, %v717_v35 }
 0x190   : >> { %v1599_v4 = vpop.f32.mrf.mxu1  ;;  %v1617_v5 = vpop.f32.mrf.mxu0 }
 0x191   : >> { %v920_v53 = vadd.f32 %v899_v59, %v814_v40  ;;  %v720_v5 = vadd.f32 %v2054_v47, %v623_v56 }
 0x192   : >> { %v798_v6 = vpop.f32.mrf.mxu1  ;;  %v2062_v8 = vpop.f32.mrf.mxu0 }
 0x193   : >> { %v815_v19 = vadd.f32 %v798_v6, %v718_v45 }
 0x194   : >> { %v1602_v9 = vpop.f32.mrf.mxu1  ;;  %v1620_v10 = vpop.f32.mrf.mxu0 }
 0x195   : >> { %v921_v4 = vadd.f32 %v904_v63, %v815_v19 }
 0x196   : >> { %v801_v12 = vpop.f32.mrf.mxu1  ;;  %v2064_v14 = vpop.f32.mrf.mxu0 }
 0x197   : >> { %v816_v0 = vadd.f32 %v801_v12, %v719_v55 }
 0x198   : >> { %v1603_v16 = vpop.f32.mrf.mxu1  ;;  %v1621_v17 = vpop.f32.mrf.mxu0 }
 0x199   : >> { %v922_v47 = vadd.f32 %v2060_v3, %v816_v0 }
 0x19a   : >> { %v806_v20 = vpop.f32.mrf.mxu1  ;;  %v1090_v21 = vpop.f32.mrf.mxu0 }
 0x19b   : >> { %v817_v15 = vadd.f32 %v806_v20, %v720_v5 }
 0x19c   : >> { %v1606_v26 = vpop.f32.mrf.mxu1  ;;  %v1640_v28 = vpop.f32.mrf.mxu0 }
 0x19d   : >> { %v923_v28 = vadd.f32 %v2062_v8, %v817_v15 }
 0x19e   : >> { %v2068_v30 = vpop.f32.mrf.mxu1  ;;  %v1093_v32 = vpop.f32.mrf.mxu0 }
 0x1a0   : >> { %v1607_v7 = vpop.f32.mrf.mxu1  ;;  %v1641_v38 = vpop.f32.mrf.mxu0 }
 0x1a2   : >> { %v993_v13 = vpop.f32.mrf.mxu1  ;;  %v1098_v27 = vpop.f32.mrf.mxu0 }
 0x1a3   : >> { %v1016_v48 = vadd.f32 %v993_v13, %v919_v44  ;;  %v1185_v44 = vpop.permute.xlu0 %1184 }
 0x1a4   : >> { %v1626_v49 = vpop.f32.mrf.mxu1  ;;  %v1644_v52 = vpop.f32.mrf.mxu0 }
 0x1a5   : >> { %v1113_v46 = vadd.f32 %v1090_v21, %v1016_v48  ;;  %v1190_v52 = vpop.permute.xlu1 %1189 }
 0x1a6   : >> { %v996_v57 = vpop.f32.mrf.mxu1  ;;  %v1101_v60 = vpop.f32.mrf.mxu0 }
 0x1a7   : >> { %v1155_v62 = vmul.f32 %v1128_v18, %v1113_v46  ;;  %v1017_v25 = vadd.f32 %v996_v57, %v920_v53 }
 0x1a8   : >> { %v1627_v39 = vpop.f32.mrf.mxu1  ;;  %v1645_v50 = vpop.f32.mrf.mxu0 }
 0x1a9   : >> { %v1197_v1 = vadd.f32 %v1170_v61, %v1155_v62  ;;  %v1114_v2 = vadd.f32 %v1093_v32, %v1017_v25  ;;  %v818_v32 = vadd.f32 %v2068_v30, %v721_v37 }
 0x1aa   : >> { %v1001_v59 = vpop.f32.mrf.mxu1  ;;  %v1106_v6 = vpop.f32.mrf.mxu0 }
 0x1ab   : >> { %v1203_v43 = vmax.f32 %v1197_v1, 0.0  ;;  %v1156_v9 = vmul.f32 %v1133_v11, %v1114_v2  ;;  %v1018_v10 = vadd.f32 %v1001_v59, %v921_v4  ;;  %v924_v42 = vadd.f32 %v2064_v14, %v818_v32  ;;  %v1195_v14 = vpop.permute.xlu0 %1194 }
 0x1ac   : >> { %v1630_v12 = vpop.f32.mrf.mxu1  ;;  %v1648_v16 = vpop.f32.mrf.mxu0 }
 0x1ad   : >> { %v1481_v17 = vpack.c.bf16 %v1203_v43, %v1203_v43  ;;  %v1198_v63 = vadd.f32 %v1175_v54, %v1156_v9  ;;  %v1115_v18 = vadd.f32 %v1098_v27, %v1018_v10 }
 0x1ae   : >> { %v1004_v21 = vpop.f32.mrf.mxu1  ;;  %v1109_v22 = vpop.f32.mrf.mxu0 }
 0x1af   : >> { %1237 = vst.msk [vmem:[%s2086_s5] sm:$0xf] %vm1236_vm2, %v1481_v17  ;;  %v1204_v11 = vmax.f32 %v1198_v63, 0.0  ;;  %v1157_v23 = vmul.f32 %v1138_v24, %v1115_v18  ;;  %v1019_v26 = vadd.f32 %v1004_v21, %v922_v47 }
 0x1b0   : >> { %v1631_v20 = vpop.f32.mrf.mxu1  ;;  %v1649_v29 = vpop.f32.mrf.mxu0 }
 0x1b1   : >> { %v1482_v34 = vpack.c.bf16 %v1204_v11, %v1204_v11  ;;  %v1199_v3 = vadd.f32 %v1180_v58, %v1157_v23  ;;  %v1116_v35 = vadd.f32 %v1101_v60, %v1019_v26 }
 0x1b2   : >> { %v1009_v7 = vpop.f32.mrf.mxu1 }
 0x1b3   : >> { %1238 = vst.msk [vmem:[%s2086_s5 + $0x4] sm:$0xf] %vm1236_vm2, %v1482_v34  ;;  %v1205_v51 = vmax.f32 %v1199_v3, 0.0  ;;  %v1158_v38 = vmul.f32 %v2071_v36, %v1116_v35  ;;  %v1020_v40 = vadd.f32 %v1009_v7, %v923_v28 }
 0x1b4   : >> { %v1634_v24 = vpop.f32.mrf.mxu1 }
 0x1b5   : >> { %v1483_v13 = vpack.c.bf16 %v1205_v51, %v1205_v51  ;;  %v1200_v27 = vadd.f32 %v1185_v44, %v1158_v38  ;;  %v1117_v8 = vadd.f32 %v1106_v6, %v1020_v40 }
 0x1b6   : >> { %v1012_v30 = vpop.f32.mrf.mxu1 }
 0x1b7   : >> { %1239 = vst.msk [vmem:[%s2086_s5 + $0x8] sm:$0xf] %vm1236_vm2, %v1483_v13  ;;  %v1206_v45 = vmax.f32 %v1200_v27, 0.0  ;;  %v1159_v48 = vmul.f32 %v2073_v41, %v1117_v8  ;;  %v1021_v49 = vadd.f32 %v1012_v30, %v924_v42 }
 0x1b8   : >> { %v1635_v36 = vpop.f32.mrf.mxu1 }
 0x1b9   : >> { %v1484_v19 = vpack.c.bf16 %v1206_v45, %v1206_v45  ;;  %v1201_v46 = vadd.f32 %v1190_v52, %v1159_v48  ;;  %v1118_v53 = vadd.f32 %v1109_v22, %v1021_v49 }
 0x1bb   : >> { %1240 = vst.msk [vmem:[%s2086_s5 + $0xc] sm:$0xf] %vm1236_vm2, %v1484_v19  ;;  %v1207_v56 = vmax.f32 %v1201_v46, 0.0  ;;  %v1160_v57 = vmul.f32 %v2077_v33, %v1118_v53 }
 0x1bd   : >> { %v1485_v60 = vpack.c.bf16 %v1207_v56, %v1207_v56  ;;  %v1202_v55 = vadd.f32 %v1195_v14, %v1160_v57 }
 0x1bf   : >> { %1241 = vst.msk [vmem:[%s2086_s5 + $0x10] sm:$0xf] %vm1236_vm2, %v1485_v60  ;;  %v1208_v61 = vmax.f32 %v1202_v55, 0.0  ;;  %229 = sbr.rel (!%p227_p5) target bundleno = 17 (0x11), region = 85 }
 0x1c1   : >> { %v1486_v62 = vpack.c.bf16 %v1208_v61, %v1208_v61 }
 0x1c3   : >> { %1242 = vst.msk [vmem:[%s2086_s5 + $0x14] sm:$0xf] %vm1236_vm2, %v1486_v62 }
 0x1c4 PF: > { %s14_s17 = sadd.s32 1, %s1749_s17   ;;  %s2125_s15 = smov %s1745_s16 }
 0x1c5   : > { %p11_p6 = scmp.ge.s32.totalorder %s14_s17, 4   ;;  %s2126_s16 = smov %s2128_s18 }
 0x1c7   :  { %13 = sbr.rel (!%p11_p6) target bundleno = 2 (0x2), region = 96 }

// kernel: forward.39
= control target key start
LH: loop header
LB: loop body
LE: loop exit
PB: predicated region body
PF: predicated region fallthrough
CT: control target
= control target key end

     0   :  { %s1944_s15 = smov 0   ;;  %s1946_s16 = smov 0   ;;  %s2391_s0 = inlined_call_operand.vmem [shape: bf16[2,6,48,6], index: 0, kind: input, shape index: {}]   ;;  %s2392_s1 = inlined_call_operand.vmem [shape: bf16[3,3,48,48], index: 1, kind: input, shape index: {}]   ;;  %s2393_s2 = inlined_call_operand.vmem [shape: f32[48,1], index: 2, kind: input, shape index: {}]   ;;  %s2394_s3 = inlined_call_operand.vmem [shape: f32[48,1], index: 3, kind: input, shape index: {}]   ;;  %s2395_s4 = inlined_call_operand.vmem [shape: bf16[2,4,48,4], index: 4, kind: output, shape index: {}]  }
   0x1   :  { %s1948_s17 = smov 0  }
   0x2 LB: > { %s26_s18 = sadd.s32 1, %s1904_s16  ;;  %p1439_p0 = scmp.ge.s32.totalorder %s1908_s17, 1  ;;  %s1908_s17 = sphi %s1948_s17, %s14_s17   ;;  %s1904_s16 = sphi %s1946_s16, %s2397_s16   ;;  %s1900_s15 = sphi %s1944_s15, %s2396_s15  }
   0x3   : > { %p28_p1 = scmp.ge.s32.totalorder %s26_s18, 2  ;;  %p176_p2 = scmp.lt.s32.totalorder %s1908_s17, 3 }
   0x5   : > { %s2399_s18 = smov (%p28_p1, %s26_s18), 0  ;;  %p177_p3 = pnand %p1439_p0, %p176_p2 }
   0x6   : > { %p207_p4 = scmp.lt.s32.totalorder (!%p177_p3), %s1900_s15, 1  ;;  %s1972_s27 = smov (!%p177_p3), 0  }
   0x7   : > { %180 = sbr.rel (%p177_p3) target bundleno = 459 (0x1cb), region = 36 }
   0xc   : > { %s2401_s15 = smov (!%p207_p4, %s1900_s15), 1 }
   0xd   : > { %s1805_s19 = smul.u32 144, %s2401_s15 }
   0xe   : > { %s1806_s20 = smul.u32 96, %s2401_s15 }
   0xf   : > { %s1965_s23 = scalar_lea.vmem %s2391_s0, %s1805_s19 }
  0x10   : > { %s1970_s26 = scalar_lea.vmem %s2395_s4, %s1806_s20 }
  0x11 LB: >> { %v1914_v0 = vmov 0.0   ;;  %s1575_s28 = smul.u32 24, %s1912_s27  ;;  %vm1915_vm0 = vmmov 0   ;;  %s1916_s30 = smov 127   ;;  %v1203_v10 = vld [vmem:[%s2393_s2] sm:$0xff]  ;;  %v1204_v11 = vld [vmem:[%s2393_s2 + $0x8] sm:$0xff]  ;;  %s1912_s27 = sphi %s1972_s27, %s230_s27  }
  0x12   : >> { %1637 = vmatprep.subr.bf16.mxu0 %v1914_v0  ;;  %1799 = vmatprep.subr.bf16.mxu1 %v1914_v0  ;;  %s1917_s5 = smov 126   ;;  %v1918_v12 = vmov 0   ;;  %v1206_v13 = vld [vmem:[%s2393_s2 + $0x18] sm:$0xff]  ;;  %v1205_v14 = vld [vmem:[%s2393_s2 + $0x10] sm:$0xff]  ;;  %v1208_v15 = vld [vmem:[%s2393_s2 + $0x28] sm:$0xff]  ;;  %vm293_vm1 = vcmask 392192  }
  0x13   : >> { %1643 = vmatprep.mubr.msk.bf16.mxu0 %vm1915_vm0, %v1914_v0  ;;  %1651 = vmatprep.mubr.msk.bf16.mxu1 %vm1915_vm0, %v1914_v0  ;;  %s234_s29 = scalar_lea.vmem %s1965_s23, %s1575_s28  ;;  %v1207_v16 = vld [vmem:[%s2393_s2 + $0x20] sm:$0xff]  ;;  %v1246_v18 = vld [vmem:[%s2394_s3 + $0x8] sm:$0xff]  ;;  %v1248_v21 = vld [vmem:[%s2394_s3 + $0x18] sm:$0xff]  ;;  %s2354_s8 = scalar_lea.vmem %s1970_s26, %s1575_s28  ;;  %vm1320_vm2 = vcmask 27648  }
  0x14   : >> { %v1987_v1 = vld [vmem:[%s234_s29 + $0x10] sm:$0xff]   ;;  %v1989_v2 = vld [vmem:[%s234_s29 + $0x8] sm:$0xff]   ;;  %v1992_v3 = vld [vmem:[%s234_s29] sm:$0xff]   ;;  %1845 = vset.pattern.permute.xlu1 %v1918_v12  ;;  %1844 = vset.pattern.permute.xlu0 %v1918_v12  ;;  %s230_s27 = sadd.s32 1, %s1912_s27  }
  0x15   : >> { %288 = vrot.lane.b32.xlu0 %v1987_v1, %s1916_s30  ;;  %284 = vrot.lane.b32.xlu1 %v1992_v3, %s1916_s30  ;;  %v1997_v4 = vld [vmem:[%s234_s29 + $0x28] sm:$0xff]   ;;  %v2000_v5 = vld [vmem:[%s234_s29 + $0x20] sm:$0xff]   ;;  %p227_p5 = scmp.ge.s32.totalorder %s230_s27, 4  }
  0x16   : >> { %v2003_v6 = vld [vmem:[%s234_s29 + $0x18] sm:$0xff]   ;;  %v2009_v7 = vld [vmem:[%s234_s29 + $0x40] sm:$0xff]   ;;  %v2018_v9 = vld [vmem:[%s234_s29 + $0x30] sm:$0xff]  }
  0x17   : >> { %v2014_v8 = vld [vmem:[%s234_s29 + $0x38] sm:$0xff]   ;;  %v1245_v19 = vld [vmem:[%s2394_s3] sm:$0xff]  ;;  %v1247_v22 = vld [vmem:[%s2394_s3 + $0x10] sm:$0xff] }
  0x18   : >> { %v1855_v24 = vld [vmem:[%s2392_s1 + $0x18] sm:$0xff]   ;;  %v1856_v25 = vld [vmem:[%s2392_s1 + $0x28] sm:$0xff]   ;;  %v1249_v27 = vld [vmem:[%s2394_s3 + $0x20] sm:$0xff] }
  0x19   : >> { %286 = vrot.lane.b32.xlu0 %v1989_v2, %s1916_s30  ;;  %470 = vrot.lane.b32.xlu1 %v1987_v1, %s1917_s5  ;;  %v1250_v26 = vld [vmem:[%s2394_s3 + $0x28] sm:$0xff]  ;;  %v1857_v30 = vld [vmem:[%s2392_s1 + $0x20] sm:$0xff]  }
  0x1a   : >> { %v1858_v32 = vld [vmem:[%s2392_s1] sm:$0xff]   ;;  %v1859_v33 = vld [vmem:[%s2392_s1 + $0x30] sm:$0xff]   ;;  %v1860_v35 = vld [vmem:[%s2392_s1 + $0x8] sm:$0xff]  }
  0x1b   : >> { %v1861_v37 = vld [vmem:[%s2392_s1 + $0x38] sm:$0xff]   ;;  %v1862_v39 = vld [vmem:[%s2392_s1 + $0x10] sm:$0xff]   ;;  %v1863_v40 = vld [vmem:[%s2392_s1 + $0x40] sm:$0xff]  }
  0x1c   : >> { %v1864_v41 = vld [vmem:[%s2392_s1 + $0x48] sm:$0xff]   ;;  %v1865_v43 = vld [vmem:[%s2392_s1 + $0x60] sm:$0xff]   ;;  %v1866_v45 = vld [vmem:[%s2392_s1 + $0x50] sm:$0xff]  }
  0x1d   : >> { %468 = vrot.lane.b32.xlu0 %v1989_v2, %s1917_s5  ;;  %466 = vrot.lane.b32.xlu1 %v1992_v3, %s1917_s5  ;;  %v1867_v47 = vld [vmem:[%s2392_s1 + $0x68] sm:$0xff]   ;;  %v1868_v48 = vld [vmem:[%s2392_s1 + $0x58] sm:$0xff]  }
  0x1e   : >> { %v1869_v49 = vld [vmem:[%s2392_s1 + $0x70] sm:$0xff]   ;;  %v1870_v51 = vld [vmem:[%s2392_s1 + $0x78] sm:$0xff]   ;;  %v1872_v55 = vld [vmem:[%s2392_s1 + $0x80] sm:$0xff]  }
  0x1f   : >> { %v1871_v53 = vld [vmem:[%s2392_s1 + $0x90] sm:$0xff]   ;;  %v1873_v58 = vld [vmem:[%s2392_s1 + $0x98] sm:$0xff]   ;;  %v1874_v60 = vld [vmem:[%s2392_s1 + $0x88] sm:$0xff]  }
  0x20   : >> { %v1875_v61 = vld [vmem:[%s2392_s1 + $0xa0] sm:$0xff]   ;;  %v1876_v62 = vld [vmem:[%s2392_s1 + $0xa8] sm:$0xff]  }
  0x21   : >> { %695 = vrot.lane.b32.xlu0 %v1997_v4, %s1916_s30  ;;  %693 = vrot.lane.b32.xlu1 %v2000_v5, %s1916_s30  ;;  %v1877_v63 = vld [vmem:[%s2392_s1 + $0xc0] sm:$0xff]  }
  0x25   : >> { %691 = vrot.lane.b32.xlu0 %v2003_v6, %s1916_s30  ;;  %798 = vrot.lane.b32.xlu1 %v1997_v4, %s1917_s5 }
  0x29   : >> { %796 = vrot.lane.b32.xlu0 %v2000_v5, %s1917_s5  ;;  %794 = vrot.lane.b32.xlu1 %v2003_v6, %s1917_s5 }
  0x2d   : >> { %1023 = vrot.lane.b32.xlu0 %v2009_v7, %s1916_s30  ;;  %1126 = vrot.lane.b32.xlu1 %v2009_v7, %s1917_s5 }
  0x31   : >> { %1021 = vrot.lane.b32.xlu0 %v2014_v8, %s1916_s30  ;;  %1124 = vrot.lane.b32.xlu1 %v2014_v8, %s1917_s5 }
  0x35   : >> { %1019 = vrot.lane.b32.xlu0 %v2018_v9, %s1916_s30  ;;  %1122 = vrot.lane.b32.xlu1 %v2018_v9, %s1917_s5 }
  0x39   : >> { %1211 = vperm.xlu0 %1844, %v1203_v10   ;;  %1216 = vperm.xlu1 %1845, %v1204_v11  }
  0x3d   : >> { %1226 = vperm.xlu0 %1844, %v1206_v13   ;;  %1221 = vperm.xlu1 %1845, %v1205_v14  }
  0x41   : >> { %1236 = vperm.xlu0 %1844, %v1208_v15   ;;  %1231 = vperm.xlu1 %1845, %v1207_v16  }
  0x45   : >> { %1258 = vperm.xlu0 %1844, %v1246_v18   ;;  %1253 = vperm.xlu1 %1845, %v1245_v19  }
  0x49   : >> { %1268 = vperm.xlu0 %1844, %v1248_v21   ;;  %1263 = vperm.xlu1 %1845, %v1247_v22  }
  0x4d   : >> { %1278 = vperm.xlu0 %1844, %v1250_v26   ;;  %1273 = vperm.xlu1 %1845, %v1249_v27  }
  0x87   : >> { %v289_v17 = vpop.permute.xlu0 %288  ;;  %v285_v23 = vpop.permute.xlu1 %284 }
  0x88   : >> { %1638 = vmatpush3.bf16.msra.mxu0 %v289_v17  ;;  %1802 = vmatpush3.bf16.msra.mxu1 %v289_v17 }
  0x89   : >> { %1639 = vmatprep.subr.bf16.mxu0 %v1914_v0  ;;  %1800 = vmatprep.subr.bf16.mxu1 %v1914_v0 }
  0x8b   : >> { %v287_v20 = vpop.permute.xlu0 %286  ;;  %v471_v28 = vpop.permute.xlu1 %470 }
  0x8c   : >> { %1640 = vmatpush3.bf16.msra.mxu0 %v287_v20  ;;  %1803 = vmatpush3.bf16.msra.mxu1 %v287_v20 }
  0x8d   : >> { %1641 = vmatprep.subr.bf16.mxu0 %v1914_v0  ;;  %1801 = vmatprep.subr.bf16.mxu1 %v1914_v0 }
  0x8f   : >> { %v469_v29 = vpop.permute.xlu0 %468  ;;  %v467_v31 = vpop.permute.xlu1 %466 }
  0x90   : >> { %1642 = vmatpush3.bf16.msra.mxu0 %v285_v23  ;;  %1804 = vmatpush3.bf16.msra.mxu1 %v285_v23 }
  0x91   : >> { %1655 = vmatprep.subr.bf16.mxu1 %v1914_v0  ;;  %1673 = vmatprep.subr.bf16.mxu0 %v1914_v0 }
  0x93   : >> { %1644 = vmatmul.mubr.msk.bf16.vlgmr.msra.gmra.mxu0 %vm293_vm1, %v1855_v24  ;;  %1652 = vmatmul.mubr.msk.bf16.vlgmr.msra.gmra.mxu1 %vm293_vm1, %v1856_v25  ;;  %v696_v34 = vpop.permute.xlu0 %695  ;;  %v694_v36 = vpop.permute.xlu1 %693 }
  0x94   : >> { %1656 = vmatpush3.bf16.msra.mxu1 %v1987_v1  ;;  %1674 = vmatpush3.bf16.msra.mxu0 %v471_v28  ;;  %v1878_v1 = vld [vmem:[%s2392_s1 + $0xb0] sm:$0xff]  }
  0x95   : >> { %1657 = vmatprep.subr.bf16.mxu1 %v1914_v0  ;;  %1675 = vmatprep.subr.bf16.mxu0 %v1914_v0 }
  0x96   : >> { %1647 = vmatprep.mubr.msk.bf16.mxu0 %vm1915_vm0, %v1914_v0  ;;  %1661 = vmatprep.mubr.msk.bf16.mxu1 %vm1915_vm0, %v1914_v0 }
  0x97   : >> { %v692_v38 = vpop.permute.xlu0 %691  ;;  %v799_v42 = vpop.permute.xlu1 %798 }
  0x98   : >> { %1658 = vmatpush3.bf16.msra.mxu1 %v1989_v2  ;;  %1676 = vmatpush3.bf16.msra.mxu0 %v469_v29  ;;  %v1879_v2 = vld [vmem:[%s2392_s1 + $0xc8] sm:$0xff]  }
  0x99   : >> { %1659 = vmatprep.subr.bf16.mxu1 %v1914_v0  ;;  %1677 = vmatprep.subr.bf16.mxu0 %v1914_v0 }
  0x9b   : >> { %1648 = vmatmul.mubr.msk.bf16.gmra.mxu0 %vm293_vm1, %v1857_v30  ;;  %v797_v44 = vpop.permute.xlu0 %796  ;;  %v795_v46 = vpop.permute.xlu1 %794 }
  0x9c   : >> { %1660 = vmatpush3.bf16.msra.mxu1 %v1992_v3  ;;  %1678 = vmatpush3.bf16.msra.mxu0 %v467_v31  ;;  %v1880_v3 = vld [vmem:[%s2392_s1 + $0xb8] sm:$0xff]  }
  0x9d   : >> { %1691 = vmatprep.subr.bf16.mxu1 %v1914_v0  ;;  %1679 = vmatprep.mubr.msk.bf16.mxu0 %vm1915_vm0, %v1914_v0 }
  0x9e   : >> { %1709 = vmatprep.subr.bf16.mxu0 %v1914_v0 }
  0x9f   : >> { %1662 = vmatmul.mubr.msk.bf16.vlgmr.msra.gmra.mxu1 %vm293_vm1, %v1858_v32  ;;  %v1024_v50 = vpop.permute.xlu0 %1023  ;;  %v1127_v52 = vpop.permute.xlu1 %1126 }
  0xa0   : >> { %1692 = vmatpush3.bf16.msra.mxu1 %v1997_v4  ;;  %1665 = vmatprep.mubr.msk.bf16.mxu1 %vm1915_vm0, %v1914_v0  ;;  %v1881_v4 = vld [vmem:[%s2392_s1 + $0xd0] sm:$0xff]  }
  0xa1   : >> { %1693 = vmatprep.subr.bf16.mxu1 %v1914_v0 }
  0xa3   : >> { %1680 = vmatmul.mubr.msk.bf16.vlgmr.msra.gmra.mxu0 %vm293_vm1, %v1859_v33  ;;  %v1022_v54 = vpop.permute.xlu0 %1021  ;;  %v1125_v56 = vpop.permute.xlu1 %1124 }
  0xa4   : >> { %1710 = vmatpush3.bf16.msra.mxu0 %v696_v34  ;;  %1683 = vmatprep.mubr.msk.bf16.mxu0 %vm1915_vm0, %v1914_v0 }
  0xa5   : >> { %1694 = vmatpush3.bf16.msra.mxu1 %v2000_v5  ;;  %1711 = vmatprep.subr.bf16.mxu0 %v1914_v0 }
  0xa6   : >> { %1695 = vmatprep.subr.bf16.mxu1 %v1914_v0 }
  0xa7   : >> { %1666 = vmatmul.mubr.msk.bf16.gmra.mxu1 %vm293_vm1, %v1860_v35  ;;  %v1020_v57 = vpop.permute.xlu0 %1019  ;;  %v1123_v59 = vpop.permute.xlu1 %1122 }
  0xa8   : >> { %1712 = vmatpush3.bf16.msra.mxu0 %v694_v36  ;;  %1669 = vmatprep.mubr.msk.bf16.mxu1 %vm1915_vm0, %v1914_v0 }
  0xa9   : >> { %1696 = vmatpush3.bf16.msra.mxu1 %v2003_v6  ;;  %1713 = vmatprep.subr.bf16.mxu0 %v1914_v0 }
  0xaa   : >> { %1727 = vmatprep.subr.bf16.mxu1 %v1914_v0 }
  0xab   : >> { %1684 = vmatmul.mubr.msk.bf16.gmra.mxu0 %vm293_vm1, %v1861_v37 }
  0xac   : >> { %1687 = vmatprep.mubr.msk.bf16.mxu0 %vm1915_vm0, %v1914_v0  ;;  %1714 = vmatpush3.bf16.msra.mxu0 %v692_v38 }
  0xad   : >> { %1745 = vmatprep.subr.bf16.mxu0 %v1914_v0 }
  0xaf   : >> { %1670 = vmatmul.mubr.msk.bf16.gmra.mxu1 %vm293_vm1, %v1862_v39 }
  0xb0   : >> { %1697 = vmatprep.mubr.msk.bf16.mxu1 %vm1915_vm0, %v1914_v0 }
  0xb3   : >> { %1688 = vmatmul.mubr.msk.bf16.gmra.mxu0 %vm293_vm1, %v1863_v40 }
  0xb4   : >> { %1715 = vmatprep.mubr.msk.bf16.mxu0 %vm1915_vm0, %v1914_v0 }
  0xb7   : >> { %1698 = vmatmul.mubr.msk.bf16.vlgmr.msra.gmra.mxu1 %vm293_vm1, %v1864_v41 }
  0xb8   : >> { %1728 = vmatpush3.bf16.msra.mxu1 %v799_v42  ;;  %1701 = vmatprep.mubr.msk.bf16.mxu1 %vm1915_vm0, %v1914_v0 }
  0xb9   : >> { %1729 = vmatprep.subr.bf16.mxu1 %v1914_v0 }
  0xbb   : >> { %1716 = vmatmul.mubr.msk.bf16.vlgmr.msra.gmra.mxu0 %vm293_vm1, %v1865_v43 }
  0xbc   : >> { %1746 = vmatpush3.bf16.msra.mxu0 %v2009_v7  ;;  %1719 = vmatprep.mubr.msk.bf16.mxu0 %vm1915_vm0, %v1914_v0 }
  0xbd   : >> { %1730 = vmatpush3.bf16.msra.mxu1 %v797_v44  ;;  %1747 = vmatprep.subr.bf16.mxu0 %v1914_v0 }
  0xbe   : >> { %1731 = vmatprep.subr.bf16.mxu1 %v1914_v0 }
  0xbf   : >> { %1702 = vmatmul.mubr.msk.bf16.gmra.mxu1 %vm293_vm1, %v1866_v45 }
  0xc0   : >> { %1748 = vmatpush3.bf16.msra.mxu0 %v2014_v8  ;;  %1705 = vmatprep.mubr.msk.bf16.mxu1 %vm1915_vm0, %v1914_v0 }
  0xc1   : >> { %1732 = vmatpush3.bf16.msra.mxu1 %v795_v46  ;;  %1749 = vmatprep.subr.bf16.mxu0 %v1914_v0 }
  0xc2   : >> { %1763 = vmatprep.subr.bf16.mxu1 %v1914_v0 }
  0xc3   : >> { %1720 = vmatmul.mubr.msk.bf16.gmra.mxu0 %vm293_vm1, %v1867_v47 }
  0xc4   : >> { %1723 = vmatprep.mubr.msk.bf16.mxu0 %vm1915_vm0, %v1914_v0  ;;  %1750 = vmatpush3.bf16.msra.mxu0 %v2018_v9 }
  0xc5   : >> { %1781 = vmatprep.subr.bf16.mxu0 %v1914_v0 }
  0xc7   : >> { %1706 = vmatmul.mubr.msk.bf16.gmra.mxu1 %vm293_vm1, %v1868_v48 }
  0xc8   : >> { %1733 = vmatprep.mubr.msk.bf16.mxu1 %vm1915_vm0, %v1914_v0 }
  0xcb   : >> { %1724 = vmatmul.mubr.msk.bf16.gmra.mxu0 %vm293_vm1, %v1869_v49 }
  0xcc   : >> { %1751 = vmatprep.mubr.msk.bf16.mxu0 %vm1915_vm0, %v1914_v0 }
  0xcf   : >> { %1734 = vmatmul.mubr.msk.bf16.vlgmr.msra.gmra.mxu1 %vm293_vm1, %v1870_v51 }
  0xd0   : >> { %1764 = vmatpush3.bf16.msra.mxu1 %v1024_v50  ;;  %1737 = vmatprep.mubr.msk.bf16.mxu1 %vm1915_vm0, %v1914_v0 }
  0xd1   : >> { %1765 = vmatprep.subr.bf16.mxu1 %v1914_v0 }
  0xd3   : >> { %1752 = vmatmul.mubr.msk.bf16.vlgmr.msra.gmra.mxu0 %vm293_vm1, %v1871_v53 }
  0xd4   : >> { %1782 = vmatpush3.bf16.msra.mxu0 %v1127_v52  ;;  %1755 = vmatprep.mubr.msk.bf16.mxu0 %vm1915_vm0, %v1914_v0 }
  0xd5   : >> { %1766 = vmatpush3.bf16.msra.mxu1 %v1022_v54  ;;  %1783 = vmatprep.subr.bf16.mxu0 %v1914_v0 }
  0xd6   : >> { %1767 = vmatprep.subr.bf16.mxu1 %v1914_v0 }
  0xd7   : >> { %1738 = vmatmul.mubr.msk.bf16.gmra.mxu1 %vm293_vm1, %v1872_v55 }
  0xd8   : >> { %1784 = vmatpush3.bf16.msra.mxu0 %v1125_v56  ;;  %1741 = vmatprep.mubr.msk.bf16.mxu1 %vm1915_vm0, %v1914_v0 }
  0xd9   : >> { %1768 = vmatpush3.bf16.msra.mxu1 %v1020_v57  ;;  %1785 = vmatprep.subr.bf16.mxu0 %v1914_v0 }
  0xdb   : >> { %1756 = vmatmul.mubr.msk.bf16.gmra.mxu0 %vm293_vm1, %v1873_v58 }
  0xdc   : >> { %1759 = vmatprep.mubr.msk.bf16.mxu0 %vm1915_vm0, %v1914_v0  ;;  %1786 = vmatpush3.bf16.msra.mxu0 %v1123_v59 }
  0xdf   : >> { %1742 = vmatmul.mubr.msk.bf16.gmra.mxu1 %vm293_vm1, %v1874_v60 }
  0xe0   : >> { %1769 = vmatprep.mubr.msk.bf16.mxu1 %vm1915_vm0, %v1914_v0 }
  0xe3   : >> { %1760 = vmatmul.mubr.msk.bf16.gmra.mxu0 %vm293_vm1, %v1875_v61 }
  0xe4   : >> { %1787 = vmatprep.mubr.msk.bf16.mxu0 %vm1915_vm0, %v1914_v0 }
  0xe7   : >> { %1770 = vmatmul.mubr.msk.bf16.vlgmr.msra.gmra.mxu1 %vm293_vm1, %v1876_v62 }
  0xe8   : >> { %1773 = vmatprep.mubr.msk.bf16.mxu1 %vm1915_vm0, %v1914_v0 }
  0xeb   : >> { %1788 = vmatmul.mubr.msk.bf16.vlgmr.msra.gmra.mxu0 %vm293_vm1, %v1877_v63 }
  0xec   : >> { %1791 = vmatprep.mubr.msk.bf16.mxu0 %vm1915_vm0, %v1914_v0 }
  0xef   : >> { %1774 = vmatmul.mubr.msk.bf16.gmra.mxu1 %vm293_vm1, %v1878_v1 }
  0xf0   : >> { %1777 = vmatprep.mubr.msk.bf16.mxu1 %vm1915_vm0, %v1914_v0 }
  0xf3   : >> { %1792 = vmatmul.mubr.msk.bf16.gmra.mxu0 %vm293_vm1, %v1879_v2 }
  0xf4   : >> { %1795 = vmatprep.mubr.msk.bf16.mxu0 %vm1915_vm0, %v1914_v0 }
  0xf7   : >> { %1778 = vmatmul.mubr.msk.bf16.gmra.mxu1 %vm293_vm1, %v1880_v3 }
  0xfb   : >> { %1796 = vmatmul.mubr.msk.bf16.gmra.mxu0 %vm293_vm1, %v1881_v4 }
 0x153   : >> { %v2254_v5 = vpop.f32.mrf.mxu0  ;;  %v2256_v6 = vpop.f32.mrf.mxu1 }
 0x155   : >> { %v1645_v7 = vpop.f32.mrf.mxu0  ;;  %v1653_v8 = vpop.f32.mrf.mxu1 }
 0x157   : >> { %v2258_v9 = vpop.f32.mrf.mxu0  ;;  %v2260_v10 = vpop.f32.mrf.mxu1 }
 0x159   : >> { %v1646_v11 = vpop.f32.mrf.mxu0  ;;  %v1654_v0 = vpop.f32.mrf.mxu1 }
 0x15b   : >> { %v2262_v12 = vpop.f32.mrf.mxu0 }
 0x15d   : >> { %v1649_v13 = vpop.f32.mrf.mxu0 }
 0x15f   : >> { %v2264_v14 = vpop.f32.mrf.mxu0  ;;  %v2266_v15 = vpop.f32.mrf.mxu1 }
 0x161   : >> { %v1650_v16 = vpop.f32.mrf.mxu0  ;;  %v1663_v17 = vpop.f32.mrf.mxu1 }
 0x163   : >> { %v2268_v18 = vpop.f32.mrf.mxu1  ;;  %v2270_v19 = vpop.f32.mrf.mxu0 }
 0x165   : >> { %v1664_v20 = vpop.f32.mrf.mxu1  ;;  %v1681_v21 = vpop.f32.mrf.mxu0 }
 0x166   : >> { %v2306_v21 = vpop.permute.xlu1 %1216 }
 0x167   : >> { %v2272_v22 = vpop.f32.mrf.mxu1  ;;  %v2274_v23 = vpop.f32.mrf.mxu0 }
 0x169   : >> { %v1667_v24 = vpop.f32.mrf.mxu1  ;;  %v1682_v25 = vpop.f32.mrf.mxu0 }
 0x16b   : >> { %v2276_v26 = vpop.f32.mrf.mxu1  ;;  %v2278_v27 = vpop.f32.mrf.mxu0 }
 0x16d   : >> { %v1668_v28 = vpop.f32.mrf.mxu1  ;;  %v1685_v29 = vpop.f32.mrf.mxu0 }
 0x16e   : >> { %v422_v28 = vadd.f32 %v2266_v15, %v2254_v5 }
 0x16f   : >> { %v2280_v30 = vpop.f32.mrf.mxu1  ;;  %v2282_v31 = vpop.f32.mrf.mxu0 }
 0x171   : >> { %v1671_v32 = vpop.f32.mrf.mxu1  ;;  %v1686_v33 = vpop.f32.mrf.mxu0 }
 0x172   : >> { %v541_v33 = vadd.f32 %v2270_v19, %v422_v28  ;;  %v430_v19 = vadd.f32 %v2272_v22, %v2262_v12 }
 0x173   : >> { %v2284_v34 = vpop.f32.mrf.mxu1  ;;  %v2286_v35 = vpop.f32.mrf.mxu0 }
 0x175   : >> { %v1672_v36 = vpop.f32.mrf.mxu1  ;;  %v1689_v37 = vpop.f32.mrf.mxu0 }
 0x176   : >> { %v1212_v36 = vpop.permute.xlu0 %1211 }
 0x177   : >> { %v2288_v38 = vpop.f32.mrf.mxu0  ;;  %v640_v39 = vpop.f32.mrf.mxu1 }
 0x179   : >> { %v1690_v40 = vpop.f32.mrf.mxu0  ;;  %v1699_v41 = vpop.f32.mrf.mxu1 }
 0x17a   : >> { %v425_v41 = vadd.f32 %v2268_v18, %v2258_v9 }
 0x17b   : >> { %v643_v42 = vpop.f32.mrf.mxu1  ;;  %v743_v43 = vpop.f32.mrf.mxu0 }
 0x17c   : >> { %v542_v5 = vadd.f32 %v2274_v23, %v425_v41 }
 0x17d   : >> { %v1700_v44 = vpop.f32.mrf.mxu1  ;;  %v1717_v45 = vpop.f32.mrf.mxu0 }
 0x17e   : >> { %v663_v44 = vadd.f32 %v640_v39, %v541_v33  ;;  %v2317_v45 = vpop.permute.xlu1 %1221  ;;  %v543_v39 = vadd.f32 %v2278_v27, %v430_v19 }
 0x17f   : >> { %v648_v46 = vpop.f32.mrf.mxu1  ;;  %v746_v47 = vpop.f32.mrf.mxu0 }
 0x180   : >> { %v766_v15 = vadd.f32 %v743_v43, %v663_v44 }
 0x181   : >> { %v1703_v48 = vpop.f32.mrf.mxu1  ;;  %v1718_v49 = vpop.f32.mrf.mxu0 }
 0x183   : >> { %v2290_v50 = vpop.f32.mrf.mxu1  ;;  %v2292_v51 = vpop.f32.mrf.mxu0 }
 0x185   : >> { %v1704_v52 = vpop.f32.mrf.mxu1  ;;  %v1721_v53 = vpop.f32.mrf.mxu0 }
 0x187   : >> { %v2294_v54 = vpop.f32.mrf.mxu1  ;;  %v2296_v55 = vpop.f32.mrf.mxu0 }
 0x189   : >> { %v1707_v56 = vpop.f32.mrf.mxu1  ;;  %v1722_v57 = vpop.f32.mrf.mxu0 }
 0x18a   : >> { %v664_v56 = vadd.f32 %v643_v42, %v542_v5 }
 0x18b   : >> { %v2298_v58 = vpop.f32.mrf.mxu1  ;;  %v2300_v59 = vpop.f32.mrf.mxu0 }
 0x18d   : >> { %v1708_v60 = vpop.f32.mrf.mxu1  ;;  %v1725_v61 = vpop.f32.mrf.mxu0 }
 0x18e   : >> { %v2326_v60 = vpop.permute.xlu0 %1226  ;;  %v767_v61 = vadd.f32 %v746_v47, %v664_v56 }
 0x18f   : >> { %v2302_v62 = vpop.f32.mrf.mxu0  ;;  %v846_v63 = vpop.f32.mrf.mxu1 }
 0x190   : >> { %v869_v57 = vadd.f32 %v846_v63, %v766_v15 }
 0x191   : >> { %v1726_v1 = vpop.f32.mrf.mxu0  ;;  %v1735_v2 = vpop.f32.mrf.mxu1 }
 0x192   : >> { %v2331_v2 = vpop.permute.xlu1 %1231  ;;  %v2337_v27 = vpop.permute.xlu0 %1236 }
 0x193   : >> { %v849_v3 = vpop.f32.mrf.mxu1  ;;  %v968_v4 = vpop.f32.mrf.mxu0 }
 0x194   : >> { %v991_v1 = vadd.f32 %v968_v4, %v869_v57  ;;  %v870_v12 = vadd.f32 %v849_v3, %v767_v61  ;;  %v438_v4 = vadd.f32 %v2280_v30, %v2256_v6  ;;  %v441_v6 = vadd.f32 %v2284_v34, %v2260_v10 }
 0x195   : >> { %v1736_v7 = vpop.f32.mrf.mxu1  ;;  %v1753_v8 = vpop.f32.mrf.mxu0 }
 0x196   : >> { %v433_v7 = vadd.f32 %v2276_v26, %v2264_v14  ;;  %v665_v8 = vadd.f32 %v648_v46, %v543_v39  ;;  %v1254_v46 = vpop.permute.xlu1 %1253  ;;  %v1259_v5 = vpop.permute.xlu0 %1258 }
 0x197   : >> { %v854_v11 = vpop.f32.mrf.mxu1  ;;  %v971_v0 = vpop.f32.mrf.mxu0 }
 0x199   : >> { %v1739_v13 = vpop.f32.mrf.mxu1  ;;  %v1754_v16 = vpop.f32.mrf.mxu0 }
 0x19a   : >> { %v544_v13 = vadd.f32 %v2282_v31, %v433_v7  ;;  %v768_v16 = vadd.f32 %v2292_v51, %v665_v8 }
 0x19b   : >> { %v2304_v17 = vpop.f32.mrf.mxu1  ;;  %v976_v20 = vpop.f32.mrf.mxu0 }
 0x19c   : >> { %v666_v14 = vadd.f32 %v2290_v50, %v544_v13  ;;  %v871_v26 = vadd.f32 %v854_v11, %v768_v16 }
 0x19d   : >> { %v1740_v24 = vpop.f32.mrf.mxu1  ;;  %v1757_v25 = vpop.f32.mrf.mxu0 }
 0x19e   : >> { %v992_v24 = vadd.f32 %v971_v0, %v870_v12  ;;  %v769_v51 = vadd.f32 %v2296_v55, %v666_v14  ;;  %v993_v0 = vadd.f32 %v976_v20, %v871_v26 }
 0x19f   : >> { %v2310_v29 = vpop.f32.mrf.mxu1  ;;  %v2312_v32 = vpop.f32.mrf.mxu0 }
 0x1a1   : >> { %v1743_v37 = vpop.f32.mrf.mxu1  ;;  %v1758_v40 = vpop.f32.mrf.mxu0 }
 0x1a2   : >> { %v545_v37 = vadd.f32 %v2286_v35, %v438_v4 }
 0x1a3   : >> { %v2319_v48 = vpop.f32.mrf.mxu1  ;;  %v2321_v49 = vpop.f32.mrf.mxu0 }
 0x1a4   : >> { %v667_v30 = vadd.f32 %v2294_v54, %v545_v37 }
 0x1a5   : >> { %v1744_v52 = vpop.f32.mrf.mxu1  ;;  %v1761_v53 = vpop.f32.mrf.mxu0 }
 0x1a6   : >> { %v546_v53 = vadd.f32 %v2288_v38, %v441_v6  ;;  %v770_v55 = vadd.f32 %v2300_v59, %v667_v30  ;;  %v1264_v59 = vpop.permute.xlu1 %1263 }
 0x1a7   : >> { %v2328_v9 = vpop.f32.mrf.mxu0  ;;  %v1071_v18 = vpop.f32.mrf.mxu1 }
 0x1a8   : >> { %v1094_v22 = vadd.f32 %v1071_v18, %v991_v1  ;;  %v668_v56 = vadd.f32 %v2298_v58, %v546_v53  ;;  %v873_v38 = vadd.f32 %v2310_v29, %v770_v55 }
 0x1a9   : >> { %v1762_v23 = vpop.f32.mrf.mxu0  ;;  %v1771_v43 = vpop.f32.mrf.mxu1 }
 0x1aa   : >> { %v771_v1 = vadd.f32 %v2302_v62, %v668_v56  ;;  %v995_v43 = vadd.f32 %v2321_v49, %v873_v38 }
 0x1ab   : >> { %v1074_v42 = vpop.f32.mrf.mxu1  ;;  %v1174_v63 = vpop.f32.mrf.mxu0 }
 0x1ac   : >> { %v1197_v47 = vadd.f32 %v1174_v63, %v1094_v22  ;;  %v1095_v3 = vadd.f32 %v1074_v42, %v992_v24  ;;  %v874_v22 = vadd.f32 %v2319_v48, %v771_v1  ;;  %v1269_v42 = vpop.permute.xlu0 %1268 }
 0x1ad   : >> { %v1772_v25 = vpop.f32.mrf.mxu1  ;;  %v1789_v28 = vpop.f32.mrf.mxu0 }
 0x1ae   : >> { %v1239_v33 = vmul.f32 %v1212_v36, %v1197_v47  ;;  %v872_v36 = vadd.f32 %v2304_v17, %v769_v51  ;;  %v996_v24 = vadd.f32 %v2328_v9, %v874_v22 }
 0x1af   : >> { %v1079_v31 = vpop.f32.mrf.mxu1  ;;  %v1177_v40 = vpop.f32.mrf.mxu0 }
 0x1b0   : >> { %v1281_v41 = vadd.f32 %v1254_v46, %v1239_v33  ;;  %v1198_v44 = vadd.f32 %v1177_v40, %v1095_v3  ;;  %v1096_v15 = vadd.f32 %v1079_v31, %v993_v0  ;;  %v994_v54 = vadd.f32 %v2312_v32, %v872_v36  ;;  %v1274_v46 = vpop.permute.xlu1 %1273  ;;  %v1279_v51 = vpop.permute.xlu0 %1278 }
 0x1b1   : >> { %v1775_v50 = vpop.f32.mrf.mxu1  ;;  %v1790_v11 = vpop.f32.mrf.mxu0 }
 0x1b2   : >> { %v1287_v35 = vmax.f32 %v1281_v41, 0.0  ;;  %v1240_v52 = vmul.f32 %v2306_v21, %v1198_v44 }
 0x1b3   : >> { %v1082_v10 = vpop.f32.mrf.mxu1  ;;  %v1182_v34 = vpop.f32.mrf.mxu0 }
 0x1b4   : >> { %v1576_v20 = vpack.c.bf16 %v1287_v35, %v1287_v35  ;;  %v1282_v17 = vadd.f32 %v1259_v5, %v1240_v52  ;;  %v1199_v19 = vadd.f32 %v1182_v34, %v1096_v15  ;;  %v1097_v39 = vadd.f32 %v1082_v10, %v994_v54 }
 0x1b5   : >> { %v1776_v57 = vpop.f32.mrf.mxu1  ;;  %v1793_v21 = vpop.f32.mrf.mxu0 }
 0x1b6   : >> { %1321 = vst.msk [vmem:[%s2354_s8] sm:$0xf] %vm1320_vm2, %v1576_v20  ;;  %v1288_v18 = vmax.f32 %v1282_v17, 0.0  ;;  %v1241_v61 = vmul.f32 %v2317_v45, %v1199_v19 }
 0x1b7   : >> { %v1087_v32 = vpop.f32.mrf.mxu1  ;;  %v1185_v23 = vpop.f32.mrf.mxu0 }
 0x1b8   : >> { %v1577_v7 = vpack.c.bf16 %v1288_v18, %v1288_v18  ;;  %v1283_v58 = vadd.f32 %v1264_v59, %v1241_v61  ;;  %v1200_v8 = vadd.f32 %v1185_v23, %v1097_v39  ;;  %v1098_v13 = vadd.f32 %v1087_v32, %v995_v43 }
 0x1b9   : >> { %v1779_v12 = vpop.f32.mrf.mxu1  ;;  %v1794_v29 = vpop.f32.mrf.mxu0 }
 0x1ba   : >> { %1322 = vst.msk [vmem:[%s2354_s8 + $0x4] sm:$0xf] %vm1320_vm2, %v1577_v7  ;;  %v1289_v63 = vmax.f32 %v1283_v58, 0.0  ;;  %v1242_v45 = vmul.f32 %v2326_v60, %v1200_v8 }
 0x1bb   : >> { %v1090_v62 = vpop.f32.mrf.mxu1  ;;  %v1190_v16 = vpop.f32.mrf.mxu0 }
 0x1bc   : >> { %v1578_v49 = vpack.c.bf16 %v1289_v63, %v1289_v63  ;;  %v1284_v47 = vadd.f32 %v1269_v42, %v1242_v45  ;;  %v1201_v4 = vadd.f32 %v1190_v16, %v1098_v13  ;;  %v1099_v14 = vadd.f32 %v1090_v62, %v996_v24 }
 0x1bd   : >> { %v1780_v25 = vpop.f32.mrf.mxu1  ;;  %v1797_v28 = vpop.f32.mrf.mxu0 }
 0x1be   : >> { %1323 = vst.msk [vmem:[%s2354_s8 + $0x8] sm:$0xf] %vm1320_vm2, %v1578_v49  ;;  %v1290_v48 = vmax.f32 %v1284_v47, 0.0  ;;  %v1243_v26 = vmul.f32 %v2331_v2, %v1201_v4 }
 0x1bf   : >> { %v1193_v60 = vpop.f32.mrf.mxu0 }
 0x1c0   : >> { %v1579_v3 = vpack.c.bf16 %v1290_v48, %v1290_v48  ;;  %v1285_v33 = vadd.f32 %v1274_v46, %v1243_v26  ;;  %v1202_v37 = vadd.f32 %v1193_v60, %v1099_v14 }
 0x1c1   : >> { %v1798_v9 = vpop.f32.mrf.mxu0 }
 0x1c2   : >> { %1324 = vst.msk [vmem:[%s2354_s8 + $0xc] sm:$0xf] %vm1320_vm2, %v1579_v3  ;;  %v1291_v31 = vmax.f32 %v1285_v33, 0.0  ;;  %v1244_v40 = vmul.f32 %v2337_v27, %v1202_v37 }
 0x1c4   : >> { %v1580_v0 = vpack.c.bf16 %v1291_v31, %v1291_v31  ;;  %v1286_v41 = vadd.f32 %v1279_v51, %v1244_v40 }
 0x1c6   : >> { %1325 = vst.msk [vmem:[%s2354_s8 + $0x10] sm:$0xf] %vm1320_vm2, %v1580_v0  ;;  %v1292_v44 = vmax.f32 %v1286_v41, 0.0  ;;  %229 = sbr.rel (!%p227_p5) target bundleno = 17 (0x11), region = 85 }
 0x1c8   : >> { %v1581_v6 = vpack.c.bf16 %v1292_v44, %v1292_v44 }
 0x1ca   : >> { %1326 = vst.msk [vmem:[%s2354_s8 + $0x14] sm:$0xf] %vm1320_vm2, %v1581_v6 }
 0x1cb PF: > { %s14_s17 = sadd.s32 1, %s1908_s17   ;;  %s2396_s15 = smov %s1904_s16 }
 0x1cc   : > { %p11_p6 = scmp.ge.s32.totalorder %s14_s17, 4   ;;  %s2397_s16 = smov %s2399_s18 }
 0x1ce   :  { %13 = sbr.rel (!%p11_p6) target bundleno = 2 (0x2), region = 96 }

// kernel: forward.42
= control target key start
LH: loop header
LB: loop body
LE: loop exit
PB: predicated region body
PF: predicated region fallthrough
CT: control target
= control target key end

     0   :  { %s1518_s15 = smov 0   ;;  %s1520_s16 = smov 0   ;;  %s1704_s0 = inlined_call_operand.vmem [shape: bf16[2,18,48,18], index: 0, kind: input, shape index: {}]   ;;  %s1705_s1 = inlined_call_operand.vmem [shape: bf16[3,3,24,48], index: 1, kind: input, shape index: {}]   ;;  %s1706_s2 = inlined_call_operand.vmem [shape: f32[24,1], index: 2, kind: input, shape index: {}]   ;;  %s1707_s3 = inlined_call_operand.vmem [shape: f32[24,1], index: 3, kind: input, shape index: {}]   ;;  %s1708_s4 = inlined_call_operand.vmem [shape: bf16[2,16,24,16], index: 4, kind: output, shape index: {}]  }
   0x1   :  { %s1522_s17 = smov 0  }
   0x2 LB: > { %s26_s18 = sadd.s32 1, %s1480_s16  ;;  %p1161_p0 = scmp.ge.s32.totalorder %s1484_s17, 1  ;;  %s1484_s17 = sphi %s1522_s17, %s14_s17   ;;  %s1480_s16 = sphi %s1520_s16, %s1710_s16   ;;  %s1476_s15 = sphi %s1518_s15, %s1709_s15  }
   0x3   : > { %p28_p1 = scmp.ge.s32.totalorder %s26_s18, 2  ;;  %p176_p2 = scmp.lt.s32.totalorder %s1484_s17, 3 }
   0x5   : > { %s1712_s18 = smov (%p28_p1, %s26_s18), 0  ;;  %p177_p3 = pnand %p1161_p0, %p176_p2 }
   0x6   : > { %p207_p4 = scmp.lt.s32.totalorder (!%p177_p3), %s1476_s15, 1  ;;  %s1546_s27 = smov (!%p177_p3), 0  }
   0x7   : > { %180 = sbr.rel (%p177_p3) target bundleno = 406 (0x196), region = 36 }
   0xc   : > { %s1714_s15 = smov (!%p207_p4, %s1476_s15), 1 }
   0xd   : > { %s1392_s19 = smul.u32 432, %s1714_s15 }
   0xe   : > { %s1393_s20 = smul.u32 192, %s1714_s15 }
   0xf   : > { %s1539_s23 = scalar_lea.vmem %s1704_s0, %s1392_s19 }
  0x10   : > { %s1544_s26 = scalar_lea.vmem %s1708_s4, %s1393_s20 }
  0x11 LB: >> { %s1252_s28 = smul.u32 24, %s1488_s27  ;;  %v1440_v0 = vld [vmem:[%s1705_s1 + $0xc] sm:$0xff]   ;;  %vm280_vm0 = vcmask 392192   ;;  %v1441_v1 = vld [vmem:[%s1705_s1] sm:$0xff]   ;;  %s1490_s8 = smov 127   ;;  %v1492_v17 = vmov 0   ;;  %s1488_s27 = sphi %s1546_s27, %s230_s27  }
  0x12   : >> { %1308 = vmatprep.mubr.msk.bf16.mxu0 %vm280_vm0, %v1440_v0  ;;  %1318 = vmatprep.mubr.msk.bf16.mxu1 %vm280_vm0, %v1441_v1  ;;  %s1491_s9 = smov 126   ;;  %v1443_v5 = vld [vmem:[%s1705_s1 + $0x8] ss:$0 sps:$4 sm:$0xff]   ;;  %v1447_v11 = vld [vmem:[%s1705_s1 + $0x2c] ss:$0 sps:$4 sm:$0xff]   ;;  %v1450_v12 = vld [vmem:[%s1705_s1 + $0x3c] sm:$0xff]  }
  0x13   : >> { %s1559_s7 = scalar_lea.vmem %s1539_s23, %s1252_s28  ;;  %v1446_v8 = vld [vmem:[%s1705_s1 + $0x24] sm:$0xff]   ;;  %1430 = vset.pattern.permute.xlu1 %v1492_v17  ;;  %1429 = vset.pattern.permute.xlu0 %v1492_v17  ;;  %v986_v19 = vld [vmem:[%s1706_s2 + $0x10] sm:$0xff]  ;;  %v1444_v29 = vld [vmem:[%s1705_s1 + $0x18] sm:$0xff]   ;;  %s1256_s14 = smul.u32 12, %s1488_s27  ;;  %vm1045_vm1 = vcmask 125952  }
  0x14   : >> { %v1431_v2 = vld [vmem:[%s1559_s7 + $0x10] sm:$0xff]   ;;  %v1432_v3 = vld [vmem:[%s1559_s7 + $0x8] sm:$0xff]   ;;  %v1433_v4 = vld [vmem:[%s1559_s7] sm:$0xff]   ;;  %s230_s27 = sadd.s32 1, %s1488_s27  }
  0x15   : >> { %275 = vrot.lane.b32.xlu0 %v1431_v2, %s1490_s8  ;;  %1312 = vmatprep.subr.bf16.mxu1 %v1431_v2  ;;  %v1434_v6 = vld [vmem:[%s1559_s7 + $0x28] sm:$0xff]   ;;  %v1435_v7 = vld [vmem:[%s1559_s7 + $0x20] sm:$0xff]   ;;  %v1436_v9 = vld [vmem:[%s1559_s7 + $0x18] sm:$0xff]   ;;  %s1044_s15 = scalar_lea.vmem %s1544_s26, %s1256_s14  ;;  %p227_p5 = scmp.ge.s32.totalorder %s230_s27, 16  }
  0x16   : >> { %1313 = vmatpush3.bf16.msra.mxu1 %v1431_v2  ;;  %271 = vrot.lane.b32.xlu1 %v1433_v4, %s1490_s8  ;;  %v1589_v10 = vld [vmem:[%s1559_s7 + $0x40] sm:$0xff]   ;;  %v1601_v13 = vld [vmem:[%s1559_s7 + $0x38] sm:$0xff]   ;;  %v1610_v14 = vld [vmem:[%s1559_s7 + $0x30] sm:$0xff]  }
  0x17   : >> { %1314 = vmatprep.subr.bf16.mxu1 %v1432_v3  ;;  %v984_v15 = vld [vmem:[%s1706_s2] sm:$0xff]  ;;  %v985_v16 = vld [vmem:[%s1706_s2 + $0x8] sm:$0xff]  ;;  %v1007_v20 = vld [vmem:[%s1707_s3 + $0x10] sm:$0xff] }
  0x18   : >> { %v1005_v18 = vld [vmem:[%s1707_s3] sm:$0xff]  ;;  %v1006_v21 = vld [vmem:[%s1707_s3 + $0x8] sm:$0xff]  ;;  %v1442_v27 = vld [vmem:[%s1705_s1 + $0x14] ss:$0 sps:$4 sm:$0xff]  }
  0x19   : >> { %273 = vrot.lane.b32.xlu0 %v1432_v3, %s1490_s8  ;;  %v1445_v35 = vld [vmem:[%s1705_s1 + $0x20] ss:$0 sps:$4 sm:$0xff]   ;;  %v1448_v37 = vld [vmem:[%s1705_s1 + $0x30] sm:$0xff]   ;;  %v1451_v39 = vld [vmem:[%s1705_s1 + $0x44] ss:$0 sps:$4 sm:$0xff]  }
  0x1a   : >> { %1315 = vmatpush3.bf16.msra.mxu1 %v1432_v3  ;;  %416 = vrot.lane.b32.xlu1 %v1431_v2, %s1491_s9  ;;  %v1454_v41 = vld [vmem:[%s1705_s1 + $0x54] sm:$0xff]   ;;  %v1452_v44 = vld [vmem:[%s1705_s1 + $0x48] sm:$0xff]   ;;  %v1455_v45 = vld [vmem:[%s1705_s1 + $0x5c] ss:$0 sps:$4 sm:$0xff]  }
  0x1b   : >> { %1316 = vmatprep.subr.bf16.mxu1 %v1433_v4  ;;  %v1449_v42 = vld [vmem:[%s1705_s1 + $0x38] ss:$0 sps:$4 sm:$0xff]   ;;  %v1453_v47 = vld [vmem:[%s1705_s1 + $0x50] ss:$0 sps:$4 sm:$0xff]   ;;  %v1456_v49 = vld [vmem:[%s1705_s1 + $0x60] sm:$0xff]  }
  0x1c   : >> { %v1457_v51 = vld [vmem:[%s1705_s1 + $0x68] ss:$0 sps:$4 sm:$0xff]  }
  0x1d   : >> { %414 = vrot.lane.b32.xlu0 %v1432_v3, %s1491_s9 }
  0x1e   : >> { %1317 = vmatpush3.bf16.msra.mxu1 %v1433_v4  ;;  %412 = vrot.lane.b32.xlu1 %v1433_v4, %s1491_s9 }
  0x1f   : >> { %1332 = vmatprep.subr.bf16.mxu1 %v1434_v6 }
  0x21   : >> { %591 = vrot.lane.b32.xlu0 %v1434_v6, %s1490_s8  ;;  %1319 = vmatmul.mubr.msk.bf16.vlgmr.msra.gmra.mxu1 %vm280_vm0, %v1443_v5 }
  0x22   : >> { %1333 = vmatpush3.bf16.msra.mxu1 %v1434_v6  ;;  %1338 = vmatprep.mubr.msk.bf16.mxu1 %vm280_vm0, %v1446_v8 }
  0x23   : >> { %589 = vrot.lane.b32.xlu1 %v1435_v7, %s1490_s8  ;;  %1334 = vmatprep.subr.bf16.mxu1 %v1435_v7 }
  0x25   : >> { %587 = vrot.lane.b32.xlu0 %v1436_v9, %s1490_s8 }
  0x26   : >> { %1335 = vmatpush3.bf16.msra.mxu1 %v1435_v7 }
  0x27   : >> { %669 = vrot.lane.b32.xlu1 %v1434_v6, %s1491_s9  ;;  %1336 = vmatprep.subr.bf16.mxu1 %v1436_v9 }
  0x29   : >> { %667 = vrot.lane.b32.xlu0 %v1435_v7, %s1491_s9 }
  0x2a   : >> { %1337 = vmatpush3.bf16.msra.mxu1 %v1436_v9 }
  0x2b   : >> { %665 = vrot.lane.b32.xlu1 %v1436_v9, %s1491_s9 }
  0x2d   : >> { %844 = vrot.lane.b32.xlu0 %v1589_v10, %s1490_s8  ;;  %1339 = vmatmul.mubr.msk.bf16.vlgmr.msra.gmra.mxu1 %vm280_vm0, %v1447_v11 }
  0x2e   : >> { %1358 = vmatprep.mubr.msk.bf16.mxu1 %vm280_vm0, %v1450_v12 }
  0x2f   : >> { %922 = vrot.lane.b32.xlu1 %v1589_v10, %s1491_s9 }
  0x31   : >> { %842 = vrot.lane.b32.xlu0 %v1601_v13, %s1490_s8 }
  0x33   : >> { %920 = vrot.lane.b32.xlu1 %v1601_v13, %s1491_s9 }
  0x35   : >> { %840 = vrot.lane.b32.xlu0 %v1610_v14, %s1490_s8 }
  0x37   : >> { %918 = vrot.lane.b32.xlu1 %v1610_v14, %s1491_s9 }
  0x39   : >> { %989 = vperm.xlu0 %1429, %v984_v15  }
  0x3b   : >> { %994 = vperm.xlu1 %1430, %v985_v16  }
  0x3d   : >> { %1010 = vperm.xlu0 %1429, %v1005_v18  }
  0x3f   : >> { %999 = vperm.xlu1 %1430, %v986_v19  }
  0x41   : >> { %1020 = vperm.xlu0 %1429, %v1007_v20  }
  0x43   : >> { %1015 = vperm.xlu1 %1430, %v1006_v21  }
  0x87   : >> { %v276_v22 = vpop.permute.xlu0 %275 }
  0x88   : >> { %1302 = vmatprep.subr.bf16.mxu0 %v276_v22  ;;  %v272_v23 = vpop.permute.xlu1 %271 }
  0x89   : >> { %1303 = vmatpush3.bf16.msra.mxu0 %v276_v22 }
  0x8b   : >> { %v274_v24 = vpop.permute.xlu0 %273 }
  0x8c   : >> { %1304 = vmatprep.subr.bf16.mxu0 %v274_v24  ;;  %v417_v25 = vpop.permute.xlu1 %416 }
  0x8d   : >> { %1305 = vmatpush3.bf16.msra.mxu0 %v274_v24 }
  0x8e   : >> { %1306 = vmatprep.subr.bf16.mxu0 %v272_v23 }
  0x8f   : >> { %v415_v26 = vpop.permute.xlu0 %414 }
  0x90   : >> { %v413_v28 = vpop.permute.xlu1 %412 }
  0x91   : >> { %1307 = vmatpush3.bf16.msra.mxu0 %v272_v23 }
  0x92   : >> { %1322 = vmatprep.subr.bf16.mxu0 %v417_v25 }
  0x93   : >> { %v592_v30 = vpop.permute.xlu0 %591 }
  0x94   : >> { %1309 = vmatmul.mubr.msk.bf16.vlgmr.msra.gmra.mxu0 %vm280_vm0, %v1442_v27 }
  0x95   : >> { %1323 = vmatpush3.bf16.msra.mxu0 %v417_v25  ;;  %v590_v31 = vpop.permute.xlu1 %589  ;;  %1328 = vmatprep.mubr.msk.bf16.mxu0 %vm280_vm0, %v1444_v29 }
  0x96   : >> { %1324 = vmatprep.subr.bf16.mxu0 %v415_v26 }
  0x97   : >> { %v588_v32 = vpop.permute.xlu0 %587 }
  0x99   : >> { %1325 = vmatpush3.bf16.msra.mxu0 %v415_v26  ;;  %v670_v33 = vpop.permute.xlu1 %669 }
  0x9a   : >> { %1326 = vmatprep.subr.bf16.mxu0 %v413_v28  ;;  %1352 = vmatprep.subr.bf16.mxu1 %v670_v33 }
  0x9b   : >> { %1353 = vmatpush3.bf16.msra.mxu1 %v670_v33  ;;  %v668_v34 = vpop.permute.xlu0 %667 }
  0x9c   : >> { %1354 = vmatprep.subr.bf16.mxu1 %v668_v34 }
  0x9d   : >> { %1327 = vmatpush3.bf16.msra.mxu0 %v413_v28  ;;  %v666_v36 = vpop.permute.xlu1 %665 }
  0x9e   : >> { %1342 = vmatprep.subr.bf16.mxu0 %v592_v30 }
  0x9f   : >> { %1355 = vmatpush3.bf16.msra.mxu1 %v668_v34  ;;  %v845_v38 = vpop.permute.xlu0 %844 }
  0xa0   : >> { %1329 = vmatmul.mubr.msk.bf16.vlgmr.msra.gmra.mxu0 %vm280_vm0, %v1445_v35  ;;  %1356 = vmatprep.subr.bf16.mxu1 %v666_v36 }
  0xa1   : >> { %1343 = vmatpush3.bf16.msra.mxu0 %v592_v30  ;;  %1348 = vmatprep.mubr.msk.bf16.mxu0 %vm280_vm0, %v1448_v37  ;;  %v923_v46 = vpop.permute.xlu1 %922 }
  0xa2   : >> { %1344 = vmatprep.subr.bf16.mxu0 %v590_v31 }
  0xa3   : >> { %1357 = vmatpush3.bf16.msra.mxu1 %v666_v36  ;;  %v843_v40 = vpop.permute.xlu0 %842 }
  0xa4   : >> { %1372 = vmatprep.subr.bf16.mxu1 %v845_v38 }
  0xa5   : >> { %1345 = vmatpush3.bf16.msra.mxu0 %v590_v31  ;;  %v921_v48 = vpop.permute.xlu1 %920 }
  0xa6   : >> { %1346 = vmatprep.subr.bf16.mxu0 %v588_v32  ;;  %1359 = vmatmul.mubr.msk.bf16.vlgmr.msra.gmra.mxu1 %vm280_vm0, %v1451_v39 }
  0xa7   : >> { %1373 = vmatpush3.bf16.msra.mxu1 %v845_v38  ;;  %1378 = vmatprep.mubr.msk.bf16.mxu1 %vm280_vm0, %v1454_v41  ;;  %v841_v43 = vpop.permute.xlu0 %840 }
  0xa8   : >> { %1374 = vmatprep.subr.bf16.mxu1 %v843_v40 }
  0xa9   : >> { %1347 = vmatpush3.bf16.msra.mxu0 %v588_v32  ;;  %v919_v50 = vpop.permute.xlu1 %918 }
  0xaa   : >> { %1362 = vmatprep.subr.bf16.mxu0 %v1589_v10 }
  0xab   : >> { %1375 = vmatpush3.bf16.msra.mxu1 %v843_v40 }
  0xac   : >> { %1349 = vmatmul.mubr.msk.bf16.vlgmr.msra.gmra.mxu0 %vm280_vm0, %v1449_v42  ;;  %1376 = vmatprep.subr.bf16.mxu1 %v841_v43 }
  0xad   : >> { %1363 = vmatpush3.bf16.msra.mxu0 %v1589_v10  ;;  %1368 = vmatprep.mubr.msk.bf16.mxu0 %vm280_vm0, %v1452_v44 }
  0xae   : >> { %1364 = vmatprep.subr.bf16.mxu0 %v1601_v13 }
  0xaf   : >> { %1377 = vmatpush3.bf16.msra.mxu1 %v841_v43 }
  0xb1   : >> { %1365 = vmatpush3.bf16.msra.mxu0 %v1601_v13 }
  0xb2   : >> { %1366 = vmatprep.subr.bf16.mxu0 %v1610_v14  ;;  %1379 = vmatmul.mubr.msk.bf16.vlgmr.msra.gmra.mxu1 %vm280_vm0, %v1455_v45 }
  0xb4   : >> { %v990_v28 = vpop.permute.xlu0 %989 }
  0xb5   : >> { %1367 = vmatpush3.bf16.msra.mxu0 %v1610_v14 }
  0xb6   : >> { %1382 = vmatprep.subr.bf16.mxu0 %v923_v46  ;;  %v995_v34 = vpop.permute.xlu1 %994 }
  0xb8   : >> { %1369 = vmatmul.mubr.msk.bf16.vlgmr.msra.gmra.mxu0 %vm280_vm0, %v1453_v47  ;;  %v1011_v37 = vpop.permute.xlu0 %1010 }
  0xb9   : >> { %1383 = vmatpush3.bf16.msra.mxu0 %v923_v46  ;;  %1388 = vmatprep.mubr.msk.bf16.mxu0 %vm280_vm0, %v1456_v49 }
  0xba   : >> { %1384 = vmatprep.subr.bf16.mxu0 %v921_v48  ;;  %v1000_v43 = vpop.permute.xlu1 %999 }
  0xbc   : >> { %v1021_v49 = vpop.permute.xlu0 %1020 }
  0xbd   : >> { %1385 = vmatpush3.bf16.msra.mxu0 %v921_v48 }
  0xbe   : >> { %1386 = vmatprep.subr.bf16.mxu0 %v919_v50 }
  0xc1   : >> { %1387 = vmatpush3.bf16.msra.mxu0 %v919_v50 }
  0xc4   : >> { %1389 = vmatmul.mubr.msk.bf16.vlgmr.msra.gmra.mxu0 %vm280_vm0, %v1457_v51 }
  0xe1   : >> { %v1320_v52 = vpop.f32.mrf.mxu1 }
  0xe3   : >> { %v386_v53 = vpop.f32.mrf.mxu1 }
  0xe5   : >> { %v1321_v54 = vpop.f32.mrf.mxu1 }
  0xe7   : >> { %v389_v55 = vpop.f32.mrf.mxu1 }
  0xed   : >> { %v1340_v56 = vpop.f32.mrf.mxu1 }
  0xef   : >> { %v558_v57 = vpop.f32.mrf.mxu1 }
  0xf1   : >> { %v1341_v58 = vpop.f32.mrf.mxu1 }
  0xf3   : >> { %v561_v2 = vpop.f32.mrf.mxu1 }
 0x154   : >> { %v1310_v59 = vpop.f32.mrf.mxu0 }
 0x155   : >> { %v395_v11 = vadd.f32 %v1320_v52, %v1310_v59 }
 0x156   : >> { %v321_v60 = vpop.f32.mrf.mxu0 }
 0x157   : >> { %v387_v13 = vadd.f32 %v386_v53, %v321_v60 }
 0x158   : >> { %v1311_v61 = vpop.f32.mrf.mxu0 }
 0x159   : >> { %v1016_v61 = vpop.permute.xlu1 %1015 }
 0x15a   : >> { %v324_v62 = vpop.f32.mrf.mxu0 }
 0x15b   : >> { %v390_v19 = vadd.f32 %v389_v55, %v324_v62 }
 0x160   : >> { %v1330_v63 = vpop.f32.mrf.mxu0 }
 0x161   : >> { %v477_v14 = vadd.f32 %v1330_v63, %v395_v11 }
 0x162   : >> { %v461_v0 = vpop.f32.mrf.mxu0 }
 0x163   : >> { %v475_v16 = vadd.f32 %v461_v0, %v387_v13  ;;  %v574_v20 = vadd.f32 %v1340_v56, %v477_v14 }
 0x164   : >> { %v1331_v1 = vpop.f32.mrf.mxu0 }
 0x165   : >> { %v572_v22 = vadd.f32 %v558_v57, %v475_v16 }
 0x166   : >> { %v1360_v3 = vpop.f32.mrf.mxu1  ;;  %v464_v5 = vpop.f32.mrf.mxu0 }
 0x167   : >> { %v476_v23 = vadd.f32 %v464_v5, %v390_v19 }
 0x168   : >> { %v714_v4 = vpop.f32.mrf.mxu1 }
 0x169   : >> { %v573_v29 = vadd.f32 %v561_v2, %v476_v23 }
 0x16a   : >> { %v1361_v6 = vpop.f32.mrf.mxu1 }
 0x16c   : >> { %v1350_v7 = vpop.f32.mrf.mxu0  ;;  %v717_v10 = vpop.f32.mrf.mxu1 }
 0x16d   : >> { %v652_v24 = vadd.f32 %v1350_v7, %v574_v20 }
 0x16e   : >> { %v636_v8 = vpop.f32.mrf.mxu0 }
 0x16f   : >> { %v650_v26 = vadd.f32 %v636_v8, %v572_v22  ;;  %v730_v30 = vadd.f32 %v1360_v3, %v652_v24 }
 0x170   : >> { %v1351_v9 = vpop.f32.mrf.mxu0 }
 0x171   : >> { %v728_v31 = vadd.f32 %v714_v4, %v650_v26 }
 0x172   : >> { %v1380_v12 = vpop.f32.mrf.mxu1  ;;  %v639_v17 = vpop.f32.mrf.mxu0 }
 0x173   : >> { %v651_v32 = vadd.f32 %v639_v17, %v573_v29 }
 0x174   : >> { %v889_v15 = vpop.f32.mrf.mxu1 }
 0x175   : >> { %v729_v38 = vadd.f32 %v717_v10, %v651_v32 }
 0x176   : >> { %v1381_v18 = vpop.f32.mrf.mxu1 }
 0x178   : >> { %v1370_v21 = vpop.f32.mrf.mxu0  ;;  %v892_v45 = vpop.f32.mrf.mxu1 }
 0x179   : >> { %v827_v33 = vadd.f32 %v1370_v21, %v730_v30 }
 0x17a   : >> { %v811_v25 = vpop.f32.mrf.mxu0 }
 0x17b   : >> { %v825_v35 = vadd.f32 %v811_v25, %v728_v31  ;;  %v905_v39 = vadd.f32 %v1380_v12, %v827_v33 }
 0x17c   : >> { %v1371_v27 = vpop.f32.mrf.mxu0 }
 0x17d   : >> { %v903_v41 = vadd.f32 %v889_v15, %v825_v35 }
 0x17e   : >> { %v814_v36 = vpop.f32.mrf.mxu0 }
 0x17f   : >> { %v826_v42 = vadd.f32 %v814_v36, %v729_v38 }
 0x181   : >> { %v904_v51 = vadd.f32 %v892_v45, %v826_v42 }
 0x184   : >> { %v1390_v40 = vpop.f32.mrf.mxu0 }
 0x185   : >> { %v983_v44 = vadd.f32 %v1390_v40, %v905_v39 }
 0x186   : >> { %v967_v46 = vpop.f32.mrf.mxu0 }
 0x187   : >> { %v1004_v47 = vmul.f32 %v1000_v43, %v983_v44  ;;  %v981_v48 = vadd.f32 %v967_v46, %v903_v41 }
 0x188   : >> { %v1391_v50 = vpop.f32.mrf.mxu0 }
 0x189   : >> { %v1025_v52 = vadd.f32 %v1021_v49, %v1004_v47  ;;  %v1002_v53 = vmul.f32 %v990_v28, %v981_v48 }
 0x18a   : >> { %v970_v54 = vpop.f32.mrf.mxu0 }
 0x18b   : >> { %v1028_v55 = vmax.f32 %v1025_v52, 0.0  ;;  %v1023_v56 = vadd.f32 %v1011_v37, %v1002_v53  ;;  %v982_v57 = vadd.f32 %v970_v54, %v904_v51 }
 0x18d   : >> { %v1255_v58 = vpack.c.bf16 %v1028_v55, %v1028_v55  ;;  %v1026_v59 = vmax.f32 %v1023_v56, 0.0  ;;  %v1003_v60 = vmul.f32 %v995_v34, %v982_v57 }
 0x18f   : >> { %1048 = vst.msk [vmem:[%s1044_s15 + $0x8] sm:$0xf] %vm1045_vm1, %v1255_v58  ;;  %v1253_v62 = vpack.c.bf16 %v1026_v59, %v1026_v59  ;;  %v1024_v63 = vadd.f32 %v1016_v61, %v1003_v60 }
 0x191   : >> { %1046 = vst.msk [vmem:[%s1044_s15] sm:$0xf] %vm1045_vm1, %v1253_v62  ;;  %v1027_v0 = vmax.f32 %v1024_v63, 0.0  ;;  %229 = sbr.rel (!%p227_p5) target bundleno = 17 (0x11), region = 85 }
 0x193   : >> { %v1254_v1 = vpack.c.bf16 %v1027_v0, %v1027_v0 }
 0x195   : >> { %1047 = vst.msk [vmem:[%s1044_s15 + $0x4] sm:$0xf] %vm1045_vm1, %v1254_v1 }
 0x196 PF: > { %s14_s17 = sadd.s32 1, %s1484_s17   ;;  %s1709_s15 = smov %s1480_s16 }
 0x197   : > { %p11_p6 = scmp.ge.s32.totalorder %s14_s17, 4   ;;  %s1710_s16 = smov %s1712_s18 }
 0x199   :  { %13 = sbr.rel (!%p11_p6) target bundleno = 2 (0x2), region = 96 }

// kernel: forward.46
= control target key start
LH: loop header
LB: loop body
LE: loop exit
PB: predicated region body
PF: predicated region fallthrough
CT: control target
= control target key end

     0   :  { %s536_s19 = smov 0   ;;  %s538_s20 = smov 0   ;;  %s588_s0 = inlined_call_operand.vmem [shape: bf16[2,32,24,32], index: 0, kind: input, shape index: {}]   ;;  %s589_s1 = inlined_call_operand.vmem [shape: bf16[1,1,1,24], index: 1, kind: input, shape index: {}]   ;;  %s590_s2 = inlined_call_operand.<no memory space> [shape: f32[1,1], index: 2, kind: input, shape index: {}]   ;;  %s591_s4 = inlined_call_operand.vmem [shape: f32[2,32,1,32], index: 4, kind: output, shape index: {}]   ;;  %s592_s3 = inlined_call_operand.<no memory space> [shape: f32[1,1], index: 3, kind: input, shape index: {}]  }
   0x1   :  { %v9_v0 = vstv %s590_s2  ;;  %v11_v1 = vstv %s592_s3  ;;  %s540_s21 = smov 0  }
   0x2   :  { %10 = vst [vmem:[#allocation2] sm:$0x1] %v9_v0  ;;  %12 = vst [vmem:[#allocation3] sm:$0x1] %v11_v1 }
   0x3 LB: > { %s30_s2 = sadd.s32 1, %s492_s20  ;;  %p410_p0 = scmp.ge.s32.totalorder %s496_s21, 1  ;;  %s496_s21 = sphi %s540_s21, %s18_s21   ;;  %s492_s20 = sphi %s538_s20, %s594_s20   ;;  %s488_s19 = sphi %s536_s19, %s593_s19  }
   0x4   : > { %p32_p1 = scmp.ge.s32.totalorder %s30_s2, 2  ;;  %p180_p2 = scmp.lt.s32.totalorder %s496_s21, 3 }
   0x6   : > { %s596_s2 = smov (%p32_p1, %s30_s2), 0  ;;  %p181_p3 = pnand %p410_p0, %p180_p2 }
   0x7   : > { %p209_p4 = scmp.lt.s32.totalorder (!%p181_p3), %s488_s19, 1  ;;  %s564_s29 = smov (!%p181_p3), 0  }
   0x8   : > { %184 = sbr.rel (%p181_p3) target bundleno = 228 (0xe4), region = 36 }
   0xd   : > { %s598_s19 = smov (!%p209_p4, %s488_s19), 1 }
   0xe   : > { %s431_s3 = smul.u32 384, %s598_s19  ;;  %s412_s22 = sshll.u32 %s598_s19, 5 }
   0xf   : > { %s557_s25 = scalar_lea.vmem %s591_s4, %s412_s22 }
  0x10   : > { %s562_s28 = scalar_lea.vmem %s588_s0, %s431_s3 }
  0x11 LB: >> { %v502_v2 = vmov 0.0   ;;  %vm503_vm0 = vmmov 0   ;;  %v296_v3 = vld [vmem:[#allocation2] sm:$0x1]  ;;  %s419_s30 = smul.u32 12, %s500_s29  ;;  %v504_v4 = vmov 0   ;;  %v302_v10 = vlaneseq  ;;  %s318_s8 = scalar_lea.vmem %s557_s25, %s500_s29  ;;  %s500_s29 = sphi %s564_s29, %s230_s29  }
  0x12   : >> { %423 = vmatprep.subr.bf16.mxu0 %v502_v2  ;;  %427 = vmatprep.mubr.msk.bf16.mxu0 %vm503_vm0, %v502_v2  ;;  %vm252_vm1 = vcmask 1043456   ;;  %v307_v5 = vld [vmem:[#allocation3] sm:$0x1]  ;;  %v238_v9 = vld [vmem:[%s589_s1] sm:$0x1]  ;;  %vm248_vm2 = vcmask 195584  }
  0x13   : >> { %467 = vset.pattern.permute.xlu0 %v504_v4  ;;  %s234_s5 = scalar_lea.vmem %s562_s28, %s419_s30  ;;  %v303_v11 = vshrl.u32 %v302_v10, 7  ;;  %vm319_vm3 = vcmask 253952   ;;  %s230_s29 = sadd.s32 1, %s500_s29  }
  0x14   : >> { %299 = vperm.xlu0 %467, %v296_v3   ;;  %v468_v6 = vld [vmem:[%s234_s5 + $0x8] ss:$0 sps:$4 sm:$0xff]   ;;  %v469_v8 = vld [vmem:[%s234_s5] sm:$0xff]   ;;  %p227_p5 = scmp.ge.s32.totalorder %s230_s29, 32  }
  0x15   : >> { %v254_v7 = vsel %vm252_vm1, %v468_v6, 0  ;;  %v304_v13 = vsub.s32 0, %v303_v11 }
  0x16   : >> { %424 = vmatpush3.bf16.msra.mxu0 %v254_v7 }
  0x17   : >> { %425 = vmatprep.subr.bf16.mxu0 %v502_v2 }
  0x18   : >> { %310 = vperm.xlu0 %467, %v307_v5  }
  0x1a   : >> { %426 = vmatpush3.bf16.msra.mxu0 %v469_v8 }
  0x1d   : >> { %428 = vmatmul.mubr.msk.bf16.vlgmr.msra.gmra.mxu0 %vm248_vm2, %v238_v9 }
  0x8f   : >> { %v300_v12 = vpop.permute.xlu0 %299 }
  0x90   : >> { %v305_v14 = vrot.slane %v300_v12, %v304_v13 }
  0x93   : >> { %v311_v15 = vpop.permute.xlu0 %310 }
  0x94   : >> { %v316_v17 = vrot.slane %v311_v15, %v304_v13 }
  0xdd   : >> { %v290_v16 = vpop.f32.mrf.mxu0 }
  0xde   : >> { %v306_v18 = vmul.f32 %v305_v14, %v290_v16 }
  0xdf   : >> { %v429_v19 = vpop.f32.mrf.mxu0  ;;  %229 = sbr.rel (!%p227_p5) target bundleno = 17 (0x11), region = 75 }
  0xe0   : >> { %v317_v20 = vadd.f32 %v316_v17, %v306_v18 }
  0xe1   : >> { %v293_v21 = vpop.f32.mrf.mxu0 }
  0xe2   : >> { %320 = vst.msk [vmem:[%s318_s8] sm:$0x1] %vm319_vm3, %v317_v20 }
  0xe3   : >> { %v430_v22 = vpop.f32.mrf.mxu0 }
  0xe4 PF: > { %s18_s21 = sadd.s32 1, %s496_s21   ;;  %s593_s19 = smov %s492_s20 }
  0xe5   : > { %p15_p6 = scmp.ge.s32.totalorder %s18_s21, 4   ;;  %s594_s20 = smov %s596_s2 }
  0xe7   :  { %17 = sbr.rel (!%p15_p6) target bundleno = 3 (0x3), region = 86 }

// kernel: forward.47
= control target key start
LH: loop header
LB: loop body
LE: loop exit
PB: predicated region body
PF: predicated region fallthrough
CT: control target
= control target key end

     0   :  { %8 = vsyncpa [#allocation3], 0  ;;  %s549_s0 = inlined_call_operand.vmem [shape: f32[2,32,32], index: 0, kind: input, shape index: {}]   ;;  %s550_s1 = inlined_call_operand.vmem [shape: f32[2,32,32], index: 1, kind: output, shape index: {0}]   ;;  %s551_s2 = inlined_call_operand.hbm [shape: f32[2,1,1], index: 2, kind: output, shape index: {1}]  }
   0x1   :  { %10 = vsyncpa [#allocation3 + $0x1], 0  ;;  %s432_s9 = smov 0   ;;  %s434_s10 = smov 0  }
   0x2   :  { %s436_s11 = smov 0   ;;  %s438_s12 = smov 0  }
   0x3 LB: > { %s453_s13 = sadd.s32 4294967295, %s414_s12   ;;  %s296_s14 = sadd.s32 4294967294, %s414_s12   ;;  %s414_s12 = sphi %s438_s12, %s557_s12   ;;  %s410_s11 = sphi %s436_s11, %s556_s11   ;;  %s406_s10 = sphi %s434_s10, %s555_s10   ;;  %s402_s9 = sphi %s432_s9, %s554_s9  }
   0x4   : > { %s457_s15 = sadd.s32 1, %s414_s12   ;;  %s75_s16 = sadd.s32 1, %s410_s11 }
   0x5   : > { %s72_s17 = ssub.s32 %s414_s12, %s457_s15  ;;  %p85_p0 = scmp.ne.s32.totalorder %s410_s11, %s406_s10 }
   0x6   : > { %p73_p1 = scmp.eq.s32.totalorder %s72_s17, 0  ;;  %p86_p2 = scmp.eq.s32.totalorder %s453_s13, 1 }
   0x7   : > { %p91_p3 = scmp.ne.s32.totalorder %s406_s10, %s402_s9  ;;  %p92_p4 = scmp.eq.s32.totalorder %s296_s14, 1 }
   0x8   : > { %s468_s18 = scalar_select %p73_p1, %s410_s11, %s75_s16  }
   0x9   : > { %p470_p5 = por %p86_p2, %p85_p0  ;;  %p474_p6 = por %p92_p4, %p91_p3 }
   0xa   : > { %p299_p7 = scmp.ge.s32.totalorder %s414_s12, 1  ;;  %p118_p8 = scmp.lt.s32.totalorder %s414_s12, 3 }
   0xc   : > { %p119_p9 = pnand %p299_p7, %p118_p8 }
   0xd   : > { %p144_p10 = scmp.lt.s32.totalorder (!%p119_p9), %s453_s13, 1  ;;  %s142_s27 = sand.u32 (!%p119_p9), 1, %s406_s10  }
   0xe   : > { %122 = sbr.rel (%p119_p9) target bundleno = 316 (0x13c), region = 24  ;;  %s304_s28 = sshll.u32 (!%p119_p9), %s453_s13, 4 }
   0xf   : > { %s143_s29 = scalar_lea.vmem (!%p119_p9), [#allocation2], %s142_s27  ;;  %s201_s16 = scalar_lea.sflag (!%p119_p9), [#allocation3], %s142_s27 }
  0x10   : > { %s216_s30 = sshll.u32 (!%p119_p9), %s143_s29, 4  ;;  %s506_s30 = int_to_ptr.vmem [resolvable:$true] %s216_s30 }
  0x11   : > { %s354_s17 = scalar_lea.vmem (!%p119_p9), %s506_s30, 16 }
  0x12   : > { %p355_p11 = scmp.ne.s32.totalorder (!%p119_p9), %s506_s30, %s354_s17 }
  0x13   : > { %s482_s21 = scalar_select %p144_p10, %s453_s13, 1  ;;  %vm162_vm0 = vcmask 261120   ;;  %vm193_vm1 = vcmask 0  }
  0x14   : > { %s504_s13 = scalar_lea.hbm %s551_s2, %s304_s28  ;;  %p356_p12 = pnand %p355_p11, %p470_p5 }
  0x15   : > { %s307_s22 = sshll.u32 %s482_s21, 5  ;;  %s416_s21 = smov [#allocation2]  }
  0x16   : > { %s148_s25 = scalar_lea.vmem %s549_s0, %s307_s22  ;;  %s153_s5 = scalar_lea.vmem %s550_s1, %s307_s22 }
  0x17   : > { %v154_v0 = vld [vmem:[%s148_s25] sm:$0xff]  ;;  %v155_v1 = vld [vmem:[%s148_s25 + $0x8] sm:$0xff]  ;;  %v156_v2 = vld [vmem:[%s148_s25 + $0x10] sm:$0xff]  ;;  %p357_p13 = pneg %p356_p12  ;;  %s358_s22 = sshll.u32 %s416_s21, 4  ;;  %s359_s22 = int_to_ptr.vmem [resolvable:$false] %s358_s22 }
  0x18   : > { %v157_v3 = vld [vmem:[%s148_s25 + $0x18] sm:$0xff]  ;;  %v158_v4 = vmul.f32 %v154_v0, %v154_v0  ;;  %v159_v5 = vmul.f32 %v155_v1, %v155_v1  ;;  %v160_v6 = vmul.f32 %v156_v2, %v156_v2  ;;  %s360_s23 = scalar_lea.vmem %s359_s22, 32  ;;  %p361_p0 = scmp.lt.s32.totalorder %s506_s30, %s359_s22 }
  0x19   : > { %v161_v7 = vmul.f32 %v157_v3, %v157_v3  ;;  %p362_p1 = scmp.lt.s32.totalorder %s360_s23, %s354_s17 }
  0x1a   : > { %v163_v8 = vsel %vm162_vm0, %v158_v4, 0.0  ;;  %v164_v9 = vsel %vm162_vm0, %v159_v5, 0.0  ;;  %v166_v10 = vsel %vm162_vm0, %v160_v6, 0.0 }
  0x1b   : > { %v165_v11 = vadd.f32 %v164_v9, %v163_v8  ;;  %v168_v12 = vsel %vm162_vm0, %v161_v7, 0.0  ;;  %p363_p2 = por %p362_p1, %p361_p0 }
  0x1d   : > { %v167_v13 = vadd.f32 %v166_v10, %v165_v11  ;;  %p364_p3 = pnand %p363_p2, %p357_p13 }
  0x1f   : > { %v169_v14 = vadd.f32 %v168_v12, %v167_v13 }
  0x21   : > { %170 = vadd.xlane.f32.xlu0 %v169_v14 }
  0xaa   : > { %v171_v15 = vpop.xlane.xlu0 %170 }
  0xab   : > { %v172_v16 = vrot.slane %v171_v15, 4 }
  0xad   : > { %v173_v17 = vadd.f32 %v172_v16, %v171_v15 }
  0xaf   : > { %v174_v18 = vrot.slane %v173_v17, 2 }
  0xb1   : > { %v175_v19 = vadd.f32 %v174_v18, %v173_v17 }
  0xb3   : > { %v176_v20 = vrot.slane %v175_v19, 1 }
  0xb5   : > { %v177_v21 = vadd.f32 %v176_v20, %v175_v19 }
  0xb7   : > { %309 = vpush %v177_v21 }
  0xe8   : > { %s310_s26 = spop %309 }
  0xe9   : > { %v179_v22 = vstv %s310_s26 }
  0xea   : > { %352 = vrsqrt.f32 %v179_v22 }
  0xf7   : > { %v353_v23 = vpop.eup %352 }
  0xf8   : > { %311 = vpush %v353_v23 }
 0x129   : > { %s312_s6 = spop %311 }
 0x12a   : > { %v182_v24 = vstv %s312_s6  ;;  %s191_s7 = smul.f32 %s312_s6, %s310_s26 }
 0x12b   : > { %v183_v25 = vmul.f32 %v182_v24, %v154_v0  ;;  %v184_v26 = vmul.f32 %v182_v24, %v155_v1  ;;  %v185_v27 = vmul.f32 %v182_v24, %v156_v2  ;;  %v186_v28 = vmul.f32 %v182_v24, %v157_v3 }
 0x12c   : > { %v192_v29 = vstv %s191_s7 }
 0x12d   : > { %187 = vst.msk [vmem:[%s153_s5] sm:$0xff] %vm162_vm0, %v183_v25  ;;  %188 = vst.msk [vmem:[%s153_s5 + $0x8] sm:$0xff] %vm162_vm0, %v184_v26 }
 0x12e   : > { %189 = vst.msk [vmem:[%s153_s5 + $0x10] sm:$0xff] %vm162_vm0, %v185_v27  ;;  %190 = vst.msk [vmem:[%s153_s5 + $0x18] sm:$0xff] %vm162_vm0, %v186_v28 }
 0x12f   : > { %194 = vst.msk [vmem:[%s143_s29] sm:$0x1] %vm193_vm1, %v192_v29 }
 0x130   : > { %367 = shalt.err (!%p364_p3)
}
 0x131   : > { %s368_s24 = scalar_lea.hbm %s504_s13, 16  ;;  %s372_s27 = scalar_lea.hbm %s551_s2, 32 }
 0x132   : > { %p369_p4 = scmp.ne.s32.totalorder %s504_s13, %s368_s24  ;;  %p373_p9 = scmp.lt.s32.totalorder %s504_s13, %s551_s2 }
 0x133   : > { %p374_p10 = scmp.lt.s32.totalorder %s372_s27, %s368_s24 }
 0x134   : > { %p370_p7 = pnand %p369_p4, %p470_p5 }
 0x135   : > { %p375_p11 = por %p374_p10, %p373_p9 }
 0x136   : > { %p371_p8 = pneg %p370_p7 }
 0x138   : > { %p376_p12 = pnand %p375_p11, %p371_p8 }
 0x13a   : > { %379 = shalt.err (!%p376_p12)
}
 0x13b   : > { %313 = dma.vmem_to_hbm [thread:$0]  (%p470_p5), %s506_s30, 16, %s504_s13, %s201_s16  }
 0x13c PF: > { %p319_p13 = scmp.ge.s32.totalorder %s414_s12, 2  ;;  %s236_s3 = sand.u32 1, %s402_s9  }
 0x13d   : > { %s237_s4 = scalar_lea.sflag [#allocation3], %s236_s3 }
 0x13e   : > { %p316_p0 = pnand %p319_p13, %p474_p6 }
 0x140   : > { %p317_p1 = pneg %p316_p0 }
 0x142   : > { %397 = dma.done.wait (%p317_p1), %s237_s4, 16  }
 0x143   : > { %399 = vsyncadd (%p317_p1), %s237_s4, 4294967280  ;;  %p13_p2 = scmp.ge.s32.totalorder %s457_s15, 4   ;;  %s554_s9 = smov %s406_s10 }
 0x144   : > { %s555_s10 = smov %s410_s11  ;;  %s556_s11 = smov %s468_s18 }
 0x145   : > { %s557_s12 = smov %s457_s15  ;;  %15 = sbr.rel (!%p13_p2) target bundleno = 3 (0x3), region = 71 }
 0x14a   :  { %241 = vsyncpa [#allocation3], 1 }
 0x14b   :  { %243 = vsyncpa [#allocation3 + $0x1], 1 }

</bundles_post_ra>
